<compile_context>
chip_gen: v7x
topology: tpu7x:2x2x1
jax: 0.10.0
libtpu: 0.0.40
codegen_flags: <defaults>
</compile_context>

<pallas_src>
import numpy as np

import jax
import jax.numpy as jnp
from jax.experimental import pallas as pl
from jax.experimental.pallas import tpu as pltpu

# ----------------------------- layout constants -----------------------------
C1P = 16            # conv1 channels padded 10 -> 16 ; cols packed as j*16 + c
C2P = 32            # conv2 channels padded 20 -> 32 ; cols packed as j2*32 + d
N1 = 24 * C1P       # 384  (multiple of 128)
N2 = 8 * C2P        # 256  (multiple of 128)
K1 = 5 * 28         # 140  fused conv1 contraction depth (5 kernel rows x 28)
KF1 = 4 * N2        # 1024 (4 pooled rows concatenated on lanes)
NF1 = 128           # fc1 out padded 50 -> 128
NOUT = 128          # fc2 out padded 4  -> 128
TB = 64             # batch tile (rows per grid step); safe for v5e/v6e/v7x


def _round_up(n, m):
    return ((n + m - 1) // m) * m


def _shift_rows_up(x, k):
    """result[r, :] = x[r + k, :] (wraps; wrapped rows are never consumed)."""
    return jnp.concatenate([x[k:], x[:k]], axis=0)


def _shift_cols_left(x, k):
    """result[:, v] = x[:, v + k] (wraps; wrapped cols are never consumed)."""
    return jnp.concatenate([x[:, k:], x[:, :k]], axis=1)


# --------------------------------- kernel -----------------------------------
def _multinet_kernel(x_ref, t1_ref, b1_ref, t2_ref, b2_ref,
                     wf1_ref, bf1_ref, wf2_ref, bf2_ref, out_ref):
    tb = x_ref.shape[0]
    xb = x_ref[...].astype(jnp.bfloat16)                  # single upfront cast

    # ---- conv1 (5x5, 1->10): ONE fused K=140 MXU matmul ---------------------
    # a1[b*24 + i, 28*ki + w] = x[b, ki + i, w]  matches t1[28*ki + w, col].
    a1 = jnp.concatenate(
        [xb[:, ki:ki + 24, :].reshape(tb * 24, 28) for ki in range(5)], axis=1)
    y1 = jnp.dot(a1, t1_ref[...], preferred_element_type=jnp.float32)
    y1 = jnp.maximum(y1 + b1_ref[...], 0.0)               # (tb*24, 384) f32

    # ---- maxpool 2x2 #1 (lazy: stretched grid, no compaction) ---------------
    m1 = jnp.maximum(y1, _shift_rows_up(y1, 1))           # pair rows i / i+1
    p1 = jnp.maximum(m1, _shift_cols_left(m1, C1P))       # pair cols j / j+1
    p1 = p1.astype(jnp.bfloat16).reshape(tb, 24, N1)      # single cast for conv2

    # ---- conv2 (5x5, 10->20) as 5 width-Toeplitz MXU matmuls (K=384) --------
    # T2 has zero rows for junk columns of p1, so no compaction was needed.
    y2 = None
    for ki in range(5):
        a = p1[:, 2 * ki:2 * ki + 16, :].reshape(tb * 16, N1)
        z = jnp.dot(a, t2_ref[ki], preferred_element_type=jnp.float32)
        y2 = z if y2 is None else y2 + z
    y2 = jnp.maximum(y2 + b2_ref[...], 0.0)               # (tb*16, 256) f32

    # ---- maxpool 2x2 #2 (lazy) ----------------------------------------------
    m2 = jnp.maximum(y2, _shift_rows_up(y2, 2))           # pair rows 4p / 4p+2
    p2 = jnp.maximum(m2, _shift_cols_left(m2, C2P))       # pair cols 64q / +32
    p2 = p2.reshape(tb, 16, N2)

    # ---- flatten: gather the 4 meaningful pooled rows -> (tb, 1024) ---------
    feats = jnp.concatenate([p2[:, 4 * h, :] for h in range(4)], axis=1)
    feats = feats.astype(jnp.bfloat16)

    # ---- fc1 + ReLU (N padded to 128) ---------------------------------------
    h1 = jnp.dot(feats, wf1_ref[...], preferred_element_type=jnp.float32)
    h1 = jnp.maximum(h1 + bf1_ref[...], 0.0)
    # TODO(synk): F.dropout is identity in eval mode; training-mode masking
    # (and the unused self.conv2_drop) are not implemented.

    # ---- fc2 (N padded to 128, lane-dense store) ----------------------------
    out = jnp.dot(h1.astype(jnp.bfloat16), wf2_ref[...],
                  preferred_element_type=jnp.float32) + bf2_ref[...]
    out_ref[...] = out.astype(out_ref.dtype)


# ------------------------------- host wrapper --------------------------------
@jax.jit
def multinet_forward(params, x_nchw):
    """MultiNet.forward (eval mode).  x_nchw: (B, 1, 28, 28) f32 -> (B, 4)."""
    B = x_nchw.shape[0]
    assert x_nchw.shape[1:] == (1, 28, 28)
    xs = x_nchw.reshape(B, 28, 28).astype(jnp.float32)

    tb = min(TB, _round_up(B, 8))          # don't over-pad tiny batches
    Bp = _round_up(B, tb)
    if Bp != B:
        xs = jnp.pad(xs, ((0, Bp - B), (0, 0), (0, 0)))

    out = pl.pallas_call(
        _multinet_kernel,
        out_shape=jax.ShapeDtypeStruct((Bp, NOUT), jnp.float32),
        grid=(Bp // tb,),
        in_specs=[
            pl.BlockSpec((tb, 28, 28), lambda i: (i, 0, 0)),   # batch tile
            pl.BlockSpec((K1, N1), lambda i: (0, 0)),          # conv1 Toeplitz
            pl.BlockSpec((1, N1), lambda i: (0, 0)),           # conv1 bias row
            pl.BlockSpec((5, N1, N2), lambda i: (0, 0, 0)),    # conv2 Toeplitz
            pl.BlockSpec((1, N2), lambda i: (0, 0)),           # conv2 bias row
            pl.BlockSpec((KF1, NF1), lambda i: (0, 0)),        # fc1 weight
            pl.BlockSpec((1, NF1), lambda i: (0, 0)),          # fc1 bias row
            pl.BlockSpec((NF1, NOUT), lambda i: (0, 0)),       # fc2 weight
            pl.BlockSpec((1, NOUT), lambda i: (0, 0)),         # fc2 bias row
        ],
        out_specs=pl.BlockSpec((tb, NOUT), lambda i: (i, 0)),
        compiler_params=pltpu.CompilerParams(
            dimension_semantics=("parallel",),
            vmem_limit_bytes=48 * 1024 * 1024),
    )(xs, params["t1"], params["b1r"], params["t2"], params["b2r"],
      params["wf1"], params["bf1r"], params["wf2"], params["bf2r"])
    return out[:B, :4]


# ----------------------- parameter init & preparation ------------------------
def init_params(key):
    """Raw params with PyTorch layer shapes and U(-1/sqrt(fan_in), ..) init."""
    def uni(k, shape, fan_in):
        bound = 1.0 / (fan_in ** 0.5)
        return jax.random.uniform(k, shape, jnp.float32, -bound, bound)

    ks = jax.random.split(key, 8)
    return {
        "w1": uni(ks[0], (10, 1, 5, 5), 25),   "b1": uni(ks[1], (10,), 25),
        "w2": uni(ks[2], (20, 10, 5, 5), 250), "b2": uni(ks[3], (20,), 250),
        "wf1": uni(ks[4], (50, 320), 320),     "bf1": uni(ks[5], (50,), 320),
        "wf2": uni(ks[6], (4, 50), 50),        "bf2": uni(ks[7], (4,), 50),
    }


def prepare_params(raw):
    """One-time host transform of PyTorch-shaped weights into the lane-dense,
    Toeplitz-banded matrices the fused kernel consumes."""
    w1 = np.asarray(raw["w1"], np.float32)   # (10, 1, 5, 5)
    b1 = np.asarray(raw["b1"], np.float32)
    w2 = np.asarray(raw["w2"], np.float32)   # (20, 10, 5, 5)
    b2 = np.asarray(raw["b2"], np.float32)
    wf1 = np.asarray(raw["wf1"], np.float32)  # (50, 320)
    bf1 = np.asarray(raw["bf1"], np.float32)
    wf2 = np.asarray(raw["wf2"], np.float32)  # (4, 50)
    bf2 = np.asarray(raw["bf2"], np.float32)

    # conv1: T1[28*ki + w, 16*j + c] = w1[c, 0, ki, w - j]  (0 <= w-j <= 4, c<10)
    w_idx = np.arange(28)[:, None]
    col1 = np.arange(N1)[None, :]
    j1, c1 = col1 // C1P, col1 % C1P
    kj1 = w_idx - j1
    ok1 = (kj1 >= 0) & (kj1 <= 4) & (c1 < 10)
    t1 = np.zeros((5, 28, N1), np.float32)
    for ki in range(5):
        t1[ki] = np.where(ok1, w1[np.clip(c1, 0, 9), 0, ki, np.clip(kj1, 0, 4)], 0.0)
    t1 = t1.reshape(K1, N1)                  # fused K=140 conv1 weight
    b1r = np.where(np.arange(N1) % C1P < 10,
                   b1[np.clip(np.arange(N1) % C1P, 0, 9)], 0.0)[None, :]

    # conv2 over the stretched, lazily-pooled conv1 grid:
    #   input col u = 32*q + c (meaningful iff c = u%32 < 10)
    #   T2[ki, u, 32*j2 + d] = w2[d, c, ki, q - j2]
    u = np.arange(N1)[:, None]
    col2 = np.arange(N2)[None, :]
    qin, cin = u // 32, u % 32
    j2, d2 = col2 // C2P, col2 % C2P
    kj2 = qin - j2
    ok2 = (kj2 >= 0) & (kj2 <= 4) & (cin < 10) & (d2 < 20)
    t2 = np.zeros((5, N1, N2), np.float32)
    for ki in range(5):
        t2[ki] = np.where(
            ok2,
            w2[np.clip(d2, 0, 19), np.clip(cin, 0, 9), ki, np.clip(kj2, 0, 4)],
            0.0)
    b2r = np.where(np.arange(N2) % C2P < 20,
                   b2[np.clip(np.arange(N2) % C2P, 0, 19)], 0.0)[None, :]

    # fc1: kernel feeds feats[b, g] = P2[b, p, q, d] with
    #   p = g // 256, v = g % 256, q = v // 64, d = v % 64 (meaningful iff d<20)
    # PyTorch flatten index of x.view(-1, 320) is d*16 + p*4 + q.
    g = np.arange(KF1)[:, None]
    n = np.arange(NF1)[None, :]
    pg, vg = g // N2, g % N2
    qg, dg = vg // 64, vg % 64
    flat = np.clip(dg, 0, 19) * 16 + pg * 4 + qg
    okf = (dg < 20) & (n < 50)
    wf1p = np.where(okf, wf1[np.clip(n, 0, 49), flat], 0.0)
    bf1r = np.zeros((1, NF1), np.float32)
    bf1r[0, :50] = bf1

    wf2p = np.zeros((NF1, NOUT), np.float32)
    wf2p[:50, :4] = wf2.T
    bf2r = np.zeros((1, NOUT), np.float32)
    bf2r[0, :4] = bf2

    bf16 = jnp.bfloat16
    return {
        "t1": jnp.asarray(t1, bf16),   "b1r": jnp.asarray(b1r, jnp.float32),
        "t2": jnp.asarray(t2, bf16),   "b2r": jnp.asarray(b2r, jnp.float32),
        "wf1": jnp.asarray(wf1p, bf16), "bf1r": jnp.asarray(bf1r, jnp.float32),
        "wf2": jnp.asarray(wf2p, bf16), "bf2r": jnp.asarray(bf2r, jnp.float32),
    }


# ----------------------------- pure-JAX reference ----------------------------
def multinet_reference(raw, x_nchw):
    """f32 reference matching PyTorch MultiNet.forward (eval mode)."""
    dn = ("NCHW", "OIHW", "NCHW")
    y = jax.lax.conv_general_dilated(x_nchw, raw["w1"], (1, 1), "VALID",
                                     dimension_numbers=dn)
    y = jax.nn.relu(y + raw["b1"][None, :, None, None])
    B, C, H, W = y.shape
    y = y.reshape(B, C, H // 2, 2, W // 2, 2).max(axis=(3, 5))
    y = jax.lax.conv_general_dilated(y, raw["w2"], (1, 1), "VALID",
                                     dimension_numbers=dn)
    y = jax.nn.relu(y + raw["b2"][None, :, None, None])
    B, C, H, W = y.shape
    y = y.reshape(B, C, H // 2, 2, W // 2, 2).max(axis=(3, 5))
    feats = y.reshape(B, -1)                  # (B, 20*4*4) channel-major
    h = jax.nn.relu(feats @ raw["wf1"].T + raw["bf1"])
    return h @ raw["wf2"].T + raw["bf2"]


if __name__ == "__main__":
    key = jax.random.PRNGKey(0)
    pkey, xkey = jax.random.split(key)
    raw = init_params(pkey)
    params = prepare_params(raw)
    # MNIST-like input (the 4*4*20 flatten implies 28x28 single-channel input).
    x = jax.random.normal(xkey, (2, 1, 28, 28), dtype=jnp.float32)
    out = jax.block_until_ready(multinet_forward(params, x))
    assert out.shape == (2, 4) and out.dtype == jnp.float32
    assert bool(jnp.all(jnp.isfinite(out)))
    # Sanity check against the f32 reference (kernel uses bf16 matmul operands
    # with f32 accumulation, so use a loose tolerance).
    ref = np.asarray(multinet_reference(raw, x))
    np.testing.assert_allclose(np.asarray(out), ref, rtol=2e-1, atol=1e-1)
    print("KERNEL_OK")
</pallas_src>

<mosaic_0001>
module attributes {stable_mosaic.version = 11 : i64} {
  func.func @_multinet_kernel(%arg0: i32, %arg1: memref<8x28x28xf32, #tpu.memory_space<vmem>>, %arg2: memref<140x384xbf16, #tpu.memory_space<vmem>>, %arg3: memref<1x384xf32, #tpu.memory_space<vmem>>, %arg4: memref<5x384x256xbf16, #tpu.memory_space<vmem>>, %arg5: memref<1x256xf32, #tpu.memory_space<vmem>>, %arg6: memref<1024x128xbf16, #tpu.memory_space<vmem>>, %arg7: memref<1x128xf32, #tpu.memory_space<vmem>>, %arg8: memref<128x128xbf16, #tpu.memory_space<vmem>>, %arg9: memref<1x128xf32, #tpu.memory_space<vmem>>, %arg10: memref<8x128xf32, #tpu.memory_space<vmem>>) attributes {dimension_semantics = [#tpu.dimension_semantics<parallel>], iteration_bounds = array<i64: 1>, scalar_prefetch = 0 : i64, scratch_operands = 0 : i64, tpu.core_type = #tpu.core_type<tc>, window_params = [{transform_indices = @transform_0, window_bounds = array<i64: 8, 28, 28>}, {pipeline_mode = #tpu.pipeline_mode<synchronous>, transform_indices = @transform_1, window_bounds = array<i64: 140, 384>}, {pipeline_mode = #tpu.pipeline_mode<synchronous>, transform_indices = @transform_2, window_bounds = array<i64: 1, 384>}, {pipeline_mode = #tpu.pipeline_mode<synchronous>, transform_indices = @transform_3, window_bounds = array<i64: 5, 384, 256>}, {pipeline_mode = #tpu.pipeline_mode<synchronous>, transform_indices = @transform_4, window_bounds = array<i64: 1, 256>}, {pipeline_mode = #tpu.pipeline_mode<synchronous>, transform_indices = @transform_5, window_bounds = array<i64: 1024, 128>}, {pipeline_mode = #tpu.pipeline_mode<synchronous>, transform_indices = @transform_6, window_bounds = array<i64: 1, 128>}, {pipeline_mode = #tpu.pipeline_mode<synchronous>, transform_indices = @transform_7, window_bounds = array<i64: 128, 128>}, {pipeline_mode = #tpu.pipeline_mode<synchronous>, transform_indices = @transform_8, window_bounds = array<i64: 1, 128>}, {transform_indices = @transform_9, window_bounds = array<i64: 8, 128>}]} {
    %c0 = arith.constant 0 : index
    %c0_0 = arith.constant 0 : index
    %c0_1 = arith.constant 0 : index
    %0 = vector.load %arg1[%c0, %c0_0, %c0_1] : memref<8x28x28xf32, #tpu.memory_space<vmem>>, vector<8x28x28xf32>
    %1 = arith.truncf %0 : vector<8x28x28xf32> to vector<8x28x28xbf16>
    %2 = vector.extract_strided_slice %1 {offsets = [0, 0, 0], sizes = [8, 24, 28], strides = [1, 1, 1]} : vector<8x28x28xbf16> to vector<8x24x28xbf16>
    %3 = vector.shape_cast %2 : vector<8x24x28xbf16> to vector<192x28xbf16>
    %4 = vector.extract_strided_slice %1 {offsets = [0, 1, 0], sizes = [8, 24, 28], strides = [1, 1, 1]} : vector<8x28x28xbf16> to vector<8x24x28xbf16>
    %5 = vector.shape_cast %4 : vector<8x24x28xbf16> to vector<192x28xbf16>
    %6 = vector.extract_strided_slice %1 {offsets = [0, 2, 0], sizes = [8, 24, 28], strides = [1, 1, 1]} : vector<8x28x28xbf16> to vector<8x24x28xbf16>
    %7 = vector.shape_cast %6 : vector<8x24x28xbf16> to vector<192x28xbf16>
    %8 = vector.extract_strided_slice %1 {offsets = [0, 3, 0], sizes = [8, 24, 28], strides = [1, 1, 1]} : vector<8x28x28xbf16> to vector<8x24x28xbf16>
    %9 = vector.shape_cast %8 : vector<8x24x28xbf16> to vector<192x28xbf16>
    %10 = vector.extract_strided_slice %1 {offsets = [0, 4, 0], sizes = [8, 24, 28], strides = [1, 1, 1]} : vector<8x28x28xbf16> to vector<8x24x28xbf16>
    %11 = vector.shape_cast %10 : vector<8x24x28xbf16> to vector<192x28xbf16>
    %12 = tpu.concatenate %3, %5, %7, %9, %11 in 1 : vector<192x28xbf16>, vector<192x28xbf16>, vector<192x28xbf16>, vector<192x28xbf16>, vector<192x28xbf16> -> vector<192x140xbf16>
    %c0_2 = arith.constant 0 : index
    %c0_3 = arith.constant 0 : index
    %13 = vector.load %arg2[%c0_2, %c0_3] : memref<140x384xbf16, #tpu.memory_space<vmem>>, vector<140x384xbf16>
    %cst = arith.constant dense<0.000000e+00> : vector<192x384xf32>
    %14 = tpu.matmul %12, %13, %cst {dimension_numbers = #tpu.dot_dimension_numbers<[1], [0], [0], [1], [0, 0, 1, 1], [], []>} : vector<192x140xbf16>, vector<140x384xbf16>, vector<192x384xf32> -> vector<192x384xf32>
    %c0_4 = arith.constant 0 : index
    %c0_5 = arith.constant 0 : index
    %15 = vector.load %arg3[%c0_4, %c0_5] : memref<1x384xf32, #tpu.memory_space<vmem>>, vector<1x384xf32>
    %16 = vector.broadcast %15 : vector<1x384xf32> to vector<192x384xf32>
    %17 = arith.addf %14, %16 : vector<192x384xf32>
    %cst_6 = arith.constant 0.000000e+00 : f32
    %18 = vector.broadcast %cst_6 : f32 to vector<192x384xf32>
    %19 = arith.maximumf %17, %18 : vector<192x384xf32>
    %20 = vector.extract_strided_slice %19 {offsets = [1, 0], sizes = [191, 384], strides = [1, 1]} : vector<192x384xf32> to vector<191x384xf32>
    %21 = vector.extract_strided_slice %19 {offsets = [0, 0], sizes = [1, 384], strides = [1, 1]} : vector<192x384xf32> to vector<1x384xf32>
    %22 = tpu.concatenate %20, %21 in 0 : vector<191x384xf32>, vector<1x384xf32> -> vector<192x384xf32>
    %23 = arith.maximumf %19, %22 : vector<192x384xf32>
    %24 = vector.extract_strided_slice %23 {offsets = [0, 16], sizes = [192, 368], strides = [1, 1]} : vector<192x384xf32> to vector<192x368xf32>
    %25 = vector.extract_strided_slice %23 {offsets = [0, 0], sizes = [192, 16], strides = [1, 1]} : vector<192x384xf32> to vector<192x16xf32>
    %26 = tpu.concatenate %24, %25 in 1 : vector<192x368xf32>, vector<192x16xf32> -> vector<192x384xf32>
    %27 = arith.maximumf %23, %26 : vector<192x384xf32>
    %28 = arith.truncf %27 : vector<192x384xf32> to vector<192x384xbf16>
    %29 = vector.shape_cast %28 : vector<192x384xbf16> to vector<8x24x384xbf16>
    %30 = vector.extract_strided_slice %29 {offsets = [0, 0, 0], sizes = [8, 16, 384], strides = [1, 1, 1]} : vector<8x24x384xbf16> to vector<8x16x384xbf16>
    %31 = vector.shape_cast %30 : vector<8x16x384xbf16> to vector<128x384xbf16>
    %c0_7 = arith.constant 0 : index
    %c0_8 = arith.constant 0 : index
    %c0_9 = arith.constant 0 : index
    %32 = vector.load %arg4[%c0_7, %c0_8, %c0_9] : memref<5x384x256xbf16, #tpu.memory_space<vmem>>, vector<1x384x256xbf16>
    %33 = vector.shape_cast %32 : vector<1x384x256xbf16> to vector<384x256xbf16>
    %cst_10 = arith.constant dense<0.000000e+00> : vector<128x256xf32>
    %34 = tpu.matmul %31, %33, %cst_10 {dimension_numbers = #tpu.dot_dimension_numbers<[1], [0], [0], [1], [0, 0, 1, 1], [], []>} : vector<128x384xbf16>, vector<384x256xbf16>, vector<128x256xf32> -> vector<128x256xf32>
    %35 = vector.extract_strided_slice %29 {offsets = [0, 2, 0], sizes = [8, 16, 384], strides = [1, 1, 1]} : vector<8x24x384xbf16> to vector<8x16x384xbf16>
    %36 = vector.shape_cast %35 : vector<8x16x384xbf16> to vector<128x384xbf16>
    %c1 = arith.constant 1 : index
    %c0_11 = arith.constant 0 : index
    %c0_12 = arith.constant 0 : index
    %37 = vector.load %arg4[%c1, %c0_11, %c0_12] : memref<5x384x256xbf16, #tpu.memory_space<vmem>>, vector<1x384x256xbf16>
    %38 = vector.shape_cast %37 : vector<1x384x256xbf16> to vector<384x256xbf16>
    %cst_13 = arith.constant dense<0.000000e+00> : vector<128x256xf32>
    %39 = tpu.matmul %36, %38, %cst_13 {dimension_numbers = #tpu.dot_dimension_numbers<[1], [0], [0], [1], [0, 0, 1, 1], [], []>} : vector<128x384xbf16>, vector<384x256xbf16>, vector<128x256xf32> -> vector<128x256xf32>
    %40 = arith.addf %34, %39 : vector<128x256xf32>
    %41 = vector.extract_strided_slice %29 {offsets = [0, 4, 0], sizes = [8, 16, 384], strides = [1, 1, 1]} : vector<8x24x384xbf16> to vector<8x16x384xbf16>
    %42 = vector.shape_cast %41 : vector<8x16x384xbf16> to vector<128x384xbf16>
    %c2 = arith.constant 2 : index
    %c0_14 = arith.constant 0 : index
    %c0_15 = arith.constant 0 : index
    %43 = vector.load %arg4[%c2, %c0_14, %c0_15] : memref<5x384x256xbf16, #tpu.memory_space<vmem>>, vector<1x384x256xbf16>
    %44 = vector.shape_cast %43 : vector<1x384x256xbf16> to vector<384x256xbf16>
    %cst_16 = arith.constant dense<0.000000e+00> : vector<128x256xf32>
    %45 = tpu.matmul %42, %44, %cst_16 {dimension_numbers = #tpu.dot_dimension_numbers<[1], [0], [0], [1], [0, 0, 1, 1], [], []>} : vector<128x384xbf16>, vector<384x256xbf16>, vector<128x256xf32> -> vector<128x256xf32>
    %46 = arith.addf %40, %45 : vector<128x256xf32>
    %47 = vector.extract_strided_slice %29 {offsets = [0, 6, 0], sizes = [8, 16, 384], strides = [1, 1, 1]} : vector<8x24x384xbf16> to vector<8x16x384xbf16>
    %48 = vector.shape_cast %47 : vector<8x16x384xbf16> to vector<128x384xbf16>
    %c3 = arith.constant 3 : index
    %c0_17 = arith.constant 0 : index
    %c0_18 = arith.constant 0 : index
    %49 = vector.load %arg4[%c3, %c0_17, %c0_18] : memref<5x384x256xbf16, #tpu.memory_space<vmem>>, vector<1x384x256xbf16>
    %50 = vector.shape_cast %49 : vector<1x384x256xbf16> to vector<384x256xbf16>
    %cst_19 = arith.constant dense<0.000000e+00> : vector<128x256xf32>
    %51 = tpu.matmul %48, %50, %cst_19 {dimension_numbers = #tpu.dot_dimension_numbers<[1], [0], [0], [1], [0, 0, 1, 1], [], []>} : vector<128x384xbf16>, vector<384x256xbf16>, vector<128x256xf32> -> vector<128x256xf32>
    %52 = arith.addf %46, %51 : vector<128x256xf32>
    %53 = vector.extract_strided_slice %29 {offsets = [0, 8, 0], sizes = [8, 16, 384], strides = [1, 1, 1]} : vector<8x24x384xbf16> to vector<8x16x384xbf16>
    %54 = vector.shape_cast %53 : vector<8x16x384xbf16> to vector<128x384xbf16>
    %c4 = arith.constant 4 : index
    %c0_20 = arith.constant 0 : index
    %c0_21 = arith.constant 0 : index
    %55 = vector.load %arg4[%c4, %c0_20, %c0_21] : memref<5x384x256xbf16, #tpu.memory_space<vmem>>, vector<1x384x256xbf16>
    %56 = vector.shape_cast %55 : vector<1x384x256xbf16> to vector<384x256xbf16>
    %cst_22 = arith.constant dense<0.000000e+00> : vector<128x256xf32>
    %57 = tpu.matmul %54, %56, %cst_22 {dimension_numbers = #tpu.dot_dimension_numbers<[1], [0], [0], [1], [0, 0, 1, 1], [], []>} : vector<128x384xbf16>, vector<384x256xbf16>, vector<128x256xf32> -> vector<128x256xf32>
    %58 = arith.addf %52, %57 : vector<128x256xf32>
    %c0_23 = arith.constant 0 : index
    %c0_24 = arith.constant 0 : index
    %59 = vector.load %arg5[%c0_23, %c0_24] : memref<1x256xf32, #tpu.memory_space<vmem>>, vector<1x256xf32>
    %60 = vector.broadcast %59 : vector<1x256xf32> to vector<128x256xf32>
    %61 = arith.addf %58, %60 : vector<128x256xf32>
    %cst_25 = arith.constant 0.000000e+00 : f32
    %62 = vector.broadcast %cst_25 : f32 to vector<128x256xf32>
    %63 = arith.maximumf %61, %62 : vector<128x256xf32>
    %64 = vector.extract_strided_slice %63 {offsets = [2, 0], sizes = [126, 256], strides = [1, 1]} : vector<128x256xf32> to vector<126x256xf32>
    %65 = vector.extract_strided_slice %63 {offsets = [0, 0], sizes = [2, 256], strides = [1, 1]} : vector<128x256xf32> to vector<2x256xf32>
    %66 = tpu.concatenate %64, %65 in 0 : vector<126x256xf32>, vector<2x256xf32> -> vector<128x256xf32>
    %67 = arith.maximumf %63, %66 : vector<128x256xf32>
    %68 = vector.extract_strided_slice %67 {offsets = [0, 32], sizes = [128, 224], strides = [1, 1]} : vector<128x256xf32> to vector<128x224xf32>
    %69 = vector.extract_strided_slice %67 {offsets = [0, 0], sizes = [128, 32], strides = [1, 1]} : vector<128x256xf32> to vector<128x32xf32>
    %70 = tpu.concatenate %68, %69 in 1 : vector<128x224xf32>, vector<128x32xf32> -> vector<128x256xf32>
    %71 = arith.maximumf %67, %70 : vector<128x256xf32>
    %72 = vector.shape_cast %71 : vector<128x256xf32> to vector<8x16x256xf32>
    %73 = vector.extract_strided_slice %72 {offsets = [0, 0, 0], sizes = [8, 1, 256], strides = [1, 1, 1]} : vector<8x16x256xf32> to vector<8x1x256xf32>
    %74 = vector.shape_cast %73 : vector<8x1x256xf32> to vector<8x256xf32>
    %75 = vector.extract_strided_slice %72 {offsets = [0, 4, 0], sizes = [8, 1, 256], strides = [1, 1, 1]} : vector<8x16x256xf32> to vector<8x1x256xf32>
    %76 = vector.shape_cast %75 : vector<8x1x256xf32> to vector<8x256xf32>
    %77 = vector.extract_strided_slice %72 {offsets = [0, 8, 0], sizes = [8, 1, 256], strides = [1, 1, 1]} : vector<8x16x256xf32> to vector<8x1x256xf32>
    %78 = vector.shape_cast %77 : vector<8x1x256xf32> to vector<8x256xf32>
    %79 = vector.extract_strided_slice %72 {offsets = [0, 12, 0], sizes = [8, 1, 256], strides = [1, 1, 1]} : vector<8x16x256xf32> to vector<8x1x256xf32>
    %80 = vector.shape_cast %79 : vector<8x1x256xf32> to vector<8x256xf32>
    %81 = tpu.concatenate %74, %76, %78, %80 in 1 : vector<8x256xf32>, vector<8x256xf32>, vector<8x256xf32>, vector<8x256xf32> -> vector<8x1024xf32>
    %82 = arith.truncf %81 : vector<8x1024xf32> to vector<8x1024xbf16>
    %c0_26 = arith.constant 0 : index
    %c0_27 = arith.constant 0 : index
    %83 = vector.load %arg6[%c0_26, %c0_27] : memref<1024x128xbf16, #tpu.memory_space<vmem>>, vector<1024x128xbf16>
    %cst_28 = arith.constant dense<0.000000e+00> : vector<8x128xf32>
    %84 = tpu.matmul %82, %83, %cst_28 {dimension_numbers = #tpu.dot_dimension_numbers<[1], [0], [0], [1], [0, 0, 1, 1], [], []>} : vector<8x1024xbf16>, vector<1024x128xbf16>, vector<8x128xf32> -> vector<8x128xf32>
    %c0_29 = arith.constant 0 : index
    %c0_30 = arith.constant 0 : index
    %85 = vector.load %arg7[%c0_29, %c0_30] : memref<1x128xf32, #tpu.memory_space<vmem>>, vector<1x128xf32>
    %86 = vector.broadcast %85 : vector<1x128xf32> to vector<8x128xf32>
    %87 = arith.addf %84, %86 : vector<8x128xf32>
    %cst_31 = arith.constant 0.000000e+00 : f32
    %88 = vector.broadcast %cst_31 : f32 to vector<8x128xf32>
    %89 = arith.maximumf %87, %88 : vector<8x128xf32>
    %90 = arith.truncf %89 : vector<8x128xf32> to vector<8x128xbf16>
    %c0_32 = arith.constant 0 : index
    %c0_33 = arith.constant 0 : index
    %91 = vector.load %arg8[%c0_32, %c0_33] : memref<128x128xbf16, #tpu.memory_space<vmem>>, vector<128x128xbf16>
    %cst_34 = arith.constant dense<0.000000e+00> : vector<8x128xf32>
    %92 = tpu.matmul %90, %91, %cst_34 {dimension_numbers = #tpu.dot_dimension_numbers<[1], [0], [0], [1], [0, 0, 1, 1], [], []>} : vector<8x128xbf16>, vector<128x128xbf16>, vector<8x128xf32> -> vector<8x128xf32>
    %c0_35 = arith.constant 0 : index
    %c0_36 = arith.constant 0 : index
    %93 = vector.load %arg9[%c0_35, %c0_36] : memref<1x128xf32, #tpu.memory_space<vmem>>, vector<1x128xf32>
    %94 = vector.broadcast %93 : vector<1x128xf32> to vector<8x128xf32>
    %95 = arith.addf %92, %94 : vector<8x128xf32>
    %c0_37 = arith.constant 0 : index
    %c0_38 = arith.constant 0 : index
    %96 = vector.load %arg10[%c0_37, %c0_38] : memref<8x128xf32, #tpu.memory_space<vmem>>, vector<8x128xf32>
    tpu.vector_store %arg10[%c0_37, %c0_38], %95 {strides = array<i32>} : memref<8x128xf32, #tpu.memory_space<vmem>>, vector<8x128xf32>,
    return
  }
  func.func @transform_0(%arg0: i32) -> (i32, i32, i32) {
    %c0_i32 = arith.constant 0 : i32
    %c0_i32_0 = arith.constant 0 : i32
    %c0_i32_1 = arith.constant 0 : i32
    return %arg0, %c0_i32, %c0_i32_0 : i32, i32, i32
  }
  func.func @transform_1(%arg0: i32) -> (i32, i32) {
    %c0_i32 = arith.constant 0 : i32
    %c0_i32_0 = arith.constant 0 : i32
    %c0_i32_1 = arith.constant 0 : i32
    return %c0_i32, %c0_i32_0 : i32, i32
  }
  func.func @transform_2(%arg0: i32) -> (i32, i32) {
    %c0_i32 = arith.constant 0 : i32
    %c0_i32_0 = arith.constant 0 : i32
    %c0_i32_1 = arith.constant 0 : i32
    return %c0_i32, %c0_i32_0 : i32, i32
  }
  func.func @transform_3(%arg0: i32) -> (i32, i32, i32) {
    %c0_i32 = arith.constant 0 : i32
    %c0_i32_0 = arith.constant 0 : i32
    %c0_i32_1 = arith.constant 0 : i32
    %c0_i32_2 = arith.constant 0 : i32
    return %c0_i32, %c0_i32_0, %c0_i32_1 : i32, i32, i32
  }
  func.func @transform_4(%arg0: i32) -> (i32, i32) {
    %c0_i32 = arith.constant 0 : i32
    %c0_i32_0 = arith.constant 0 : i32
    %c0_i32_1 = arith.constant 0 : i32
    return %c0_i32, %c0_i32_0 : i32, i32
  }
  func.func @transform_5(%arg0: i32) -> (i32, i32) {
    %c0_i32 = arith.constant 0 : i32
    %c0_i32_0 = arith.constant 0 : i32
    %c0_i32_1 = arith.constant 0 : i32
    return %c0_i32, %c0_i32_0 : i32, i32
  }
  func.func @transform_6(%arg0: i32) -> (i32, i32) {
    %c0_i32 = arith.constant 0 : i32
    %c0_i32_0 = arith.constant 0 : i32
    %c0_i32_1 = arith.constant 0 : i32
    return %c0_i32, %c0_i32_0 : i32, i32
  }
  func.func @transform_7(%arg0: i32) -> (i32, i32) {
    %c0_i32 = arith.constant 0 : i32
    %c0_i32_0 = arith.constant 0 : i32
    %c0_i32_1 = arith.constant 0 : i32
    return %c0_i32, %c0_i32_0 : i32, i32
  }
  func.func @transform_8(%arg0: i32) -> (i32, i32) {
    %c0_i32 = arith.constant 0 : i32
    %c0_i32_0 = arith.constant 0 : i32
    %c0_i32_1 = arith.constant 0 : i32
    return %c0_i32, %c0_i32_0 : i32, i32
  }
  func.func @transform_9(%arg0: i32) -> (i32, i32) {
    %c0_i32 = arith.constant 0 : i32
    %c0_i32_0 = arith.constant 0 : i32
    return %arg0, %c0_i32 : i32, i32
  }
}

</mosaic_0001>

<bundles_post_ra>
// kernel: multinet_forward.1
= control target key start
LH: loop header
LB: loop body
LE: loop exit
PB: predicated region body
PF: predicated region fallthrough
CT: control target
= control target key end

     0   :  { %14 = vsyncpa [#allocation3], 0  ;;  %s13465_s0 = inlined_call_operand.vmem [shape: f32[8,28,28], index: 0, kind: input, shape index: {}]   ;;  %s13466_s1 = inlined_call_operand.hbm [shape: bf16[140,384], index: 1, kind: input, shape index: {}]   ;;  %s13467_s2 = inlined_call_operand.vmem [shape: f32[1,384], index: 2, kind: input, shape index: {}]   ;;  %s13468_s3 = inlined_call_operand.hbm [shape: bf16[5,384,256], index: 3, kind: input, shape index: {}]   ;;  %s13469_s4 = inlined_call_operand.vmem [shape: f32[1,256], index: 4, kind: input, shape index: {}]   ;;  %s13470_s5 = inlined_call_operand.vmem [shape: bf16[1024,128], index: 5, kind: input, shape index: {}]   ;;  %s13471_s6 = inlined_call_operand.vmem [shape: f32[1,128], index: 6, kind: input, shape index: {}]   ;;  %s13472_s7 = inlined_call_operand.hbm [shape: bf16[128,128], index: 7, kind: input, shape index: {}]   ;;  %s13473_s8 = inlined_call_operand.vmem [shape: f32[1,128], index: 8, kind: input, shape index: {}]   ;;  %s13474_s9 = inlined_call_operand.vmem [shape: f32[8,128], index: 9, kind: output, shape index: {}]  }
   0x1   :  { %15 = vsyncpa [#allocation5], 0  ;;  %s9553_s30 = smov [#allocation4]   ;;  %s9483_s13 = scalar_lea.hbm %s13468_s3, 30720 }
   0x2   :  { %s37_s10 = sshll.u32 %s9553_s30, 4  ;;  %p9484_p0 = scmp.ne.s32.totalorder %s13468_s3, %s9483_s13  ;;  %s38_s10 = int_to_ptr.vmem [resolvable:$true] %s37_s10 }
   0x3   :  { %p9487_p1 = scmp.lt.u32.totalorder %s9483_s13, %s13468_s3 }
   0x5   :  { %p9489_p2 = pnand %p9487_p1, %p9484_p0 }
   0x7   :  { %9492 = shalt.err (!%p9489_p2)
}
   0x8   :  { %s9493_s18 = scalar_lea.vmem %s38_s10, 30720  ;;  %p9498_p4 = scmp.lt.s32.totalorder %s38_s10, %s38_s10 }
   0x9   :  { %p9494_p3 = scmp.ne.s32.totalorder %s38_s10, %s9493_s18  ;;  %p9499_p5 = scmp.lt.s32.totalorder %s9493_s18, %s9493_s18 }
   0xb   :  { %p9500_p6 = por %p9499_p5, %p9498_p4 }
   0xd   :  { %p9501_p7 = pnand %p9500_p6, %p9494_p3 }
   0xf   :  { %9504 = shalt.err (!%p9501_p7)
}
  0x10   :  { %s9554_s19 = smov 128   ;;  %s9555_s20 = smov 8  }
  0x11   :  { %43 = dma.hbm_to_vmem [thread:$0]  %s13468_s3, 30720, %s38_s10, [#allocation5], %s9554_s19, %s9554_s19, %s9555_s20  }
  0x12   :  { %s9556_s23 = smov [#allocation2]   ;;  %s9505_s27 = scalar_lea.hbm %s13466_s1, 3456 }
  0x13   :  { %s23_s24 = sshll.u32 %s9556_s23, 4  ;;  %p9506_p8 = scmp.ne.s32.totalorder %s13466_s1, %s9505_s27  ;;  %s24_s24 = int_to_ptr.vmem [resolvable:$true] %s23_s24 }
  0x14   :  { %p9509_p9 = scmp.lt.u32.totalorder %s9505_s27, %s13466_s1 }
  0x16   :  { %p9511_p10 = pnand %p9509_p9, %p9506_p8 }
  0x18   :  { %9514 = shalt.err (!%p9511_p10)
}
  0x19   :  { %s9515_s12 = scalar_lea.vmem %s24_s24, 3456  ;;  %p9520_p12 = scmp.lt.s32.totalorder %s24_s24, %s24_s24 }
  0x1a   :  { %p9516_p11 = scmp.ne.s32.totalorder %s24_s24, %s9515_s12  ;;  %p9521_p13 = scmp.lt.s32.totalorder %s9515_s12, %s9515_s12 }
  0x1c   :  { %p9522_p0 = por %p9521_p13, %p9520_p12 }
  0x1e   :  { %p9523_p1 = pnand %p9522_p0, %p9516_p11 }
  0x20   :  { %9526 = shalt.err (!%p9523_p1)
}
  0x21   :  { %s9557_s3 = smov 192   ;;  %s9558_s10 = smov 12  }
  0x22   :  { %29 = dma.hbm_to_vmem [thread:$0]  %s13466_s1, 3456, %s24_s24, [#allocation3], %s9557_s3, %s9557_s3, %s9558_s10  }
  0x23   :  { %s9559_s15 = smov [#allocation6]   ;;  %s9527_s19 = scalar_lea.hbm %s13472_s7, 1024 }
  0x24   :  { %s55_s16 = sshll.u32 %s9559_s15, 4  ;;  %p9528_p2 = scmp.ne.s32.totalorder %s13472_s7, %s9527_s19  ;;  %s56_s16 = int_to_ptr.vmem [resolvable:$true] %s55_s16 }
  0x25   :  { %p9531_p3 = scmp.lt.u32.totalorder %s9527_s19, %s13472_s7 }
  0x27   :  { %p9533_p4 = pnand %p9531_p3, %p9528_p2 }
  0x29   :  { %9536 = shalt.err (!%p9533_p4)
}
  0x2a   :  { %s9537_s25 = scalar_lea.vmem %s56_s16, 1024  ;;  %p9542_p6 = scmp.lt.s32.totalorder %s56_s16, %s56_s16 }
  0x2b   :  { %p9538_p5 = scmp.ne.s32.totalorder %s56_s16, %s9537_s25  ;;  %p9543_p7 = scmp.lt.s32.totalorder %s9537_s25, %s9537_s25 }
  0x2d   :  { %p9544_p8 = por %p9543_p7, %p9542_p6 }
  0x2f   :  { %p9545_p9 = pnand %p9544_p8, %p9538_p5 }
  0x31   :  { %9548 = shalt.err (!%p9545_p9)
}
  0x32   :  { %s9560_s1 = smov 64   ;;  %s9561_s24 = smov 4  }
  0x33   :  { %61 = dma.hbm_to_vmem [thread:$0]  %s13472_s7, 1024, %s56_s16, [#allocation5], %s9560_s1, %s9560_s1, %s9561_s24  }
  0x34   :  { %9549 = dma.done.wait [#allocation3], 3456  }
  0x35   :  { %9550 = vsyncadd [#allocation3], 4294963840 }
  0x36   :  { %9551 = dma.done.wait [#allocation5], 31744  }
  0x37   :  { %9552 = vsyncadd [#allocation5], 4294935552  ;;  %vm202_vm0 = vsmask.f32 3328  ;;  %vm203_vm1 = vsmask.f32 7440 }
  0x38   :  { %vm560_vm2 = vsmask.f32 2304  ;;  %vm561_vm3 = vsmask.f32 6416  ;;  %v74_v0 = vld [vmem:[%s13465_s0] sm:$0xff]  ;;  %v75_v1 = vld [vmem:[%s13465_s0 + $0x8] sm:$0xff]  ;;  %vm9702_vm9 = vmor %vm202_vm0, %vm203_vm1 }
  0x39   :  { %v76_v2 = vld [vmem:[%s13465_s0 + $0x10] sm:$0xff]  ;;  %vm477_vm4 = vcmask 1042432   ;;  %vm478_vm5 = vcmask 1046532   ;;  %v9665_v3 = vpack.c.bf16 %v74_v0, %v74_v0  ;;  %v9667_v4 = vpack.c.bf16 %v75_v1, %v75_v1  ;;  %v77_v6 = vld [vmem:[%s13465_s0 + $0x18] sm:$0xf]  ;;  %v78_v7 = vld [vmem:[%s13465_s0 + $0x20] sm:$0xff] }
  0x3a   :  { %v9669_v5 = vpack.c.bf16 %v76_v2, %v76_v2  ;;  %vm723_vm6 = vcmask 1041408   ;;  %v79_v8 = vld [vmem:[%s13465_s0 + $0x28] sm:$0xff]  ;;  %vm724_vm7 = vcmask 1045508   ;;  %v9680_v9 = vpack.c.bf16 %v77_v6, %v77_v6  ;;  %vm9696_vm8 = vmor %vm477_vm4, %vm478_vm5  ;;  %v8995_v56 = vld [vmem:[#allocation2 + $0x4] ss:$12 sps:$4 sm:$0xff]   ;;  %s9562_s17 = smov 28  }
  0x3b   :  { %v9682_v10 = vpack.c.bf16 %v78_v7, %v78_v7  ;;  %v9684_v11 = vpack.c.bf16 %v79_v8, %v79_v8  ;;  %v206_v12 = vshrl.u32 %v9665_v3, 16  ;;  %v209_v13 = vshll.u32 %v9665_v3, 16  ;;  %vm9708_vm10 = vmor %vm560_vm2, %vm561_vm3  ;;  %v8997_v57 = vld [vmem:[#allocation2] ss:$12 sps:$4 sm:$0xff]   ;;  %1411 = vmatprep.subr.bf16.mxu1 %v8995_v56  ;;  %v8998_v2 = vld [vmem:[#allocation2 + $0x1c] ss:$12 sps:$4 sm:$0xff]  }
  0x3c   :  { %v215_v14 = vshll.u32 %v9667_v4, 16  ;;  %v219_v15 = vshrl.u32 %v9667_v4, 16  ;;  %v225_v16 = vshll.u32 %v9669_v5, 16  ;;  %v229_v17 = vshrl.u32 %v9669_v5, 16  ;;  %vm9723_vm11 = vmor %vm723_vm6, %vm724_vm7  ;;  %1412 = vmatpush1.bf16.msra.mxu1 %v8997_v57  ;;  %s9563_s18 = smov 84   ;;  %s9564_s19 = smov 56  }
  0x3d   :  { %v7615_v18 = vrot.slane %v9665_v3, 9  ;;  %v482_v19 = vrot.slane %v9667_v4, 5  ;;  %v208_v20 = vrot.slane %v206_v12, 4  ;;  %v211_v21 = vrot.slane %v209_v13, 5  ;;  %1413 = vmatprep.subr.bf16.mxu1 %v8998_v2  ;;  %s9565_s20 = smov 112   ;;  %v9464_v33 = vld [vmem:[%s13465_s0 + $0x8] sm:$0xff] }
  0x3e   :  { %v217_v22 = vrot.slane %v215_v14, 5  ;;  %v221_v23 = vrot.slane %v219_v15, 4  ;;  %v227_v24 = vrot.slane %v225_v16, 5  ;;  %v231_v25 = vrot.slane %v229_v17, 4  ;;  %v9007_v57 = vld [vmem:[#allocation2 + $0x64] ss:$12 sps:$4 sm:$0xff]  }
  0x3f   :  { %v563_v26 = vrot.slane %v206_v12, 5  ;;  %v564_v27 = vrot.slane %v209_v13, 6  ;;  %v13716_v28 = vmov 0  ;;  %v212_v29 = vor.u32 %v211_v21, %v208_v20 }
  0x40   :  { %v13717_v28 = vsel %vm9696_vm8, 4294967295, %v13716_v28  ;;  %v222_v30 = vor.u32 %v221_v23, %v217_v22  ;;  %v567_v31 = vrot.slane %v219_v15, 5  ;;  %v568_v32 = vrot.slane %v215_v14, 6  ;;  %v9001_v23 = vld [vmem:[#allocation2 + $0x34] ss:$12 sps:$4 sm:$0xff]  }
  0x41   :  { %13718 = vst [vmem:[#allocation9_spill] sm:$0xff] %v13717_v28  ;;  %v232_v34 = vor.u32 %v231_v25, %v227_v24  ;;  %v565_v35 = vor.u32 %v564_v27, %v563_v26  ;;  %v572_v36 = vrot.slane %v229_v17, 5  ;;  %v573_v37 = vrot.slane %v225_v16, 6 }
  0x42   :  { %v213_v38 = vrot.slane %v212_v29, 4  ;;  %v223_v39 = vrot.slane %v222_v30, 4  ;;  %v569_v41 = vor.u32 %v568_v32, %v567_v31  ;;  %v483_v42 = vsel %vm9696_vm8, %v7615_v18, %v482_v19  ;;  %v9003_v29 = vld [vmem:[#allocation2 + $0x30] ss:$12 sps:$4 sm:$0xff]  }
  0x43   :  { %v566_v43 = vrot.slane %v565_v35, 4  ;;  %v9714_v44 = vor.u32 %v573_v37, %v572_v36  ;;  %v484_v45 = vrot.slane %v482_v19, 4  ;;  %v485_v46 = vrot.slane %v9669_v5, 5  ;;  %v9004_v35 = vld [vmem:[#allocation2 + $0x4c] ss:$12 sps:$4 sm:$0xff]  }
  0x44   :  { %v218_v47 = vsel %vm9702_vm9, %v213_v38, %v217_v22  ;;  %v228_v48 = vsel %vm9702_vm9, %v223_v39, %v227_v24  ;;  %v571_v49 = vrot.slane %v569_v41, 4  ;;  %v13723_v50 = vmov 0 }
  0x45   :  { %v13724_v50 = vsel %vm9723_vm11, 4294967295, %v13723_v50  ;;  %v7623_v51 = vrot.slane %v9665_v3, 10  ;;  %v7635_v52 = vcombine.low %v218_v47, %v228_v48  ;;  %v570_v53 = vsel %vm9708_vm10, %v566_v43, %v569_v41  ;;  %v80_v41 = vld [vmem:[%s13465_s0 + $0x30] sm:$0xff]  ;;  %v81_v47 = vld [vmem:[%s13465_s0 + $0x38] sm:$0xf] }
  0x46   :  { %13725 = vst [vmem:[#allocation10_spill] sm:$0xff] %v13724_v50  ;;  %v576_v54 = vrot.slane %v9714_v44, 4  ;;  %v486_v55 = vsel %vm9696_vm8, %v484_v45, %v485_v46  ;;  %v575_v58 = vsel %vm9708_vm10, %v571_v49, %v9714_v44  ;;  %v728_v60 = vrot.slane %v9667_v4, 6 }
  0x47   :  { %v7647_v59 = vcombine.low %v483_v42, %v486_v55  ;;  %v731_v61 = vrot.slane %v9669_v5, 6  ;;  %854 = vrot.lane.b32.xlu0 %v7635_v52, %s9562_s17  ;;  %v7659_v62 = vcombine.low %v570_v53, %v575_v58  ;;  %v233_v63 = vrot.slane %v232_v34, 4  ;;  %v9000_v5 = vld [vmem:[#allocation2 + $0x18] ss:$12 sps:$4 sm:$0xff]   ;;  %v9006_v53 = vld [vmem:[#allocation2 + $0x48] ss:$12 sps:$4 sm:$0xff]  }
  0x48   :  { %v235_v0 = vshll.u32 %v9680_v9, 16  ;;  %v240_v1 = vshrl.u32 %v9682_v10, 16  ;;  %v729_v3 = vsel %vm9723_vm11, %v7623_v51, %v728_v60  ;;  %v730_v6 = vrot.slane %v728_v60, 4  ;;  %1414 = vmatpush1.bf16.msra.mxu1 %v9000_v5 }
  0x49   :  { %v243_v7 = vshll.u32 %v9682_v10, 16  ;;  %v249_v4 = vshll.u32 %v9684_v11, 16  ;;  %974 = vrot.lane.b32.xlu1 %v7659_v62, %s9563_s18  ;;  %v487_v13 = vrot.slane %v485_v46, 4  ;;  %v488_v14 = vrot.slane %v9680_v9, 5  ;;  %1415 = vmatprep.subr.bf16.mxu1 %v9001_v23 }
  0x4a   :  { %v237_v8 = vrot.slane %v235_v0, 5  ;;  %v242_v12 = vrot.slane %v240_v1, 4  ;;  %v732_v15 = vsel %vm9723_vm11, %v730_v6, %v731_v61  ;;  %v7616_v18 = vrot.slane %v9682_v10, 9  ;;  %v9010_v6 = vld [vmem:[#allocation2 + $0x7c] ss:$12 sps:$4 sm:$0xff]  }
  0x4b   :  { %v245_v16 = vrot.slane %v243_v7, 5  ;;  %v9749_v17 = vrot.slane %v249_v4, 5  ;;  %914 = vrot.lane.b32.xlu0 %v7647_v59, %s9564_s19  ;;  %v7671_v19 = vcombine.low %v729_v3, %v732_v15  ;;  %v489_v21 = vsel %vm9696_vm8, %v487_v13, %v488_v14 }
  0x4c   :  { %v238_v20 = vsel %vm9702_vm9, %v233_v63, %v237_v8  ;;  %v492_v22 = vrot.slane %v9684_v11, 5  ;;  %v253_v25 = vshrl.u32 %v9684_v11, 16  ;;  %v577_v26 = vshrl.u32 %v9680_v9, 16  ;;  %1416 = vmatpush1.bf16.msra.mxu1 %v9003_v29 }
  0x4d   :  { %v246_v24 = vor.u32 %v245_v16, %v242_v12  ;;  %v580_v27 = vrot.slane %v235_v0, 6  ;;  %1034 = vrot.lane.b32.xlu1 %v7671_v19, %s9565_s20  ;;  %v583_v31 = vrot.slane %v240_v1, 5  ;;  %v584_v32 = vrot.slane %v243_v7, 6  ;;  %1417 = vmatprep.subr.bf16.mxu1 %v9004_v35  ;;  %v82_v16 = vld [vmem:[%s13465_s0 + $0x40] sm:$0xff] }
  0x4e   :  { %v493_v30 = vsel %vm9696_vm8, %v7616_v18, %v492_v22  ;;  %v588_v34 = vrot.slane %v249_v4, 6  ;;  %v579_v38 = vrot.slane %v577_v26, 5  ;;  %v587_v39 = vrot.slane %v253_v25, 5 }
  0x4f   :  { %v247_v36 = vrot.slane %v246_v24, 4  ;;  %v7648_v37 = vcombine.low %v489_v21, %v493_v30  ;;  %v585_v42 = vor.u32 %v584_v32, %v583_v31  ;;  %v733_v43 = vrot.slane %v731_v61, 4  ;;  %v9009_v61 = vld [vmem:[#allocation2 + $0x60] ss:$12 sps:$4 sm:$0xff]  }
  0x50   :  { %v734_v45 = vrot.slane %v9680_v9, 6  ;;  %v7624_v46 = vrot.slane %v9682_v10, 10  ;;  %v581_v49 = vor.u32 %v580_v27, %v579_v38  ;;  %v9774_v51 = vor.u32 %v588_v34, %v587_v39  ;;  %1418 = vmatpush1.bf16.msra.mxu1 %v9006_v53  ;;  %v83_v21 = vld [vmem:[%s13465_s0 + $0x48] sm:$0xff]  ;;  %v84_v27 = vld [vmem:[%s13465_s0 + $0x50] sm:$0xff] }
  0x51   :  { %v252_v48 = vsel %vm9702_vm9, %v247_v36, %v9749_v17  ;;  %v738_v52 = vrot.slane %v9684_v11, 6  ;;  %916 = vrot.lane.b32.xlu1 %v7648_v37, %s9564_s19  ;;  %v586_v9 = vrot.slane %v585_v42, 4  ;;  %v8223_v56 = vpack.c.bf16 %v80_v41, %v80_v41  ;;  %1419 = vmatprep.subr.bf16.mxu1 %v9007_v57  ;;  %v9013_v34 = vld [vmem:[#allocation2 + $0x94] ss:$12 sps:$4 sm:$0xff]   ;;  %v9015_v39 = vld [vmem:[#allocation2 + $0x90] ss:$12 sps:$4 sm:$0xff]  }
  0x52   :  { %v7636_v55 = vcombine.low %v238_v20, %v252_v48  ;;  %v735_v10 = vsel %vm9723_vm11, %v733_v43, %v734_v45  ;;  %v582_v58 = vsel %vm9708_vm10, %v576_v54, %v581_v49  ;;  %v9786_v59 = vpack.c.bf16 %v81_v47, %v81_v47 }
  0x53   :  { %v739_v11 = vsel %vm9723_vm11, %v7624_v46, %v738_v52  ;;  %v255_v60 = vrot.slane %v253_v25, 4  ;;  %v590_v62 = vsel %vm9708_vm10, %v586_v9, %v9774_v51  ;;  %v259_v0 = vshll.u32 %v8223_v56, 16  ;;  %v9016_v46 = vld [vmem:[#allocation2 + $0xac] ss:$12 sps:$4 sm:$0xff]  }
  0x54   :  { %856 = vrot.lane.b32.xlu0 %v7636_v55, %s9562_s17  ;;  %v7672_v63 = vcombine.low %v735_v10, %v739_v11  ;;  %v263_v1 = vshrl.u32 %v8223_v56, 16  ;;  %v7660_v44 = vcombine.low %v582_v58, %v590_v62  ;;  %v269_v54 = vshll.u32 %v9786_v59, 16  ;;  %1420 = vmatpush1.bf16.msra.mxu1 %v9009_v61 }
  0x55   :  { %v256_v2 = vor.u32 %v255_v60, %v9749_v17  ;;  %v494_v3 = vrot.slane %v492_v22, 4  ;;  %v261_v7 = vrot.slane %v259_v0, 5  ;;  %v495_v5 = vrot.slane %v8223_v56, 5  ;;  %v9012_v22 = vld [vmem:[#allocation2 + $0x78] ss:$12 sps:$4 sm:$0xff]   ;;  %1421 = vmatprep.subr.bf16.mxu1 %v9010_v6 }
  0x56   :  { %1036 = vrot.lane.b32.xlu1 %v7672_v63, %s9565_s20  ;;  %v265_v4 = vrot.slane %v263_v1, 4  ;;  %v498_v8 = vrot.slane %v9786_v59, 5  ;;  %v271_v13 = vrot.slane %v269_v54, 5  ;;  %v591_v14 = vrot.slane %v9774_v51, 4 }
  0x57   :  { %v257_v12 = vrot.slane %v256_v2, 4  ;;  %v592_v15 = vrot.slane %v263_v1, 5  ;;  %v496_v18 = vsel %vm9696_vm8, %v494_v3, %v495_v5  ;;  %v497_v19 = vrot.slane %v495_v5, 4 }
  0x58   :  { %976 = vrot.lane.b32.xlu0 %v7660_v44, %s9563_s18  ;;  %v266_v17 = vor.u32 %v265_v4, %v261_v7  ;;  %v593_v20 = vrot.slane %v259_v0, 6  ;;  %v597_v24 = vshrl.u32 %v9786_v59, 16  ;;  %v600_v25 = vrot.slane %v269_v54, 6  ;;  %1422 = vmatpush1.bf16.msra.mxu1 %v9012_v22  ;;  %v9018_v44 = vld [vmem:[#allocation2 + $0xa8] ss:$12 sps:$4 sm:$0xff]  }
  0x59   :  { %v262_v23 = vsel %vm9702_vm9, %v257_v12, %v261_v7  ;;  %v740_v26 = vrot.slane %v738_v52, 4  ;;  %v499_v30 = vsel %vm9696_vm8, %v497_v19, %v498_v8  ;;  %v741_v32 = vrot.slane %v8223_v56, 6  ;;  %1423 = vmatprep.subr.bf16.mxu1 %v9013_v34  ;;  %v87_v22 = vld [vmem:[%s13465_s0 + $0x68] sm:$0xff] }
  0x5a   :  { %v267_v29 = vrot.slane %v266_v17, 4  ;;  %v594_v31 = vor.u32 %v593_v20, %v592_v15  ;;  %v7649_v35 = vcombine.low %v496_v18, %v499_v30  ;;  %v599_v36 = vrot.slane %v597_v24, 5  ;;  %v86_v17 = vld [vmem:[%s13465_s0 + $0x60] sm:$0xff] }
  0x5b   :  { %v744_v37 = vrot.slane %v9786_v59, 6  ;;  %v9815_v38 = vpack.c.bf16 %v82_v16, %v82_v16  ;;  %v742_v45 = vsel %vm9723_vm11, %v740_v26, %v741_v32  ;;  %v743_v49 = vrot.slane %v741_v32, 4  ;;  %v85_v16 = vld [vmem:[%s13465_s0 + $0x58] sm:$0xf] }
  0x5c   :  { %v272_v41 = vsel %vm9702_vm9, %v267_v29, %v271_v13  ;;  %v595_v42 = vsel %vm9708_vm10, %v591_v14, %v594_v31  ;;  %v596_v43 = vrot.slane %v594_v31, 4  ;;  %918 = vrot.lane.b32.xlu1 %v7649_v35, %s9564_s19  ;;  %v601_v48 = vor.u32 %v600_v25, %v599_v36  ;;  %1424 = vmatpush1.bf16.msra.mxu1 %v9015_v39 }
  0x5d   :  { %v7637_v47 = vcombine.low %v262_v23, %v272_v41  ;;  %v8226_v51 = vpack.c.bf16 %v83_v21, %v83_v21  ;;  %v9824_v52 = vpack.c.bf16 %v84_v27, %v84_v27  ;;  %v274_v53 = vshrl.u32 %v9815_v38, 16  ;;  %1425 = vmatprep.subr.bf16.mxu1 %v9016_v46 }
  0x5e   :  { %v277_v55 = vshll.u32 %v9815_v38, 16  ;;  %v7617_v9 = vrot.slane %v9815_v38, 9  ;;  %v602_v10 = vsel %vm9708_vm10, %v596_v43, %v601_v48  ;;  %v745_v56 = vsel %vm9723_vm11, %v743_v49, %v744_v37 }
  0x5f   :  { %858 = vrot.lane.b32.xlu0 %v7637_v47, %s9562_s17  ;;  %v283_v57 = vshll.u32 %v8226_v51, 16  ;;  %v287_v58 = vshrl.u32 %v8226_v51, 16  ;;  %v7661_v11 = vcombine.low %v595_v42, %v602_v10  ;;  %v7673_v59 = vcombine.low %v742_v45, %v745_v56 }
  0x60   :  { %v276_v60 = vrot.slane %v274_v53, 4  ;;  %v279_v61 = vrot.slane %v277_v55, 5  ;;  %v293_v0 = vshll.u32 %v9824_v52, 16  ;;  %v502_v1 = vrot.slane %v8226_v51, 5  ;;  %1426 = vmatpush1.bf16.msra.mxu1 %v9018_v44 }
  0x61   :  { %v285_v62 = vrot.slane %v283_v57, 5  ;;  %v289_v63 = vrot.slane %v287_v58, 4  ;;  %1038 = vrot.lane.b32.xlu1 %v7673_v59, %s9565_s20  ;;  %v505_v54 = vrot.slane %v9824_v52, 5  ;;  %v297_v3 = vshrl.u32 %v9824_v52, 16 }
  0x62   :  { %v280_v2 = vor.u32 %v279_v61, %v276_v60  ;;  %v603_v6 = vrot.slane %v274_v53, 5  ;;  %v295_v4 = vrot.slane %v293_v0, 5  ;;  %v503_v5 = vsel %vm9696_vm8, %v7617_v9, %v502_v1 }
  0x63   :  { %978 = vrot.lane.b32.xlu0 %v7661_v11, %s9563_s18  ;;  %v290_v7 = vor.u32 %v289_v63, %v285_v62  ;;  %v504_v8 = vrot.slane %v502_v1, 4  ;;  %v604_v13 = vrot.slane %v277_v55, 6  ;;  %v607_v14 = vrot.slane %v287_v58, 5 }
  0x64   :  { %v281_v12 = vrot.slane %v280_v2, 4  ;;  %v608_v15 = vrot.slane %v283_v57, 6  ;;  %v612_v20 = vrot.slane %v297_v3, 5  ;;  %v613_v21 = vrot.slane %v293_v0, 6 }
  0x65   :  { %v291_v18 = vrot.slane %v290_v7, 4  ;;  %v506_v19 = vsel %vm9696_vm8, %v504_v8, %v505_v54  ;;  %v605_v25 = vor.u32 %v604_v13, %v603_v6  ;;  %v7625_v30 = vrot.slane %v9815_v38, 10  ;;  %v88_v6 = vld [vmem:[%s13465_s0 + $0x70] sm:$0xff] }
  0x66   :  { %v286_v23 = vsel %vm9702_vm9, %v281_v12, %v285_v62  ;;  %v7650_v24 = vcombine.low %v503_v5, %v506_v19  ;;  %v609_v26 = vor.u32 %v608_v15, %v607_v14  ;;  %v9856_v29 = vor.u32 %v613_v21, %v612_v20  ;;  %v89_v12 = vld [vmem:[%s13465_s0 + $0x78] sm:$0xf] }
  0x67   :  { %v296_v27 = vsel %vm9702_vm9, %v291_v18, %v295_v4  ;;  %v748_v31 = vrot.slane %v8226_v51, 6  ;;  %v606_v34 = vrot.slane %v605_v25, 4  ;;  %v751_v36 = vrot.slane %v9824_v52, 6 }
  0x68   :  { %v7638_v32 = vcombine.low %v286_v23, %v296_v27  ;;  %920 = vrot.lane.b32.xlu1 %v7650_v24, %s9564_s19  ;;  %v611_v35 = vrot.slane %v609_v26, 4  ;;  %v8228_v41 = vpack.c.bf16 %v85_v16, %v85_v16  ;;  %v8229_v42 = vpack.c.bf16 %v86_v17, %v86_v17 }
  0x69   :  { %v749_v37 = vsel %vm9723_vm11, %v7625_v30, %v748_v31  ;;  %v750_v39 = vrot.slane %v748_v31, 4  ;;  %v610_v43 = vsel %vm9708_vm10, %v606_v34, %v609_v26  ;;  %v9869_v45 = vpack.c.bf16 %v87_v22, %v87_v22 }
  0x6a   :  { %860 = vrot.lane.b32.xlu0 %v7638_v32, %s9562_s17  ;;  %v615_v38 = vsel %vm9708_vm10, %v611_v35, %v9856_v29  ;;  %v299_v46 = vrot.slane %v297_v3, 4  ;;  %v303_v49 = vshll.u32 %v8228_v41, 16  ;;  %v308_v51 = vshrl.u32 %v8229_v42, 16 }
  0x6b   :  { %v7662_v47 = vcombine.low %v610_v43, %v615_v38  ;;  %v752_v48 = vsel %vm9723_vm11, %v750_v39, %v751_v36  ;;  %v311_v55 = vshll.u32 %v8229_v42, 16  ;;  %v317_v9 = vshll.u32 %v9869_v45, 16 }
  0x6c   :  { %v7674_v52 = vcombine.low %v749_v37, %v752_v48  ;;  %v300_v53 = vor.u32 %v299_v46, %v295_v4  ;;  %v305_v10 = vrot.slane %v303_v49, 5  ;;  %v310_v56 = vrot.slane %v308_v51, 4 }
  0x6d   :  { %v507_v57 = vrot.slane %v505_v54, 4  ;;  %v508_v58 = vrot.slane %v8228_v41, 5  ;;  %v313_v59 = vrot.slane %v311_v55, 5  ;;  %v319_v60 = vrot.slane %v317_v9, 5 }
  0x6e   :  { %980 = vrot.lane.b32.xlu0 %v7662_v47, %s9563_s18  ;;  %1040 = vrot.lane.b32.xlu1 %v7674_v52, %s9565_s20  ;;  %v301_v11 = vrot.slane %v300_v53, 4  ;;  %v7618_v61 = vrot.slane %v8229_v42, 9  ;;  %v512_v63 = vrot.slane %v9869_v45, 5  ;;  %v321_v0 = vshrl.u32 %v9869_v45, 16 }
  0x6f   :  { %v509_v62 = vsel %vm9696_vm8, %v507_v57, %v508_v58  ;;  %v616_v1 = vrot.slane %v9856_v29, 4  ;;  %v314_v2 = vor.u32 %v313_v59, %v310_v56  ;;  %v617_v54 = vshrl.u32 %v8228_v41, 16  ;;  %v91_v58 = vld [vmem:[%s13465_s0 + $0x88] sm:$0xff] }
  0x70   :  { %v306_v44 = vsel %vm9702_vm9, %v301_v11, %v305_v10  ;;  %v620_v3 = vrot.slane %v303_v49, 6  ;;  %v513_v7 = vsel %vm9696_vm8, %v7618_v61, %v512_v63  ;;  %v623_v4 = vrot.slane %v308_v51, 5  ;;  %v90_v49 = vld [vmem:[%s13465_s0 + $0x80] sm:$0xff] }
  0x71   :  { %v624_v5 = vrot.slane %v311_v55, 6  ;;  %v627_v8 = vrot.slane %v321_v0, 5  ;;  %v315_v13 = vrot.slane %v314_v2, 4  ;;  %v7651_v14 = vcombine.low %v509_v62, %v513_v7  ;;  %v92_v62 = vld [vmem:[%s13465_s0 + $0x90] sm:$0xff] }
  0x72   :  { %v619_v15 = vrot.slane %v617_v54, 5  ;;  %v628_v16 = vrot.slane %v317_v9, 6  ;;  %v753_v18 = vrot.slane %v751_v36, 4  ;;  %v754_v19 = vrot.slane %v8228_v41, 6 }
  0x73   :  { %v625_v17 = vor.u32 %v624_v5, %v623_v4  ;;  %v7626_v20 = vrot.slane %v8229_v42, 10  ;;  %v320_v21 = vsel %vm9702_vm9, %v315_v13, %v319_v60  ;;  %922 = vrot.lane.b32.xlu1 %v7651_v14, %s9564_s19  ;;  %v758_v24 = vrot.slane %v9869_v45, 6 }
  0x74   :  { %v621_v22 = vor.u32 %v620_v3, %v619_v15  ;;  %v629_v23 = vor.u32 %v628_v16, %v627_v8  ;;  %v7639_v25 = vcombine.low %v306_v44, %v320_v21  ;;  %v755_v27 = vsel %vm9723_vm11, %v753_v18, %v754_v19 }
  0x75   :  { %v626_v26 = vrot.slane %v625_v17, 4  ;;  %v8231_v29 = vpack.c.bf16 %v88_v6, %v88_v6  ;;  %v759_v31 = vsel %vm9723_vm11, %v7626_v20, %v758_v24  ;;  %v8232_v32 = vpack.c.bf16 %v89_v12, %v89_v12 }
  0x76   :  { %v622_v30 = vsel %vm9708_vm10, %v616_v1, %v621_v22  ;;  %v323_v34 = vrot.slane %v321_v0, 4  ;;  %862 = vrot.lane.b32.xlu0 %v7639_v25, %s9562_s17  ;;  %v7675_v36 = vcombine.low %v755_v27, %v759_v31  ;;  %v514_v38 = vrot.slane %v512_v63, 4 }
  0x77   :  { %v630_v35 = vsel %vm9708_vm10, %v626_v26, %v629_v23  ;;  %v327_v37 = vshll.u32 %v8231_v29, 16  ;;  %v331_v39 = vshrl.u32 %v8231_v29, 16  ;;  %v337_v43 = vshll.u32 %v8232_v32, 16 }
  0x78   :  { %v7663_v41 = vcombine.low %v622_v30, %v630_v35  ;;  %v324_v42 = vor.u32 %v323_v34, %v319_v60  ;;  %1042 = vrot.lane.b32.xlu1 %v7675_v36, %s9565_s20  ;;  %v515_v47 = vrot.slane %v8231_v29, 5  ;;  %v518_v48 = vrot.slane %v8232_v32, 5 }
  0x79   :  { %v329_v45 = vrot.slane %v327_v37, 5  ;;  %v333_v46 = vrot.slane %v331_v39, 4  ;;  %v339_v52 = vrot.slane %v337_v43, 5  ;;  %v631_v53 = vrot.slane %v629_v23, 4 }
  0x7a   :  { %v325_v51 = vrot.slane %v324_v42, 4  ;;  %v632_v55 = vrot.slane %v331_v39, 5  ;;  %982 = vrot.lane.b32.xlu0 %v7663_v41, %s9563_s18  ;;  %v516_v10 = vsel %vm9696_vm8, %v514_v38, %v515_v47  ;;  %v517_v56 = vrot.slane %v515_v47, 4 }
  0x7b   :  { %v334_v9 = vor.u32 %v333_v46, %v329_v45  ;;  %v633_v57 = vrot.slane %v327_v37, 6  ;;  %v637_v59 = vshrl.u32 %v8232_v32, 16  ;;  %v640_v60 = vrot.slane %v337_v43, 6 }
  0x7c   :  { %v330_v11 = vsel %vm9702_vm9, %v325_v51, %v329_v45  ;;  %v760_v61 = vrot.slane %v758_v24, 4  ;;  %v519_v0 = vsel %vm9696_vm8, %v517_v56, %v518_v48  ;;  %v761_v44 = vrot.slane %v8231_v29, 6  ;;  %v93_v48 = vld [vmem:[%s13465_s0 + $0x98] sm:$0xf] }
  0x7d   :  { %v335_v63 = vrot.slane %v334_v9, 4  ;;  %v634_v1 = vor.u32 %v633_v57, %v632_v55  ;;  %v7652_v2 = vcombine.low %v516_v10, %v519_v0  ;;  %v639_v54 = vrot.slane %v637_v59, 5  ;;  %v95_v9 = vld [vmem:[%s13465_s0 + $0xa8] sm:$0xff] }
  0x7e   :  { %v764_v3 = vrot.slane %v8232_v32, 6  ;;  %v9921_v6 = vpack.c.bf16 %v90_v49, %v90_v49  ;;  %v762_v8 = vsel %vm9723_vm11, %v760_v61, %v761_v44  ;;  %v763_v14 = vrot.slane %v761_v44, 4  ;;  %v94_v49 = vld [vmem:[%s13465_s0 + $0xa0] sm:$0xff] }
  0x7f   :  { %v340_v7 = vsel %vm9702_vm9, %v335_v63, %v339_v52  ;;  %v635_v4 = vsel %vm9708_vm10, %v631_v53, %v634_v1  ;;  %v636_v5 = vrot.slane %v634_v1, 4  ;;  %924 = vrot.lane.b32.xlu1 %v7652_v2, %s9564_s19  ;;  %v641_v13 = vor.u32 %v640_v60, %v639_v54 }
  0x80   :  { %v7640_v12 = vcombine.low %v330_v11, %v340_v7  ;;  %v8234_v15 = vpack.c.bf16 %v91_v58, %v91_v58  ;;  %v9930_v16 = vpack.c.bf16 %v92_v62, %v92_v62  ;;  %v342_v17 = vshrl.u32 %v9921_v6, 16 }
  0x81   :  { %v345_v18 = vshll.u32 %v9921_v6, 16  ;;  %v7619_v19 = vrot.slane %v9921_v6, 9  ;;  %v642_v20 = vsel %vm9708_vm10, %v636_v5, %v641_v13  ;;  %v765_v21 = vsel %vm9723_vm11, %v763_v14, %v764_v3 }
  0x82   :  { %864 = vrot.lane.b32.xlu0 %v7640_v12, %s9562_s17  ;;  %v351_v22 = vshll.u32 %v8234_v15, 16  ;;  %v355_v23 = vshrl.u32 %v8234_v15, 16  ;;  %v7664_v24 = vcombine.low %v635_v4, %v642_v20  ;;  %v7676_v25 = vcombine.low %v762_v8, %v765_v21 }
  0x83   :  { %v344_v26 = vrot.slane %v342_v17, 4  ;;  %v347_v27 = vrot.slane %v345_v18, 5  ;;  %v361_v31 = vshll.u32 %v9930_v16, 16  ;;  %v522_v32 = vrot.slane %v8234_v15, 5 }
  0x84   :  { %v353_v29 = vrot.slane %v351_v22, 5  ;;  %v357_v30 = vrot.slane %v355_v23, 4  ;;  %1044 = vrot.lane.b32.xlu1 %v7676_v25, %s9565_s20  ;;  %v525_v35 = vrot.slane %v9930_v16, 5  ;;  %v365_v36 = vshrl.u32 %v9930_v16, 16 }
  0x85   :  { %v348_v34 = vor.u32 %v347_v27, %v344_v26  ;;  %v643_v37 = vrot.slane %v342_v17, 5  ;;  %v363_v41 = vrot.slane %v361_v31, 5  ;;  %v523_v42 = vsel %vm9696_vm8, %v7619_v19, %v522_v32 }
  0x86   :  { %984 = vrot.lane.b32.xlu0 %v7664_v24, %s9563_s18  ;;  %v358_v39 = vor.u32 %v357_v30, %v353_v29  ;;  %v524_v43 = vrot.slane %v522_v32, 4  ;;  %v644_v45 = vrot.slane %v345_v18, 6  ;;  %v647_v46 = vrot.slane %v355_v23, 5 }
  0x87   :  { %v349_v38 = vrot.slane %v348_v34, 4  ;;  %v648_v47 = vrot.slane %v351_v22, 6  ;;  %v652_v53 = vrot.slane %v365_v36, 5  ;;  %v653_v55 = vrot.slane %v361_v31, 6 }
  0x88   :  { %v359_v51 = vrot.slane %v358_v39, 4  ;;  %v526_v52 = vsel %vm9696_vm8, %v524_v43, %v525_v35  ;;  %v645_v57 = vor.u32 %v644_v45, %v643_v37  ;;  %v7627_v60 = vrot.slane %v9921_v6, 10  ;;  %v9992_v37 = vld [vmem:[%s13465_s0 + $0xb0] sm:$0xff] }
  0x89   :  { %v354_v10 = vsel %vm9702_vm9, %v349_v38, %v353_v29  ;;  %v7653_v56 = vcombine.low %v523_v42, %v526_v52  ;;  %v649_v58 = vor.u32 %v648_v47, %v647_v46  ;;  %v9962_v59 = vor.u32 %v653_v55, %v652_v53  ;;  %v9999_v38 = vld [vmem:[%s13465_s0 + $0xb8] sm:$0xf] }
  0x8a   :  { %v364_v11 = vsel %vm9702_vm9, %v359_v51, %v363_v41  ;;  %v768_v61 = vrot.slane %v8234_v15, 6  ;;  %v646_v63 = vrot.slane %v645_v57, 4  ;;  %v771_v1 = vrot.slane %v9930_v16, 6 }
  0x8b   :  { %v7641_v62 = vcombine.low %v354_v10, %v364_v11  ;;  %926 = vrot.lane.b32.xlu1 %v7653_v56, %s9564_s19  ;;  %v651_v0 = vrot.slane %v649_v58, 4  ;;  %v8236_v54 = vpack.c.bf16 %v93_v48, %v93_v48  ;;  %v8237_v3 = vpack.c.bf16 %v94_v49, %v94_v49 }
  0x8c   :  { %v769_v44 = vsel %vm9723_vm11, %v7627_v60, %v768_v61  ;;  %v770_v2 = vrot.slane %v768_v61, 4  ;;  %v650_v7 = vsel %vm9708_vm10, %v646_v63, %v649_v58  ;;  %v9975_v4 = vpack.c.bf16 %v95_v9, %v95_v9 }
  0x8d   :  { %866 = vrot.lane.b32.xlu0 %v7641_v62, %s9562_s17  ;;  %v655_v6 = vsel %vm9708_vm10, %v651_v0, %v9962_v59  ;;  %v367_v5 = vrot.slane %v365_v36, 4  ;;  %v371_v13 = vshll.u32 %v8236_v54, 16  ;;  %v376_v14 = vshrl.u32 %v8237_v3, 16 }
  0x8e   :  { %v7665_v8 = vcombine.low %v650_v7, %v655_v6  ;;  %v772_v12 = vsel %vm9723_vm11, %v770_v2, %v771_v1  ;;  %v379_v17 = vshll.u32 %v8237_v3, 16  ;;  %v385_v18 = vshll.u32 %v9975_v4, 16 }
  0x8f   :  { %v7677_v15 = vcombine.low %v769_v44, %v772_v12  ;;  %v368_v16 = vor.u32 %v367_v5, %v363_v41  ;;  %v373_v19 = vrot.slane %v371_v13, 5  ;;  %v378_v20 = vrot.slane %v376_v14, 4 }
  0x90   :  { %v527_v21 = vrot.slane %v525_v35, 4  ;;  %v528_v22 = vrot.slane %v8236_v54, 5  ;;  %v381_v24 = vrot.slane %v379_v17, 5  ;;  %v387_v25 = vrot.slane %v385_v18, 5 }
  0x91   :  { %986 = vrot.lane.b32.xlu0 %v7665_v8, %s9563_s18  ;;  %1046 = vrot.lane.b32.xlu1 %v7677_v15, %s9565_s20  ;;  %v369_v23 = vrot.slane %v368_v16, 4  ;;  %v7620_v26 = vrot.slane %v8237_v3, 9  ;;  %v532_v29 = vrot.slane %v9975_v4, 5  ;;  %v389_v30 = vshrl.u32 %v9975_v4, 16 }
  0x92   :  { %v529_v27 = vsel %vm9696_vm8, %v527_v21, %v528_v22  ;;  %v656_v31 = vrot.slane %v9962_v59, 4  ;;  %v382_v34 = vor.u32 %v381_v24, %v378_v20  ;;  %v657_v35 = vshrl.u32 %v8236_v54, 16  ;;  %v10030_v22 = vld [vmem:[%s13465_s0 + $0xc8] sm:$0xff] }
  0x93   :  { %v374_v32 = vsel %vm9702_vm9, %v369_v23, %v373_v19  ;;  %v660_v36 = vrot.slane %v371_v13, 6  ;;  %v533_v39 = vsel %vm9696_vm8, %v7620_v26, %v532_v29  ;;  %v663_v41 = vrot.slane %v376_v14, 5  ;;  %v10022_v13 = vld [vmem:[%s13465_s0 + $0xc0] sm:$0xff] }
  0x94   :  { %v664_v42 = vrot.slane %v379_v17, 6  ;;  %v667_v43 = vrot.slane %v389_v30, 5  ;;  %v383_v45 = vrot.slane %v382_v34, 4  ;;  %v7654_v46 = vcombine.low %v529_v27, %v533_v39  ;;  %v10037_v27 = vld [vmem:[%s13465_s0 + $0xd0] sm:$0xff] }
  0x95   :  { %v659_v47 = vrot.slane %v657_v35, 5  ;;  %v668_v48 = vrot.slane %v385_v18, 6  ;;  %v773_v51 = vrot.slane %v771_v1, 4  ;;  %v774_v52 = vrot.slane %v8236_v54, 6 }
  0x96   :  { %v665_v49 = vor.u32 %v664_v42, %v663_v41  ;;  %v7628_v53 = vrot.slane %v8237_v3, 10  ;;  %v388_v55 = vsel %vm9702_vm9, %v383_v45, %v387_v25  ;;  %928 = vrot.lane.b32.xlu1 %v7654_v46, %s9564_s19  ;;  %v778_v56 = vrot.slane %v9975_v4, 6 }
  0x97   :  { %v661_v9 = vor.u32 %v660_v36, %v659_v47  ;;  %v669_v10 = vor.u32 %v668_v48, %v667_v43  ;;  %v7642_v57 = vcombine.low %v374_v32, %v388_v55  ;;  %v775_v11 = vsel %vm9723_vm11, %v773_v51, %v774_v52 }
  0x98   :  { %v666_v58 = vrot.slane %v665_v49, 4  ;;  %v8239_v59 = vpack.c.bf16 %v9992_v37, %v9992_v37  ;;  %v779_v61 = vsel %vm9723_vm11, %v7628_v53, %v778_v56  ;;  %v8240_v62 = vpack.c.bf16 %v9999_v38, %v9999_v38 }
  0x99   :  { %v662_v60 = vsel %vm9708_vm10, %v656_v31, %v661_v9  ;;  %v391_v63 = vrot.slane %v389_v30, 4  ;;  %868 = vrot.lane.b32.xlu0 %v7642_v57, %s9562_s17  ;;  %v7678_v1 = vcombine.low %v775_v11, %v779_v61  ;;  %v534_v6 = vrot.slane %v532_v29, 4 }
  0x9a   :  { %v670_v0 = vsel %vm9708_vm10, %v666_v58, %v669_v10  ;;  %v395_v44 = vshll.u32 %v8239_v59, 16  ;;  %v399_v2 = vshrl.u32 %v8239_v59, 16  ;;  %v405_v7 = vshll.u32 %v8240_v62, 16 }
  0x9b   :  { %v7666_v54 = vcombine.low %v662_v60, %v670_v0  ;;  %v392_v3 = vor.u32 %v391_v63, %v387_v25  ;;  %1048 = vrot.lane.b32.xlu1 %v7678_v1, %s9565_s20  ;;  %v535_v8 = vrot.slane %v8239_v59, 5  ;;  %v538_v12 = vrot.slane %v8240_v62, 5 }
  0x9c   :  { %v397_v4 = vrot.slane %v395_v44, 5  ;;  %v401_v5 = vrot.slane %v399_v2, 4  ;;  %v407_v15 = vrot.slane %v405_v7, 5  ;;  %v671_v16 = vrot.slane %v669_v10, 4 }
  0x9d   :  { %v393_v14 = vrot.slane %v392_v3, 4  ;;  %v672_v17 = vrot.slane %v399_v2, 5  ;;  %988 = vrot.lane.b32.xlu0 %v7666_v54, %s9563_s18  ;;  %v536_v19 = vsel %vm9696_vm8, %v534_v6, %v535_v8  ;;  %v537_v20 = vrot.slane %v535_v8, 4 }
  0x9e   :  { %v402_v18 = vor.u32 %v401_v5, %v397_v4  ;;  %v673_v21 = vrot.slane %v395_v44, 6  ;;  %v677_v24 = vshrl.u32 %v8240_v62, 16  ;;  %v680_v25 = vrot.slane %v405_v7, 6 }
  0x9f   :  { %v398_v23 = vsel %vm9702_vm9, %v393_v14, %v397_v4  ;;  %v780_v26 = vrot.slane %v778_v56, 4  ;;  %v539_v30 = vsel %vm9696_vm8, %v537_v20, %v538_v12  ;;  %v781_v32 = vrot.slane %v8239_v59, 6 }
  0xa0   :  { %v403_v29 = vrot.slane %v402_v18, 4  ;;  %v674_v31 = vor.u32 %v673_v21, %v672_v17  ;;  %v7655_v34 = vcombine.low %v536_v19, %v539_v30  ;;  %v679_v35 = vrot.slane %v677_v24, 5  ;;  %v10086_v21 = vld [vmem:[%s13465_s0 + $0xe8] sm:$0xff] }
  0xa1   :  { %v784_v36 = vrot.slane %v8240_v62, 6  ;;  %v10043_v39 = vpack.c.bf16 %v10022_v13, %v10022_v13  ;;  %v782_v45 = vsel %vm9723_vm11, %v780_v26, %v781_v32  ;;  %v783_v48 = vrot.slane %v781_v32, 4 }
  0xa2   :  { %v408_v41 = vsel %vm9702_vm9, %v403_v29, %v407_v15  ;;  %v675_v42 = vsel %vm9708_vm10, %v671_v16, %v674_v31  ;;  %v676_v43 = vrot.slane %v674_v31, 4  ;;  %930 = vrot.lane.b32.xlu1 %v7655_v34, %s9564_s19  ;;  %v681_v47 = vor.u32 %v680_v25, %v679_v35  ;;  %v101_v15 = vld [vmem:[%s13465_s0 + $0xd8] sm:$0xf]  ;;  %v10079_v16 = vld [vmem:[%s13465_s0 + $0xe0] sm:$0xff] }
  0xa3   :  { %v7643_v46 = vcombine.low %v398_v23, %v408_v41  ;;  %v8242_v49 = vpack.c.bf16 %v10030_v22, %v10030_v22  ;;  %v10056_v51 = vpack.c.bf16 %v10037_v27, %v10037_v27  ;;  %v410_v52 = vshrl.u32 %v10043_v39, 16 }
  0xa4   :  { %v413_v53 = vshll.u32 %v10043_v39, 16  ;;  %v7621_v55 = vrot.slane %v10043_v39, 9  ;;  %v682_v9 = vsel %vm9708_vm10, %v676_v43, %v681_v47  ;;  %v785_v10 = vsel %vm9723_vm11, %v783_v48, %v784_v36 }
  0xa5   :  { %870 = vrot.lane.b32.xlu0 %v7643_v46, %s9562_s17  ;;  %v419_v56 = vshll.u32 %v8242_v49, 16  ;;  %v423_v57 = vshrl.u32 %v8242_v49, 16  ;;  %v7667_v58 = vcombine.low %v675_v42, %v682_v9  ;;  %v7679_v11 = vcombine.low %v782_v45, %v785_v10 }
  0xa6   :  { %v412_v59 = vrot.slane %v410_v52, 4  ;;  %v415_v60 = vrot.slane %v413_v53, 5  ;;  %v429_v63 = vshll.u32 %v10056_v51, 16  ;;  %v542_v0 = vrot.slane %v8242_v49, 5 }
  0xa7   :  { %v421_v61 = vrot.slane %v419_v56, 5  ;;  %v425_v62 = vrot.slane %v423_v57, 4  ;;  %1050 = vrot.lane.b32.xlu1 %v7679_v11, %s9565_s20  ;;  %v545_v44 = vrot.slane %v10056_v51, 5  ;;  %v433_v2 = vshrl.u32 %v10056_v51, 16 }
  0xa8   :  { %v416_v1 = vor.u32 %v415_v60, %v412_v59  ;;  %v683_v54 = vrot.slane %v410_v52, 5  ;;  %v431_v7 = vrot.slane %v429_v63, 5  ;;  %v543_v6 = vsel %vm9696_vm8, %v7621_v55, %v542_v0 }
  0xa9   :  { %990 = vrot.lane.b32.xlu0 %v7667_v58, %s9563_s18  ;;  %v426_v3 = vor.u32 %v425_v62, %v421_v61  ;;  %v544_v4 = vrot.slane %v542_v0, 4  ;;  %v684_v8 = vrot.slane %v413_v53, 6  ;;  %v687_v12 = vrot.slane %v423_v57, 5 }
  0xaa   :  { %v417_v5 = vrot.slane %v416_v1, 4  ;;  %v688_v14 = vrot.slane %v419_v56, 6  ;;  %v692_v19 = vrot.slane %v433_v2, 5  ;;  %v693_v20 = vrot.slane %v429_v63, 6 }
  0xab   :  { %v427_v17 = vrot.slane %v426_v3, 4  ;;  %v546_v18 = vsel %vm9696_vm8, %v544_v4, %v545_v44  ;;  %v685_v25 = vor.u32 %v684_v8, %v683_v54  ;;  %v7629_v31 = vrot.slane %v10043_v39, 10 }
  0xac   :  { %v422_v23 = vsel %vm9702_vm9, %v417_v5, %v421_v61  ;;  %v7656_v24 = vcombine.low %v543_v6, %v546_v18  ;;  %v689_v26 = vor.u32 %v688_v14, %v687_v12  ;;  %v10092_v30 = vor.u32 %v693_v20, %v692_v19 }
  0xad   :  { %v432_v29 = vsel %vm9702_vm9, %v427_v17, %v431_v7  ;;  %v788_v32 = vrot.slane %v8242_v49, 6  ;;  %v686_v35 = vrot.slane %v685_v25, 4  ;;  %v791_v41 = vrot.slane %v10056_v51, 6 }
  0xae   :  { %v7644_v34 = vcombine.low %v422_v23, %v432_v29  ;;  %932 = vrot.lane.b32.xlu1 %v7656_v24, %s9564_s19  ;;  %v691_v36 = vrot.slane %v689_v26, 4  ;;  %v8244_v45 = vpack.c.bf16 %v101_v15, %v101_v15  ;;  %v8245_v46 = vpack.c.bf16 %v10079_v16, %v10079_v16  ;;  %v10128_v15 = vld [vmem:[%s13465_s0 + $0xf8] sm:$0xf]  ;;  %v10133_v23 = vld [vmem:[%s13465_s0 + $0xf0] sm:$0xff] }
  0xaf   :  { %v789_v42 = vsel %vm9723_vm11, %v7629_v31, %v788_v32  ;;  %v790_v43 = vrot.slane %v788_v32, 4  ;;  %v690_v39 = vsel %vm9708_vm10, %v686_v35, %v689_v26  ;;  %v10109_v48 = vpack.c.bf16 %v10086_v21, %v10086_v21 }
  0xb0   :  { %872 = vrot.lane.b32.xlu0 %v7644_v34, %s9562_s17  ;;  %v695_v47 = vsel %vm9708_vm10, %v691_v36, %v10092_v30  ;;  %v435_v49 = vrot.slane %v433_v2, 4  ;;  %v439_v53 = vshll.u32 %v8244_v45, 16  ;;  %v444_v55 = vshrl.u32 %v8245_v46, 16 }
  0xb1   :  { %v7668_v51 = vcombine.low %v690_v39, %v695_v47  ;;  %v792_v52 = vsel %vm9723_vm11, %v790_v43, %v791_v41  ;;  %v447_v56 = vshll.u32 %v8245_v46, 16  ;;  %v453_v57 = vshll.u32 %v10109_v48, 16 }
  0xb2   :  { %v7680_v9 = vcombine.low %v789_v42, %v792_v52  ;;  %v436_v10 = vor.u32 %v435_v49, %v431_v7  ;;  %v441_v58 = vrot.slane %v439_v53, 5  ;;  %v446_v11 = vrot.slane %v444_v55, 4 }
  0xb3   :  { %v547_v59 = vrot.slane %v545_v44, 4  ;;  %v548_v60 = vrot.slane %v8244_v45, 5  ;;  %v449_v62 = vrot.slane %v447_v56, 5  ;;  %v455_v63 = vrot.slane %v453_v57, 5 }
  0xb4   :  { %992 = vrot.lane.b32.xlu0 %v7668_v51, %s9563_s18  ;;  %1052 = vrot.lane.b32.xlu1 %v7680_v9, %s9565_s20  ;;  %v437_v61 = vrot.slane %v436_v10, 4  ;;  %v7622_v0 = vrot.slane %v8245_v46, 9  ;;  %v552_v2 = vrot.slane %v10109_v48, 5  ;;  %v457_v54 = vshrl.u32 %v10109_v48, 16 }
  0xb5   :  { %v549_v1 = vsel %vm9696_vm8, %v547_v59, %v548_v60  ;;  %v696_v3 = vrot.slane %v10092_v30, 4  ;;  %v450_v7 = vor.u32 %v449_v62, %v446_v11  ;;  %v697_v6 = vshrl.u32 %v8244_v45, 16 }
  0xb6   :  { %v442_v44 = vsel %vm9702_vm9, %v437_v61, %v441_v58  ;;  %v700_v4 = vrot.slane %v439_v53, 6  ;;  %v553_v5 = vsel %vm9696_vm8, %v7622_v0, %v552_v2  ;;  %v703_v8 = vrot.slane %v444_v55, 5 }
  0xb7   :  { %v704_v12 = vrot.slane %v447_v56, 6  ;;  %v707_v14 = vrot.slane %v457_v54, 5  ;;  %v451_v17 = vrot.slane %v450_v7, 4  ;;  %v7657_v18 = vcombine.low %v549_v1, %v553_v5 }
  0xb8   :  { %v699_v19 = vrot.slane %v697_v6, 5  ;;  %v708_v20 = vrot.slane %v453_v57, 6  ;;  %v793_v25 = vrot.slane %v791_v41, 4  ;;  %v794_v26 = vrot.slane %v8244_v45, 6 }
  0xb9   :  { %v705_v24 = vor.u32 %v704_v12, %v703_v8  ;;  %v7630_v29 = vrot.slane %v8245_v46, 10  ;;  %v456_v30 = vsel %vm9702_vm9, %v451_v17, %v455_v63  ;;  %934 = vrot.lane.b32.xlu1 %v7657_v18, %s9564_s19  ;;  %v798_v34 = vrot.slane %v10109_v48, 6  ;;  %v10139_v35 = vpop.permute.xlu0 %854  ;;  %v9019_v8 = vld [vmem:[#allocation2 + $0xc4] ss:$12 sps:$4 sm:$0x3f]  }
  0xba   :  { %v701_v31 = vor.u32 %v700_v4, %v699_v19  ;;  %v709_v32 = vor.u32 %v708_v20, %v707_v14  ;;  %v7645_v36 = vcombine.low %v442_v44, %v456_v30  ;;  %v795_v43 = vsel %vm9723_vm11, %v793_v25, %v794_v26  ;;  %v9021_v12 = vld [vmem:[#allocation2 + $0xc0] ss:$12 sps:$4 sm:$0x3f]  }
  0xbb   :  { %v706_v42 = vrot.slane %v705_v24, 4  ;;  %v8247_v41 = vpack.c.bf16 %v10133_v23, %v10133_v23  ;;  %v799_v46 = vsel %vm9723_vm11, %v7630_v29, %v798_v34  ;;  %v10151_v39 = vpack.c.bf16 %v10128_v15, %v10128_v15  ;;  %v10153_v48 = vpop.permute.xlu1 %974 }
  0xbc   :  { %v702_v45 = vsel %vm9708_vm10, %v696_v3, %v701_v31  ;;  %v459_v47 = vrot.slane %v457_v54, 4  ;;  %874 = vrot.lane.b32.xlu0 %v7645_v36, %s9562_s17  ;;  %v7681_v51 = vcombine.low %v795_v43, %v799_v46  ;;  %v554_v56 = vrot.slane %v552_v2, 4  ;;  %v9463_v43 = vld [vmem:[%s13465_s0] sm:$0xff]  ;;  %v9022_v46 = vld [vmem:[#allocation2 + $0x8] ss:$12 sps:$4 sm:$0xff]  }
  0xbd   :  { %v710_v49 = vsel %vm9708_vm10, %v706_v42, %v709_v32  ;;  %v463_v52 = vshll.u32 %v8247_v41, 16  ;;  %v467_v53 = vshrl.u32 %v8247_v41, 16  ;;  %v473_v10 = vshll.u32 %v10151_v39, 16  ;;  %v915_v1 = vpop.permute.xlu0 %914 }
  0xbe   :  { %v7669_v55 = vcombine.low %v702_v45, %v710_v49  ;;  %v460_v9 = vor.u32 %v459_v47, %v455_v63  ;;  %1054 = vrot.lane.b32.xlu1 %v7681_v51, %s9565_s20  ;;  %v555_v11 = vrot.slane %v8247_v41, 5  ;;  %v558_v59 = vrot.slane %v10151_v39, 5 }
  0xbf   :  { %v465_v57 = vrot.slane %v463_v52, 5  ;;  %v469_v58 = vrot.slane %v467_v53, 4  ;;  %v475_v61 = vrot.slane %v473_v10, 5  ;;  %v711_v62 = vrot.slane %v709_v32, 4  ;;  %v10161_v54 = vpop.permute.xlu1 %1034 }
  0xc0   :  { %v461_v60 = vrot.slane %v460_v9, 4  ;;  %v712_v0 = vrot.slane %v467_v53, 5  ;;  %994 = vrot.lane.b32.xlu0 %v7669_v55, %s9563_s18  ;;  %v556_v2 = vsel %vm9696_vm8, %v554_v56, %v555_v11  ;;  %v557_v3 = vrot.slane %v555_v11, 4 }
  0xc1   :  { %v470_v63 = vor.u32 %v469_v58, %v465_v57  ;;  %v713_v44 = vrot.slane %v463_v52, 6  ;;  %v717_v6 = vshrl.u32 %v10151_v39, 16  ;;  %v720_v4 = vrot.slane %v473_v10, 6  ;;  %v9466_v10 = vld [vmem:[%s13465_s0 + $0x20] sm:$0xff]  ;;  %v9467_v58 = vld [vmem:[%s13465_s0 + $0x28] sm:$0xff] }
  0xc2   :  { %v466_v7 = vsel %vm9702_vm9, %v461_v60, %v465_v57  ;;  %v800_v5 = vrot.slane %v798_v34, 4  ;;  %v559_v17 = vsel %vm9696_vm8, %v557_v3, %v558_v59  ;;  %v801_v19 = vrot.slane %v8247_v41, 6 }
  0xc3   :  { %v471_v14 = vrot.slane %v470_v63, 4  ;;  %v714_v18 = vor.u32 %v713_v44, %v712_v0  ;;  %v7658_v20 = vcombine.low %v556_v2, %v559_v17  ;;  %v719_v24 = vrot.slane %v717_v6, 5  ;;  %v917_v26 = vpop.permute.xlu1 %916  ;;  %v9023_v0 = vld [vmem:[#allocation2 + $0x20] ss:$12 sps:$4 sm:$0xff]  }
  0xc4   :  { %v804_v25 = vrot.slane %v10151_v39, 6  ;;  %vm1058_vm12 = vcmask 228352   ;;  %v802_v32 = vsel %vm9723_vm11, %v800_v5, %v801_v19  ;;  %v803_v42 = vrot.slane %v801_v19, 4  ;;  %v9024_v5 = vld [vmem:[#allocation2 + $0x38] ss:$12 sps:$4 sm:$0xff]  }
  0xc5   :  { %v476_v29 = vsel %vm9702_vm9, %v471_v14, %v475_v61  ;;  %v715_v30 = vsel %vm9708_vm10, %v711_v62, %v714_v18  ;;  %v716_v31 = vrot.slane %v714_v18, 4  ;;  %936 = vrot.lane.b32.xlu1 %v7658_v20, %s9564_s19  ;;  %v721_v36 = vor.u32 %v720_v4, %v719_v24  ;;  %v9468_v61 = vld [vmem:[%s13465_s0 + $0x30] sm:$0xff] }
  0xc6   :  { %v7646_v34 = vcombine.low %v466_v7, %v476_v29  ;;  %v106_v41 = vpack.c.bf16 %v9464_v33, %v9463_v43  ;;  %v857_v45 = vpop.permute.xlu0 %856  ;;  %vm1401_vm13 = vcmask 1045504   ;;  %vm1095_vm14 = vcmask 457728  }
  0xc7   :  { %vm1376_vm15 = vcmask 97280   ;;  %v722_v39 = vsel %vm9708_vm10, %v716_v31, %v721_v36  ;;  %v805_v47 = vsel %vm9723_vm11, %v803_v42, %v804_v25  ;;  %7710 = vmatprep.subr.msk.bf16.mxu1 %vm1401_vm13, %v9019_v8  ;;  %v1403_v51 = vsel %vm1401_vm13, %v9021_v12, 0  ;;  %v9470_v36 = vld [vmem:[%s13465_s0 + $0x40] sm:$0xff]  ;;  %v9471_v42 = vld [vmem:[%s13465_s0 + $0x48] sm:$0xff] }
  0xc8   :  { %876 = vrot.lane.b32.xlu0 %v7646_v34, %s9562_s17  ;;  %v1061_v49 = vsel %vm1058_vm12, %v106_v41, %v10139_v35  ;;  %v7670_v52 = vcombine.low %v715_v30, %v722_v39  ;;  %v7682_v53 = vcombine.low %v802_v32, %v805_v47  ;;  %1428 = vmatpush1.bf16.msra.mxu1 %v1403_v51  ;;  %vm1120_vm0 = vcmask 687104   ;;  %v10197_v40 = vpop.permute.xlu1 %1036  ;;  %v9465_v35 = vld [vmem:[%s13465_s0 + $0x10] sm:$0xff] }
  0xc9   :  { %v1097_v55 = vsel %vm1095_vm14, %v1061_v49, %v915_v1  ;;  %7711 = vmatprep.mubr.msk.bf16.mxu1 %vm1376_vm15, %v10161_v54  ;;  %v13477_v9 = vmov 0   ;;  %v8249_v56 = vpack.c.bf16 %v9466_v10, %v9465_v35  ;;  %vm1145_vm1 = vcmask 916480   ;;  %v9030_v1 = vld [vmem:[#allocation2 + $0xc8] ss:$12 sps:$4 sm:$0x3f]  }
  0xca   :  { %1564 = vmatprep.subr.bf16.mxu1 %v13477_v9  ;;  %v1122_v57 = vsel %vm1120_vm0, %v1097_v55, %v10153_v48  ;;  %v108_v11 = vpack.c.bf16 %v9467_v58, %v9466_v10  ;;  %3467 = vmatprep.mubr.bf16.mxu0 %v13477_v9  ;;  %v977_v60 = vpop.permute.xlu0 %976  ;;  %v9469_v48 = vld [vmem:[%s13465_s0 + $0x38] sm:$0xf]  ;;  %v117_v8 = vpack.c.bf16 %v9999_v38, %v9992_v37  ;;  %v1409_v24 = vsel %vm1401_vm13, %v9030_v1, 0  ;;  %v9026_v34 = vld [vmem:[#allocation2 + $0x68] ss:$12 sps:$4 sm:$0xff]  }
  0xcb   :  { %1056 = vrot.lane.b32.xlu1 %v7682_v53, %s9565_s20  ;;  %v10215_v59 = vsel %vm1145_vm1, %v1122_v57, %v10161_v54  ;;  %v109_v62 = vpack.c.bf16 %v9469_v48, %v9468_v61  ;;  %v1064_v63 = vsel %vm1058_vm12, %v8249_v56, %v857_v45  ;;  %v118_v12 = vpack.c.bf16 %v10030_v22, %v10022_v13  ;;  %v9027_v45 = vld [vmem:[#allocation2 + $0x80] ss:$12 sps:$4 sm:$0xff]   ;;  %v9028_v49 = vld [vmem:[#allocation2 + $0x98] ss:$12 sps:$4 sm:$0xff]   ;;  %v9029_v35 = vld [vmem:[#allocation2 + $0xb0] ss:$12 sps:$4 sm:$0xff]  }
  0xcc   :  { %996 = vrot.lane.b32.xlu0 %v7670_v52, %s9563_s18  ;;  %1444 = vmatmul.mubr.bf16.vlgmr.msra.gmra.mrb[0].mxu1 %v10215_v59  ;;  %v142_v2 = vunpack.c.h.b16 %v108_v11  ;;  %v1099_v3 = vsel %vm1095_vm14, %v1064_v63, %v917_v26  ;;  %v8252_v14 = vpack.c.bf16 %v10079_v16, %v10037_v27  ;;  %v120_v17 = vpack.c.bf16 %v10086_v21, %v10079_v16  ;;  %v9025_v21 = vld [vmem:[#allocation2 + $0x50] ss:$12 sps:$4 sm:$0xff]   ;;  %v9473_v56 = vld [vmem:[%s13465_s0 + $0x60] sm:$0xff] }
  0xcd   :  { %1565 = vmatpush1.bf16.msra.mxu1 %v9022_v46  ;;  %7712 = vmatprep.mubr.msk.bf16.mxu1 %vm1376_vm15, %v10197_v40  ;;  %v143_v44 = vunpack.c.l.b16 %v109_v62  ;;  %v1124_v7 = vsel %vm1120_vm0, %v1099_v3, %v977_v60  ;;  %v121_v20 = vpack.c.bf16 %v10128_v15, %v10133_v23  ;;  %v110_v43 = vpack.c.bf16 %v9471_v42, %v9470_v36  ;;  %v9472_v10 = vld [vmem:[%s13465_s0 + $0x50] sm:$0xff]  ;;  %v9474_v60 = vld [vmem:[%s13465_s0 + $0x68] sm:$0xff]  ;;  %v9476_v62 = vld [vmem:[%s13465_s0 + $0x78] sm:$0xf] }
  0xce   :  { %1566 = vmatprep.subr.bf16.mxu1 %v13477_v9  ;;  %v919_v4 = vpop.permute.xlu1 %918  ;;  %v10241_v19 = vsel %vm1145_vm1, %v1124_v7, %v10197_v40  ;;  %v10248_v26 = vunpack.c.h.b16 %v120_v17  ;;  %v8250_v57 = vpack.c.bf16 %v9473_v56, %v9472_v10  ;;  %v112_v61 = vpack.c.bf16 %v9474_v60, %v9473_v56  ;;  %v9475_v48 = vld [vmem:[%s13465_s0 + $0x70] sm:$0xff] }
  0xcf   :  { %v808_v6 = vpack.c.b16 %v143_v44, %v142_v2  ;;  %v10251_v30 = vunpack.c.l.b16 %v121_v20  ;;  %vm1837_vm2 = vcmask 1046528   ;;  %vm4817_vm3 = vcmask 1040384  }
  0xd0   :  { %v148_v44 = vunpack.c.h.b16 %v112_v61  ;;  %vm4818_vm4 = vcmask 1044484   ;;  %vm6504_vm6 = vcmask 785408   ;;  %vm6634_vm7 = vcmask 1041409  }
  0xd1   :  { %v859_v18 = vpop.permute.xlu0 %858  ;;  %1567 = vmatpush1.bf16.msra.mxu1 %v9023_v0  ;;  %v817_v15 = vpack.c.b16 %v10251_v30, %v10248_v26  ;;  %v113_v0 = vpack.c.bf16 %v9476_v62, %v9475_v48  ;;  %vm10914_vm5 = vmor %vm4817_vm3, %vm4818_vm4  ;;  %vm6640_vm9 = vcmask 1043459   ;;  %vm6646_vm10 = vcmask 1045509  }
  0xd2   :  { %v1067_v25 = vsel %vm1058_vm12, %v808_v6, %v859_v18  ;;  %1568 = vmatprep.subr.bf16.mxu1 %v13477_v9 }
  0xd3   :  { %v1101_v29 = vsel %vm1095_vm14, %v1067_v25, %v919_v4  ;;  %v10254_v31 = vpop.permute.xlu1 %1038  ;;  %v149_v7 = vunpack.c.l.b16 %v113_v0  ;;  %v155_v0 = vunpack.c.l.b16 %v117_v8 }
  0xd4   :  { %1454 = vmatmul.mubr.bf16.gmra.mrb[4].mxu1 %v10241_v19 }
  0xd5   :  { %v979_v32 = vpop.permute.xlu0 %978  ;;  %7713 = vmatprep.mubr.msk.bf16.mxu1 %vm1376_vm15, %v10254_v31  ;;  %1569 = vmatpush1.bf16.msra.mxu1 %v9024_v5  ;;  %v811_v5 = vpack.c.b16 %v149_v7, %v148_v44 }
  0xd6   :  { %v1126_v23 = vsel %vm1120_vm0, %v1101_v29, %v979_v32  ;;  %1570 = vmatprep.subr.bf16.mxu1 %v13477_v9 }
  0xd7   :  { %v10270_v33 = vsel %vm1145_vm1, %v1126_v23, %v10254_v31  ;;  %v9477_v23 = vld [vmem:[%s13465_s0 + $0x80] sm:$0xff] }
  0xd9   :  { %1571 = vmatpush1.bf16.msra.mxu1 %v9025_v21 }
  0xda   :  { %v921_v41 = vpop.permute.xlu1 %920  ;;  %1572 = vmatprep.subr.bf16.mxu1 %v13477_v9 }
  0xdc   :  { %v861_v46 = vpop.permute.xlu0 %860  ;;  %1464 = vmatmul.mubr.bf16.gmra.mrb[8].mxu1 %v10270_v33 }
  0xdd   :  { %v1070_v39 = vsel %vm1058_vm12, %v110_v43, %v861_v46  ;;  %1573 = vmatpush1.bf16.msra.mxu1 %v9026_v34  ;;  %v9478_v34 = vld [vmem:[%s13465_s0 + $0x88] sm:$0xff] }
  0xde   :  { %v1103_v47 = vsel %vm1095_vm14, %v1070_v39, %v921_v41  ;;  %1574 = vmatprep.subr.bf16.mxu1 %v13477_v9  ;;  %v114_v36 = vpack.c.bf16 %v9478_v34, %v9477_v23 }
  0xe0   :  { %v981_v51 = vpop.permute.xlu0 %980  ;;  %v10277_v52 = vpop.permute.xlu1 %1040 }
  0xe1   :  { %v1128_v53 = vsel %vm1120_vm0, %v1103_v47, %v981_v51  ;;  %7714 = vmatprep.mubr.msk.bf16.mxu1 %vm1376_vm15, %v10277_v52  ;;  %1575 = vmatpush1.bf16.msra.mxu1 %v9027_v45  ;;  %v9479_v51 = vld [vmem:[%s13465_s0 + $0x90] sm:$0xff] }
  0xe2   :  { %v10284_v55 = vsel %vm1145_vm1, %v1128_v53, %v10277_v52  ;;  %1576 = vmatprep.subr.bf16.mxu1 %v13477_v9  ;;  %v9480_v53 = vld [vmem:[%s13465_s0 + $0xa0] sm:$0xff] }
  0xe4   :  { %1474 = vmatmul.mubr.bf16.gmra.mrb[12].mxu1 %v10284_v55 }
  0xe5   :  { %1577 = vmatpush1.bf16.msra.mxu1 %v9028_v49  ;;  %v923_v58 = vpop.permute.xlu1 %922 }
  0xe6   :  { %1578 = vmatprep.subr.bf16.mxu1 %v13477_v9 }
  0xe8   :  { %v863_v11 = vpop.permute.xlu0 %862 }
  0xe9   :  { %1579 = vmatpush1.bf16.msra.mxu1 %v9029_v35  ;;  %v1073_v1 = vsel %vm1058_vm12, %v8250_v57, %v863_v11  ;;  %v8251_v35 = vpack.c.bf16 %v9480_v53, %v9479_v51  ;;  %v9481_v57 = vld [vmem:[%s13465_s0 + $0xa8] sm:$0xff] }
  0xea   :  { %1580 = vmatprep.subr.bf16.mxu1 %v13477_v9  ;;  %v1105_v63 = vsel %vm1095_vm14, %v1073_v1, %v923_v58  ;;  %v10307_v2 = vpop.permute.xlu1 %1042  ;;  %v116_v58 = vpack.c.bf16 %v9481_v57, %v9480_v53 }
  0xeb   :  { %7715 = vmatprep.mubr.msk.bf16.mxu1 %vm1376_vm15, %v10307_v2 }
  0xec   :  { %v983_v3 = vpop.permute.xlu0 %982  ;;  %v154_v62 = vunpack.c.h.b16 %v116_v58 }
  0xed   :  { %1581 = vmatpush1.bf16.msra.mxu1 %v1409_v24  ;;  %v1130_v6 = vsel %vm1120_vm0, %v1105_v63, %v983_v3 }
  0xee   :  { %v10314_v4 = vsel %vm1145_vm1, %v1130_v6, %v10307_v2  ;;  %v814_v3 = vpack.c.b16 %v155_v0, %v154_v62 }
  0xef   :  { %1484 = vmatmul.mubr.bf16.gmra.mrb[16].mxu1 %v10314_v4 }
  0xf1   :  { %v925_v17 = vpop.permute.xlu1 %924 }
  0xf4   :  { %v865_v18 = vpop.permute.xlu0 %864 }
  0xf5   :  { %v1076_v20 = vsel %vm1058_vm12, %v811_v5, %v865_v18 }
  0xf6   :  { %v1107_v25 = vsel %vm1095_vm14, %v1076_v20, %v925_v17  ;;  %v10319_v29 = vpop.permute.xlu1 %1044 }
  0xf7   :  { %7716 = vmatprep.mubr.msk.bf16.mxu1 %vm1376_vm15, %v10319_v29 }
  0xf8   :  { %v985_v21 = vpop.permute.xlu0 %984 }
  0xf9   :  { %v1132_v24 = vsel %vm1120_vm0, %v1107_v25, %v985_v21 }
  0xfa   :  { %v10326_v32 = vsel %vm1145_vm1, %v1132_v24, %v10319_v29 }
  0xfb   :  { %1494 = vmatmul.mubr.bf16.gmra.mrb[20].mxu1 %v10326_v32 }
  0xfd   :  { %v927_v42 = vpop.permute.xlu1 %926 }
  0xff   :  { %v867_v43 = vpop.permute.xlu0 %866 }
 0x100   :  { %v1079_v41 = vsel %vm1058_vm12, %v114_v36, %v867_v43 }
 0x101   :  { %v1109_v45 = vsel %vm1095_vm14, %v1079_v41, %v927_v42 }
 0x103   :  { %v987_v46 = vpop.permute.xlu0 %986  ;;  %v10337_v39 = vpop.permute.xlu1 %1046 }
 0x104   :  { %v1134_v47 = vsel %vm1120_vm0, %v1109_v45, %v987_v46  ;;  %7717 = vmatprep.mubr.msk.bf16.mxu1 %vm1376_vm15, %v10337_v39 }
 0x105   :  { %v10344_v49 = vsel %vm1145_vm1, %v1134_v47, %v10337_v39 }
 0x106   :  { %1504 = vmatmul.mubr.bf16.gmra.mrb[24].mxu1 %v10344_v49 }
 0x108   :  { %v929_v10 = vpop.permute.xlu1 %928 }
 0x10b   :  { %v869_v56 = vpop.permute.xlu0 %868 }
 0x10c   :  { %v1082_v11 = vsel %vm1058_vm12, %v8251_v35, %v869_v56 }
 0x10d   :  { %v1111_v60 = vsel %vm1095_vm14, %v1082_v11, %v929_v10  ;;  %v10358_v61 = vpop.permute.xlu1 %1048 }
 0x10e   :  { %7718 = vmatprep.mubr.msk.bf16.mxu1 %vm1376_vm15, %v10358_v61 }
 0x10f   :  { %v989_v48 = vpop.permute.xlu0 %988 }
 0x110   :  { %v1136_v1 = vsel %vm1120_vm0, %v1111_v60, %v989_v48 }
 0x111   :  { %v1168_v63 = vsel %vm1145_vm1, %v1136_v1, %v10358_v61 }
 0x112   :  { %1514 = vmatmul.mubr.bf16.gmra.mrb[28].mxu1 %v1168_v63 }
 0x114   :  { %v931_v44 = vpop.permute.xlu1 %930 }
 0x117   :  { %v871_v7 = vpop.permute.xlu0 %870 }
 0x118   :  { %v1085_v6 = vsel %vm1058_vm12, %v814_v3, %v871_v7 }
 0x119   :  { %v1113_v5 = vsel %vm1095_vm14, %v1085_v6, %v931_v44  ;;  %v1051_v17 = vpop.permute.xlu1 %1050 }
 0x11a   :  { %7719 = vmatprep.mubr.msk.bf16.mxu1 %vm1376_vm15, %v1051_v17 }
 0x11b   :  { %v991_v18 = vpop.permute.xlu0 %990 }
 0x11c   :  { %v1138_v37 = vsel %vm1120_vm0, %v1113_v5, %v991_v18 }
 0x11d   :  { %v1171_v38 = vsel %vm1145_vm1, %v1138_v37, %v1051_v17 }
 0x11e   :  { %1524 = vmatmul.mubr.bf16.gmra.mrb[32].mxu1 %v1171_v38 }
 0x120   :  { %v933_v8 = vpop.permute.xlu1 %932 }
 0x122   :  { %v873_v20 = vpop.permute.xlu0 %872 }
 0x123   :  { %v1088_v25 = vsel %vm1058_vm12, %v118_v12, %v873_v20 }
 0x124   :  { %v1115_v21 = vsel %vm1095_vm14, %v1088_v25, %v933_v8 }
 0x126   :  { %v993_v24 = vpop.permute.xlu0 %992  ;;  %v1053_v23 = vpop.permute.xlu1 %1052 }
 0x127   :  { %v1140_v34 = vsel %vm1120_vm0, %v1115_v21, %v993_v24  ;;  %7720 = vmatprep.mubr.msk.bf16.mxu1 %vm1376_vm15, %v1053_v23 }
 0x128   :  { %v1174_v36 = vsel %vm1145_vm1, %v1140_v34, %v1053_v23 }
 0x129   :  { %1534 = vmatmul.mubr.bf16.gmra.mrb[36].mxu1 %v1174_v36 }
 0x12b   :  { %v935_v42 = vpop.permute.xlu1 %934 }
 0x12e   :  { %v875_v43 = vpop.permute.xlu0 %874 }
 0x12f   :  { %v1091_v13 = vsel %vm1058_vm12, %v8252_v14, %v875_v43 }
 0x130   :  { %v1117_v22 = vsel %vm1095_vm14, %v1091_v13, %v935_v42  ;;  %v1055_v12 = vpop.permute.xlu1 %1054 }
 0x131   :  { %7721 = vmatprep.mubr.msk.bf16.mxu1 %vm1376_vm15, %v1055_v12 }
 0x132   :  { %v995_v41 = vpop.permute.xlu0 %994 }
 0x133   :  { %v1142_v45 = vsel %vm1120_vm0, %v1117_v22, %v995_v41 }
 0x134   :  { %v1177_v46 = vsel %vm1145_vm1, %v1142_v45, %v1055_v12 }
 0x135   :  { %1544 = vmatmul.mubr.bf16.gmra.mrb[40].mxu1 %v1177_v46 }
 0x137   :  { %v937_v47 = vpop.permute.xlu1 %936 }
 0x13a   :  { %v877_v51 = vpop.permute.xlu0 %876 }
 0x13b   :  { %v1094_v27 = vsel %vm1058_vm12, %v817_v15, %v877_v51  ;;  %vm6652_vm12 = vcmask 1047559  }
 0x13c   :  { %v1119_v16 = vsel %vm1095_vm14, %v1094_v27, %v937_v47 }
 0x13d   :  { %v1057_v14 = vpop.permute.xlu1 %1056 }
 0x13e   :  { %v997_v53 = vpop.permute.xlu0 %996  ;;  %7722 = vmatprep.mubr.msk.bf16.mxu1 %vm1376_vm15, %v1057_v14 }
 0x13f   :  { %v1144_v35 = vsel %vm1120_vm0, %v1119_v16, %v997_v53 }
 0x140   :  { %v1180_v10 = vsel %vm1145_vm1, %v1144_v35, %v1057_v14 }
 0x141   :  { %1554 = vmatmul.mubr.bf16.gmra.mrb[44].mxu1 %v1180_v10 }
 0x142   :  { %7723 = vmatprep.mubr.msk.bf16.mxu1 %vm1376_vm15, %v10161_v54  ;;  %v1220_v54 = vlaneseq }
 0x149   :  { %1597 = vmatmul.mubr.bf16.vlgmr.msra.gmra.mrb[48].mxu1 %v10215_v59 }
 0x14a   :  { %7724 = vmatprep.mubr.msk.bf16.mxu1 %vm1376_vm15, %v10197_v40  ;;  %v10423_v40 = vshrl.u32 %v1220_v54, 7 }
 0x14c   :  { %13726 = vst [vmem:[#allocation11_spill] sm:$0xff] %v10423_v40  ;;  %v13476_v59 = vsub.s32 0, %v10423_v40  ;;  %v13475_v26 = vsub.s32 1, %v10423_v40 }
 0x151   :  { %1605 = vmatmul.mubr.bf16.gmra.mrb[52].mxu1 %v10241_v19  ;;  %v10429_v19 = vld [vmem:[%s13467_s2] sm:$0x7] }
 0x152   :  { %7725 = vmatprep.mubr.msk.bf16.mxu1 %vm1376_vm15, %v10254_v31  ;;  %v10436_v30 = vrot.slane %v10429_v19, %v13476_v59  ;;  %v10441_v31 = vrot.slane %v10429_v19, %v13475_v26 }
 0x159   :  { %1613 = vmatmul.mubr.bf16.gmra.mrb[56].mxu1 %v10270_v33 }
 0x15a   :  { %7726 = vmatprep.mubr.msk.bf16.mxu1 %vm1376_vm15, %v10277_v52 }
 0x161   :  { %1621 = vmatmul.mubr.bf16.gmra.mrb[60].mxu1 %v10284_v55 }
 0x162   :  { %7727 = vmatprep.mubr.msk.bf16.mxu1 %vm1376_vm15, %v10307_v2 }
 0x169   :  { %1629 = vmatmul.mubr.bf16.gmra.mrb[64].mxu1 %v10314_v4 }
 0x16a   :  { %7728 = vmatprep.mubr.msk.bf16.mxu1 %vm1376_vm15, %v10319_v29 }
 0x171   :  { %1637 = vmatmul.mubr.bf16.gmra.mrb[68].mxu1 %v10326_v32 }
 0x172   :  { %7729 = vmatprep.mubr.msk.bf16.mxu1 %vm1376_vm15, %v10337_v39 }
 0x179   :  { %1645 = vmatmul.mubr.bf16.gmra.mrb[72].mxu1 %v10344_v49 }
 0x17a   :  { %7730 = vmatprep.mubr.msk.bf16.mxu1 %vm1376_vm15, %v10358_v61 }
 0x181   :  { %1653 = vmatmul.mubr.bf16.gmra.mrb[76].mxu1 %v1168_v63 }
 0x182   :  { %7731 = vmatprep.mubr.msk.bf16.mxu1 %vm1376_vm15, %v1051_v17 }
 0x189   :  { %1661 = vmatmul.mubr.bf16.gmra.mrb[80].mxu1 %v1171_v38 }
 0x18a   :  { %7732 = vmatprep.mubr.msk.bf16.mxu1 %vm1376_vm15, %v1053_v23 }
 0x191   :  { %1669 = vmatmul.mubr.bf16.gmra.mrb[84].mxu1 %v1174_v36 }
 0x192   :  { %7733 = vmatprep.mubr.msk.bf16.mxu1 %vm1376_vm15, %v1055_v12 }
 0x199   :  { %1677 = vmatmul.mubr.bf16.gmra.mrb[88].mxu1 %v1177_v46 }
 0x19a   :  { %7734 = vmatprep.mubr.msk.bf16.mxu1 %vm1376_vm15, %v1057_v14 }
 0x19f   :  { %v1445_v15 = vpop.f32.mrb[0].mxu1 }
 0x1a0   :  { %v1446_v33 = vadd.f32 %v1445_v15, %v10436_v30  ;;  %v1447_v52 = vpop.f32.mrb[1].mxu1 }
 0x1a1   :  { %1685 = vmatmul.mubr.bf16.gmra.mrb[92].mxu1 %v1180_v10  ;;  %v1448_v55 = vadd.f32 %v1447_v52, %v10441_v31  ;;  %v1449_v2 = vpop.f32.mrb[2].mxu1 }
 0x1a2   :  { %v1693_v4 = vmax.f32 %v1446_v33, 0.0  ;;  %v1450_v29 = vadd.f32 %v1449_v2, %v10436_v30  ;;  %v1451_v32 = vpop.f32.mrb[3].mxu1 }
 0x1a3   :  { %v1694_v39 = vmax.f32 %v1448_v55, 0.0  ;;  %v1452_v49 = vadd.f32 %v1451_v32, %v10441_v31 }
 0x1a4   :  { %v1696_v56 = vmax.f32 %v1450_v29, 0.0  ;;  %v10447_v58 = vrot.slane %v1693_v4, 1 }
 0x1a5   :  { %v1697_v57 = vmax.f32 %v1452_v49, 0.0  ;;  %v10449_v60 = vrot.slane %v1694_v39, 1 }
 0x1a6   :  { %v1839_v11 = vrot.slane %v1696_v56, 1 }
 0x1a7   :  { %v1842_v61 = vrot.slane %v1697_v57, 1  ;;  %v1455_v48 = vpop.f32.mrb[4].mxu1 }
 0x1a8   :  { %v1456_v62 = vadd.f32 %v1455_v48, %v10436_v30  ;;  %v1457_v0 = vpop.f32.mrb[5].mxu1  ;;  %v1840_v1 = vsel %vm1837_vm2, %v10447_v58, %v1839_v11 }
 0x1a9   :  { %v1458_v63 = vadd.f32 %v1457_v0, %v10441_v31  ;;  %v1459_v3 = vpop.f32.mrb[6].mxu1  ;;  %v10455_v44 = vmax.f32 %v1693_v4, %v1840_v1  ;;  %v1843_v7 = vsel %vm1837_vm2, %v10449_v60, %v1842_v61 }
 0x1aa   :  { %v1699_v6 = vmax.f32 %v1456_v62, 0.0  ;;  %v1460_v5 = vadd.f32 %v1459_v3, %v10436_v30  ;;  %v1461_v17 = vpop.f32.mrb[7].mxu1  ;;  %v10460_v18 = vmax.f32 %v1694_v39, %v1843_v7 }
 0x1ab   :  { %13727 = vst [vmem:[#allocation12_spill] sm:$0xff] %v10455_v44  ;;  %v1700_v37 = vmax.f32 %v1458_v63, 0.0  ;;  %v1462_v38 = vadd.f32 %v1461_v17, %v10441_v31 }
 0x1ac   :  { %v1847_v8 = vrot.slane %v1699_v6, 1  ;;  %v1702_v20 = vmax.f32 %v1460_v5, 0.0 }
 0x1ad   :  { %v1849_v25 = vrot.slane %v1700_v37, 1  ;;  %v1703_v21 = vmax.f32 %v1462_v38, 0.0 }
 0x1ae   :  { %v1853_v24 = vrot.slane %v1702_v20, 1  ;;  %v1848_v23 = vsel %vm1837_vm2, %v1839_v11, %v1847_v8 }
 0x1af   :  { %v1855_v34 = vrot.slane %v1703_v21, 1  ;;  %v1465_v36 = vpop.f32.mrb[8].mxu1  ;;  %v10464_v42 = vmax.f32 %v1696_v56, %v1848_v23  ;;  %v1850_v43 = vsel %vm1837_vm2, %v1842_v61, %v1849_v25 }
 0x1b0   :  { %v1466_v13 = vadd.f32 %v1465_v36, %v10436_v30  ;;  %v1467_v22 = vpop.f32.mrb[9].mxu1  ;;  %v1854_v12 = vsel %vm1837_vm2, %v1847_v8, %v1853_v24  ;;  %v10469_v41 = vmax.f32 %v1697_v57, %v1850_v43 }
 0x1b1   :  { %13728 = vst [vmem:[#allocation13_spill] sm:$0xff] %v10464_v42  ;;  %v1468_v45 = vadd.f32 %v1467_v22, %v10441_v31  ;;  %v1469_v46 = vpop.f32.mrb[10].mxu1  ;;  %v10472_v47 = vmax.f32 %v1699_v6, %v1854_v12  ;;  %v1856_v51 = vsel %vm1837_vm2, %v1849_v25, %v1855_v34 }
 0x1b2   :  { %v1705_v27 = vmax.f32 %v1466_v13, 0.0  ;;  %v1470_v16 = vadd.f32 %v1469_v46, %v10436_v30  ;;  %v1471_v14 = vpop.f32.mrb[11].mxu1  ;;  %v10476_v53 = vmax.f32 %v1700_v37, %v1856_v51 }
 0x1b3   :  { %13729 = vst [vmem:[#allocation14_spill] sm:$0xff] %v10472_v47  ;;  %v1706_v35 = vmax.f32 %v1468_v45, 0.0  ;;  %v1472_v10 = vadd.f32 %v1471_v14, %v10441_v31 }
 0x1b4   :  { %v1859_v54 = vrot.slane %v1705_v27, 1  ;;  %v1708_v15 = vmax.f32 %v1470_v16, 0.0 }
 0x1b5   :  { %v1861_v33 = vrot.slane %v1706_v35, 1  ;;  %v1709_v52 = vmax.f32 %v1472_v10, 0.0 }
 0x1b6   :  { %v1865_v55 = vrot.slane %v1708_v15, 1  ;;  %v1860_v2 = vsel %vm1837_vm2, %v1853_v24, %v1859_v54 }
 0x1b7   :  { %v1867_v4 = vrot.slane %v1709_v52, 1  ;;  %v1475_v29 = vpop.f32.mrb[12].mxu1  ;;  %v10480_v32 = vmax.f32 %v1702_v20, %v1860_v2  ;;  %v1862_v39 = vsel %vm1837_vm2, %v1855_v34, %v1861_v33 }
 0x1b8   :  { %v1476_v49 = vadd.f32 %v1475_v29, %v10436_v30  ;;  %v1477_v56 = vpop.f32.mrb[13].mxu1  ;;  %v1866_v57 = vsel %vm1837_vm2, %v1859_v54, %v1865_v55  ;;  %v10485_v11 = vmax.f32 %v1703_v21, %v1862_v39 }
 0x1b9   :  { %13730 = vst [vmem:[#allocation15_spill] sm:$0xff] %v10480_v32  ;;  %v1478_v61 = vadd.f32 %v1477_v56, %v10441_v31  ;;  %v1479_v48 = vpop.f32.mrb[14].mxu1  ;;  %v10488_v62 = vmax.f32 %v1705_v27, %v1866_v57  ;;  %v1868_v0 = vsel %vm1837_vm2, %v1861_v33, %v1867_v4 }
 0x1ba   :  { %v1711_v1 = vmax.f32 %v1476_v49, 0.0  ;;  %v1480_v63 = vadd.f32 %v1479_v48, %v10436_v30  ;;  %v1481_v3 = vpop.f32.mrb[15].mxu1  ;;  %v10492_v7 = vmax.f32 %v1706_v35, %v1868_v0 }
 0x1bb   :  { %13731 = vst [vmem:[#allocation16_spill] sm:$0xff] %v10488_v62  ;;  %v1712_v6 = vmax.f32 %v1478_v61, 0.0  ;;  %v1482_v5 = vadd.f32 %v1481_v3, %v10441_v31 }
 0x1bc   :  { %v1871_v17 = vrot.slane %v1711_v1, 1  ;;  %v1714_v37 = vmax.f32 %v1480_v63, 0.0 }
 0x1bd   :  { %v1873_v38 = vrot.slane %v1712_v6, 1  ;;  %v1715_v8 = vmax.f32 %v1482_v5, 0.0 }
 0x1be   :  { %v1877_v20 = vrot.slane %v1714_v37, 1  ;;  %v1872_v25 = vsel %vm1837_vm2, %v1865_v55, %v1871_v17 }
 0x1bf   :  { %v1879_v21 = vrot.slane %v1715_v8, 1  ;;  %v10496_v24 = vmax.f32 %v1708_v15, %v1872_v25  ;;  %v1874_v23 = vsel %vm1837_vm2, %v1867_v4, %v1873_v38 }
 0x1c0   :  { %v1878_v34 = vsel %vm1837_vm2, %v1871_v17, %v1877_v20  ;;  %v10500_v36 = vmax.f32 %v1709_v52, %v1874_v23 }
 0x1c1   :  { %13732 = vst [vmem:[#allocation17_spill] sm:$0xff] %v10496_v24  ;;  %v10502_v43 = vmax.f32 %v1711_v1, %v1878_v34  ;;  %v1880_v13 = vsel %vm1837_vm2, %v1873_v38, %v1879_v21 }
 0x1c2   :  { %v10505_v22 = vmax.f32 %v1712_v6, %v1880_v13  ;;  %v1485_v12 = vpop.f32.mrb[16].mxu1 }
 0x1c3   :  { %13733 = vst [vmem:[#allocation18_spill] sm:$0xff] %v10502_v43  ;;  %v1486_v45 = vadd.f32 %v1485_v12, %v10436_v30  ;;  %v1487_v46 = vpop.f32.mrb[17].mxu1 }
 0x1c4   :  { %v1488_v51 = vadd.f32 %v1487_v46, %v10441_v31  ;;  %v1489_v27 = vpop.f32.mrb[18].mxu1 }
 0x1c5   :  { %v1717_v16 = vmax.f32 %v1486_v45, 0.0  ;;  %v1490_v14 = vadd.f32 %v1489_v27, %v10436_v30  ;;  %v1491_v35 = vpop.f32.mrb[19].mxu1 }
 0x1c6   :  { %v1718_v10 = vmax.f32 %v1488_v51, 0.0  ;;  %v1492_v54 = vadd.f32 %v1491_v35, %v10441_v31 }
 0x1c7   :  { %v1883_v15 = vrot.slane %v1717_v16, 1  ;;  %v1720_v33 = vmax.f32 %v1490_v14, 0.0 }
 0x1c8   :  { %v1885_v52 = vrot.slane %v1718_v10, 1  ;;  %v1721_v55 = vmax.f32 %v1492_v54, 0.0 }
 0x1c9   :  { %v1889_v2 = vrot.slane %v1720_v33, 1  ;;  %v1884_v4 = vsel %vm1837_vm2, %v1877_v20, %v1883_v15 }
 0x1ca   :  { %v1891_v29 = vrot.slane %v1721_v55, 1  ;;  %v10512_v39 = vmax.f32 %v1714_v37, %v1884_v4  ;;  %v1886_v49 = vsel %vm1837_vm2, %v1879_v21, %v1885_v52 }
 0x1cb   :  { %v1890_v56 = vsel %vm1837_vm2, %v1883_v15, %v1889_v2  ;;  %v10516_v57 = vmax.f32 %v1715_v8, %v1886_v49 }
 0x1cc   :  { %13734 = vst [vmem:[#allocation19_spill] sm:$0xff] %v10512_v39  ;;  %v10518_v61 = vmax.f32 %v1717_v16, %v1890_v56  ;;  %v1892_v48 = vsel %vm1837_vm2, %v1885_v52, %v1891_v29 }
 0x1cd   :  { %13735 = vst [vmem:[#allocation20_spill] sm:$0xff] %v10516_v57  ;;  %v10521_v1 = vmax.f32 %v1718_v10, %v1892_v48 }
 0x1ce   :  { %13736 = vst [vmem:[#allocation21_spill] sm:$0xff] %v10518_v61  ;;  %v1495_v0 = vpop.f32.mrb[20].mxu1 }
 0x1cf   :  { %13737 = vst [vmem:[#allocation22_spill] sm:$0xff] %v10521_v1  ;;  %v1496_v63 = vadd.f32 %v1495_v0, %v10436_v30  ;;  %v1497_v3 = vpop.f32.mrb[21].mxu1 }
 0x1d0   :  { %v1498_v6 = vadd.f32 %v1497_v3, %v10441_v31  ;;  %v1499_v5 = vpop.f32.mrb[22].mxu1 }
 0x1d1   :  { %v1723_v17 = vmax.f32 %v1496_v63, 0.0  ;;  %v1500_v37 = vadd.f32 %v1499_v5, %v10436_v30  ;;  %v1501_v38 = vpop.f32.mrb[23].mxu1 }
 0x1d2   :  { %v1724_v20 = vmax.f32 %v1498_v6, 0.0  ;;  %v1502_v8 = vadd.f32 %v1501_v38, %v10441_v31 }
 0x1d3   :  { %v1895_v25 = vrot.slane %v1723_v17, 1  ;;  %v1726_v21 = vmax.f32 %v1500_v37, 0.0 }
 0x1d4   :  { %v1897_v23 = vrot.slane %v1724_v20, 1  ;;  %v1727_v34 = vmax.f32 %v1502_v8, 0.0 }
 0x1d5   :  { %v1901_v13 = vrot.slane %v1726_v21, 1  ;;  %v1896_v12 = vsel %vm1837_vm2, %v1889_v2, %v1895_v25 }
 0x1d6   :  { %v1903_v45 = vrot.slane %v1727_v34, 1  ;;  %v10528_v46 = vmax.f32 %v1720_v33, %v1896_v12  ;;  %v1898_v51 = vsel %vm1837_vm2, %v1891_v29, %v1897_v23 }
 0x1d7   :  { %v1902_v27 = vsel %vm1837_vm2, %v1895_v25, %v1901_v13  ;;  %v10532_v16 = vmax.f32 %v1721_v55, %v1898_v51 }
 0x1d8   :  { %13738 = vst [vmem:[#allocation23_spill] sm:$0xff] %v10528_v46  ;;  %v10534_v14 = vmax.f32 %v1723_v17, %v1902_v27  ;;  %v1904_v35 = vsel %vm1837_vm2, %v1897_v23, %v1903_v45 }
 0x1d9   :  { %13739 = vst [vmem:[#allocation24_spill] sm:$0xff] %v10532_v16  ;;  %v1505_v10 = vpop.f32.mrb[24].mxu1  ;;  %v10537_v54 = vmax.f32 %v1724_v20, %v1904_v35 }
 0x1da   :  { %13740 = vst [vmem:[#allocation25_spill] sm:$0xff] %v10534_v14  ;;  %v1506_v15 = vadd.f32 %v1505_v10, %v10436_v30  ;;  %v1507_v52 = vpop.f32.mrb[25].mxu1 }
 0x1db   :  { %13741 = vst [vmem:[#allocation26_spill] sm:$0xff] %v10537_v54  ;;  %v1508_v2 = vadd.f32 %v1507_v52, %v10441_v31  ;;  %v1509_v33 = vpop.f32.mrb[26].mxu1 }
 0x1dc   :  { %v1729_v4 = vmax.f32 %v1506_v15, 0.0  ;;  %v1510_v29 = vadd.f32 %v1509_v33, %v10436_v30  ;;  %v1511_v49 = vpop.f32.mrb[27].mxu1 }
 0x1dd   :  { %v1730_v56 = vmax.f32 %v1508_v2, 0.0  ;;  %v1512_v55 = vadd.f32 %v1511_v49, %v10441_v31 }
 0x1de   :  { %v1907_v48 = vrot.slane %v1729_v4, 1  ;;  %v1732_v0 = vmax.f32 %v1510_v29, 0.0 }
 0x1df   :  { %v1909_v63 = vrot.slane %v1730_v56, 1  ;;  %v1733_v3 = vmax.f32 %v1512_v55, 0.0 }
 0x1e0   :  { %v1913_v6 = vrot.slane %v1732_v0, 1  ;;  %v1908_v5 = vsel %vm1837_vm2, %v1901_v13, %v1907_v48 }
 0x1e1   :  { %v1915_v17 = vrot.slane %v1733_v3, 1  ;;  %v10544_v37 = vmax.f32 %v1726_v21, %v1908_v5  ;;  %v1910_v38 = vsel %vm1837_vm2, %v1903_v45, %v1909_v63 }
 0x1e2   :  { %v1914_v20 = vsel %vm1837_vm2, %v1907_v48, %v1913_v6  ;;  %v10548_v8 = vmax.f32 %v1727_v34, %v1910_v38 }
 0x1e3   :  { %13742 = vst [vmem:[#allocation27_spill] sm:$0xff] %v10544_v37  ;;  %v10550_v25 = vmax.f32 %v1729_v4, %v1914_v20  ;;  %v1916_v23 = vsel %vm1837_vm2, %v1909_v63, %v1915_v17 }
 0x1e4   :  { %13743 = vst [vmem:[#allocation28_spill] sm:$0xff] %v10548_v8  ;;  %v10553_v12 = vmax.f32 %v1730_v56, %v1916_v23 }
 0x1e5   :  { %13744 = vst [vmem:[#allocation29_spill] sm:$0xff] %v10550_v25  ;;  %v1515_v51 = vpop.f32.mrb[28].mxu1 }
 0x1e6   :  { %13745 = vst [vmem:[#allocation30_spill] sm:$0xff] %v10553_v12  ;;  %v1516_v27 = vadd.f32 %v1515_v51, %v10436_v30  ;;  %v1517_v35 = vpop.f32.mrb[29].mxu1 }
 0x1e7   :  { %v1518_v13 = vadd.f32 %v1517_v35, %v10441_v31  ;;  %v1519_v21 = vpop.f32.mrb[30].mxu1 }
 0x1e8   :  { %v1735_v10 = vmax.f32 %v1516_v27, 0.0  ;;  %v1520_v45 = vadd.f32 %v1519_v21, %v10436_v30  ;;  %v1521_v15 = vpop.f32.mrb[31].mxu1 }
 0x1e9   :  { %v1736_v52 = vmax.f32 %v1518_v13, 0.0  ;;  %v1522_v34 = vadd.f32 %v1521_v15, %v10441_v31 }
 0x1ea   :  { %v1919_v2 = vrot.slane %v1735_v10, 1  ;;  %v1738_v33 = vmax.f32 %v1520_v45, 0.0 }
 0x1eb   :  { %v1921_v4 = vrot.slane %v1736_v52, 1  ;;  %v1739_v29 = vmax.f32 %v1522_v34, 0.0 }
 0x1ec   :  { %v1925_v49 = vrot.slane %v1738_v33, 1  ;;  %v1920_v56 = vsel %vm1837_vm2, %v1913_v6, %v1919_v2 }
 0x1ed   :  { %v1927_v55 = vrot.slane %v1739_v29, 1  ;;  %v10560_v48 = vmax.f32 %v1732_v0, %v1920_v56  ;;  %v1922_v63 = vsel %vm1837_vm2, %v1915_v17, %v1921_v4 }
 0x1ee   :  { %v1926_v5 = vsel %vm1837_vm2, %v1919_v2, %v1925_v49  ;;  %v10564_v38 = vmax.f32 %v1733_v3, %v1922_v63 }
 0x1ef   :  { %13746 = vst [vmem:[#allocation31_spill] sm:$0xff] %v10560_v48  ;;  %v10566_v20 = vmax.f32 %v1735_v10, %v1926_v5  ;;  %v1928_v23 = vsel %vm1837_vm2, %v1921_v4, %v1927_v55 }
 0x1f0   :  { %13747 = vst [vmem:[#allocation32_spill] sm:$0xff] %v10564_v38  ;;  %v10569_v27 = vmax.f32 %v1736_v52, %v1928_v23 }
 0x1f1   :  { %13748 = vst [vmem:[#allocation33_spill] sm:$0xff] %v10566_v20  ;;  %v1525_v51 = vpop.f32.mrb[32].mxu1 }
 0x1f2   :  { %13749 = vst [vmem:[#allocation34_spill] sm:$0xff] %v10569_v27  ;;  %v1526_v35 = vadd.f32 %v1525_v51, %v10436_v30  ;;  %v1527_v13 = vpop.f32.mrb[33].mxu1 }
 0x1f3   :  { %v1528_v6 = vadd.f32 %v1527_v13, %v10441_v31  ;;  %v1529_v0 = vpop.f32.mrb[34].mxu1 }
 0x1f4   :  { %v1741_v21 = vmax.f32 %v1526_v35, 0.0  ;;  %v1530_v17 = vadd.f32 %v1529_v0, %v10436_v30  ;;  %v1531_v45 = vpop.f32.mrb[35].mxu1 }
 0x1f5   :  { %v1742_v15 = vmax.f32 %v1528_v6, 0.0  ;;  %v1532_v3 = vadd.f32 %v1531_v45, %v10441_v31 }
 0x1f6   :  { %v1931_v10 = vrot.slane %v1741_v21, 1  ;;  %v1744_v34 = vmax.f32 %v1530_v17, 0.0 }
 0x1f7   :  { %v1933_v2 = vrot.slane %v1742_v15, 1  ;;  %v1745_v4 = vmax.f32 %v1532_v3, 0.0 }
 0x1f8   :  { %v1937_v56 = vrot.slane %v1744_v34, 1  ;;  %v1932_v52 = vsel %vm1837_vm2, %v1925_v49, %v1931_v10 }
 0x1f9   :  { %v1939_v63 = vrot.slane %v1745_v4, 1  ;;  %v10576_v5 = vmax.f32 %v1738_v33, %v1932_v52  ;;  %v1934_v23 = vsel %vm1837_vm2, %v1927_v55, %v1933_v2 }
 0x1fa   :  { %v1938_v51 = vsel %vm1837_vm2, %v1931_v10, %v1937_v56  ;;  %v10580_v35 = vmax.f32 %v1739_v29, %v1934_v23 }
 0x1fb   :  { %13750 = vst [vmem:[#allocation35_spill] sm:$0xff] %v10576_v5  ;;  %v10582_v13 = vmax.f32 %v1741_v21, %v1938_v51  ;;  %v1940_v6 = vsel %vm1837_vm2, %v1933_v2, %v1939_v63 }
 0x1fc   :  { %13751 = vst [vmem:[#allocation36_spill] sm:$0xff] %v10580_v35  ;;  %v1535_v0 = vpop.f32.mrb[36].mxu1  ;;  %v10585_v17 = vmax.f32 %v1742_v15, %v1940_v6  ;;  %v9034_v35 = vld [vmem:[#allocation4 + $0x294] ss:$8 sps:$4 sm:$0xff]  }
 0x1fd   :  { %13752 = vst [vmem:[#allocation37_spill] sm:$0xff] %v10582_v13  ;;  %v1536_v45 = vadd.f32 %v1535_v0, %v10436_v30  ;;  %v1537_v3 = vpop.f32.mrb[37].mxu1 }
 0x1fe   :  { %13753 = vst [vmem:[#allocation38_spill] sm:$0xff] %v10585_v17  ;;  %v1538_v49 = vadd.f32 %v1537_v3, %v10441_v31  ;;  %v1539_v33 = vpop.f32.mrb[38].mxu1 }
 0x1ff   :  { %v1747_v52 = vmax.f32 %v1536_v45, 0.0  ;;  %v1540_v55 = vadd.f32 %v1539_v33, %v10436_v30  ;;  %v1541_v26 = vpop.f32.mrb[39].mxu1 }
 0x200   :  { %v1748_v10 = vmax.f32 %v1538_v49, 0.0  ;;  %v1542_v29 = vadd.f32 %v1541_v26, %v10441_v31 }
 0x201   :  { %v1943_v21 = vrot.slane %v1747_v52, 1  ;;  %v1750_v23 = vmax.f32 %v1540_v55, 0.0 }
 0x202   :  { %v1945_v51 = vrot.slane %v1748_v10, 1  ;;  %v1751_v2 = vmax.f32 %v1542_v29, 0.0 }
 0x203   :  { %v1949_v59 = vrot.slane %v1750_v23, 1  ;;  %v1944_v15 = vsel %vm1837_vm2, %v1937_v56, %v1943_v21 }
 0x204   :  { %v1951_v6 = vrot.slane %v1751_v2, 1  ;;  %v10592_v0 = vmax.f32 %v1744_v34, %v1944_v15  ;;  %v1946_v3 = vsel %vm1837_vm2, %v1939_v63, %v1945_v51 }
 0x205   :  { %v1950_v45 = vsel %vm1837_vm2, %v1943_v21, %v1949_v59  ;;  %v10596_v9 = vmax.f32 %v1745_v4, %v1946_v3 }
 0x206   :  { %13754 = vst [vmem:[#allocation39_spill] sm:$0xff] %v10592_v0  ;;  %v10598_v33 = vmax.f32 %v1747_v52, %v1950_v45  ;;  %v1952_v26 = vsel %vm1837_vm2, %v1945_v51, %v1951_v6 }
 0x207   :  { %13755 = vst [vmem:[#allocation40_spill] sm:$0xff] %v10596_v9  ;;  %v10601_v49 = vmax.f32 %v1748_v10, %v1952_v26 }
 0x208   :  { %13756 = vst [vmem:[#allocation41_spill] sm:$0xff] %v10598_v33  ;;  %v1545_v55 = vpop.f32.mrb[40].mxu1 }
 0x209   :  { %13757 = vst [vmem:[#allocation42_spill] sm:$0xff] %v10601_v49  ;;  %v1546_v29 = vadd.f32 %v1545_v55, %v10436_v30  ;;  %v1547_v28 = vpop.f32.mrb[41].mxu1  ;;  %v9031_v49 = vld [vmem:[#allocation4 + $0x284] ss:$8 sps:$4 sm:$0xff]  }
 0x20a   :  { %v1548_v56 = vadd.f32 %v1547_v28, %v10441_v31  ;;  %v1549_v34 = vpop.f32.mrb[42].mxu1  ;;  %3435 = vmatprep.subr.bf16.mxu0 %v9031_v49 }
 0x20b   :  { %v1753_v15 = vmax.f32 %v1546_v29, 0.0  ;;  %v1550_v63 = vadd.f32 %v1549_v34, %v10436_v30  ;;  %v1551_v50 = vpop.f32.mrb[43].mxu1  ;;  %v9033_v34 = vld [vmem:[#allocation4 + $0x280] ss:$8 sps:$4 sm:$0xff]  }
 0x20c   :  { %v1754_v21 = vmax.f32 %v1548_v56, 0.0  ;;  %v1552_v4 = vadd.f32 %v1551_v50, %v10441_v31  ;;  %3436 = vmatpush1.bf16.msra.mxu0 %v9033_v34 }
 0x20d   :  { %v1955_v52 = vrot.slane %v1753_v15, 1  ;;  %v1756_v3 = vmax.f32 %v1550_v63, 0.0  ;;  %3437 = vmatprep.subr.bf16.mxu0 %v9034_v35 }
 0x20e   :  { %v1957_v45 = vrot.slane %v1754_v21, 1  ;;  %v1757_v51 = vmax.f32 %v1552_v4, 0.0 }
 0x20f   :  { %v1961_v10 = vrot.slane %v1756_v3, 1  ;;  %v1956_v26 = vsel %vm1837_vm2, %v1949_v59, %v1955_v52 }
 0x210   :  { %v1963_v9 = vrot.slane %v1757_v51, 1  ;;  %v10608_v55 = vmax.f32 %v1750_v23, %v1956_v26  ;;  %v1958_v28 = vsel %vm1837_vm2, %v1951_v6, %v1957_v45  ;;  %v1230_v26 = vsub.s32 2, %v10423_v40  ;;  %v9037_v40 = vld [vmem:[#allocation4 + $0x2a4] ss:$8 sps:$4 sm:$0xff]  }
 0x211   :  { %v1962_v29 = vsel %vm1837_vm2, %v1955_v52, %v1961_v10  ;;  %v10612_v27 = vmax.f32 %v1751_v2, %v1958_v28  ;;  %v9036_v2 = vld [vmem:[#allocation4 + $0x290] ss:$8 sps:$4 sm:$0xff]  }
 0x212   :  { %13758 = vst [vmem:[#allocation43_spill] sm:$0xff] %v10608_v55  ;;  %v10614_v56 = vmax.f32 %v1753_v15, %v1962_v29  ;;  %v1964_v50 = vsel %vm1837_vm2, %v1957_v45, %v1963_v9  ;;  %3438 = vmatpush1.bf16.msra.mxu0 %v9036_v2 }
 0x213   :  { %13759 = vst [vmem:[#allocation44_spill] sm:$0xff] %v10612_v27  ;;  %v10617_v4 = vmax.f32 %v1754_v21, %v1964_v50  ;;  %3439 = vmatprep.subr.bf16.mxu0 %v9037_v40  ;;  %v9042_v27 = vld [vmem:[#allocation4 + $0x2b0] ss:$8 sps:$4 sm:$0xff]  }
 0x214   :  { %13760 = vst [vmem:[#allocation45_spill] sm:$0xff] %v10614_v56  ;;  %v1555_v63 = vpop.f32.mrb[44].mxu1 }
 0x215   :  { %13761 = vst [vmem:[#allocation46_spill] sm:$0xff] %v10617_v4  ;;  %v1556_v59 = vadd.f32 %v1555_v63, %v10436_v30  ;;  %v1557_v23 = vpop.f32.mrb[45].mxu1  ;;  %v10628_v63 = vrot.slane %v10429_v19, %v1230_v26  ;;  %v9039_v4 = vld [vmem:[#allocation4 + $0x2a0] ss:$8 sps:$4 sm:$0xff]  }
 0x216   :  { %v1558_v6 = vadd.f32 %v1557_v23, %v10441_v31  ;;  %v1559_v52 = vpop.f32.mrb[46].mxu1  ;;  %3440 = vmatpush1.bf16.msra.mxu0 %v9039_v4  ;;  %v9043_v4 = vld [vmem:[#allocation4 + $0x2c4] ss:$8 sps:$4 sm:$0xff]  }
 0x217   :  { %v1759_v28 = vmax.f32 %v1556_v59, 0.0  ;;  %v10623_v15 = vadd.f32 %v1559_v52, %v10436_v30  ;;  %v1561_v45 = vpop.f32.mrb[47].mxu1 }
 0x218   :  { %v1760_v29 = vmax.f32 %v1558_v6, 0.0  ;;  %v1562_v49 = vadd.f32 %v1561_v45, %v10441_v31 }
 0x219   :  { %v1967_v21 = vrot.slane %v1759_v28, 1  ;;  %v13490_v50 = vmax.f32 %v10623_v15, 0.0 }
 0x21a   :  { %v1969_v34 = vrot.slane %v1760_v29, 1  ;;  %v1763_v23 = vmax.f32 %v1562_v49, 0.0 }
 0x21b   :  { %v10632_v30 = vrot.slane %v13490_v50, 1  ;;  %v1968_v59 = vsel %vm1837_vm2, %v1961_v10, %v1967_v21 }
 0x21c   :  { %v1975_v6 = vrot.slane %v1763_v23, 1  ;;  %v1598_v31 = vpop.f32.mrb[48].mxu1  ;;  %v10635_v35 = vmax.f32 %v1756_v3, %v1968_v59  ;;  %v1970_v52 = vsel %vm1837_vm2, %v1963_v9, %v1969_v34  ;;  %v9040_v3 = vld [vmem:[#allocation4 + $0x2b4] ss:$8 sps:$4 sm:$0xff]  }
 0x21d   :  { %v1599_v19 = vadd.f32 %v1598_v31, %v10628_v63  ;;  %v1600_v26 = vpop.f32.mrb[49].mxu1  ;;  %v1974_v2 = vsel %vm1837_vm2, %v1967_v21, %v10632_v30  ;;  %v10641_v45 = vmax.f32 %v1757_v51, %v1970_v52  ;;  %3441 = vmatprep.subr.bf16.mxu0 %v9040_v3  ;;  %v9045_v52 = vld [vmem:[#allocation4 + $0x2c0] ss:$8 sps:$4 sm:$0xff]  }
 0x21e   :  { %13762 = vst [vmem:[#allocation47_spill] sm:$0xff] %v10635_v35  ;;  %v2055_v49 = vsel %vm1837_vm2, %v1975_v6, %v10449_v60  ;;  %v1601_v10 = vpop.f32.mrb[50].mxu1  ;;  %v10645_v50 = vmax.f32 %v1759_v28, %v1974_v2  ;;  %v1976_v40 = vsel %vm1837_vm2, %v1969_v34, %v1975_v6  ;;  %3442 = vmatpush1.bf16.msra.mxu0 %v9042_v27 }
 0x21f   :  { %13763 = vst [vmem:[#allocation48_spill] sm:$0xff] %v10641_v45  ;;  %v10648_v59 = vmax.f32 %v1763_v23, %v2055_v49  ;;  %v1695_v9 = vmax.f32 %v1599_v19, 0.0  ;;  %v1602_v31 = vadd.f32 %v1601_v10, %v10628_v63  ;;  %v1603_v26 = vpop.f32.mrb[51].mxu1  ;;  %v10651_v21 = vmax.f32 %v1760_v29, %v1976_v40  ;;  %3443 = vmatprep.subr.bf16.mxu0 %v9043_v4  ;;  %v9046_v49 = vld [vmem:[#allocation4 + $0x2d4] ss:$8 sps:$4 sm:$0xff]  }
 0x220   :  { %13764 = vst [vmem:[#allocation49_spill] sm:$0xff] %v10645_v50  ;;  %v9048_v40 = vld [vmem:[#allocation4 + $0x2d0] ss:$8 sps:$4 sm:$0xff]  }
 0x221   :  { %13765 = vst [vmem:[#allocation50_spill] sm:$0xff] %v10648_v59  ;;  %13766 = vst [vmem:[#allocation51_spill] sm:$0xff] %v10651_v21  ;;  %v1698_v51 = vmax.f32 %v1602_v31, 0.0  ;;  %v10653_v60 = vrot.slane %v1695_v9, 1 }
 0x222   :  { %3444 = vmatpush1.bf16.msra.mxu0 %v9045_v52 }
 0x223   :  { %v1845_v28 = vrot.slane %v1698_v51, 1  ;;  %3445 = vmatprep.subr.bf16.mxu0 %v9046_v49 }
 0x224   :  { %v1606_v2 = vpop.f32.mrb[52].mxu1 }
 0x225   :  { %v1607_v34 = vadd.f32 %v1606_v2, %v10628_v63  ;;  %v1608_v23 = vpop.f32.mrb[53].mxu1  ;;  %v1846_v6 = vsel %vm1837_vm2, %v10653_v60, %v1845_v28  ;;  %v9049_v2 = vld [vmem:[#allocation4 + $0x2e4] ss:$8 sps:$4 sm:$0xff]  }
 0x226   :  { %v1609_v19 = vpop.f32.mrb[54].mxu1  ;;  %v10658_v29 = vmax.f32 %v1695_v9, %v1846_v6  ;;  %3446 = vmatpush1.bf16.msra.mxu0 %v9048_v40  ;;  %v9051_v23 = vld [vmem:[#allocation4 + $0x2e0] ss:$8 sps:$4 sm:$0xff]  }
 0x227   :  { %v1701_v10 = vmax.f32 %v1607_v34, 0.0  ;;  %v1610_v27 = vadd.f32 %v1609_v19, %v10628_v63  ;;  %v1611_v3 = vpop.f32.mrb[55].mxu1  ;;  %3447 = vmatprep.subr.bf16.mxu0 %v9049_v2 }
 0x228   :  { %13767 = vst [vmem:[#allocation52_spill] sm:$0xff] %v10658_v29  ;;  %v8755_v31 = vpack.i.bf16 %v10658_v29, %v10455_v44 }
 0x229   :  { %v1851_v26 = vrot.slane %v1701_v10, 1  ;;  %v1704_v4 = vmax.f32 %v1610_v27, 0.0 }
 0x22a   :  { %8756 = vrot.lane.b32.xlu1 %v8755_v31, %s9565_s20  ;;  %3448 = vmatpush1.bf16.msra.mxu0 %v9051_v23  ;;  %v9052_v31 = vld [vmem:[#allocation4 + $0x2f4] ss:$8 sps:$4 sm:$0xff]  }
 0x22b   :  { %v1857_v52 = vrot.slane %v1704_v4, 1  ;;  %v1852_v9 = vsel %vm1837_vm2, %v1845_v28, %v1851_v26  ;;  %3449 = vmatprep.subr.bf16.mxu0 %v9052_v31 }
 0x22c   :  { %v1614_v6 = vpop.f32.mrb[56].mxu1  ;;  %v10665_v34 = vmax.f32 %v1698_v51, %v1852_v9  ;;  %v9054_v51 = vld [vmem:[#allocation4 + $0x2f0] ss:$8 sps:$4 sm:$0xff]  }
 0x22d   :  { %v1615_v19 = vadd.f32 %v1614_v6, %v10628_v63  ;;  %v1616_v3 = vpop.f32.mrb[57].mxu1  ;;  %v1858_v44 = vsel %vm1837_vm2, %v1851_v26, %v1857_v52 }
 0x22e   :  { %v1617_v49 = vpop.f32.mrb[58].mxu1  ;;  %v8760_v27 = vpack.i.bf16 %v10665_v34, %v10464_v42  ;;  %v10671_v40 = vmax.f32 %v1701_v10, %v1858_v44  ;;  %3450 = vmatpush1.bf16.msra.mxu0 %v9054_v51  ;;  %v9064_v42 = vld [vmem:[#allocation4 + $0x1a0] ss:$8 sps:$4 sm:$0xff]  }
 0x22f   :  { %v1707_v59 = vmax.f32 %v1615_v19, 0.0  ;;  %v1618_v28 = vadd.f32 %v1617_v49, %v10628_v63  ;;  %v1619_v29 = vpop.f32.mrb[59].mxu1 }
 0x230   :  { %8761 = vrot.lane.b32.xlu0 %v8760_v27, %s9565_s20  ;;  %v8765_v26 = vpack.i.bf16 %v10671_v40, %v10472_v47 }
 0x231   :  { %v1863_v2 = vrot.slane %v1707_v59, 1  ;;  %v1710_v9 = vmax.f32 %v1618_v28, 0.0 }
 0x233   :  { %v1869_v23 = vrot.slane %v1710_v9, 1  ;;  %v1864_v6 = vsel %vm1837_vm2, %v1857_v52, %v1863_v2 }
 0x234   :  { %v1622_v44 = vpop.f32.mrb[60].mxu1  ;;  %8766 = vrot.lane.b32.xlu0 %v8765_v26, %s9565_s20  ;;  %v10679_v10 = vmax.f32 %v1704_v4, %v1864_v6 }
 0x235   :  { %v1623_v29 = vadd.f32 %v1622_v44, %v10628_v63  ;;  %v1624_v19 = vpop.f32.mrb[61].mxu1  ;;  %v1870_v3 = vsel %vm1837_vm2, %v1863_v2, %v1869_v23 }
 0x236   :  { %v1625_v49 = vpop.f32.mrb[62].mxu1  ;;  %v8770_v27 = vpack.i.bf16 %v10679_v10, %v10480_v32  ;;  %v10685_v31 = vmax.f32 %v1707_v59, %v1870_v3  ;;  %v9055_v32 = vld [vmem:[#allocation4 + $0x180] ss:$8 sps:$4 sm:$0xff]  }
 0x237   :  { %v1713_v28 = vmax.f32 %v1623_v29, 0.0  ;;  %v1626_v51 = vadd.f32 %v1625_v49, %v10628_v63  ;;  %v1627_v52 = vpop.f32.mrb[63].mxu1 }
 0x238   :  { %8771 = vrot.lane.b32.xlu0 %v8770_v27, %s9565_s20  ;;  %v8775_v4 = vpack.i.bf16 %v10685_v31, %v10488_v62 }
 0x239   :  { %v1875_v26 = vrot.slane %v1713_v28, 1  ;;  %v1716_v6 = vmax.f32 %v1626_v51, 0.0 }
 0x23a   :  { %8776 = vrot.lane.b32.xlu1 %v8775_v4, %s9565_s20 }
 0x23b   :  { %v1881_v2 = vrot.slane %v1716_v6, 1  ;;  %v1876_v44 = vsel %vm1837_vm2, %v1869_v23, %v1875_v26 }
 0x23c   :  { %v1630_v19 = vpop.f32.mrb[64].mxu1  ;;  %v10693_v47 = vmax.f32 %v1710_v9, %v1876_v44 }
 0x23d   :  { %v1631_v59 = vadd.f32 %v1630_v19, %v10628_v63  ;;  %v1632_v29 = vpop.f32.mrb[65].mxu1  ;;  %v1882_v3 = vsel %vm1837_vm2, %v1875_v26, %v1881_v2 }
 0x23e   :  { %v1633_v49 = vpop.f32.mrb[66].mxu1  ;;  %v8780_v27 = vpack.i.bf16 %v10693_v47, %v10496_v24  ;;  %v10699_v52 = vmax.f32 %v1713_v28, %v1882_v3 }
 0x23f   :  { %v1719_v51 = vmax.f32 %v1631_v59, 0.0  ;;  %v1634_v4 = vadd.f32 %v1633_v49, %v10628_v63  ;;  %v1635_v62 = vpop.f32.mrb[67].mxu1 }
 0x240   :  { %8781 = vrot.lane.b32.xlu1 %v8780_v27, %s9565_s20  ;;  %v8785_v44 = vpack.i.bf16 %v10699_v52, %v10502_v43 }
 0x241   :  { %v1887_v23 = vrot.slane %v1719_v51, 1  ;;  %v1722_v9 = vmax.f32 %v1634_v4, 0.0 }
 0x243   :  { %v1893_v19 = vrot.slane %v1722_v9, 1  ;;  %v1888_v26 = vsel %vm1837_vm2, %v1881_v2, %v1887_v23 }
 0x244   :  { %v1638_v29 = vpop.f32.mrb[68].mxu1  ;;  %8786 = vrot.lane.b32.xlu1 %v8785_v44, %s9565_s20  ;;  %v10707_v24 = vmax.f32 %v1716_v6, %v1888_v26  ;;  %v9057_v44 = vld [vmem:[#allocation4 + $0x184] ss:$8 sps:$4 sm:$0xff]  }
 0x245   :  { %v1639_v28 = vadd.f32 %v1638_v29, %v10628_v63  ;;  %v1640_v59 = vpop.f32.mrb[69].mxu1  ;;  %v1894_v62 = vsel %vm1837_vm2, %v1887_v23, %v1893_v19  ;;  %3322 = vmatprep.subr.bf16.mxu1 %v9057_v44 }
 0x246   :  { %v1641_v3 = vpop.f32.mrb[70].mxu1  ;;  %v8790_v49 = vpack.i.bf16 %v10707_v24, %v10512_v39  ;;  %v10713_v27 = vmax.f32 %v1719_v51, %v1894_v62  ;;  %3323 = vmatpush1.bf16.msra.mxu1 %v9055_v32  ;;  %v9060_v62 = vld [vmem:[#allocation4 + $0x194] ss:$8 sps:$4 sm:$0xff]  }
 0x247   :  { %v1725_v4 = vmax.f32 %v1639_v28, 0.0  ;;  %v1642_v43 = vadd.f32 %v1641_v3, %v10628_v63  ;;  %v1643_v2 = vpop.f32.mrb[71].mxu1  ;;  %3324 = vmatprep.subr.bf16.mxu1 %v9060_v62 }
 0x248   :  { %8791 = vrot.lane.b32.xlu0 %v8790_v49, %s9565_s20  ;;  %v8795_v29 = vpack.i.bf16 %v10713_v27, %v10518_v61  ;;  %v9058_v2 = vld [vmem:[#allocation4 + $0x190] ss:$8 sps:$4 sm:$0xff]  }
 0x249   :  { %v1899_v6 = vrot.slane %v1725_v4, 1  ;;  %v1728_v26 = vmax.f32 %v1642_v43, 0.0 }
 0x24a   :  { %3325 = vmatpush1.bf16.msra.mxu1 %v9058_v2 }
 0x24b   :  { %v1905_v23 = vrot.slane %v1728_v26, 1  ;;  %v1900_v59 = vsel %vm1837_vm2, %v1893_v19, %v1899_v6 }
 0x24c   :  { %v1646_v51 = vpop.f32.mrb[72].mxu1  ;;  %8796 = vrot.lane.b32.xlu0 %v8795_v29, %s9565_s20  ;;  %v10721_v28 = vmax.f32 %v1722_v9, %v1900_v59  ;;  %v9063_v59 = vld [vmem:[#allocation4 + $0x104] ss:$8 sps:$4 sm:$0xff]  }
 0x24d   :  { %v1647_v3 = vadd.f32 %v1646_v51, %v10628_v63  ;;  %v1648_v49 = vpop.f32.mrb[73].mxu1  ;;  %v1906_v43 = vsel %vm1837_vm2, %v1899_v6, %v1905_v23  ;;  %v9066_v6 = vld [vmem:[#allocation4 + $0x1a4] ss:$8 sps:$4 sm:$0xff]   ;;  %3949 = vmatprep.subr.bf16.mxu0 %v9063_v59 }
 0x24e   :  { %v1649_v39 = vpop.f32.mrb[74].mxu1  ;;  %v8800_v44 = vpack.i.bf16 %v10721_v28, %v10528_v46  ;;  %v10727_v61 = vmax.f32 %v1725_v4, %v1906_v43  ;;  %3326 = vmatprep.subr.bf16.mxu1 %v9066_v6  ;;  %v9069_v43 = vld [vmem:[#allocation4 + $0x1b4] ss:$8 sps:$4 sm:$0xff]  }
 0x24f   :  { %v1731_v32 = vmax.f32 %v1647_v3, 0.0  ;;  %v1650_v19 = vadd.f32 %v1649_v39, %v10628_v63  ;;  %v1651_v29 = vpop.f32.mrb[75].mxu1  ;;  %3327 = vmatpush1.bf16.msra.mxu1 %v9064_v42  ;;  %v9075_v42 = vld [vmem:[#allocation4 + $0x1c4] ss:$8 sps:$4 sm:$0xff]  }
 0x250   :  { %8801 = vrot.lane.b32.xlu0 %v8800_v44, %s9565_s20  ;;  %v8805_v9 = vpack.i.bf16 %v10727_v61, %v10534_v14  ;;  %v9067_v14 = vld [vmem:[#allocation4 + $0x1b0] ss:$8 sps:$4 sm:$0xff]   ;;  %3328 = vmatprep.subr.bf16.mxu1 %v9069_v43 }
 0x251   :  { %v1911_v51 = vrot.slane %v1731_v32, 1  ;;  %v1734_v49 = vmax.f32 %v1650_v19, 0.0 }
 0x252   :  { %8806 = vrot.lane.b32.xlu1 %v8805_v9, %s9565_s20 }
 0x253   :  { %v1917_v4 = vrot.slane %v1734_v49, 1  ;;  %v1912_v62 = vsel %vm1837_vm2, %v1905_v23, %v1911_v51  ;;  %3329 = vmatpush1.bf16.msra.mxu1 %v9067_v14 }
 0x254   :  { %v1654_v39 = vpop.f32.mrb[76].mxu1  ;;  %v10735_v3 = vmax.f32 %v1728_v26, %v1912_v62  ;;  %3330 = vmatprep.subr.bf16.mxu1 %v9075_v42 }
 0x255   :  { %v1655_v2 = vadd.f32 %v1654_v39, %v10628_v63  ;;  %v1656_v44 = vpop.f32.mrb[77].mxu1  ;;  %v1918_v29 = vsel %vm1837_vm2, %v1911_v51, %v1917_v4 }
 0x256   :  { %v1657_v19 = vpop.f32.mrb[78].mxu1  ;;  %v8810_v9 = vpack.i.bf16 %v10735_v3, %v10544_v37  ;;  %v10741_v59 = vmax.f32 %v1731_v32, %v1918_v29  ;;  %v9073_v44 = vld [vmem:[#allocation4 + $0x1c0] ss:$8 sps:$4 sm:$0xff]  }
 0x257   :  { %v1737_v23 = vmax.f32 %v1655_v2, 0.0  ;;  %v1658_v6 = vadd.f32 %v1657_v19, %v10628_v63  ;;  %v1659_v26 = vpop.f32.mrb[79].mxu1  ;;  %3331 = vmatpush1.bf16.msra.mxu1 %v9073_v44  ;;  %v9078_v2 = vld [vmem:[#allocation4 + $0x1d4] ss:$8 sps:$4 sm:$0xff]   ;;  %v9084_v44 = vld [vmem:[#allocation4 + $0x1e4] ss:$8 sps:$4 sm:$0xff]  }
 0x258   :  { %8811 = vrot.lane.b32.xlu1 %v8810_v9, %s9565_s20  ;;  %v8815_v51 = vpack.i.bf16 %v10741_v59, %v10550_v25  ;;  %3332 = vmatprep.subr.bf16.mxu1 %v9078_v2 }
 0x259   :  { %v1923_v62 = vrot.slane %v1737_v23, 1  ;;  %v1740_v39 = vmax.f32 %v1658_v6, 0.0  ;;  %v9076_v6 = vld [vmem:[#allocation4 + $0x1d0] ss:$8 sps:$4 sm:$0xff]  }
 0x25b   :  { %v1929_v46 = vrot.slane %v1740_v39, 1  ;;  %v1924_v32 = vsel %vm1837_vm2, %v1917_v4, %v1923_v62  ;;  %3333 = vmatpush1.bf16.msra.mxu1 %v9076_v6 }
 0x25c   :  { %v1662_v29 = vpop.f32.mrb[80].mxu1  ;;  %8816 = vrot.lane.b32.xlu1 %v8815_v51, %s9565_s20  ;;  %v10749_v43 = vmax.f32 %v1734_v49, %v1924_v32  ;;  %3334 = vmatprep.subr.bf16.mxu1 %v9084_v44 }
 0x25d   :  { %v1663_v14 = vadd.f32 %v1662_v29, %v10628_v63  ;;  %v1664_v19 = vpop.f32.mrb[81].mxu1  ;;  %v1930_v9 = vsel %vm1837_vm2, %v1923_v62, %v1929_v46 }
 0x25e   :  { %v1665_v26 = vpop.f32.mrb[82].mxu1  ;;  %v8820_v42 = vpack.i.bf16 %v10749_v43, %v10560_v48  ;;  %v10755_v37 = vmax.f32 %v1737_v23, %v1930_v9  ;;  %v9082_v19 = vld [vmem:[#allocation4 + $0x1e0] ss:$8 sps:$4 sm:$0xff]  }
 0x25f   :  { %v1743_v4 = vmax.f32 %v1663_v14, 0.0  ;;  %v1666_v51 = vadd.f32 %v1665_v26, %v10628_v63  ;;  %v1667_v49 = vpop.f32.mrb[83].mxu1  ;;  %3335 = vmatpush1.bf16.msra.mxu1 %v9082_v19  ;;  %v9087_v14 = vld [vmem:[#allocation4 + $0x1f4] ss:$8 sps:$4 sm:$0xff]  }
 0x260   :  { %8821 = vrot.lane.b32.xlu0 %v8820_v42, %s9565_s20  ;;  %v8825_v62 = vpack.i.bf16 %v10755_v37, %v10566_v20  ;;  %3336 = vmatprep.subr.bf16.mxu1 %v9087_v14 }
 0x261   :  { %v1935_v32 = vrot.slane %v1743_v4, 1  ;;  %v1746_v29 = vmax.f32 %v1666_v51, 0.0  ;;  %v9085_v51 = vld [vmem:[#allocation4 + $0x1f0] ss:$8 sps:$4 sm:$0xff]  }
 0x263   :  { %v1941_v25 = vrot.slane %v1746_v29, 1  ;;  %v1936_v23 = vsel %vm1837_vm2, %v1929_v46, %v1935_v32  ;;  %3337 = vmatpush1.bf16.msra.mxu1 %v9085_v51 }
 0x264   :  { %v1670_v9 = vpop.f32.mrb[84].mxu1  ;;  %8826 = vrot.lane.b32.xlu0 %v8825_v62, %s9565_s20  ;;  %v10763_v2 = vmax.f32 %v1740_v39, %v1936_v23  ;;  %v9093_v23 = vld [vmem:[#allocation4 + $0x204] ss:$8 sps:$4 sm:$0xff]  }
 0x265   :  { %v1671_v6 = vadd.f32 %v1670_v9, %v10628_v63  ;;  %v1672_v26 = vpop.f32.mrb[85].mxu1  ;;  %v1942_v42 = vsel %vm1837_vm2, %v1935_v32, %v1941_v25  ;;  %3338 = vmatprep.subr.bf16.mxu1 %v9093_v23 }
 0x266   :  { %v1673_v49 = vpop.f32.mrb[86].mxu1  ;;  %v8830_v44 = vpack.i.bf16 %v10763_v2, %v10576_v5  ;;  %v10769_v20 = vmax.f32 %v1743_v4, %v1942_v42  ;;  %v9091_v26 = vld [vmem:[#allocation4 + $0x200] ss:$8 sps:$4 sm:$0xff]  }
 0x267   :  { %v1749_v46 = vmax.f32 %v1671_v6, 0.0  ;;  %v1674_v62 = vadd.f32 %v1673_v49, %v10628_v63  ;;  %v1675_v39 = vpop.f32.mrb[87].mxu1  ;;  %3339 = vmatpush1.bf16.msra.mxu1 %v9091_v26  ;;  %v9096_v49 = vld [vmem:[#allocation4 + $0x214] ss:$8 sps:$4 sm:$0xff]   ;;  %v9102_v26 = vld [vmem:[#allocation4 + $0x224] ss:$8 sps:$4 sm:$0xff]  }
 0x268   :  { %8831 = vrot.lane.b32.xlu0 %v8830_v44, %s9565_s20  ;;  %v8835_v19 = vpack.i.bf16 %v10769_v20, %v10582_v13  ;;  %v9094_v13 = vld [vmem:[#allocation4 + $0x210] ss:$8 sps:$4 sm:$0xff]   ;;  %3340 = vmatprep.subr.bf16.mxu1 %v9096_v49 }
 0x269   :  { %v1947_v32 = vrot.slane %v1749_v46, 1  ;;  %v1752_v9 = vmax.f32 %v1674_v62, 0.0 }
 0x26a   :  { %8836 = vrot.lane.b32.xlu1 %v8835_v19, %s9565_s20 }
 0x26b   :  { %v1953_v4 = vrot.slane %v1752_v9, 1  ;;  %v1948_v14 = vsel %vm1837_vm2, %v1941_v25, %v1947_v32  ;;  %3341 = vmatpush1.bf16.msra.mxu1 %v9094_v13 }
 0x26c   :  { %v1678_v6 = vpop.f32.mrb[88].mxu1  ;;  %v10777_v42 = vmax.f32 %v1746_v29, %v1948_v14  ;;  %3342 = vmatprep.subr.bf16.mxu1 %v9102_v26 }
 0x26d   :  { %v1679_v44 = vadd.f32 %v1678_v6, %v10628_v63  ;;  %v1680_v39 = vpop.f32.mrb[89].mxu1  ;;  %v1954_v51 = vsel %vm1837_vm2, %v1947_v32, %v1953_v4 }
 0x26e   :  { %v1681_v5 = vpop.f32.mrb[90].mxu1  ;;  %v8840_v62 = vpack.i.bf16 %v10777_v42, %v10592_v0  ;;  %v10783_v19 = vmax.f32 %v1749_v46, %v1954_v51  ;;  %v9100_v39 = vld [vmem:[#allocation4 + $0x220] ss:$8 sps:$4 sm:$0xff]  }
 0x26f   :  { %v1755_v23 = vmax.f32 %v1679_v44, 0.0  ;;  %v1682_v25 = vadd.f32 %v1681_v5, %v10628_v63  ;;  %v1683_v29 = vpop.f32.mrb[91].mxu1  ;;  %3343 = vmatpush1.bf16.msra.mxu1 %v9100_v39  ;;  %v9105_v5 = vld [vmem:[#allocation4 + $0x234] ss:$8 sps:$4 sm:$0xff]   ;;  %v9111_v39 = vld [vmem:[#allocation4 + $0x244] ss:$8 sps:$4 sm:$0xff]  }
 0x270   :  { %8841 = vrot.lane.b32.xlu1 %v8840_v62, %s9565_s20  ;;  %v8845_v32 = vpack.i.bf16 %v10783_v19, %v10598_v33  ;;  %3344 = vmatprep.subr.bf16.mxu1 %v9105_v5 }
 0x271   :  { %v1959_v14 = vrot.slane %v1755_v23, 1  ;;  %v1758_v6 = vmax.f32 %v1682_v25, 0.0  ;;  %v9103_v25 = vld [vmem:[#allocation4 + $0x230] ss:$8 sps:$4 sm:$0xff]  }
 0x273   :  { %v1965_v48 = vrot.slane %v1758_v6, 1  ;;  %v1960_v46 = vsel %vm1837_vm2, %v1953_v4, %v1959_v14  ;;  %3345 = vmatpush1.bf16.msra.mxu1 %v9103_v25 }
 0x274   :  { %v1686_v51 = vpop.f32.mrb[92].mxu1  ;;  %8846 = vrot.lane.b32.xlu1 %v8845_v32, %s9565_s20  ;;  %v10791_v49 = vmax.f32 %v1752_v9, %v1960_v46  ;;  %3346 = vmatprep.subr.bf16.mxu1 %v9111_v39  ;;  %v8885_v39 = vpack.i.bf16 %v10505_v22, %v10516_v57 }
 0x275   :  { %v1687_v13 = vadd.f32 %v1686_v51, %v10628_v63  ;;  %v1688_v44 = vpop.f32.mrb[93].mxu1  ;;  %v1966_v62 = vsel %vm1837_vm2, %v1959_v14, %v1965_v48 }
 0x276   :  { %v1689_v29 = vpop.f32.mrb[94].mxu1  ;;  %v8850_v26 = vpack.i.bf16 %v10791_v49, %v10608_v55  ;;  %v10797_v0 = vmax.f32 %v1755_v23, %v1966_v62  ;;  %v9109_v44 = vld [vmem:[#allocation4 + $0x240] ss:$8 sps:$4 sm:$0xff]   ;;  %v9114_v62 = vld [vmem:[#allocation4 + $0x254] ss:$8 sps:$4 sm:$0xff]  }
 0x277   :  { %v1761_v4 = vmax.f32 %v1687_v13, 0.0  ;;  %v1690_v32 = vadd.f32 %v1689_v29, %v10628_v63  ;;  %v1691_v9 = vpop.f32.mrb[95].mxu1  ;;  %3347 = vmatpush1.bf16.msra.mxu1 %v9109_v44  ;;  %v8890_v44 = vpack.i.bf16 %v10532_v16, %v10537_v54 }
 0x278   :  { %8851 = vrot.lane.b32.xlu0 %v8850_v26, %s9565_s20  ;;  %v8855_v14 = vpack.i.bf16 %v10797_v0, %v10614_v56  ;;  %v9112_v26 = vld [vmem:[#allocation4 + $0x250] ss:$8 sps:$4 sm:$0xff]   ;;  %3348 = vmatprep.subr.bf16.mxu1 %v9114_v62  ;;  %v13771_v62 = vld [vmem:[#allocation34_spill] sm:$0xff] }
 0x279   :  { %v1971_v46 = vrot.slane %v1761_v4, 1  ;;  %v1764_v51 = vmax.f32 %v1690_v32, 0.0  ;;  %v13768_v32 = vmax.f32 %v10623_v15, 0.0  ;;  %v8880_v15 = vpack.i.bf16 %v10485_v11, %v10492_v7 }
 0x27b   :  { %v1977_v33 = vrot.slane %v1764_v51, 1  ;;  %v1972_v23 = vsel %vm1837_vm2, %v1965_v48, %v1971_v46  ;;  %v2054_v48 = vsel %vm1837_vm2, %v10632_v30, %v10447_v58  ;;  %3349 = vmatpush1.bf16.msra.mxu1 %v9112_v26  ;;  %v9118_v58 = vld [vmem:[#allocation4 + $0x260] ss:$8 sps:$4 sm:$0xff]  }
 0x27c   :  { %8856 = vrot.lane.b32.xlu0 %v8855_v14, %s9565_s20  ;;  %v10805_v5 = vmax.f32 %v1758_v6, %v1972_v23  ;;  %v10824_v9 = vmax.f32 %v13768_v32, %v2054_v48  ;;  %v8895_v14 = vpack.i.bf16 %v10553_v12, %v10564_v38  ;;  %v13770_v23 = vld [vmem:[#allocation36_spill] sm:$0xff]  ;;  %v13773_v26 = vld [vmem:[#allocation42_spill] sm:$0xff] }
 0x27d   :  { %v2056_v63 = vsel %vm1837_vm2, %v1977_v33, %v10653_v60  ;;  %v1978_v13 = vsel %vm1837_vm2, %v1971_v46, %v1977_v33  ;;  %v9120_v33 = vld [vmem:[#allocation4 + $0x264] ss:$8 sps:$4 sm:$0xff]   ;;  %v9121_v46 = vld [vmem:[#allocation4 + $0x270] ss:$8 sps:$4 sm:$0xff]  }
 0x27e   :  { %v8860_v25 = vpack.i.bf16 %v10805_v5, %v10635_v35  ;;  %v10812_v29 = vmax.f32 %v1761_v4, %v1978_v13  ;;  %v10817_v6 = vmax.f32 %v1764_v51, %v2056_v63  ;;  %13769 = vst [vmem:[#allocation53_spill] sm:$0xff] %v10824_v9  ;;  %v8875_v4 = vpack.i.bf16 %v10460_v18, %v10469_v41  ;;  %v9123_v51 = vld [vmem:[#allocation4 + $0x274] ss:$8 sps:$4 sm:$0xff]   ;;  %v9129_v13 = vld [vmem:[#allocation4 + $0x4] ss:$8 sps:$4 sm:$0xff]  }
 0x27f   :  { %3350 = vmatprep.subr.bf16.mxu1 %v9120_v33  ;;  %v8900_v63 = vpack.i.bf16 %v13770_v23, %v10585_v17 }
 0x280   :  { %8861 = vrot.lane.b32.xlu0 %v8860_v25, %s9565_s20  ;;  %v8865_v60 = vpack.i.bf16 %v10812_v29, %v10645_v50  ;;  %v8870_v30 = vpack.i.bf16 %v10817_v6, %v10824_v9  ;;  %3351 = vmatpush1.bf16.msra.mxu1 %v9118_v58  ;;  %v13772_v25 = vld [vmem:[#allocation44_spill] sm:$0xff]  ;;  %v8910_v58 = vpack.i.bf16 %v10641_v45, %v10651_v21 }
 0x281   :  { %3352 = vmatprep.subr.bf16.mxu1 %v9123_v51  ;;  %v8905_v48 = vpack.i.bf16 %v13773_v26, %v13772_v25  ;;  %v13776_v51 = vld [vmem:[#allocation46_spill] sm:$0xff] }
 0x282   :  { %8866 = vrot.lane.b32.xlu1 %v8865_v60, %s9565_s20 }
 0x284   :  { %8876 = vrot.lane.b32.xlu0 %v8875_v4, %s9565_s20  ;;  %3353 = vmatpush1.bf16.msra.mxu1 %v9121_v46  ;;  %v13774_v4 = vld [vmem:[#allocation40_spill] sm:$0xff] }
 0x285   :  { %3836 = vmatprep.subr.bf16.mxu1 %v9129_v13 }
 0x286   :  { %8871 = vrot.lane.b32.xlu1 %v8870_v30, %s9565_s20 }
 0x288   :  { %8881 = vrot.lane.b32.xlu0 %v8880_v15, %s9565_s20  ;;  %v13775_v15 = vld [vmem:[#allocation52_spill] sm:$0xff] }
 0x28a   :  { %2215 = vrot.lane.b32.xlu1 %v10476_v53, %s9565_s20 }
 0x28c   :  { %8886 = vrot.lane.b32.xlu0 %v8885_v39, %s9565_s20 }
 0x28e   :  { %2233 = vrot.lane.b32.xlu1 %v10500_v36, %s9565_s20 }
 0x290   :  { %8891 = vrot.lane.b32.xlu0 %v8890_v44, %s9565_s20 }
 0x292   :  { %2251 = vrot.lane.b32.xlu1 %v10521_v1, %s9565_s20  ;;  %v9090_v1 = vld [vmem:[#allocation4 + $0x134] ss:$8 sps:$4 sm:$0xff]  }
 0x294   :  { %8896 = vrot.lane.b32.xlu0 %v8895_v14, %s9565_s20 }
 0x296   :  { %2269 = vrot.lane.b32.xlu1 %v10548_v8, %s9565_s20 }
 0x298   :  { %8901 = vrot.lane.b32.xlu0 %v8900_v63, %s9565_s20 }
 0x29a   :  { %2287 = vrot.lane.b32.xlu1 %v13771_v62, %s9565_s20 }
 0x29c   :  { %8906 = vrot.lane.b32.xlu0 %v8905_v48, %s9565_s20  ;;  %v10861_v60 = vpop.permute.xlu1 %8756 }
 0x29d   :  { %v13513_v33 = vunpack.i.h.bf16 %v10861_v60  ;;  %v13514_v32 = vunpack.i.l.bf16 %v10861_v60 }
 0x29e   :  { %2305 = vrot.lane.b32.xlu1 %v13774_v4, %s9565_s20 }
 0x29f   :  { %v2489_v30 = vsel %vm1145_vm1, %v13513_v33, %v13514_v32 }
 0x2a0   :  { %8911 = vrot.lane.b32.xlu0 %v8910_v58, %s9565_s20  ;;  %v2515_v39 = vmax.f32 %v13775_v15, %v2489_v30  ;;  %v13777_v30 = vld [vmem:[#allocation50_spill] sm:$0xff] }
 0x2a2   :  { %v10876_v46 = vpop.permute.xlu0 %8761  ;;  %2323 = vrot.lane.b32.xlu1 %v13776_v51, %s9565_s20  ;;  %v8254_v13 = vpack.c.bf16 %v2515_v39, %v2515_v39 }
 0x2a3   :  { %v13516_v44 = vunpack.i.h.bf16 %v10876_v46  ;;  %v13517_v14 = vunpack.i.l.bf16 %v10876_v46 }
 0x2a4   :  { %v8008_v51 = vrot.slane %v8254_v13, 11  ;;  %v7784_v35 = vrot.slane %v8254_v13, 9 }
 0x2a5   :  { %v2490_v63 = vsel %vm1145_vm1, %v13516_v44, %v13517_v14 }
 0x2a6   :  { %v2518_v48 = vmax.f32 %v10665_v34, %v2490_v63  ;;  %v10888_v58 = vpop.permute.xlu0 %8766  ;;  %2341 = vrot.lane.b32.xlu1 %v13777_v30, %s9565_s20  ;;  %v7920_v34 = vrot.slane %v8254_v13, 10 }
 0x2a7   :  { %v13523_v15 = vunpack.i.h.bf16 %v10888_v58  ;;  %v13524_v33 = vunpack.i.l.bf16 %v10888_v58 }
 0x2a8   :  { %v10894_v32 = vpack.c.bf16 %v2518_v48, %v2515_v39  ;;  %v8256_v9 = vpack.c.bf16 %v2518_v48, %v2518_v48 }
 0x2a9   :  { %v2491_v44 = vsel %vm1145_vm1, %v13523_v15, %v13524_v33 }
 0x2aa   :  { %13778 = vst [vmem:[#allocation52_spill] sm:$0xff] %v10894_v32  ;;  %v4068_v63 = vrot.slane %v8256_v9, 6  ;;  %v4826_v14 = vrot.slane %v8256_v9, 7  ;;  %v2521_v30 = vmax.f32 %v10671_v40, %v2491_v44  ;;  %v10902_v21 = vpop.permute.xlu0 %8771  ;;  %v2831_v48 = vrot.slane %v8256_v9, 5 }
 0x2ab   :  { %v13529_v50 = vunpack.i.h.bf16 %v10902_v21  ;;  %v13530_v39 = vunpack.i.l.bf16 %v10902_v21  ;;  %v13781_v40 = vmov 0 }
 0x2ac   :  { %v8258_v56 = vpack.c.bf16 %v2521_v30, %v2521_v30  ;;  %v10906_v45 = vpop.permute.xlu1 %8776  ;;  %v10910_v33 = vsel %vm9723_vm11, %v7920_v34, %v4068_v63  ;;  %v13782_v40 = vsel %vm10914_vm5, 4294967295, %v13781_v40  ;;  %v4073_v44 = vrot.slane %v4068_v63, 4 }
 0x2ad   :  { %13780 = vst [vmem:[#allocation10_spill] sm:$0xff] %v10910_v33  ;;  %13783 = vst [vmem:[#allocation54_spill] sm:$0xff] %v13782_v40  ;;  %v2492_v9 = vsel %vm1145_vm1, %v13529_v50, %v13530_v39  ;;  %v13532_v4 = vunpack.i.h.bf16 %v10906_v45  ;;  %v13533_v13 = vunpack.i.l.bf16 %v10906_v45  ;;  %v4831_v17 = vrot.slane %v4826_v14, 4 }
 0x2ae   :  { %v4074_v34 = vrot.slane %v8258_v56, 6  ;;  %v4832_v25 = vrot.slane %v8258_v56, 7  ;;  %v2524_v8 = vmax.f32 %v10679_v10, %v2492_v9  ;;  %v2836_v54 = vrot.slane %v2831_v48, 4 }
 0x2af   :  { %v2493_v63 = vsel %vm1145_vm1, %v13532_v4, %v13533_v13  ;;  %v2837_v55 = vrot.slane %v8258_v56, 5  ;;  %v10933_v50 = vsel %vm10914_vm5, %v8008_v51, %v4826_v14  ;;  %v2832_v62 = vsel %vm9696_vm8, %v7784_v35, %v2831_v48  ;;  %v9061_v56 = vld [vmem:[#allocation4 + $0x100] ss:$8 sps:$4 sm:$0xff]  }
 0x2b0   :  { %13784 = vst [vmem:[#allocation55_spill] sm:$0xff] %v10933_v50  ;;  %v8260_v39 = vpack.c.bf16 %v2524_v8, %v2524_v8  ;;  %v2527_v26 = vmax.f32 %v10685_v31, %v2493_v63  ;;  %v10936_v32 = vpack.c.bf16 %v2524_v8, %v2521_v30  ;;  %v10940_v10 = vsel %vm9723_vm11, %v4073_v44, %v4074_v34  ;;  %v9072_v44 = vld [vmem:[#allocation4 + $0x114] ss:$8 sps:$4 sm:$0xff]  }
 0x2b1   :  { %13786 = vst [vmem:[#allocation57_spill] sm:$0xff] %v10940_v10  ;;  %v2838_v4 = vsel %vm9696_vm8, %v2836_v54, %v2837_v55  ;;  %v10950_v14 = vsel %vm10914_vm5, %v4831_v17, %v4832_v25  ;;  %v13789_v25 = vmov 0  }
 0x2b2   :  { %13785 = vst [vmem:[#allocation56_spill] sm:$0xff] %v10936_v32  ;;  %13788 = vst [vmem:[#allocation9_spill] sm:$0xff] %v10950_v14  ;;  %v8262_v8 = vpack.c.bf16 %v2527_v26, %v2527_v26  ;;  %v10952_v31 = vpop.permute.xlu1 %8781  ;;  %v7801_v30 = vcombine.low %v2832_v62, %v2838_v4  ;;  %v7922_v48 = vrot.slane %v8260_v39, 10  ;;  %v9070_v4 = vld [vmem:[#allocation4 + $0x110] ss:$8 sps:$4 sm:$0xff]  }
 0x2b3   :  { %v13535_v34 = vunpack.i.h.bf16 %v10952_v31  ;;  %v13536_v35 = vunpack.i.l.bf16 %v10952_v31 }
 0x2b4   :  { %3468 = vmatmul.mubr.bf16.vlgmr.msra.gmra.mrb[0].mxu0 %v7801_v30  ;;  %v4082_v54 = vrot.slane %v8262_v8, 6  ;;  %v2845_v62 = vrot.slane %v8262_v8, 5  ;;  %v9081_v30 = vld [vmem:[#allocation4 + $0x124] ss:$8 sps:$4 sm:$0xff]  }
 0x2b5   :  { %v2494_v17 = vsel %vm1145_vm1, %v13535_v34, %v13536_v35  ;;  %3477 = vmatprep.mubr.bf16.mxu0 %v13789_v25  ;;  %3950 = vmatpush1.bf16.msra.mxu0 %v9061_v56  ;;  %v7786_v35 = vrot.slane %v8260_v39, 9 }
 0x2b6   :  { %v2530_v63 = vmax.f32 %v10693_v47, %v2494_v17  ;;  %v10965_v51 = vpop.permute.xlu1 %8786  ;;  %3951 = vmatprep.subr.bf16.mxu0 %v9072_v44  ;;  %v10969_v55 = vsel %vm9723_vm11, %v7922_v48, %v4082_v54  ;;  %v2850_v56 = vrot.slane %v2845_v62, 4  ;;  %v9079_v44 = vld [vmem:[#allocation4 + $0x120] ss:$8 sps:$4 sm:$0xff]   ;;  %v8010_v17 = vrot.slane %v8260_v39, 11 }
 0x2b7   :  { %13790 = vst [vmem:[#allocation58_spill] sm:$0xff] %v10969_v55  ;;  %v13543_v13 = vunpack.i.h.bf16 %v10965_v51  ;;  %v13548_v14 = vunpack.i.l.bf16 %v10965_v51  ;;  %v4840_v48 = vrot.slane %v8262_v8, 7  ;;  %v2846_v39 = vsel %vm9696_vm8, %v7786_v35, %v2845_v62 }
 0x2b8   :  { %v8264_v34 = vpack.c.bf16 %v2530_v63, %v2530_v63  ;;  %v10973_v50 = vpack.c.bf16 %v2530_v63, %v2527_v26  ;;  %v4087_v26 = vrot.slane %v4082_v54, 4 }
 0x2b9   :  { %v2495_v47 = vsel %vm1145_vm1, %v13543_v13, %v13548_v14  ;;  %3952 = vmatpush1.bf16.msra.mxu0 %v9070_v4  ;;  %v10987_v13 = vsel %vm10914_vm5, %v8010_v17, %v4840_v48 }
 0x2ba   :  { %13791 = vst [vmem:[#allocation59_spill] sm:$0xff] %v10973_v50  ;;  %v2533_v10 = vmax.f32 %v10699_v52, %v2495_v47  ;;  %v10981_v33 = vpop.permute.xlu0 %8791  ;;  %v2851_v23 = vrot.slane %v8264_v34, 5  ;;  %3953 = vmatprep.subr.bf16.mxu0 %v9081_v30  ;;  %v4088_v63 = vrot.slane %v8264_v34, 6  ;;  %13792 = vst [vmem:[#allocation60_spill] sm:$0xff] %v10987_v13  ;;  %v9088_v47 = vld [vmem:[#allocation4 + $0x130] ss:$8 sps:$4 sm:$0xff]  }
 0x2bb   :  { %v13544_v16 = vunpack.i.h.bf16 %v10981_v33  ;;  %v13545_v38 = vunpack.i.l.bf16 %v10981_v33  ;;  %v9117_v13 = vld [vmem:[#allocation4 + $0x164] ss:$8 sps:$4 sm:$0xff]  }
 0x2bc   :  { %v2852_v52 = vsel %vm9696_vm8, %v2850_v56, %v2851_v23  ;;  %v10995_v8 = vsel %vm9723_vm11, %v4087_v26, %v4088_v63  ;;  %v8266_v54 = vpack.c.bf16 %v2533_v10, %v2533_v10  ;;  %v9099_v56 = vld [vmem:[#allocation4 + $0x144] ss:$8 sps:$4 sm:$0xff]  }
 0x2bd   :  { %13793 = vst [vmem:[#allocation61_spill] sm:$0xff] %v10995_v8  ;;  %v2496_v4 = vsel %vm1145_vm1, %v13544_v16, %v13545_v38  ;;  %v7804_v30 = vcombine.low %v2846_v39, %v2852_v52  ;;  %3954 = vmatpush1.bf16.msra.mxu0 %v9079_v44  ;;  %v4845_v44 = vrot.slane %v4840_v48, 4  ;;  %v4846_v52 = vrot.slane %v8264_v34, 7 }
 0x2be   :  { %v2536_v62 = vmax.f32 %v10707_v24, %v2496_v4  ;;  %v11005_v23 = vpop.permute.xlu0 %8796  ;;  %3955 = vmatprep.subr.bf16.mxu0 %v9090_v1  ;;  %v9097_v1 = vld [vmem:[#allocation4 + $0x140] ss:$8 sps:$4 sm:$0xff]   ;;  %v7924_v4 = vrot.slane %v8266_v54, 10  ;;  %v8012_v35 = vrot.slane %v8266_v54, 11 }
 0x2bf   :  { %13794 = vst [vmem:[#allocation62_spill] sm:$0xff] %v11005_v23  ;;  %v13546_v17 = vunpack.i.h.bf16 %v11005_v23  ;;  %v13547_v26 = vunpack.i.l.bf16 %v11005_v23  ;;  %3478 = vmatmul.mubr.bf16.gmra.mrb[4].mxu0 %v7804_v30  ;;  %v11022_v34 = vsel %vm10914_vm5, %v4845_v44, %v4846_v52 }
 0x2c0   :  { %v8268_v63 = vpack.c.bf16 %v2536_v62, %v2536_v62  ;;  %3487 = vmatprep.mubr.bf16.mxu0 %v13789_v25  ;;  %v11010_v39 = vpack.c.bf16 %v2536_v62, %v2533_v10  ;;  %v9108_v10 = vld [vmem:[#allocation4 + $0x154] ss:$8 sps:$4 sm:$0xff]   ;;  %13796 = vst [vmem:[#allocation64_spill] sm:$0xff] %v11022_v34 }
 0x2c1   :  { %v2497_v24 = vsel %vm1145_vm1, %v13546_v17, %v13547_v26  ;;  %3956 = vmatpush1.bf16.msra.mxu0 %v9088_v47 }
 0x2c2   :  { %13795 = vst [vmem:[#allocation63_spill] sm:$0xff] %v11010_v39  ;;  %v2539_v16 = vmax.f32 %v10713_v27, %v2497_v24  ;;  %v11018_v30 = vpop.permute.xlu0 %8801  ;;  %v2859_v38 = vrot.slane %v8268_v63, 5  ;;  %3957 = vmatprep.subr.bf16.mxu0 %v9099_v56  ;;  %v4096_v62 = vrot.slane %v8268_v63, 6  ;;  %v4854_v26 = vrot.slane %v8268_v63, 7  ;;  %v9106_v63 = vld [vmem:[#allocation4 + $0x150] ss:$8 sps:$4 sm:$0xff]  }
 0x2c3   :  { %v13552_v48 = vunpack.i.h.bf16 %v11018_v30  ;;  %v13553_v17 = vunpack.i.l.bf16 %v11018_v30  ;;  %v7788_v24 = vrot.slane %v8266_v54, 9  ;;  %v9115_v39 = vld [vmem:[#allocation4 + $0x160] ss:$8 sps:$4 sm:$0xff]  }
 0x2c4   :  { %v8270_v14 = vpack.c.bf16 %v2539_v16, %v2539_v16  ;;  %v11028_v27 = vpop.permute.xlu1 %8806  ;;  %v11032_v56 = vsel %vm9723_vm11, %v7924_v4, %v4096_v62  ;;  %v11043_v47 = vsel %vm10914_vm5, %v8012_v35, %v4854_v26  ;;  %v2864_v4 = vrot.slane %v2859_v38, 4 }
 0x2c5   :  { %13797 = vst [vmem:[#allocation65_spill] sm:$0xff] %v11028_v27  ;;  %13798 = vst [vmem:[#allocation66_spill] sm:$0xff] %v11032_v56  ;;  %v2498_v44 = vsel %vm1145_vm1, %v13552_v48, %v13553_v17  ;;  %v13562_v52 = vunpack.i.h.bf16 %v11028_v27  ;;  %v13565_v8 = vunpack.i.l.bf16 %v11028_v27  ;;  %3958 = vmatpush1.bf16.msra.mxu0 %v9097_v1  ;;  %v2860_v1 = vsel %vm9696_vm8, %v7788_v24, %v2859_v38  ;;  %v9126_v38 = vld [vmem:[#allocation4 + $0x174] ss:$8 sps:$4 sm:$0xff]  }
 0x2c6   :  { %13799 = vst [vmem:[#allocation67_spill] sm:$0xff] %v11043_v47  ;;  %v2542_v54 = vmax.f32 %v10721_v28, %v2498_v44  ;;  %v2865_v34 = vrot.slane %v8270_v14, 5  ;;  %3959 = vmatprep.subr.bf16.mxu0 %v9108_v10  ;;  %v4101_v17 = vrot.slane %v4096_v62, 4  ;;  %v4102_v12 = vrot.slane %v8270_v14, 6 }
 0x2c7   :  { %v2499_v48 = vsel %vm1145_vm1, %v13562_v52, %v13565_v8  ;;  %v4859_v57 = vrot.slane %v4854_v26, 4  ;;  %v4860_v27 = vrot.slane %v8270_v14, 7 }
 0x2c8   :  { %v8272_v55 = vpack.c.bf16 %v2542_v54, %v2542_v54  ;;  %v2545_v35 = vmax.f32 %v10727_v61, %v2499_v48  ;;  %v2866_v28 = vsel %vm9696_vm8, %v2864_v4, %v2865_v34  ;;  %v11056_v44 = vpack.c.bf16 %v2542_v54, %v2539_v16 }
 0x2c9   :  { %v7807_v10 = vcombine.low %v2860_v1, %v2866_v28  ;;  %3960 = vmatpush1.bf16.msra.mxu0 %v9106_v63  ;;  %v11064_v16 = vsel %vm9723_vm11, %v4101_v17, %v4102_v12  ;;  %v11068_v34 = vsel %vm10914_vm5, %v4859_v57, %v4860_v27  ;;  %v9124_v57 = vld [vmem:[#allocation4 + $0x170] ss:$8 sps:$4 sm:$0xff]   ;;  %v9135_v63 = vld [vmem:[#allocation4 + $0x304] ss:$8 sps:$4 sm:$0xff]  }
 0x2ca   :  { %13800 = vst [vmem:[#allocation68_spill] sm:$0xff] %v11056_v44  ;;  %v8274_v23 = vpack.c.bf16 %v2545_v35, %v2545_v35  ;;  %v11058_v52 = vpop.permute.xlu1 %8811  ;;  %3961 = vmatprep.subr.bf16.mxu0 %v9117_v13  ;;  %13801 = vst [vmem:[#allocation69_spill] sm:$0xff] %v11064_v16  ;;  %v7926_v13 = vrot.slane %v8272_v55, 10 }
 0x2cb   :  { %v13563_v62 = vunpack.i.h.bf16 %v11058_v52  ;;  %v13564_v61 = vunpack.i.l.bf16 %v11058_v52  ;;  %3488 = vmatmul.mubr.bf16.gmra.mrb[8].mxu0 %v7807_v10  ;;  %13802 = vst [vmem:[#allocation70_spill] sm:$0xff] %v11068_v34  ;;  %v7790_v10 = vrot.slane %v8272_v55, 9 }
 0x2cc   :  { %3497 = vmatprep.mubr.bf16.mxu0 %v13789_v25  ;;  %v4110_v26 = vrot.slane %v8274_v23, 6  ;;  %v2873_v17 = vrot.slane %v8274_v23, 5 }
 0x2cd   :  { %v2500_v12 = vsel %vm1145_vm1, %v13563_v62, %v13564_v61  ;;  %3962 = vmatpush1.bf16.msra.mxu0 %v9115_v39 }
 0x2ce   :  { %v2548_v27 = vmax.f32 %v10735_v3, %v2500_v12  ;;  %v11081_v24 = vpop.permute.xlu1 %8816  ;;  %3963 = vmatprep.subr.bf16.mxu0 %v9126_v38  ;;  %v11085_v54 = vsel %vm9723_vm11, %v7926_v13, %v4110_v26  ;;  %v2878_v39 = vrot.slane %v2873_v17, 4  ;;  %v8014_v38 = vrot.slane %v8272_v55, 11 }
 0x2cf   :  { %13803 = vst [vmem:[#allocation71_spill] sm:$0xff] %v11085_v54  ;;  %v13571_v4 = vunpack.i.h.bf16 %v11081_v24  ;;  %v13572_v1 = vunpack.i.l.bf16 %v11081_v24  ;;  %v4868_v12 = vrot.slane %v8274_v23, 7  ;;  %v4115_v61 = vrot.slane %v4110_v26, 4 }
 0x2d0   :  { %v8276_v28 = vpack.c.bf16 %v2548_v27, %v2548_v27  ;;  %v11089_v48 = vpack.c.bf16 %v2548_v27, %v2545_v35  ;;  %v2874_v55 = vsel %vm9696_vm8, %v7790_v10, %v2873_v17 }
 0x2d1   :  { %v2501_v3 = vsel %vm1145_vm1, %v13571_v4, %v13572_v1  ;;  %3964 = vmatpush1.bf16.msra.mxu0 %v9124_v57  ;;  %v11103_v34 = vsel %vm10914_vm5, %v8014_v38, %v4868_v12  ;;  %v4873_v38 = vrot.slane %v4868_v12, 4 }
 0x2d2   :  { %13804 = vst [vmem:[#allocation72_spill] sm:$0xff] %v11089_v48  ;;  %v2551_v13 = vmax.f32 %v10741_v59, %v2501_v3  ;;  %v11097_v14 = vpop.permute.xlu0 %8821  ;;  %v2879_v62 = vrot.slane %v8276_v28, 5  ;;  %4559 = vmatprep.subr.bf16.mxu0 %v9135_v63  ;;  %v4116_v8 = vrot.slane %v8276_v28, 6  ;;  %13805 = vst [vmem:[#allocation73_spill] sm:$0xff] %v11103_v34 }
 0x2d3   :  { %v13567_v35 = vunpack.i.h.bf16 %v11097_v14  ;;  %v13568_v27 = vunpack.i.l.bf16 %v11097_v14 }
 0x2d4   :  { %v2880_v59 = vsel %vm9696_vm8, %v2878_v39, %v2879_v62  ;;  %v11111_v23 = vsel %vm9723_vm11, %v4115_v61, %v4116_v8  ;;  %v8278_v26 = vpack.c.bf16 %v2551_v13, %v2551_v13 }
 0x2d5   :  { %13806 = vst [vmem:[#allocation74_spill] sm:$0xff] %v11111_v23  ;;  %v2502_v57 = vsel %vm1145_vm1, %v13567_v35, %v13568_v27  ;;  %v7810_v63 = vcombine.low %v2874_v55, %v2880_v59  ;;  %v4874_v35 = vrot.slane %v8276_v28, 7 }
 0x2d6   :  { %v2554_v17 = vmax.f32 %v10749_v43, %v2502_v57  ;;  %v11121_v10 = vpop.permute.xlu0 %8826  ;;  %v7792_v55 = vrot.slane %v8278_v26, 9  ;;  %v7928_v59 = vrot.slane %v8278_v26, 10 }
 0x2d7   :  { %v13569_v62 = vunpack.i.h.bf16 %v11121_v10  ;;  %v13570_v8 = vunpack.i.l.bf16 %v11121_v10  ;;  %3498 = vmatmul.mubr.bf16.gmra.mrb[12].mxu0 %v7810_v63 }
 0x2d8   :  { %v8280_v61 = vpack.c.bf16 %v2554_v17, %v2554_v17  ;;  %3507 = vmatprep.mubr.bf16.mxu0 %v13789_v25  ;;  %v11126_v39 = vpack.c.bf16 %v2554_v17, %v2551_v13  ;;  %v11138_v13 = vsel %vm10914_vm5, %v4873_v38, %v4874_v35  ;;  %v8016_v35 = vrot.slane %v8278_v26, 11 }
 0x2d9   :  { %v2503_v43 = vsel %vm1145_vm1, %v13569_v62, %v13570_v8  ;;  %13808 = vst [vmem:[#allocation76_spill] sm:$0xff] %v11138_v13 }
 0x2da   :  { %13807 = vst [vmem:[#allocation75_spill] sm:$0xff] %v11126_v39  ;;  %v2557_v57 = vmax.f32 %v10755_v37, %v2503_v43  ;;  %v11134_v3 = vpop.permute.xlu0 %8831  ;;  %v2887_v63 = vrot.slane %v8280_v61, 5  ;;  %v4124_v27 = vrot.slane %v8280_v61, 6  ;;  %v4882_v62 = vrot.slane %v8280_v61, 7 }
 0x2db   :  { %v13575_v28 = vunpack.i.h.bf16 %v11134_v3  ;;  %v13576_v12 = vunpack.i.l.bf16 %v11134_v3 }
 0x2dc   :  { %v8282_v8 = vpack.c.bf16 %v2557_v57, %v2557_v57  ;;  %v11144_v4 = vpop.permute.xlu1 %8836  ;;  %v2888_v37 = vsel %vm9696_vm8, %v7792_v55, %v2887_v63  ;;  %v11150_v43 = vsel %vm9723_vm11, %v7928_v59, %v4124_v27  ;;  %v2892_v1 = vrot.slane %v2887_v63, 4 }
 0x2dd   :  { %13809 = vst [vmem:[#allocation77_spill] sm:$0xff] %v11150_v43  ;;  %v2504_v38 = vsel %vm1145_vm1, %v13575_v28, %v13576_v12  ;;  %v13581_v17 = vunpack.i.h.bf16 %v11144_v4  ;;  %v13584_v61 = vunpack.i.l.bf16 %v11144_v4  ;;  %v11162_v59 = vsel %vm10914_vm5, %v8016_v35, %v4882_v62 }
 0x2de   :  { %v2560_v13 = vmax.f32 %v10763_v2, %v2504_v38  ;;  %v2893_v34 = vrot.slane %v8282_v8, 5  ;;  %v4130_v55 = vrot.slane %v8282_v8, 6  ;;  %13810 = vst [vmem:[#allocation78_spill] sm:$0xff] %v11162_v59  ;;  %v4129_v28 = vrot.slane %v4124_v27, 4 }
 0x2df   :  { %v2505_v26 = vsel %vm1145_vm1, %v13581_v17, %v13584_v61  ;;  %v4887_v12 = vrot.slane %v4882_v62, 4  ;;  %v4888_v47 = vrot.slane %v8282_v8, 7 }
 0x2e0   :  { %v8284_v23 = vpack.c.bf16 %v2560_v13, %v2560_v13  ;;  %v2563_v63 = vmax.f32 %v10769_v20, %v2505_v26  ;;  %v2894_v2 = vsel %vm9696_vm8, %v2892_v1, %v2893_v34  ;;  %v11172_v38 = vpack.c.bf16 %v2560_v13, %v2557_v57 }
 0x2e1   :  { %v7813_v54 = vcombine.low %v2888_v37, %v2894_v2  ;;  %v11176_v35 = vsel %vm9723_vm11, %v4129_v28, %v4130_v55  ;;  %v11180_v16 = vsel %vm10914_vm5, %v4887_v12, %v4888_v47 }
 0x2e2   :  { %13811 = vst [vmem:[#allocation79_spill] sm:$0xff] %v11172_v38  ;;  %13812 = vst [vmem:[#allocation80_spill] sm:$0xff] %v11176_v35  ;;  %v8286_v27 = vpack.c.bf16 %v2563_v63, %v2563_v63  ;;  %v11182_v62 = vpop.permute.xlu1 %8841  ;;  %v7930_v57 = vrot.slane %v8284_v23, 10  ;;  %v8018_v37 = vrot.slane %v8284_v23, 11 }
 0x2e3   :  { %13813 = vst [vmem:[#allocation81_spill] sm:$0xff] %v11180_v16  ;;  %v13582_v8 = vunpack.i.h.bf16 %v11182_v62  ;;  %v13583_v34 = vunpack.i.l.bf16 %v11182_v62  ;;  %3508 = vmatmul.mubr.bf16.gmra.mrb[16].mxu0 %v7813_v54 }
 0x2e4   :  { %3517 = vmatprep.mubr.bf16.mxu0 %v13789_v25  ;;  %v4138_v13 = vrot.slane %v8286_v27, 6  ;;  %v4896_v47 = vrot.slane %v8286_v27, 7  ;;  %v2901_v12 = vrot.slane %v8286_v27, 5  ;;  %v7794_v27 = vrot.slane %v8284_v23, 9 }
 0x2e5   :  { %v2506_v28 = vsel %vm1145_vm1, %v13582_v8, %v13583_v34 }
 0x2e6   :  { %v2566_v55 = vmax.f32 %v10777_v42, %v2506_v28  ;;  %v11197_v26 = vpop.permute.xlu1 %8846  ;;  %v11201_v54 = vsel %vm9723_vm11, %v7930_v57, %v4138_v13  ;;  %v11207_v20 = vsel %vm10914_vm5, %v8018_v37, %v4896_v47  ;;  %v2906_v57 = vrot.slane %v2901_v12, 4 }
 0x2e7   :  { %13814 = vst [vmem:[#allocation82_spill] sm:$0xff] %v11201_v54  ;;  %v13593_v2 = vunpack.i.h.bf16 %v11197_v26  ;;  %v13594_v1 = vunpack.i.l.bf16 %v11197_v26  ;;  %13815 = vst [vmem:[#allocation83_spill] sm:$0xff] %v11207_v20  ;;  %v4143_v16 = vrot.slane %v4138_v13, 4  ;;  %v2902_v43 = vsel %vm9696_vm8, %v7794_v27, %v2901_v12 }
 0x2e8   :  { %v8288_v17 = vpack.c.bf16 %v2566_v55, %v2566_v55  ;;  %v11209_v8 = vpack.c.bf16 %v2566_v55, %v2563_v63  ;;  %v4901_v55 = vrot.slane %v4896_v47, 4 }
 0x2e9   :  { %v2507_v42 = vsel %vm1145_vm1, %v13593_v2, %v13594_v1 }
 0x2ea   :  { %13816 = vst [vmem:[#allocation84_spill] sm:$0xff] %v11209_v8  ;;  %v2569_v28 = vmax.f32 %v10783_v19, %v2507_v42  ;;  %v11217_v34 = vpop.permute.xlu0 %8851  ;;  %v2907_v61 = vrot.slane %v8288_v17, 5  ;;  %v4144_v59 = vrot.slane %v8288_v17, 6  ;;  %v4902_v35 = vrot.slane %v8288_v17, 7 }
 0x2eb   :  { %v13589_v37 = vunpack.i.h.bf16 %v11217_v34  ;;  %v13590_v63 = vunpack.i.l.bf16 %v11217_v34 }
 0x2ec   :  { %v2908_v23 = vsel %vm9696_vm8, %v2906_v57, %v2907_v61  ;;  %v11227_v19 = vsel %vm9723_vm11, %v4143_v16, %v4144_v59  ;;  %v11238_v47 = vsel %vm10914_vm5, %v4901_v55, %v4902_v35  ;;  %v8290_v12 = vpack.c.bf16 %v2569_v28, %v2569_v28 }
 0x2ed   :  { %13817 = vst [vmem:[#allocation85_spill] sm:$0xff] %v11227_v19  ;;  %v2508_v13 = vsel %vm1145_vm1, %v13589_v37, %v13590_v63  ;;  %v7816_v42 = vcombine.low %v2902_v43, %v2908_v23  ;;  %13818 = vst [vmem:[#allocation86_spill] sm:$0xff] %v11238_v47  ;;  %v13827_v19 = vld [vmem:[#allocation12_spill] sm:$0xff] }
 0x2ee   :  { %v2572_v61 = vmax.f32 %v10791_v49, %v2508_v13  ;;  %v11241_v27 = vpop.permute.xlu0 %8856  ;;  %v7932_v13 = vrot.slane %v8290_v12, 10 }
 0x2ef   :  { %v13591_v59 = vunpack.i.h.bf16 %v11241_v27  ;;  %v13592_v57 = vunpack.i.l.bf16 %v11241_v27  ;;  %3518 = vmatmul.mubr.bf16.gmra.mrb[20].mxu0 %v7816_v42 }
 0x2f0   :  { %v11247_v43 = vpack.c.bf16 %v2572_v61, %v2572_v61  ;;  %3527 = vmatprep.mubr.bf16.mxu0 %v13789_v25  ;;  %v11250_v23 = vpack.c.bf16 %v2572_v61, %v2569_v28 }
 0x2f1   :  { %v2509_v49 = vsel %vm1145_vm1, %v13591_v59, %v13592_v57 }
 0x2f2   :  { %13819 = vst [vmem:[#allocation87_spill] sm:$0xff] %v11247_v43  ;;  %13820 = vst [vmem:[#allocation88_spill] sm:$0xff] %v11250_v23  ;;  %v2575_v35 = vmax.f32 %v10797_v0, %v2509_v49  ;;  %v11258_v55 = vpop.permute.xlu0 %8861  ;;  %v13596_v16 = vrot.slane %v11247_v43, 6  ;;  %v13603_v42 = vrot.slane %v11247_v43, 7  ;;  %v2915_v61 = vrot.slane %v11247_v43, 5 }
 0x2f3   :  { %v13600_v17 = vunpack.i.h.bf16 %v11258_v55  ;;  %v13601_v28 = vunpack.i.l.bf16 %v11258_v55  ;;  %v8020_v49 = vrot.slane %v8290_v12, 11 }
 0x2f4   :  { %v11265_v37 = vpack.c.bf16 %v2575_v35, %v2575_v35  ;;  %v11267_v63 = vpop.permute.xlu1 %8866  ;;  %v11273_v0 = vsel %vm9723_vm11, %v7932_v13, %v13596_v16  ;;  %v2920_v20 = vrot.slane %v2915_v61, 4 }
 0x2f5   :  { %13822 = vst [vmem:[#allocation90_spill] sm:$0xff] %v11273_v0  ;;  %v2510_v59 = vsel %vm1145_vm1, %v13600_v17, %v13601_v28  ;;  %v11288_v47 = vsel %vm10914_vm5, %v8020_v49, %v13603_v42  ;;  %v7796_v17 = vrot.slane %v8290_v12, 9  ;;  %v13825_v28 = vunpack.i.l.bf16 %v10861_v60  ;;  %v13828_v12 = vld [vmem:[#allocation13_spill] sm:$0xff] }
 0x2f6   :  { %13821 = vst [vmem:[#allocation89_spill] sm:$0xff] %v11265_v37  ;;  %v11281_v57 = vmax.f32 %v10805_v5, %v2510_v59  ;;  %v8877_v2 = vpop.permute.xlu0 %8876  ;;  %v2921_v1 = vrot.slane %v11265_v37, 5  ;;  %13823 = vst [vmem:[#allocation91_spill] sm:$0xff] %v11288_v47  ;;  %v13826_v49 = vunpack.i.l.bf16 %v10876_v46  ;;  %v13831_v37 = vunpack.i.h.bf16 %v11267_v63 }
 0x2f7   :  { %v8879_v13 = vunpack.i.h.bf16 %v8877_v2  ;;  %v8878_v16 = vunpack.i.l.bf16 %v8877_v2  ;;  %v2916_v59 = vsel %vm9696_vm8, %v7796_v17, %v2915_v61 }
 0x2f8   :  { %v11291_v54 = vpop.permute.xlu1 %8871  ;;  %v11294_v5 = vpack.c.bf16 %v11281_v57, %v2575_v35  ;;  %v2922_v2 = vsel %vm9696_vm8, %v2920_v20, %v2921_v1 }
 0x2f9   :  { %v2345_v56 = vsel %vm1145_vm1, %v13825_v28, %v8879_v13  ;;  %v2347_v42 = vsel %vm1145_vm1, %v13826_v49, %v8878_v16  ;;  %v7819_v28 = vcombine.low %v2916_v59, %v2922_v2  ;;  %v13830_v49 = vunpack.i.l.bf16 %v11267_v63  ;;  %v13834_v2 = vld [vmem:[#allocation15_spill] sm:$0xff] }
 0x2fa   :  { %13824 = vst [vmem:[#allocation92_spill] sm:$0xff] %v11294_v5  ;;  %v11306_v47 = vmax.f32 %v13827_v19, %v2345_v56  ;;  %v2516_v40 = vmax.f32 %v13828_v12, %v2347_v42  ;;  %v8882_v35 = vpop.permute.xlu0 %8881  ;;  %v13832_v56 = vunpack.i.l.bf16 %v10902_v21  ;;  %v13833_v19 = vunpack.i.h.bf16 %v10902_v21 }
 0x2fb   :  { %v8884_v5 = vunpack.i.h.bf16 %v8882_v35  ;;  %v2511_v20 = vsel %vm1145_vm1, %v13831_v37, %v13830_v49  ;;  %v13615_v17 = vunpack.i.h.bf16 %v11291_v54  ;;  %v13616_v61 = vunpack.i.l.bf16 %v11291_v54  ;;  %3528 = vmatmul.mubr.bf16.gmra.mrb[24].mxu0 %v7819_v28 }
 0x2fc   :  { %v11312_v23 = vpack.c.bf16 %v2516_v40, %v11306_v47  ;;  %v2216_v0 = vpop.permute.xlu1 %2215  ;;  %v8883_v59 = vunpack.i.l.bf16 %v8882_v35  ;;  %v13835_v37 = vunpack.i.l.bf16 %v10888_v58  ;;  %3537 = vmatprep.mubr.bf16.mxu0 %v13789_v25 }
 0x2fd   :  { %v2351_v1 = vsel %vm1145_vm1, %v13832_v56, %v8884_v5  ;;  %v2352_v42 = vsel %vm1145_vm1, %v8884_v5, %v13833_v19  ;;  %v13836_v56 = vunpack.i.h.bf16 %v10888_v58  ;;  %v13837_v5 = vld [vmem:[#allocation14_spill] sm:$0xff] }
 0x2fe   :  { %13829 = vst [vmem:[#allocation12_spill] sm:$0xff] %v11312_v23  ;;  %v2522_v12 = vmax.f32 %v13834_v2, %v2351_v1  ;;  %v8887_v23 = vpop.permute.xlu0 %8886  ;;  %v2523_v43 = vmax.f32 %v10485_v11, %v2352_v42  ;;  %v2349_v49 = vsel %vm1145_vm1, %v13835_v37, %v2216_v0  ;;  %v2668_v1 = vunpack.c.h.b16 %v10936_v32  ;;  %v13866_v32 = vld [vmem:[#allocation20_spill] sm:$0xff] }
 0x2ff   :  { %v2350_v21 = vsel %vm1145_vm1, %v2216_v0, %v13836_v56  ;;  %v2519_v19 = vmax.f32 %v13837_v5, %v2349_v49  ;;  %v2671_v2 = vunpack.c.l.b16 %v10973_v50  ;;  %v11341_v11 = vmax.f32 %v10812_v29, %v2511_v20 }
 0x300   :  { %v2520_v35 = vmax.f32 %v10476_v53, %v2350_v21  ;;  %v2234_v28 = vpop.permute.xlu1 %2233  ;;  %v13838_v42 = vunpack.i.h.bf16 %v10861_v60  ;;  %v13839_v0 = vunpack.i.h.bf16 %v10876_v46  ;;  %v8889_v56 = vunpack.i.h.bf16 %v8887_v23 }
 0x301   :  { %v2512_v53 = vsel %vm1145_vm1, %v13615_v17, %v13616_v61  ;;  %v13840_v49 = vunpack.i.l.bf16 %v10906_v45  ;;  %v11357_v20 = vpack.c.bf16 %v2522_v12, %v2519_v19  ;;  %v13844_v21 = vunpack.i.l.bf16 %v10952_v31 }
 0x302   :  { %v2346_v58 = vsel %vm1145_vm1, %v8879_v13, %v13838_v42  ;;  %v2348_v37 = vsel %vm1145_vm1, %v8878_v16, %v13839_v0  ;;  %v11359_v60 = vpack.c.bf16 %v2523_v43, %v2520_v35  ;;  %v13843_v13 = vunpack.i.h.bf16 %v10906_v45 }
 0x303   :  { %v2353_v29 = vsel %vm1145_vm1, %v13840_v49, %v8883_v59  ;;  %13841 = vst [vmem:[#allocation13_spill] sm:$0xff] %v11357_v20  ;;  %v8888_v16 = vunpack.i.l.bf16 %v8887_v23  ;;  %v2355_v5 = vsel %vm1145_vm1, %v13844_v21, %v2234_v28  ;;  %v13845_v42 = vunpack.i.h.bf16 %v10952_v31  ;;  %v11373_v49 = vpop.permute.xlu0 %8891 }
 0x304   :  { %13842 = vst [vmem:[#allocation15_spill] sm:$0xff] %v11359_v60  ;;  %v2354_v46 = vsel %vm1145_vm1, %v8883_v59, %v13843_v13  ;;  %v11371_v17 = vmax.f32 %v10460_v18, %v2346_v58  ;;  %v11375_v61 = vpack.c.b16 %v2671_v2, %v2668_v1  ;;  %v11378_v45 = vmax.f32 %v10469_v41, %v2348_v37  ;;  %v13848_v18 = vld [vmem:[#allocation16_spill] sm:$0xff]  ;;  %v13849_v1 = vld [vmem:[#allocation17_spill] sm:$0xff] }
 0x305   :  { %v2356_v0 = vsel %vm1145_vm1, %v2234_v28, %v13845_v42  ;;  %v11381_v23 = vmax.f32 %v10817_v6, %v2512_v53  ;;  %v13846_v59 = vunpack.i.l.bf16 %v10965_v51  ;;  %v13847_v31 = vunpack.i.h.bf16 %v10965_v51  ;;  %v2252_v42 = vpop.permute.xlu1 %2251 }
 0x306   :  { %v2525_v58 = vmax.f32 %v13848_v18, %v2353_v29  ;;  %v2526_v21 = vmax.f32 %v10492_v7, %v2354_v46  ;;  %v2528_v2 = vmax.f32 %v13849_v1, %v2355_v5  ;;  %v2529_v41 = vmax.f32 %v10500_v36, %v2356_v0  ;;  %v13852_v29 = vld [vmem:[#allocation18_spill] sm:$0xff]  ;;  %v13861_v18 = vld [vmem:[#allocation23_spill] sm:$0xff] }
 0x307   :  { %v2357_v13 = vsel %vm1145_vm1, %v13846_v59, %v8889_v56  ;;  %v2358_v28 = vsel %vm1145_vm1, %v8889_v56, %v13847_v31  ;;  %v11395_v6 = vpack.c.bf16 %v11341_v11, %v11341_v11  ;;  %v11397_v37 = vpack.c.bf16 %v2520_v35, %v2519_v19 }
 0x308   :  { %v13851_v53 = vunpack.i.l.bf16 %v10981_v33  ;;  %v8894_v56 = vunpack.i.h.bf16 %v11373_v49  ;;  %v11404_v59 = vmax.f32 %v13852_v29, %v2357_v13  ;;  %v11407_v7 = vmax.f32 %v10505_v22, %v2358_v28 }
 0x309   :  { %13850 = vst [vmem:[#allocation14_spill] sm:$0xff] %v11395_v6  ;;  %v11409_v36 = vpack.c.bf16 %v2528_v2, %v2525_v58  ;;  %v11411_v46 = vpack.c.bf16 %v2529_v41, %v2526_v21  ;;  %v11415_v19 = vpack.c.bf16 %v11281_v57, %v11281_v57  ;;  %v11419_v35 = vpack.c.bf16 %v11381_v23, %v11381_v23  ;;  %v2270_v20 = vpop.permute.xlu1 %2269 }
 0x30a   :  { %v2359_v51 = vsel %vm1145_vm1, %v13851_v53, %v8888_v16  ;;  %13853 = vst [vmem:[#allocation16_spill] sm:$0xff] %v11404_v59  ;;  %13854 = vst [vmem:[#allocation17_spill] sm:$0xff] %v11407_v7  ;;  %v13859_v5 = vunpack.i.h.bf16 %v10981_v33  ;;  %v13860_v13 = vunpack.i.l.bf16 %v11018_v30  ;;  %v11429_v31 = vpack.c.bf16 %v11371_v17, %v11306_v47  ;;  %v8897_v53 = vpop.permute.xlu0 %8896 }
 0x30b   :  { %13855 = vst [vmem:[#allocation18_spill] sm:$0xff] %v11409_v36  ;;  %13856 = vst [vmem:[#allocation93_spill] sm:$0xff] %v11411_v46  ;;  %v11432_v28 = vpack.c.bf16 %v11378_v45, %v2516_v40  ;;  %v8893_v57 = vunpack.i.l.bf16 %v11373_v49  ;;  %v11436_v29 = vpack.c.bf16 %v2523_v43, %v2522_v12  ;;  %v2834_v33 = vrot.slane %v11397_v37, 5  ;;  %v13869_v49 = vld [vmem:[#allocation21_spill] sm:$0xff] }
 0x30c   :  { %13857 = vst [vmem:[#allocation94_spill] sm:$0xff] %v11415_v19  ;;  %13858 = vst [vmem:[#allocation95_spill] sm:$0xff] %v11419_v35  ;;  %v2360_v0 = vsel %vm1145_vm1, %v8888_v16, %v13859_v5  ;;  %v2363_v22 = vsel %vm1145_vm1, %v13860_v13, %v8894_v56  ;;  %v13862_v16 = vld [vmem:[#allocation19_spill] sm:$0xff]  ;;  %v13864_v13 = vld [vmem:[#allocation62_spill] sm:$0xff]  ;;  %v11450_v40 = vpack.c.bf16 %v11407_v7, %v11404_v59  ;;  %v2929_v43 = vrot.slane %v11395_v6, 5 }
 0x30d   :  { %v2540_v1 = vmax.f32 %v13861_v18, %v2363_v22  ;;  %v11440_v5 = vmax.f32 %v13862_v16, %v2359_v51  ;;  %v13865_v50 = vunpack.i.l.bf16 %v13864_v13  ;;  %v11446_v36 = vmax.f32 %v13866_v32, %v2360_v0  ;;  %v13871_v0 = vld [vmem:[#allocation65_spill] sm:$0xff] }
 0x30e   :  { %13868 = vst [vmem:[#allocation62_spill] sm:$0xff] %v11450_v40  ;;  %v11454_v12 = vpack.c.bf16 %v2526_v21, %v2525_v58  ;;  %v2935_v51 = vrot.slane %v11419_v35, 5  ;;  %v8899_v18 = vunpack.i.h.bf16 %v8897_v53  ;;  %v8898_v16 = vunpack.i.l.bf16 %v8897_v53  ;;  %v11657_v7 = vld [vmem:[#allocation4 + $0x320] ss:$8 sps:$4 sm:$0xff]  }
 0x30f   :  { %13863 = vst [vmem:[#allocation23_spill] sm:$0xff] %v11440_v5  ;;  %v2361_v47 = vsel %vm1145_vm1, %v13865_v50, %v2252_v42  ;;  %13867 = vst [vmem:[#allocation19_spill] sm:$0xff] %v11446_v36  ;;  %v13870_v50 = vunpack.i.h.bf16 %v11018_v30  ;;  %v13872_v60 = vunpack.i.l.bf16 %v13871_v0  ;;  %v13874_v58 = vunpack.i.l.bf16 %v11081_v24 }
 0x310   :  { %v2537_v22 = vmax.f32 %v13869_v49, %v2361_v47  ;;  %v7798_v47 = vrot.slane %v11415_v19, 9  ;;  %v2934_v49 = vrot.slane %v2929_v43, 4  ;;  %v13875_v53 = vunpack.i.h.bf16 %v11081_v24 }
 0x311   :  { %v2364_v32 = vsel %vm1145_vm1, %v8894_v56, %v13870_v50  ;;  %v2365_v46 = vsel %vm1145_vm1, %v13872_v60, %v8893_v57  ;;  %v2369_v21 = vsel %vm1145_vm1, %v13874_v58, %v8899_v18  ;;  %v13876_v30 = vunpack.i.l.bf16 %v11097_v14 }
 0x312   :  { %v11463_v39 = vpack.c.bf16 %v2540_v1, %v2537_v22  ;;  %v2370_v35 = vsel %vm1145_vm1, %v8899_v18, %v13875_v53  ;;  %v13877_v50 = vunpack.i.h.bf16 %v13864_v13  ;;  %v2930_v19 = vsel %vm9696_vm8, %v7798_v47, %v2929_v43  ;;  %v13879_v18 = vld [vmem:[#allocation29_spill] sm:$0xff]  ;;  %v13883_v13 = vld [vmem:[#allocation31_spill] sm:$0xff]  ;;  %v13885_v43 = vld [vmem:[#allocation32_spill] sm:$0xff] }
 0x313   :  { %v2371_v56 = vsel %vm1145_vm1, %v13876_v30, %v8898_v16  ;;  %v13878_v6 = vunpack.i.h.bf16 %v11097_v14  ;;  %v7783_v58 = vrot.slane %v11429_v31, 9  ;;  %v2936_v24 = vsel %vm9696_vm8, %v2934_v49, %v2935_v51  ;;  %v13881_v30 = vld [vmem:[#allocation30_spill] sm:$0xff]  ;;  %v8902_v51 = vpop.permute.xlu0 %8901 }
 0x314   :  { %13873 = vst [vmem:[#allocation20_spill] sm:$0xff] %v11463_v39  ;;  %v2362_v60 = vsel %vm1145_vm1, %v2252_v42, %v13877_v50  ;;  %v11487_v53 = vmax.f32 %v13879_v18, %v2369_v21  ;;  %v11490_v59 = vmax.f32 %v13881_v30, %v2370_v35  ;;  %v11493_v42 = vmax.f32 %v13883_v13, %v2371_v56  ;;  %v13888_v21 = vld [vmem:[#allocation24_spill] sm:$0xff]  ;;  %v13890_v35 = vld [vmem:[#allocation22_spill] sm:$0xff]  ;;  %v13892_v13 = vld [vmem:[#allocation25_spill] sm:$0xff] }
 0x315   :  { %v2372_v39 = vsel %vm1145_vm1, %v8898_v16, %v13878_v6  ;;  %v7822_v50 = vcombine.low %v2930_v19, %v2936_v24  ;;  %v2827_v14 = vrot.slane %v11432_v28, 5  ;;  %v13887_v6 = vunpack.i.l.bf16 %v11058_v52 }
 0x316   :  { %13880 = vst [vmem:[#allocation21_spill] sm:$0xff] %v11487_v53  ;;  %13882 = vst [vmem:[#allocation65_spill] sm:$0xff] %v11490_v59  ;;  %v11496_v47 = vmax.f32 %v13885_v43, %v2372_v39  ;;  %v11502_v49 = vpack.c.bf16 %v2529_v41, %v2528_v2  ;;  %v11505_v18 = vmax.f32 %v13888_v21, %v2364_v32  ;;  %v2288_v39 = vpop.permute.xlu1 %2287  ;;  %v13893_v41 = vld [vmem:[#allocation27_spill] sm:$0xff] }
 0x317   :  { %13884 = vst [vmem:[#allocation29_spill] sm:$0xff] %v11493_v42  ;;  %v2367_v16 = vsel %vm1145_vm1, %v13887_v6, %v2270_v20  ;;  %v11508_v30 = vmax.f32 %v13890_v35, %v2362_v60  ;;  %v11512_v19 = vpack.c.bf16 %v11490_v59, %v11487_v53  ;;  %3538 = vmatmul.mubr.bf16.gmra.mrb[28].mxu0 %v7822_v50  ;;  %v2833_v24 = vrot.slane %v2827_v14, 4 }
 0x318   :  { %13886 = vst [vmem:[#allocation30_spill] sm:$0xff] %v11496_v47  ;;  %13889 = vst [vmem:[#allocation31_spill] sm:$0xff] %v11505_v18  ;;  %v11516_v56 = vpack.c.bf16 %v11496_v47, %v11493_v42  ;;  %v11519_v2 = vmax.f32 %v13892_v13, %v2365_v46  ;;  %v11522_v32 = vmax.f32 %v13893_v41, %v2367_v16  ;;  %v8904_v6 = vunpack.i.h.bf16 %v8902_v51  ;;  %v9127_v42 = vld [vmem:[#allocation4] ss:$8 sps:$4 sm:$0xff]  }
 0x319   :  { %13891 = vst [vmem:[#allocation32_spill] sm:$0xff] %v11508_v30  ;;  %v11526_v60 = vpack.c.bf16 %v11446_v36, %v11440_v5  ;;  %v2828_v43 = vsel %vm9696_vm8, %v7783_v58, %v2827_v14  ;;  %v8903_v50 = vunpack.i.l.bf16 %v8902_v51  ;;  %3981 = vmatprep.mubr.bf16.mxu0 %v13789_v25  ;;  %v2835_v21 = vsel %vm9696_vm8, %v2833_v24, %v2834_v33  ;;  %v8907_v5 = vpop.permute.xlu0 %8906 }
 0x31a   :  { %v11535_v46 = vpack.c.bf16 %v11522_v32, %v11519_v2  ;;  %v7785_v16 = vrot.slane %v11436_v29, 9  ;;  %v2841_v35 = vrot.slane %v11454_v12, 5  ;;  %v2848_v13 = vrot.slane %v11502_v49, 5 }
 0x31b   :  { %13894 = vst [vmem:[#allocation24_spill] sm:$0xff] %v11526_v60  ;;  %v13896_v41 = vunpack.i.h.bf16 %v13871_v0  ;;  %v7799_v14 = vcombine.low %v2828_v43, %v2835_v21  ;;  %v7800_v51 = vcombine.high %v2828_v43, %v2835_v21  ;;  %v11544_v53 = vpack.c.bf16 %v11505_v18, %v2540_v1  ;;  %v9132_v0 = vld [vmem:[#allocation4 + $0x14] ss:$8 sps:$4 sm:$0xff]  }
 0x31c   :  { %13895 = vst [vmem:[#allocation22_spill] sm:$0xff] %v11535_v46  ;;  %v11547_v33 = vpack.c.bf16 %v11508_v30, %v2537_v22  ;;  %v13898_v24 = vunpack.i.l.bf16 %v11134_v3  ;;  %v13899_v47 = vunpack.i.h.bf16 %v11134_v3  ;;  %v13901_v1 = vunpack.i.l.bf16 %v11144_v4 }
 0x31d   :  { %v2366_v58 = vsel %vm1145_vm1, %v8893_v57, %v13896_v41  ;;  %3354 = vmatprep.mubr.bf16.mxu1 %v7800_v51  ;;  %v13900_v57 = vunpack.i.h.bf16 %v11058_v52  ;;  %v13902_v21 = vunpack.i.h.bf16 %v11144_v4  ;;  %v11566_v3 = vsel %vm9696_vm8, %v7785_v16, %v2841_v35  ;;  %v13904_v52 = vld [vmem:[#allocation35_spill] sm:$0xff] }
 0x31e   :  { %13897 = vst [vmem:[#allocation25_spill] sm:$0xff] %v11547_v33  ;;  %v2375_v46 = vsel %vm1145_vm1, %v13898_v24, %v8904_v6  ;;  %v2376_v59 = vsel %vm1145_vm1, %v8904_v6, %v13899_v47  ;;  %v2377_v22 = vsel %vm1145_vm1, %v13901_v1, %v8903_v50  ;;  %v11568_v47 = vld [vmem:[#allocation4 + $0x300] ss:$8 sps:$4 sm:$0xff]   ;;  %v2306_v6 = vpop.permute.xlu1 %2305  ;;  %3355 = vmatmul.mubr.bf16.vlgmr.msra.gmra.mrb[96].mxu1 %v7799_v14  ;;  %v2847_v51 = vrot.slane %v2841_v35, 4  ;;  %v11575_v4 = vld [vmem:[#allocation4 + $0x314] ss:$8 sps:$4 sm:$0xff]  }
 0x31f   :  { %v2368_v43 = vsel %vm1145_vm1, %v2270_v20, %v13900_v57  ;;  %v2378_v41 = vsel %vm1145_vm1, %v8903_v50, %v13902_v21  ;;  %13903 = vst [vmem:[#allocation27_spill] sm:$0xff] %v11568_v47  ;;  %v2558_v24 = vmax.f32 %v13904_v52, %v2375_v46  ;;  %v13905_v20 = vld [vmem:[#allocation36_spill] sm:$0xff]  ;;  %v13906_v18 = vunpack.i.l.bf16 %v11121_v10  ;;  %13907 = vst [vmem:[#allocation35_spill] sm:$0xff] %v11575_v4  ;;  %v13909_v21 = vld [vmem:[#allocation33_spill] sm:$0xff] }
 0x320   :  { %v2559_v57 = vmax.f32 %v13905_v20, %v2376_v59  ;;  %3837 = vmatpush1.bf16.msra.mxu1 %v9127_v42  ;;  %v13908_v50 = vunpack.i.h.bf16 %v11121_v10  ;;  %v9130_v14 = vld [vmem:[#allocation4 + $0x10] ss:$8 sps:$4 sm:$0xff]   ;;  %v8909_v35 = vunpack.i.h.bf16 %v8907_v5  ;;  %v8908_v36 = vunpack.i.l.bf16 %v8907_v5  ;;  %v13910_v52 = vld [vmem:[#allocation34_spill] sm:$0xff] }
 0x321   :  { %v2373_v1 = vsel %vm1145_vm1, %v13906_v18, %v2288_v39  ;;  %v2849_v59 = vsel %vm9696_vm8, %v2847_v51, %v2848_v13  ;;  %3838 = vmatprep.subr.bf16.mxu1 %v9132_v0  ;;  %v13911_v42 = vld [vmem:[#allocation52_spill] sm:$0xff]  ;;  %v9138_v10 = vld [vmem:[#allocation4 + $0x24] ss:$8 sps:$4 sm:$0xff]   ;;  %v13913_v5 = vunpack.i.l.bf16 %v11197_v26  ;;  %v13914_v51 = vunpack.i.h.bf16 %v11197_v26 }
 0x322   :  { %v2374_v16 = vsel %vm1145_vm1, %v2288_v39, %v13908_v50  ;;  %v11581_v30 = vmax.f32 %v13909_v21, %v2373_v1  ;;  %v11585_v46 = vpack.c.bf16 %v2559_v57, %v2558_v24  ;;  %3982 = vmatmul.mubr.bf16.vlgmr.msra.gmra.mrb[32].mxu0 %v13911_v42  ;;  %v7803_v39 = vcombine.high %v11566_v3, %v2849_v59  ;;  %v11602_v50 = vld [vmem:[#allocation4 + $0x310] ss:$8 sps:$4 sm:$0xff]   ;;  %v11615_v26 = vld [vmem:[#allocation4 + $0x324] ss:$8 sps:$4 sm:$0xff]  }
 0x323   :  { %v11588_v18 = vmax.f32 %v13910_v52, %v2374_v16  ;;  %4560 = vmatpush1.bf16.msra.mxu0 %v11568_v47  ;;  %v2381_v13 = vsel %vm1145_vm1, %v13913_v5, %v8909_v35  ;;  %v2382_v1 = vsel %vm1145_vm1, %v8909_v35, %v13914_v51  ;;  %13915 = vst [vmem:[#allocation33_spill] sm:$0xff] %v11602_v50  ;;  %v13917_v16 = vunpack.i.l.bf16 %v11217_v34  ;;  %v13920_v35 = vld [vmem:[#allocation41_spill] sm:$0xff] }
 0x324   :  { %v11593_v20 = vpack.c.bf16 %v2558_v24, %v11581_v30  ;;  %v13918_v21 = vunpack.i.h.bf16 %v11217_v34  ;;  %4561 = vmatprep.subr.bf16.mxu0 %v11575_v4  ;;  %v7787_v5 = vrot.slane %v11450_v40, 9  ;;  %13919 = vst [vmem:[#allocation96_spill] sm:$0xff] %v11615_v26  ;;  %3364 = vmatprep.mubr.bf16.mxu1 %v7803_v39  ;;  %v11618_v51 = vmax.f32 %v13920_v35, %v2381_v13  ;;  %v9136_v34 = vld [vmem:[#allocation4 + $0x20] ss:$8 sps:$4 sm:$0xff]   ;;  %v13927_v39 = vld [vmem:[#allocation28_spill] sm:$0xff] }
 0x325   :  { %v11605_v0 = vpack.c.bf16 %v2559_v57, %v11588_v18  ;;  %v2383_v24 = vsel %vm1145_vm1, %v13917_v16, %v8908_v36  ;;  %3839 = vmatpush1.bf16.msra.mxu1 %v9130_v14  ;;  %v13922_v57 = vld [vmem:[#allocation42_spill] sm:$0xff]  ;;  %v11632_v14 = vmax.f32 %v13927_v39, %v2368_v43  ;;  %v13929_v13 = vld [vmem:[#allocation44_spill] sm:$0xff]  ;;  %3991 = vmatprep.mubr.bf16.mxu0 %v13789_v25  ;;  %v13932_v39 = vld [vmem:[#allocation37_spill] sm:$0xff] }
 0x326   :  { %13912 = vst [vmem:[#allocation36_spill] sm:$0xff] %v11593_v20  ;;  %v2384_v52 = vsel %vm1145_vm1, %v8908_v36, %v13918_v21  ;;  %13921 = vst [vmem:[#allocation41_spill] sm:$0xff] %v11618_v51  ;;  %v11621_v42 = vmax.f32 %v13922_v57, %v2382_v1  ;;  %v13924_v20 = vld [vmem:[#allocation43_spill] sm:$0xff]  ;;  %v2855_v36 = vrot.slane %v11526_v60, 5  ;;  %v2324_v21 = vpop.permute.xlu1 %2323  ;;  %v13925_v4 = vld [vmem:[#allocation26_spill] sm:$0xff]  ;;  %3840 = vmatprep.subr.bf16.mxu1 %v9138_v10  ;;  %v8912_v1 = vpop.permute.xlu0 %8911 }
 0x327   :  { %13916 = vst [vmem:[#allocation34_spill] sm:$0xff] %v11605_v0  ;;  %v11624_v16 = vmax.f32 %v13924_v20, %v2383_v24  ;;  %v2862_v0 = vrot.slane %v11547_v33, 5  ;;  %v11629_v47 = vmax.f32 %v13925_v4, %v2366_v58  ;;  %13928 = vst [vmem:[#allocation26_spill] sm:$0xff] %v11632_v14  ;;  %v11635_v35 = vmax.f32 %v13929_v13, %v2384_v52  ;;  %v9144_v57 = vld [vmem:[#allocation4 + $0x34] ss:$8 sps:$4 sm:$0xff]   ;;  %v13933_v13 = vld [vmem:[#allocation38_spill] sm:$0xff] }
 0x328   :  { %13923 = vst [vmem:[#allocation42_spill] sm:$0xff] %v11621_v42  ;;  %v11640_v20 = vpack.c.bf16 %v11621_v42, %v11618_v51  ;;  %v13930_v24 = vunpack.i.l.bf16 %v11182_v62  ;;  %v13931_v4 = vunpack.i.h.bf16 %v11182_v62  ;;  %v2561_v52 = vmax.f32 %v13932_v39, %v2377_v22  ;;  %4562 = vmatpush1.bf16.msra.mxu0 %v11602_v50  ;;  %v13934_v51 = vld [vmem:[#allocation39_spill] sm:$0xff]  ;;  %v13935_v33 = vld [vmem:[#allocation40_spill] sm:$0xff]  ;;  %13936 = vst [vmem:[#allocation28_spill] sm:$0xff] %v11657_v7 }
 0x329   :  { %13926 = vst [vmem:[#allocation43_spill] sm:$0xff] %v11629_v47  ;;  %v11652_v10 = vpack.c.bf16 %v11635_v35, %v11624_v16  ;;  %v2562_v60 = vmax.f32 %v13933_v13, %v2378_v41  ;;  %4563 = vmatprep.subr.bf16.mxu0 %v11615_v26  ;;  %v7802_v62 = vcombine.low %v11566_v3, %v2849_v59  ;;  %v13939_v59 = vunpack.i.l.bf16 %v11258_v55 }
 0x32a   :  { %v2379_v58 = vsel %vm1145_vm1, %v13930_v24, %v2306_v6  ;;  %v2380_v43 = vsel %vm1145_vm1, %v2306_v6, %v13931_v4  ;;  %v2856_v22 = vsel %vm9696_vm8, %v7787_v5, %v2855_v36  ;;  %v2861_v6 = vrot.slane %v2855_v36, 4  ;;  %3841 = vmatpush1.bf16.msra.mxu1 %v9136_v34  ;;  %v9142_v4 = vld [vmem:[#allocation4 + $0x30] ss:$8 sps:$4 sm:$0xff]   ;;  %3992 = vmatmul.mubr.bf16.gmra.mrb[36].mxu0 %v11375_v61 }
 0x32b   :  { %v2564_v42 = vmax.f32 %v13934_v51, %v2379_v58  ;;  %v2565_v40 = vmax.f32 %v13935_v33, %v2380_v43  ;;  %v8914_v24 = vunpack.i.h.bf16 %v8912_v1  ;;  %v11667_v51 = vpack.c.bf16 %v2562_v60, %v2561_v52  ;;  %3842 = vmatprep.subr.bf16.mxu1 %v9144_v57  ;;  %3365 = vmatmul.mubr.bf16.gmra.mrb[100].mxu1 %v7802_v62  ;;  %v9150_v43 = vld [vmem:[#allocation4 + $0x44] ss:$8 sps:$4 sm:$0xff]   ;;  %v11689_v57 = vld [vmem:[#allocation4 + $0x334] ss:$8 sps:$4 sm:$0xff]  }
 0x32c   :  { %v2863_v3 = vsel %vm9696_vm8, %v2861_v6, %v2862_v0  ;;  %v13940_v34 = vunpack.i.h.bf16 %v11258_v55  ;;  %v8913_v58 = vunpack.i.l.bf16 %v8912_v1  ;;  %4564 = vmatpush1.bf16.msra.mxu0 %v11657_v7  ;;  %13941 = vst [vmem:[#allocation38_spill] sm:$0xff] %v11689_v57  ;;  %4001 = vmatprep.mubr.bf16.mxu0 %v13789_v25  ;;  %v13942_v55 = vunpack.i.l.bf16 %v11267_v63  ;;  %v9148_v6 = vld [vmem:[#allocation4 + $0x40] ss:$8 sps:$4 sm:$0xff]  }
 0x32d   :  { %v11663_v39 = vpack.c.bf16 %v2564_v42, %v2561_v52  ;;  %v11665_v41 = vpack.c.bf16 %v2565_v40, %v2562_v60  ;;  %v11669_v33 = vpack.c.bf16 %v2565_v40, %v2564_v42  ;;  %v2387_v5 = vsel %vm1145_vm1, %v13939_v59, %v8914_v24  ;;  %v2342_v60 = vpop.permute.xlu1 %2341  ;;  %v13944_v52 = vld [vmem:[#allocation47_spill] sm:$0xff]  ;;  %4565 = vmatprep.subr.bf16.mxu0 %v11689_v57 }
 0x32e   :  { %v2388_v36 = vsel %vm1145_vm1, %v8914_v24, %v13940_v34  ;;  %v11682_v40 = vpack.c.bf16 %v11629_v47, %v11519_v2  ;;  %v11686_v42 = vpack.c.bf16 %v11632_v14, %v11522_v32  ;;  %v7806_v0 = vcombine.high %v2856_v22, %v2863_v3  ;;  %v13945_v32 = vld [vmem:[#allocation48_spill] sm:$0xff]  ;;  %3843 = vmatpush1.bf16.msra.mxu1 %v9142_v4  ;;  %v13999_v14 = vld [vmem:[#allocation31_spill] sm:$0xff] }
 0x32f   :  { %13937 = vst [vmem:[#allocation44_spill] sm:$0xff] %v11663_v39  ;;  %13938 = vst [vmem:[#allocation37_spill] sm:$0xff] %v11665_v41  ;;  %v2389_v61 = vsel %vm1145_vm1, %v13942_v55, %v8913_v58  ;;  %v13943_v1 = vunpack.i.h.bf16 %v11267_v63  ;;  %v11699_v13 = vmax.f32 %v13944_v52, %v2387_v5  ;;  %v11702_v62 = vmax.f32 %v13945_v32, %v2388_v36  ;;  %v11704_v24 = vld [vmem:[#allocation4 + $0x330] ss:$8 sps:$4 sm:$0xff]   ;;  %v13951_v52 = vld [vmem:[#allocation45_spill] sm:$0xff] }
 0x330   :  { %13946 = vst [vmem:[#allocation39_spill] sm:$0xff] %v11704_v24  ;;  %3374 = vmatprep.mubr.bf16.mxu1 %v7806_v0  ;;  %v13947_v59 = vunpack.i.l.bf16 %v11241_v27  ;;  %v13948_v55 = vunpack.i.h.bf16 %v11241_v27  ;;  %v13950_v36 = vunpack.i.h.bf16 %v11291_v54  ;;  %v11720_v0 = vpack.c.bf16 %v11588_v18, %v11581_v30  ;;  %v13953_v27 = vld [vmem:[#allocation49_spill] sm:$0xff]  ;;  %3844 = vmatprep.subr.bf16.mxu1 %v9150_v43 }
 0x331   :  { %v2390_v2 = vsel %vm1145_vm1, %v8913_v58, %v13943_v1  ;;  %v13949_v58 = vunpack.i.l.bf16 %v11291_v54  ;;  %v9156_v1 = vld [vmem:[#allocation4 + $0x54] ss:$8 sps:$4 sm:$0xff]   ;;  %v11725_v41 = vmax.f32 %v13953_v27, %v2389_v61  ;;  %v13956_v54 = vld [vmem:[#allocation53_spill] sm:$0xff]  ;;  %v7805_v30 = vcombine.low %v2856_v22, %v2863_v3  ;;  %4566 = vmatpush1.bf16.msra.mxu0 %v11704_v24 }
 0x332   :  { %v2385_v34 = vsel %vm1145_vm1, %v13947_v59, %v2324_v21  ;;  %v2386_v63 = vsel %vm1145_vm1, %v2324_v21, %v13948_v55  ;;  %v2392_v4 = vsel %vm1145_vm1, %v2342_v60, %v13950_v36  ;;  %v13952_v59 = vld [vmem:[#allocation46_spill] sm:$0xff]  ;;  %v13955_v55 = vld [vmem:[#allocation51_spill] sm:$0xff]  ;;  %3845 = vmatpush1.bf16.msra.mxu1 %v9148_v6  ;;  %v7789_v6 = vrot.slane %v11544_v53, 9 }
 0x333   :  { %v2391_v5 = vsel %vm1145_vm1, %v13949_v58, %v2342_v60  ;;  %v2573_v32 = vmax.f32 %v13951_v52, %v2385_v34  ;;  %v2574_v39 = vmax.f32 %v13952_v59, %v2386_v63  ;;  %v11727_v21 = vld [vmem:[#allocation4 + $0x344] ss:$8 sps:$4 sm:$0xff]   ;;  %v11730_v58 = vmax.f32 %v13955_v55, %v2390_v2  ;;  %v9154_v2 = vld [vmem:[#allocation4 + $0x50] ss:$8 sps:$4 sm:$0xff]   ;;  %v11748_v34 = vld [vmem:[#allocation4 + $0x340] ss:$8 sps:$4 sm:$0xff]   ;;  %3846 = vmatprep.subr.bf16.mxu1 %v9156_v1 }
 0x334   :  { %13954 = vst [vmem:[#allocation40_spill] sm:$0xff] %v11727_v21  ;;  %v11733_v60 = vmax.f32 %v13956_v54, %v2391_v5  ;;  %v13957_v36 = vld [vmem:[#allocation50_spill] sm:$0xff]  ;;  %13960 = vst [vmem:[#allocation45_spill] sm:$0xff] %v11748_v34  ;;  %v11758_v5 = vld [vmem:[#allocation4 + $0x354] ss:$8 sps:$4 sm:$0xff]   ;;  %3375 = vmatmul.mubr.bf16.gmra.mrb[104].mxu1 %v7805_v30  ;;  %4567 = vmatprep.subr.bf16.mxu0 %v11727_v21  ;;  %v2890_v52 = vrot.slane %v11720_v0, 5  ;;  %v2686_v1 = vunpack.c.h.b16 %v11056_v44  ;;  %v2689_v55 = vunpack.c.l.b16 %v11089_v48 }
 0x335   :  { %v11736_v7 = vmax.f32 %v13957_v36, %v2392_v4  ;;  %v11740_v18 = vpack.c.bf16 %v11699_v13, %v2573_v32  ;;  %v11743_v61 = vpack.c.bf16 %v11702_v62, %v2574_v39  ;;  %v11745_v43 = vpack.c.bf16 %v2574_v39, %v2573_v32  ;;  %v9162_v3 = vld [vmem:[#allocation4 + $0x64] ss:$8 sps:$4 sm:$0xff]   ;;  %13963 = vst [vmem:[#allocation51_spill] sm:$0xff] %v11758_v5  ;;  %v13964_v32 = vld [vmem:[#allocation63_spill] sm:$0xff]  ;;  %v9160_v59 = vld [vmem:[#allocation4 + $0x60] ss:$8 sps:$4 sm:$0xff]  }
 0x336   :  { %v11752_v63 = vpack.c.bf16 %v11733_v60, %v11725_v41  ;;  %v2876_v39 = vrot.slane %v11686_v42, 5  ;;  %v2869_v4 = vrot.slane %v11682_v40, 5  ;;  %4002 = vmatmul.mubr.bf16.gmra.mrb[40].mxu0 %v13964_v32  ;;  %v7791_v27 = vrot.slane %v11512_v19, 9  ;;  %3847 = vmatpush1.bf16.msra.mxu1 %v9154_v2  ;;  %v11771_v30 = vld [vmem:[#allocation4 + $0x350] ss:$8 sps:$4 sm:$0xff]  }
 0x337   :  { %13958 = vst [vmem:[#allocation47_spill] sm:$0xff] %v11740_v18  ;;  %13959 = vst [vmem:[#allocation48_spill] sm:$0xff] %v11743_v61  ;;  %v11756_v22 = vpack.c.bf16 %v11736_v7, %v11730_v58  ;;  %v2904_v54 = vrot.slane %v11669_v33, 5  ;;  %4568 = vmatpush1.bf16.msra.mxu0 %v11748_v34  ;;  %v2918_v32 = vrot.slane %v11745_v43, 5  ;;  %3848 = vmatprep.subr.bf16.mxu1 %v9162_v3  ;;  %v9168_v44 = vld [vmem:[#allocation4 + $0x74] ss:$8 sps:$4 sm:$0xff]  }
 0x338   :  { %13961 = vst [vmem:[#allocation46_spill] sm:$0xff] %v11752_v63  ;;  %v2875_v36 = vrot.slane %v2869_v4, 4  ;;  %13965 = vst [vmem:[#allocation53_spill] sm:$0xff] %v11771_v30  ;;  %v2883_v63 = vrot.slane %v11516_v56, 5  ;;  %4569 = vmatprep.subr.bf16.mxu0 %v11758_v5  ;;  %v2897_v48 = vrot.slane %v11667_v51, 5  ;;  %v7795_v21 = vrot.slane %v11640_v20, 9  ;;  %4011 = vmatprep.mubr.bf16.mxu0 %v13789_v25 }
 0x339   :  { %13962 = vst [vmem:[#allocation49_spill] sm:$0xff] %v11756_v22  ;;  %v7793_v22 = vrot.slane %v11585_v46, 9  ;;  %v2911_v2 = vrot.slane %v11652_v10, 5  ;;  %v2870_v34 = vsel %vm9696_vm8, %v7789_v6, %v2869_v4  ;;  %v11789_v5 = vld [vmem:[#allocation4 + $0x364] ss:$8 sps:$4 sm:$0xff]   ;;  %v3559_v61 = vpack.c.b16 %v2689_v55, %v2686_v1 }
 0x33a   :  { %v2877_v24 = vsel %vm9696_vm8, %v2875_v36, %v2876_v39  ;;  %v11786_v57 = vsel %vm9696_vm8, %v7791_v27, %v2883_v63  ;;  %v2889_v3 = vrot.slane %v2883_v63, 4  ;;  %13966 = vst [vmem:[#allocation50_spill] sm:$0xff] %v11789_v5  ;;  %v2903_v50 = vrot.slane %v2897_v48, 4  ;;  %3849 = vmatpush1.bf16.msra.mxu1 %v9160_v59  ;;  %v9166_v63 = vld [vmem:[#allocation4 + $0x70] ss:$8 sps:$4 sm:$0xff]  }
 0x33b   :  { %v7809_v18 = vcombine.high %v2870_v34, %v2877_v24  ;;  %v11793_v26 = vsel %vm9696_vm8, %v7793_v22, %v2897_v48  ;;  %v7808_v6 = vcombine.low %v2870_v34, %v2877_v24  ;;  %4570 = vmatpush1.bf16.msra.mxu0 %v11771_v30  ;;  %v11800_v4 = vld [vmem:[#allocation4 + $0x360] ss:$8 sps:$4 sm:$0xff]   ;;  %v11804_v27 = vsel %vm9696_vm8, %v7795_v21, %v2911_v2  ;;  %v9174_v34 = vld [vmem:[#allocation4 + $0x84] ss:$8 sps:$4 sm:$0xff]   ;;  %v11810_v22 = vld [vmem:[#allocation4 + $0x374] ss:$8 sps:$4 sm:$0xff]  }
 0x33c   :  { %v11797_v39 = vsel %vm9696_vm8, %v2889_v3, %v2890_v52  ;;  %13967 = vst [vmem:[#allocation97_spill] sm:$0xff] %v11800_v4  ;;  %v2917_v1 = vrot.slane %v2911_v2, 4  ;;  %3850 = vmatprep.subr.bf16.mxu1 %v9168_v44  ;;  %13968 = vst [vmem:[#allocation98_spill] sm:$0xff] %v11810_v22  ;;  %v11814_v52 = vsel %vm9696_vm8, %v2903_v50, %v2904_v54  ;;  %4571 = vmatprep.subr.bf16.mxu0 %v11789_v5  ;;  %v9172_v54 = vld [vmem:[#allocation4 + $0x80] ss:$8 sps:$4 sm:$0xff]   ;;  %v13973_v50 = vld [vmem:[#allocation19_spill] sm:$0xff] }
 0x33d   :  { %3384 = vmatprep.mubr.bf16.mxu1 %v7809_v18  ;;  %v7812_v48 = vcombine.high %v11786_v57, %v11797_v39  ;;  %v7811_v24 = vcombine.low %v11786_v57, %v11797_v39  ;;  %v7815_v21 = vcombine.high %v11793_v26, %v11814_v52  ;;  %v7919_v59 = vrot.slane %v11429_v31, 10  ;;  %v11832_v36 = vld [vmem:[#allocation4 + $0x370] ss:$8 sps:$4 sm:$0xff]   ;;  %v9180_v2 = vld [vmem:[#allocation4 + $0x94] ss:$8 sps:$4 sm:$0xff]  }
 0x33e   :  { %3385 = vmatmul.mubr.bf16.gmra.mrb[108].mxu1 %v7808_v6  ;;  %v11823_v44 = vsel %vm9696_vm8, %v2917_v1, %v2918_v32  ;;  %4012 = vmatmul.mubr.bf16.gmra.mrb[44].mxu0 %v3559_v61  ;;  %v4071_v55 = vrot.slane %v11397_v37, 6  ;;  %13969 = vst [vmem:[#allocation99_spill] sm:$0xff] %v11832_v36  ;;  %v11836_v32 = vpack.c.bf16 %v11378_v45, %v11371_v17  ;;  %v4064_v61 = vrot.slane %v11432_v28, 6  ;;  %v11840_v3 = vld [vmem:[#allocation4 + $0x384] ss:$8 sps:$4 sm:$0xff]  }
 0x33f   :  { %3394 = vmatprep.mubr.bf16.mxu1 %v7812_v48  ;;  %3851 = vmatpush1.bf16.msra.mxu1 %v9166_v63  ;;  %13970 = vst [vmem:[#allocation100_spill] sm:$0xff] %v11840_v3  ;;  %v11844_v6 = vpack.c.bf16 %v11381_v23, %v11341_v11  ;;  %v7921_v39 = vrot.slane %v11436_v29, 10  ;;  %v4085_v63 = vrot.slane %v11502_v49, 6  ;;  %v2704_v17 = vunpack.c.h.b16 %v11172_v38  ;;  %v13972_v23 = vld [vmem:[#allocation17_spill] sm:$0xff]  ;;  %v9178_v18 = vld [vmem:[#allocation4 + $0x90] ss:$8 sps:$4 sm:$0xff]  }
 0x340   :  { %4572 = vmatpush1.bf16.msra.mxu0 %v11800_v4  ;;  %3852 = vmatprep.subr.bf16.mxu1 %v9174_v34  ;;  %v4070_v45 = vrot.slane %v4064_v61, 4  ;;  %v4078_v1 = vrot.slane %v11454_v12, 6  ;;  %v11853_v48 = vpack.c.bf16 %v11730_v58, %v11725_v41  ;;  %v2707_v34 = vunpack.c.l.b16 %v11209_v8  ;;  %v11865_v38 = vld [vmem:[#allocation4 + $0x380] ss:$8 sps:$4 sm:$0xff]   ;;  %v13980_v4 = vld [vmem:[#allocation16_spill] sm:$0xff] }
 0x341   :  { %4573 = vmatprep.subr.bf16.mxu0 %v11810_v22  ;;  %13971 = vst [vmem:[#allocation101_spill] sm:$0xff] %v11844_v6  ;;  %4021 = vmatprep.mubr.bf16.mxu0 %v13789_v25  ;;  %v11858_v11 = vsel %vm9723_vm11, %v7919_v59, %v4064_v61  ;;  %v11862_v57 = vpack.c.bf16 %v13973_v50, %v13972_v23  ;;  %13975 = vst [vmem:[#allocation19_spill] sm:$0xff] %v11865_v38  ;;  %v13976_v61 = vld [vmem:[#allocation62_spill] sm:$0xff]  ;;  %v13977_v22 = vld [vmem:[#allocation25_spill] sm:$0xff] }
 0x342   :  { %v11869_v41 = vsel %vm9723_vm11, %v4070_v45, %v4071_v55  ;;  %v11873_v58 = vsel %vm9723_vm11, %v7921_v39, %v4078_v1  ;;  %v4084_v59 = vrot.slane %v4078_v1, 4  ;;  %v7923_v8 = vrot.slane %v13976_v61, 10  ;;  %v11878_v23 = vld [vmem:[#allocation4 + $0x394] ss:$8 sps:$4 sm:$0xff]   ;;  %v9198_v30 = vld [vmem:[#allocation4 + $0xc4] ss:$8 sps:$4 sm:$0xff]  }
 0x343   :  { %13974 = vst [vmem:[#allocation17_spill] sm:$0xff] %v11862_v57  ;;  %3853 = vmatpush1.bf16.msra.mxu1 %v9172_v54  ;;  %v4099_v50 = vrot.slane %v13977_v22, 6  ;;  %v9186_v54 = vld [vmem:[#allocation4 + $0xa4] ss:$8 sps:$4 sm:$0xff]   ;;  %13978 = vst [vmem:[#allocation62_spill] sm:$0xff] %v11878_v23  ;;  %v13979_v45 = vld [vmem:[#allocation24_spill] sm:$0xff]  ;;  %v11887_v1 = vpack.c.bf16 %v11702_v62, %v11699_v13 }
 0x344   :  { %4574 = vmatpush1.bf16.msra.mxu0 %v11832_v36  ;;  %3854 = vmatprep.subr.bf16.mxu1 %v9180_v2  ;;  %v4092_v39 = vrot.slane %v13979_v45, 6  ;;  %v11891_v2 = vpack.c.bf16 %v11736_v7, %v11733_v60  ;;  %v13981_v36 = vld [vmem:[#allocation23_spill] sm:$0xff]  ;;  %v13991_v13 = vld [vmem:[#allocation21_spill] sm:$0xff] }
 0x345   :  { %4575 = vmatprep.subr.bf16.mxu0 %v11840_v3  ;;  %v11895_v3 = vsel %vm9723_vm11, %v4084_v59, %v4085_v63  ;;  %v11899_v5 = vpack.c.bf16 %v13981_v36, %v13980_v4  ;;  %v13983_v55 = vld [vmem:[#allocation75_spill] sm:$0xff]  ;;  %v2925_v36 = vrot.slane %v11853_v48, 5  ;;  %v11915_v59 = vld [vmem:[#allocation4 + $0x3a4] ss:$8 sps:$4 sm:$0xff]  }
 0x346   :  { %3395 = vmatmul.mubr.bf16.gmra.mrb[112].mxu1 %v7811_v24  ;;  %4022 = vmatmul.mubr.bf16.gmra.mrb[48].mxu0 %v13983_v55  ;;  %v11908_v7 = vsel %vm9723_vm11, %v7923_v8, %v4092_v39  ;;  %v4098_v60 = vrot.slane %v4092_v39, 4  ;;  %v9184_v24 = vld [vmem:[#allocation4 + $0xa0] ss:$8 sps:$4 sm:$0xff]   ;;  %v11911_v4 = vld [vmem:[#allocation4 + $0x390] ss:$8 sps:$4 sm:$0xff]   ;;  %13986 = vst [vmem:[#allocation23_spill] sm:$0xff] %v11915_v59 }
 0x347   :  { %13982 = vst [vmem:[#allocation25_spill] sm:$0xff] %v11899_v5  ;;  %3404 = vmatprep.mubr.bf16.mxu1 %v7815_v21  ;;  %13984 = vst [vmem:[#allocation24_spill] sm:$0xff] %v11908_v7  ;;  %3855 = vmatpush1.bf16.msra.mxu1 %v9178_v18  ;;  %v3565_v21 = vpack.c.b16 %v2707_v34, %v2704_v17  ;;  %v9192_v63 = vld [vmem:[#allocation4 + $0xb4] ss:$8 sps:$4 sm:$0xff]   ;;  %v13988_v39 = vld [vmem:[#allocation65_spill] sm:$0xff]  ;;  %v4169_v9 = vrot.slane %v11891_v2, 6 }
 0x348   :  { %4576 = vmatpush1.bf16.msra.mxu0 %v11865_v38  ;;  %13985 = vst [vmem:[#allocation16_spill] sm:$0xff] %v11911_v4  ;;  %3856 = vmatprep.subr.bf16.mxu1 %v9186_v54  ;;  %v11919_v8 = vsel %vm9723_vm11, %v4098_v60, %v4099_v50  ;;  %v13989_v18 = vld [vmem:[#allocation30_spill] sm:$0xff]  ;;  %v13992_v55 = vld [vmem:[#allocation29_spill] sm:$0xff]  ;;  %v13994_v17 = vld [vmem:[#allocation87_spill] sm:$0xff] }
 0x349   :  { %4577 = vmatprep.subr.bf16.mxu0 %v11878_v23  ;;  %13987 = vst [vmem:[#allocation102_spill] sm:$0xff] %v11919_v8  ;;  %v11923_v62 = vpack.c.bf16 %v13989_v18, %v13988_v39  ;;  %v11927_v38 = vpack.c.bf16 %v13992_v55, %v13991_v13  ;;  %v13995_v34 = vrot.slane %v13994_v17, 6  ;;  %v2932_v23 = vrot.slane %v11891_v2, 5  ;;  %4031 = vmatprep.mubr.bf16.mxu0 %v13789_v25  ;;  %v13996_v60 = vld [vmem:[#allocation89_spill] sm:$0xff]  ;;  %v9190_v13 = vld [vmem:[#allocation4 + $0xb0] ss:$8 sps:$4 sm:$0xff]  }
 0x34a   :  { %v4158_v39 = vrot.slane %v13996_v60, 6  ;;  %v13998_v5 = vld [vmem:[#allocation32_spill] sm:$0xff]  ;;  %v11950_v50 = vld [vmem:[#allocation4 + $0x3a0] ss:$8 sps:$4 sm:$0xff]   ;;  %v2931_v18 = vrot.slane %v2925_v36, 4 }
 0x34b   :  { %13990 = vst [vmem:[#allocation65_spill] sm:$0xff] %v11923_v62  ;;  %13993 = vst [vmem:[#allocation30_spill] sm:$0xff] %v11927_v38  ;;  %v4157_v54 = vrot.slane %v13995_v34, 4  ;;  %v7797_v38 = vrot.slane %v11887_v1, 9  ;;  %v13997_v34 = vrot.slane %v13994_v17, 7  ;;  %v11947_v47 = vpack.c.bf16 %v13999_v14, %v13998_v5  ;;  %3857 = vmatpush1.bf16.msra.mxu1 %v9184_v24  ;;  %v14002_v8 = vld [vmem:[#allocation42_spill] sm:$0xff] }
 0x34c   :  { %4578 = vmatpush1.bf16.msra.mxu0 %v11911_v4  ;;  %14001 = vst [vmem:[#allocation29_spill] sm:$0xff] %v11950_v50  ;;  %v11954_v55 = vpack.c.bf16 %v11635_v35, %v14002_v8  ;;  %v14004_v7 = vld [vmem:[#allocation41_spill] sm:$0xff]  ;;  %v4127_v5 = vrot.slane %v11720_v0, 6  ;;  %3858 = vmatprep.subr.bf16.mxu1 %v9192_v63  ;;  %v11965_v4 = vld [vmem:[#allocation4 + $0x3b4] ss:$8 sps:$4 sm:$0xff]   ;;  %v4141_v35 = vrot.slane %v11669_v33, 6  ;;  %v11975_v14 = vsel %vm9696_vm8, %v2931_v18, %v2932_v23 }
 0x34d   :  { %v11943_v62 = vrot.slane %v13997_v34, 4  ;;  %14000 = vst [vmem:[#allocation21_spill] sm:$0xff] %v11947_v47  ;;  %v11958_v17 = vpack.c.bf16 %v11624_v16, %v14004_v7  ;;  %4579 = vmatprep.subr.bf16.mxu0 %v11915_v59  ;;  %14006 = vst [vmem:[#allocation32_spill] sm:$0xff] %v11965_v4  ;;  %v4155_v16 = vrot.slane %v11745_v43, 6  ;;  %v14007_v7 = vcombine.low %v11793_v26, %v11814_v52  ;;  %v9196_v34 = vld [vmem:[#allocation4 + $0xc0] ss:$8 sps:$4 sm:$0xff]  }
 0x34e   :  { %14003 = vst [vmem:[#allocation87_spill] sm:$0xff] %v11954_v55  ;;  %v14008_v24 = vcombine.high %v11804_v27, %v11823_v44  ;;  %4032 = vmatmul.mubr.bf16.gmra.mrb[52].mxu0 %v3565_v21  ;;  %v11983_v8 = vsel %vm9696_vm8, %v7797_v38, %v2925_v36  ;;  %v7927_v59 = vrot.slane %v11512_v19, 10  ;;  %v4120_v26 = vrot.slane %v11516_v56, 6  ;;  %v11988_v52 = vld [vmem:[#allocation4 + $0x3b0] ss:$8 sps:$4 sm:$0xff]  }
 0x34f   :  { %14005 = vst [vmem:[#allocation89_spill] sm:$0xff] %v11958_v17  ;;  %3405 = vmatmul.mubr.bf16.gmra.mrb[116].mxu1 %v14007_v7  ;;  %v7929_v23 = vrot.slane %v11585_v46, 10  ;;  %v4134_v18 = vrot.slane %v11667_v51, 6  ;;  %v7931_v21 = vrot.slane %v11640_v20, 10  ;;  %v7821_v38 = vcombine.high %v11983_v8, %v11975_v14  ;;  %v9204_v36 = vld [vmem:[#allocation4 + $0xd4] ss:$8 sps:$4 sm:$0xff]   ;;  %4041 = vmatprep.mubr.bf16.mxu0 %v13789_v25 }
 0x350   :  { %3414 = vmatprep.mubr.bf16.mxu1 %v14008_v24  ;;  %3859 = vmatpush1.bf16.msra.mxu1 %v9190_v13  ;;  %v4148_v24 = vrot.slane %v11652_v10, 6  ;;  %v11998_v13 = vld [vmem:[#allocation4 + $0x3c4] ss:$8 sps:$4 sm:$0xff]   ;;  %v12002_v7 = vsel %vm9723_vm11, %v7927_v59, %v4120_v26  ;;  %v4126_v63 = vrot.slane %v4120_v26, 4  ;;  %v7933_v17 = vrot.slane %v11887_v1, 10 }
 0x351   :  { %4580 = vmatpush1.bf16.msra.mxu0 %v11950_v50  ;;  %3860 = vmatprep.subr.bf16.mxu1 %v9198_v30  ;;  %v12007_v50 = vsel %vm9723_vm11, %v7929_v23, %v4134_v18  ;;  %v4140_v30 = vrot.slane %v4134_v18, 4  ;;  %v4162_v26 = vrot.slane %v11853_v48, 6  ;;  %v12021_v47 = vsel %vm9723_vm11, %v4157_v54, %v4158_v39  ;;  %v9202_v23 = vld [vmem:[#allocation4 + $0xd0] ss:$8 sps:$4 sm:$0xff]   ;;  %v12024_v18 = vld [vmem:[#allocation4 + $0x3c0] ss:$8 sps:$4 sm:$0xff]  }
 0x352   :  { %4581 = vmatprep.subr.bf16.mxu0 %v11965_v4  ;;  %v12011_v4 = vsel %vm9723_vm11, %v7931_v21, %v4148_v24  ;;  %v12016_v55 = vsel %vm9723_vm11, %v4126_v63, %v4127_v5  ;;  %v4154_v59 = vrot.slane %v4148_v24, 4  ;;  %14009 = vst [vmem:[#allocation31_spill] sm:$0xff] %v12021_v47  ;;  %v2725_v21 = vunpack.c.l.b16 %v11844_v6  ;;  %v9210_v54 = vld [vmem:[#allocation4 + $0xe4] ss:$8 sps:$4 sm:$0xff]   ;;  %v12036_v39 = vld [vmem:[#allocation4 + $0x3d4] ss:$8 sps:$4 sm:$0xff]  }
 0x353   :  { %v12033_v63 = vsel %vm9723_vm11, %v4140_v30, %v4141_v35  ;;  %v4168_v5 = vrot.slane %v4162_v26, 4  ;;  %v14010_v35 = vcombine.low %v11804_v27, %v11823_v44  ;;  %v14011_v24 = vld [vmem:[#allocation90_spill] sm:$0xff]  ;;  %v7820_v27 = vcombine.low %v11983_v8, %v11975_v14 }
 0x354   :  { %3861 = vmatpush1.bf16.msra.mxu1 %v9196_v34  ;;  %v12044_v57 = vsel %vm9723_vm11, %v4154_v59, %v4155_v16  ;;  %v12055_v34 = vsel %vm9723_vm11, %v7933_v17, %v4162_v26  ;;  %v14012_v59 = vld [vmem:[#allocation88_spill] sm:$0xff]  ;;  %v9208_v44 = vld [vmem:[#allocation4 + $0xe0] ss:$8 sps:$4 sm:$0xff]   ;;  %v8007_v14 = vrot.slane %v11429_v31, 11  ;;  %v4822_v8 = vrot.slane %v11432_v28, 7 }
 0x355   :  { %4582 = vmatpush1.bf16.msra.mxu0 %v11988_v52  ;;  %3862 = vmatprep.subr.bf16.mxu1 %v9204_v36  ;;  %v12066_v30 = vsel %vm9723_vm11, %v4168_v5, %v4169_v9  ;;  %v12069_v17 = vld [vmem:[#allocation4 + $0x3d0] ss:$8 sps:$4 sm:$0xff]   ;;  %v9216_v26 = vld [vmem:[#allocation4 + $0xf4] ss:$8 sps:$4 sm:$0xff]   ;;  %v12078_v9 = vld [vmem:[#allocation4 + $0x3e4] ss:$8 sps:$4 sm:$0xff]  }
 0x356   :  { %4583 = vmatprep.subr.bf16.mxu0 %v11998_v13  ;;  %4042 = vmatmul.mubr.bf16.gmra.mrb[56].mxu0 %v14012_v59  ;;  %v8009_v16 = vrot.slane %v11436_v29, 11  ;;  %v4836_v59 = vrot.slane %v11454_v12, 7  ;;  %v12087_v31 = vsel %vm10914_vm5, %v8007_v14, %v4822_v8  ;;  %v4828_v28 = vrot.slane %v4822_v8, 4 }
 0x357   :  { %3415 = vmatmul.mubr.bf16.gmra.mrb[120].mxu1 %v14010_v35  ;;  %v14013_v35 = vld [vmem:[#allocation92_spill] sm:$0xff]  ;;  %4051 = vmatprep.mubr.bf16.mxu0 %v13789_v25  ;;  %v8013_v29 = vrot.slane %v11544_v53, 11  ;;  %v4864_v12 = vrot.slane %v11682_v40, 7  ;;  %v8015_v14 = vrot.slane %v11512_v19, 11  ;;  %v14017_v8 = vrot.slane %v11502_v49, 7 }
 0x358   :  { %3424 = vmatprep.mubr.bf16.mxu1 %v7821_v38  ;;  %v2722_v36 = vunpack.c.h.b16 %v14013_v35  ;;  %3863 = vmatpush1.bf16.msra.mxu1 %v9202_v23  ;;  %v14014_v23 = vld [vmem:[#allocation93_spill] sm:$0xff]  ;;  %v8011_v38 = vrot.slane %v13976_v61, 11  ;;  %v12092_v47 = vsel %vm10914_vm5, %v8009_v16, %v4836_v59  ;;  %v9214_v61 = vld [vmem:[#allocation4 + $0xf0] ss:$8 sps:$4 sm:$0xff]   ;;  %vm6637_vm8 = vcmask 1042434  }
 0x359   :  { %4584 = vmatpush1.bf16.msra.mxu0 %v12024_v18  ;;  %3864 = vmatprep.subr.bf16.mxu1 %v9210_v54  ;;  %v2670_v5 = vunpack.c.l.b16 %v14014_v23  ;;  %v4850_v54 = vrot.slane %v13979_v45, 7  ;;  %v4842_v23 = vrot.slane %v4836_v59, 4  ;;  %v12135_v49 = vsel %vm10914_vm5, %v8013_v29, %v4864_v12  ;;  %v12150_v29 = vld [vmem:[#allocation4 + $0x3f0] ss:$8 sps:$4 sm:$0xff]  }
 0x35a   :  { %4585 = vmatprep.subr.bf16.mxu0 %v12036_v39  ;;  %v3571_v6 = vpack.c.b16 %v2725_v21, %v2722_v36  ;;  %v12097_v21 = vld [vmem:[#allocation4 + $0x3e0] ss:$8 sps:$4 sm:$0xff]   ;;  %v14016_v36 = vrot.slane %v11397_v37, 7  ;;  %v14023_v37 = vrot.slane %v11720_v0, 7 }
 0x35b   :  { %v12107_v16 = vsel %vm10914_vm5, %v8011_v38, %v4850_v54  ;;  %v4856_v59 = vrot.slane %v4850_v54, 4  ;;  %v4870_v38 = vrot.slane %v4864_v12, 4  ;;  %v12121_v54 = vld [vmem:[#allocation4 + $0x3f4] ss:$8 sps:$4 sm:$0xff]   ;;  %v8019_v12 = vrot.slane %v11640_v20, 11 }
 0x35c   :  { %3865 = vmatpush1.bf16.msra.mxu1 %v9208_v44  ;;  %v12103_v45 = vsel %vm10914_vm5, %v4828_v28, %v14016_v36  ;;  %v12119_v28 = vsel %vm10914_vm5, %v4842_v23, %v14017_v8  ;;  %v14018_v36 = vrot.slane %v13977_v22, 7  ;;  %v14019_v8 = vrot.slane %v11686_v42, 7 }
 0x35d   :  { %4586 = vmatpush1.bf16.msra.mxu0 %v12069_v17  ;;  %3866 = vmatprep.subr.bf16.mxu1 %v9216_v26  ;;  %v4892_v23 = vrot.slane %v11667_v51, 7  ;;  %v4920_v20 = vrot.slane %v11853_v48, 7  ;;  %v9223_v48 = vld [vmem:[#allocation4 + $0x400] ss:$8 sps:$4 sm:$0xff]  }
 0x35e   :  { %4587 = vmatprep.subr.bf16.mxu0 %v12078_v9  ;;  %v12131_v44 = vsel %vm10914_vm5, %v4856_v59, %v14018_v36  ;;  %4052 = vmatmul.mubr.bf16.gmra.mrb[60].mxu0 %v3571_v6  ;;  %v12146_v22 = vsel %vm10914_vm5, %v4870_v38, %v14019_v8  ;;  %v4878_v59 = vrot.slane %v11516_v56, 7  ;;  %v8017_v36 = vrot.slane %v11585_v46, 11  ;;  %v9482_v56 = vld [vmem:[#allocation4 + $0x304] ss:$8 sps:$4 sm:$0xff]  }
 0x35f   :  { %3425 = vmatmul.mubr.bf16.gmra.mrb[124].mxu1 %v7820_v27  ;;  %v14020_v38 = vcombine.high %v11858_v11, %v11869_v41  ;;  %v9225_v27 = vld [vmem:[#allocation4 + $0x404] ss:$8 sps:$4 sm:$0xff]   ;;  %v4898_v51 = vrot.slane %v4892_v23, 4 }
 0x360   :  { %3868 = vmatprep.mubr.bf16.mxu1 %v11836_v32  ;;  %3867 = vmatpush1.bf16.msra.mxu1 %v9214_v61  ;;  %v14021_v61 = vld [vmem:[#allocation15_spill] sm:$0xff]  ;;  %v12164_v26 = vsel %vm10914_vm5, %v8015_v14, %v4878_v59  ;;  %v4884_v6 = vrot.slane %v4878_v59, 4  ;;  %v12170_v46 = vsel %vm10914_vm5, %v8017_v36, %v4892_v23  ;;  %v4916_v59 = vrot.slane %v13996_v60, 7  ;;  %v14029_v36 = vld [vmem:[#allocation12_spill] sm:$0xff]  ;;  %v14051_v23 = vld [vmem:[#allocation65_spill] sm:$0xff] }
 0x361   :  { %4588 = vmatpush1.bf16.msra.mxu0 %v12097_v21  ;;  %4591 = vmatprep.mubr.bf16.mxu0 %v14020_v38  ;;  %v2667_v8 = vunpack.c.h.b16 %v14021_v61  ;;  %14022 = vst [vmem:[#allocation42_spill] sm:$0xff] %v12170_v46  ;;  %v4906_v38 = vrot.slane %v11652_v10, 7  ;;  %v14032_v60 = vld [vmem:[#allocation27_spill] sm:$0xff]  ;;  %v14034_v10 = vrot.slane %v11745_v43, 7  ;;  %v9229_v46 = vld [vmem:[#allocation4 + $0x420] ss:$8 sps:$4 sm:$0xff]  }
 0x362   :  { %8418 = vmatprep.subr.bf16.mxu1 %v9482_v56  ;;  %4589 = vmatprep.subr.bf16.mxu0 %v12121_v54  ;;  %v8021_v56 = vrot.slane %v11887_v1, 11  ;;  %v12178_v14 = vsel %vm10914_vm5, %v4884_v6, %v14023_v37  ;;  %v14025_v1 = vrot.slane %v11669_v33, 7  ;;  %v14033_v37 = vld [vmem:[#allocation18_spill] sm:$0xff] }
 0x363   :  { %v3552_v19 = vpack.c.b16 %v2670_v5, %v2667_v8  ;;  %14024 = vst [vmem:[#allocation41_spill] sm:$0xff] %v12178_v14  ;;  %v12195_v5 = vsel %vm10914_vm5, %v8019_v12, %v4906_v38  ;;  %v4912_v6 = vrot.slane %v4906_v38, 4  ;;  %v14030_v8 = vld [vmem:[#allocation13_spill] sm:$0xff]  ;;  %v4926_v12 = vrot.slane %v4920_v20, 4 }
 0x364   :  { %v12191_v0 = vsel %vm10914_vm5, %v4898_v51, %v14025_v1  ;;  %14027 = vst [vmem:[#allocation15_spill] sm:$0xff] %v12195_v5  ;;  %v12203_v33 = vsel %vm10914_vm5, %v8021_v56, %v4920_v20  ;;  %v2666_v51 = vunpack.c.h.b16 %v14030_v8  ;;  %v9228_v1 = vld [vmem:[#allocation4 + $0x414] ss:$8 sps:$4 sm:$0xff]   ;;  %v2669_v38 = vunpack.c.l.b16 %v14033_v37 }
 0x365   :  { %4590 = vmatpush1.bf16.msra.mxu0 %v12150_v29  ;;  %14026 = vst [vmem:[#allocation90_spill] sm:$0xff] %v12191_v0  ;;  %14028 = vst [vmem:[#allocation103_spill] sm:$0xff] %v12203_v33  ;;  %v12218_v56 = vsel %vm10914_vm5, %v4912_v6, %v14034_v10  ;;  %v2664_v20 = vunpack.c.l.b16 %v14021_v61  ;;  %v14037_v8 = vld [vmem:[#allocation35_spill] sm:$0xff]  ;;  %v2661_v61 = vunpack.c.h.b16 %v11836_v32  ;;  %v9231_v32 = vld [vmem:[#allocation4 + $0x424] ss:$8 sps:$4 sm:$0xff]  }
 0x366   :  { %4672 = vmatprep.subr.bf16.mxu0 %v9225_v27  ;;  %v12210_v27 = vsel %vm10914_vm5, %v11943_v62, %v4916_v59  ;;  %14035 = vst [vmem:[#allocation27_spill] sm:$0xff] %v12218_v56  ;;  %v14038_v62 = vcombine.low %v11858_v11, %v11869_v41  ;;  %v14039_v59 = vrot.slane %v11891_v2, 7  ;;  %v9226_v11 = vld [vmem:[#allocation4 + $0x410] ss:$8 sps:$4 sm:$0xff]   ;;  %v14049_v41 = vld [vmem:[#allocation33_spill] sm:$0xff]  ;;  %v14052_v33 = vld [vmem:[#allocation34_spill] sm:$0xff] }
 0x367   :  { %3869 = vmatmul.mubr.bf16.vlgmr.msra.gmra.mrb[128].mxu1 %v14029_v36  ;;  %14031 = vst [vmem:[#allocation104_spill] sm:$0xff] %v12210_v27  ;;  %v14048_v37 = vld [vmem:[#allocation20_spill] sm:$0xff]  ;;  %v3551_v27 = vpack.c.b16 %v2669_v38, %v2666_v51  ;;  %v2700_v56 = vunpack.c.l.b16 %v14052_v33  ;;  %v14060_v38 = vld [vmem:[#allocation89_spill] sm:$0xff] }
 0x368   :  { %3878 = vmatprep.mubr.bf16.mxu1 %v3552_v19  ;;  %8434 = vmatpush1.bf16.msra.mxu1 %v14032_v60  ;;  %v12235_v10 = vsel %vm10914_vm5, %v4926_v12, %v14039_v59  ;;  %v14041_v60 = vcombine.high %v11873_v58, %v11895_v3  ;;  %v14044_v12 = vld [vmem:[#allocation43_spill] sm:$0xff]  ;;  %v14045_v59 = vld [vmem:[#allocation26_spill] sm:$0xff]  ;;  %v2681_v35 = vunpack.c.l.b16 %v14048_v37  ;;  %v14053_v5 = vld [vmem:[#allocation96_spill] sm:$0xff] }
 0x369   :  { %8419 = vmatprep.subr.bf16.mxu1 %v14037_v8  ;;  %4592 = vmatmul.mubr.bf16.vlgmr.msra.gmra.mrb[32].mxu0 %v14038_v62  ;;  %14040 = vst [vmem:[#allocation35_spill] sm:$0xff] %v12235_v10  ;;  %v14042_v8 = vld [vmem:[#allocation17_spill] sm:$0xff]  ;;  %v12249_v43 = vpack.c.bf16 %v14045_v59, %v14044_v12  ;;  %v2697_v10 = vunpack.c.h.b16 %v14051_v23 }
 0x36a   :  { %4673 = vmatpush1.bf16.msra.mxu0 %v9223_v48  ;;  %4601 = vmatprep.mubr.bf16.mxu0 %v14041_v60  ;;  %v2679_v2 = vunpack.c.h.b16 %v14042_v8  ;;  %v14043_v62 = vld [vmem:[#allocation21_spill] sm:$0xff]  ;;  %v12251_v48 = vpack.c.b16 %v2664_v20, %v2661_v61  ;;  %v14056_v61 = vld [vmem:[#allocation36_spill] sm:$0xff] }
 0x36b   :  { %v2682_v36 = vunpack.c.l.b16 %v14043_v62  ;;  %4674 = vmatprep.subr.bf16.mxu0 %v9228_v1  ;;  %v14047_v60 = vld [vmem:[#allocation25_spill] sm:$0xff]  ;;  %v14055_v1 = vld [vmem:[#allocation30_spill] sm:$0xff]  ;;  %v2699_v59 = vunpack.c.l.b16 %v14056_v61 }
 0x36c   :  { %14046 = vst [vmem:[#allocation17_spill] sm:$0xff] %v12251_v48  ;;  %v2678_v19 = vunpack.c.h.b16 %v14047_v60  ;;  %8435 = vmatpush1.bf16.msra.mxu1 %v14049_v41  ;;  %v2696_v20 = vunpack.c.h.b16 %v14055_v1  ;;  %v14057_v48 = vld [vmem:[#allocation87_spill] sm:$0xff]  ;;  %v12266_v41 = vpack.c.b16 %v2700_v56, %v2697_v10  ;;  %v4113_v10 = vrot.slane %v11686_v42, 6 }
 0x36d   :  { %v12256_v6 = vpack.c.b16 %v2682_v36, %v2679_v2  ;;  %8420 = vmatprep.subr.bf16.mxu1 %v14053_v5  ;;  %v2715_v0 = vunpack.c.h.b16 %v14057_v48  ;;  %v14059_v36 = vld [vmem:[#allocation48_spill] sm:$0xff]  ;;  %v2714_v2 = vunpack.c.h.b16 %v14060_v38  ;;  %v4106_v5 = vrot.slane %v11682_v40, 6  ;;  %v14070_v42 = vld [vmem:[#allocation39_spill] sm:$0xff] }
 0x36e   :  { %v12261_v12 = vpack.c.b16 %v2681_v35, %v2678_v19  ;;  %4675 = vmatpush1.bf16.msra.mxu0 %v9226_v11  ;;  %14058 = vst [vmem:[#allocation26_spill] sm:$0xff] %v12266_v41  ;;  %v2718_v51 = vunpack.c.l.b16 %v14059_v36  ;;  %v9234_v35 = vld [vmem:[#allocation4 + $0x434] ss:$8 sps:$4 sm:$0xff]   ;;  %v12272_v19 = vpack.c.b16 %v2699_v59, %v2696_v20  ;;  %v14065_v41 = vld [vmem:[#allocation38_spill] sm:$0xff] }
 0x36f   :  { %14050 = vst [vmem:[#allocation21_spill] sm:$0xff] %v12256_v6  ;;  %v14061_v6 = vld [vmem:[#allocation47_spill] sm:$0xff]  ;;  %3879 = vmatmul.mubr.bf16.gmra.mrb[132].mxu1 %v3551_v27  ;;  %4676 = vmatprep.subr.bf16.mxu0 %v9231_v32  ;;  %v14066_v27 = vcombine.low %v11873_v58, %v11895_v3  ;;  %v14067_v40 = vld [vmem:[#allocation24_spill] sm:$0xff]  ;;  %v14068_v32 = vld [vmem:[#allocation102_spill] sm:$0xff]  ;;  %v4112_v59 = vrot.slane %v4106_v5, 4 }
 0x370   :  { %14054 = vst [vmem:[#allocation43_spill] sm:$0xff] %v12261_v12  ;;  %v2717_v14 = vunpack.c.l.b16 %v14061_v6  ;;  %3888 = vmatprep.mubr.bf16.mxu1 %v14042_v8  ;;  %v14062_v12 = vld [vmem:[#allocation28_spill] sm:$0xff]  ;;  %v12276_v11 = vpack.c.b16 %v2718_v51, %v2715_v0  ;;  %v14069_v20 = vcombine.high %v14067_v40, %v14068_v32  ;;  %v9237_v0 = vld [vmem:[#allocation4 + $0x444] ss:$8 sps:$4 sm:$0xff]  }
 0x371   :  { %8436 = vmatpush1.bf16.msra.mxu1 %v14062_v12  ;;  %4602 = vmatmul.mubr.bf16.gmra.mrb[36].mxu0 %v14066_v27  ;;  %v9232_v8 = vld [vmem:[#allocation4 + $0x430] ss:$8 sps:$4 sm:$0xff]   ;;  %v2688_v12 = vunpack.c.l.b16 %v12249_v43  ;;  %v4114_v3 = vsel %vm9723_vm11, %v4112_v59, %v4113_v10  ;;  %v14075_v10 = vld [vmem:[#allocation22_spill] sm:$0xff] }
 0x372   :  { %14063 = vst [vmem:[#allocation25_spill] sm:$0xff] %v12276_v11  ;;  %v12278_v56 = vpack.c.b16 %v2717_v14, %v2714_v2  ;;  %8421 = vmatprep.subr.bf16.mxu1 %v14065_v41  ;;  %4677 = vmatpush1.bf16.msra.mxu0 %v9229_v46  ;;  %v7925_v14 = vrot.slane %v11544_v53, 10  ;;  %v2685_v41 = vunpack.c.h.b16 %v14043_v62  ;;  %v14071_v51 = vld [vmem:[#allocation40_spill] sm:$0xff]  ;;  %v9235_v46 = vld [vmem:[#allocation4 + $0x440] ss:$8 sps:$4 sm:$0xff]   ;;  %v14073_v62 = vld [vmem:[#allocation51_spill] sm:$0xff] }
 0x373   :  { %4611 = vmatprep.mubr.bf16.mxu0 %v14069_v20  ;;  %4678 = vmatprep.subr.bf16.mxu0 %v9234_v35  ;;  %v9240_v53 = vld [vmem:[#allocation4 + $0x454] ss:$8 sps:$4 sm:$0xff]   ;;  %v14072_v35 = vld [vmem:[#allocation45_spill] sm:$0xff]  ;;  %v14074_v20 = vcombine.low %v14067_v40, %v14068_v32  ;;  %v14077_v59 = vld [vmem:[#allocation50_spill] sm:$0xff] }
 0x374   :  { %14064 = vst [vmem:[#allocation20_spill] sm:$0xff] %v12278_v56  ;;  %v3558_v58 = vpack.c.b16 %v2688_v12, %v2685_v41  ;;  %v4107_v2 = vsel %vm9723_vm11, %v7925_v14, %v4106_v5  ;;  %v2684_v12 = vunpack.c.h.b16 %v14048_v37  ;;  %v9243_v5 = vld [vmem:[#allocation4 + $0x464] ss:$8 sps:$4 sm:$0xff]   ;;  %v9246_v32 = vld [vmem:[#allocation4 + $0x474] ss:$8 sps:$4 sm:$0xff]  }
 0x375   :  { %8437 = vmatpush1.bf16.msra.mxu1 %v14070_v42  ;;  %v7945_v27 = vcombine.high %v4107_v2, %v4114_v3  ;;  %v9241_v42 = vld [vmem:[#allocation4 + $0x460] ss:$8 sps:$4 sm:$0xff]   ;;  %v7944_v40 = vcombine.low %v4107_v2, %v4114_v3  ;;  %v9244_v37 = vld [vmem:[#allocation4 + $0x470] ss:$8 sps:$4 sm:$0xff]   ;;  %v2703_v3 = vunpack.c.h.b16 %v14052_v33 }
 0x376   :  { %8422 = vmatprep.subr.bf16.mxu1 %v14071_v51  ;;  %4679 = vmatpush1.bf16.msra.mxu0 %v9232_v8  ;;  %v2687_v8 = vunpack.c.l.b16 %v14075_v10  ;;  %v14078_v41 = vld [vmem:[#allocation97_spill] sm:$0xff]  ;;  %v14079_v51 = vld [vmem:[#allocation98_spill] sm:$0xff]  ;;  %v14082_v2 = vld [vmem:[#allocation100_spill] sm:$0xff] }
 0x377   :  { %3889 = vmatmul.mubr.bf16.gmra.mrb[136].mxu1 %v14047_v60  ;;  %4680 = vmatprep.subr.bf16.mxu0 %v9237_v0  ;;  %v9238_v60 = vld [vmem:[#allocation4 + $0x450] ss:$8 sps:$4 sm:$0xff]   ;;  %v14076_v0 = vld [vmem:[#allocation53_spill] sm:$0xff] }
 0x378   :  { %3898 = vmatprep.mubr.bf16.mxu1 %v3558_v58  ;;  %v3557_v14 = vpack.c.b16 %v2687_v8, %v2684_v12  ;;  %v14080_v58 = vld [vmem:[#allocation37_spill] sm:$0xff]  ;;  %v14084_v8 = vld [vmem:[#allocation62_spill] sm:$0xff] }
 0x379   :  { %8438 = vmatpush1.bf16.msra.mxu1 %v14072_v35  ;;  %4612 = vmatmul.mubr.bf16.gmra.mrb[40].mxu0 %v14074_v20  ;;  %v14081_v35 = vld [vmem:[#allocation99_spill] sm:$0xff]  ;;  %v14086_v12 = vld [vmem:[#allocation57_spill] sm:$0xff] }
 0x37a   :  { %8423 = vmatprep.subr.bf16.mxu1 %v14073_v62  ;;  %4681 = vmatpush1.bf16.msra.mxu0 %v9235_v46  ;;  %v2706_v46 = vunpack.c.l.b16 %v14080_v58  ;;  %v9252_v62 = vld [vmem:[#allocation4 + $0x494] ss:$8 sps:$4 sm:$0xff]  }
 0x37b   :  { %4621 = vmatprep.mubr.bf16.mxu0 %v7945_v27  ;;  %4682 = vmatprep.subr.bf16.mxu0 %v9240_v53  ;;  %v9249_v53 = vld [vmem:[#allocation4 + $0x484] ss:$8 sps:$4 sm:$0xff]   ;;  %v9247_v27 = vld [vmem:[#allocation4 + $0x480] ss:$8 sps:$4 sm:$0xff]   ;;  %v14083_v20 = vld [vmem:[#allocation19_spill] sm:$0xff] }
 0x37d   :  { %8439 = vmatpush1.bf16.msra.mxu1 %v14076_v0  ;;  %v14088_v0 = vld [vmem:[#allocation44_spill] sm:$0xff] }
 0x37e   :  { %8424 = vmatprep.subr.bf16.mxu1 %v14077_v59  ;;  %4683 = vmatpush1.bf16.msra.mxu0 %v9238_v60  ;;  %v14085_v60 = vld [vmem:[#allocation10_spill] sm:$0xff]  ;;  %v2705_v33 = vunpack.c.l.b16 %v14088_v0  ;;  %v2702_v59 = vunpack.c.h.b16 %v14056_v61  ;;  %v14094_v61 = vld [vmem:[#allocation61_spill] sm:$0xff] }
 0x37f   :  { %3899 = vmatmul.mubr.bf16.gmra.mrb[140].mxu1 %v3557_v14  ;;  %4684 = vmatprep.subr.bf16.mxu0 %v9243_v5  ;;  %v14087_v5 = vcombine.low %v14085_v60, %v14086_v12  ;;  %v9250_v14 = vld [vmem:[#allocation4 + $0x490] ss:$8 sps:$4 sm:$0xff]  }
 0x380   :  { %3908 = vmatprep.mubr.bf16.mxu1 %v14051_v23  ;;  %v3564_v23 = vpack.c.b16 %v2706_v46, %v2703_v3  ;;  %v14092_v46 = vld [vmem:[#allocation32_spill] sm:$0xff] }
 0x381   :  { %8440 = vmatpush1.bf16.msra.mxu1 %v14078_v41  ;;  %4622 = vmatmul.mubr.bf16.gmra.mrb[44].mxu0 %v7944_v40  ;;  %v3563_v40 = vpack.c.b16 %v2705_v33, %v2702_v59  ;;  %v9253_v41 = vld [vmem:[#allocation4 + $0x4a0] ss:$8 sps:$4 sm:$0xff]   ;;  %v9264_v33 = vld [vmem:[#allocation4 + $0x4d4] ss:$8 sps:$4 sm:$0xff]  }
 0x382   :  { %8425 = vmatprep.subr.bf16.mxu1 %v14079_v51  ;;  %4685 = vmatpush1.bf16.msra.mxu0 %v9241_v42  ;;  %v14089_v42 = vld [vmem:[#allocation16_spill] sm:$0xff] }
 0x383   :  { %4704 = vmatprep.mubr.bf16.mxu0 %v13789_v25  ;;  %4686 = vmatprep.subr.bf16.mxu0 %v9246_v32  ;;  %v14090_v32 = vld [vmem:[#allocation23_spill] sm:$0xff] }
 0x384   :  { %v9258_v51 = vld [vmem:[#allocation4 + $0x4b4] ss:$8 sps:$4 sm:$0xff]  }
 0x385   :  { %8441 = vmatpush1.bf16.msra.mxu1 %v14081_v35 }
 0x386   :  { %8426 = vmatprep.subr.bf16.mxu1 %v14082_v2  ;;  %4687 = vmatpush1.bf16.msra.mxu0 %v9244_v37  ;;  %v14091_v37 = vld [vmem:[#allocation29_spill] sm:$0xff]  ;;  %v9256_v2 = vld [vmem:[#allocation4 + $0x4b0] ss:$8 sps:$4 sm:$0xff]  }
 0x387   :  { %3909 = vmatmul.mubr.bf16.gmra.mrb[144].mxu1 %v14055_v1  ;;  %5317 = vmatprep.subr.bf16.mxu0 %v9249_v53  ;;  %v9255_v1 = vld [vmem:[#allocation4 + $0x4a4] ss:$8 sps:$4 sm:$0xff]   ;;  %v12332_v3 = vpop.f32.mrb[0].mxu0 }
 0x388   :  { %3918 = vmatprep.mubr.bf16.mxu1 %v3564_v23  ;;  %v14093_v53 = vld [vmem:[#allocation58_spill] sm:$0xff]  ;;  %v14096_v23 = vld [vmem:[#allocation49_spill] sm:$0xff] }
 0x389   :  { %8442 = vmatpush1.bf16.msra.mxu1 %v14083_v20  ;;  %4705 = vmatmul.mubr.bf16.vlgmr.msra.gmra.mrb[32].mxu0 %v14087_v5  ;;  %v14095_v35 = vcombine.low %v14093_v53, %v14094_v61  ;;  %v9259_v5 = vld [vmem:[#allocation4 + $0x4c0] ss:$8 sps:$4 sm:$0xff]   ;;  %v9268_v53 = vld [vmem:[#allocation4 + $0x4f0] ss:$8 sps:$4 sm:$0xff]   ;;  %v9273_v61 = vld [vmem:[#allocation4 + $0x504] ss:$8 sps:$4 sm:$0xff]  }
 0x38a   :  { %8427 = vmatprep.subr.bf16.mxu1 %v14084_v8  ;;  %5318 = vmatpush1.bf16.msra.mxu0 %v9247_v27  ;;  %v2724_v27 = vunpack.c.l.b16 %v14096_v23  ;;  %v2721_v8 = vunpack.c.h.b16 %v14059_v36  ;;  %v14100_v36 = vld [vmem:[#allocation46_spill] sm:$0xff] }
 0x38b   :  { %4714 = vmatprep.mubr.bf16.mxu0 %v13789_v25  ;;  %5319 = vmatprep.subr.bf16.mxu0 %v9252_v62  ;;  %v12336_v62 = vpop.f32.mrb[1].mxu0 }
 0x38c   :  { %v12338_v20 = vpop.f32.mrb[2].mxu0  ;;  %v3570_v12 = vpack.c.b16 %v2724_v27, %v2721_v8  ;;  %v14108_v8 = vld [vmem:[#allocation80_spill] sm:$0xff] }
 0x38d   :  { %8443 = vmatpush1.bf16.msra.mxu1 %v14089_v42  ;;  %v12342_v60 = vpop.f32.mrb[3].mxu0  ;;  %v2720_v42 = vunpack.c.h.b16 %v14061_v6  ;;  %v14103_v6 = vld [vmem:[#allocation74_spill] sm:$0xff] }
 0x38e   :  { %8428 = vmatprep.subr.bf16.mxu1 %v14090_v32  ;;  %5320 = vmatpush1.bf16.msra.mxu0 %v9250_v14  ;;  %v14097_v14 = vld [vmem:[#allocation66_spill] sm:$0xff] }
 0x38f   :  { %3919 = vmatmul.mubr.bf16.gmra.mrb[148].mxu1 %v3563_v40  ;;  %5321 = vmatprep.subr.bf16.mxu0 %v9255_v1  ;;  %v2723_v1 = vunpack.c.l.b16 %v14100_v36  ;;  %v9265_v32 = vld [vmem:[#allocation4 + $0x4e0] ss:$8 sps:$4 sm:$0xff]  }
 0x390   :  { %3928 = vmatprep.mubr.bf16.mxu1 %v14057_v48  ;;  %v9261_v48 = vld [vmem:[#allocation4 + $0x4c4] ss:$8 sps:$4 sm:$0xff]  }
 0x391   :  { %8444 = vmatpush1.bf16.msra.mxu1 %v14091_v37  ;;  %4715 = vmatmul.mubr.bf16.gmra.mrb[36].mxu0 %v14095_v35  ;;  %v14105_v35 = vcombine.low %v12002_v7, %v12016_v55 }
 0x392   :  { %8429 = vmatprep.subr.bf16.mxu1 %v14092_v46  ;;  %5322 = vmatpush1.bf16.msra.mxu0 %v9253_v41  ;;  %v12355_v40 = vpop.f32.mrb[4].mxu0 }
 0x393   :  { %4724 = vmatprep.mubr.bf16.mxu0 %v13789_v25  ;;  %5323 = vmatprep.subr.bf16.mxu0 %v9258_v51  ;;  %v9270_v51 = vld [vmem:[#allocation4 + $0x4f4] ss:$8 sps:$4 sm:$0xff]  }
 0x395   :  { %8445 = vmatpush1.bf16.msra.mxu1 %v11988_v52  ;;  %v14098_v52 = vld [vmem:[#allocation69_spill] sm:$0xff] }
 0x396   :  { %8430 = vmatprep.subr.bf16.mxu1 %v11998_v13  ;;  %5324 = vmatpush1.bf16.msra.mxu0 %v9256_v2  ;;  %v14099_v59 = vcombine.low %v14097_v14, %v14098_v52  ;;  %v9262_v13 = vld [vmem:[#allocation4 + $0x4d0] ss:$8 sps:$4 sm:$0xff]   ;;  %v14106_v2 = vcombine.high %v12007_v50, %v12033_v63  ;;  %v9277_v14 = vld [vmem:[#allocation4 + $0x520] ss:$8 sps:$4 sm:$0xff]   ;;  %v14110_v52 = vcombine.low %v12007_v50, %v12033_v63 }
 0x397   :  { %3929 = vmatmul.mubr.bf16.gmra.mrb[152].mxu1 %v14060_v38  ;;  %5325 = vmatprep.subr.bf16.mxu0 %v9261_v48  ;;  %v9267_v38 = vld [vmem:[#allocation4 + $0x4e4] ss:$8 sps:$4 sm:$0xff]   ;;  %v9283_v63 = vld [vmem:[#allocation4 + $0x540] ss:$8 sps:$4 sm:$0xff]  }
 0x398   :  { %3938 = vmatprep.mubr.bf16.mxu1 %v3570_v12  ;;  %v14107_v48 = vld [vmem:[#allocation77_spill] sm:$0xff] }
 0x399   :  { %8446 = vmatpush1.bf16.msra.mxu1 %v12024_v18  ;;  %4725 = vmatmul.mubr.bf16.gmra.mrb[40].mxu0 %v14099_v59  ;;  %v3569_v18 = vpack.c.b16 %v2723_v1, %v2720_v42  ;;  %v14109_v12 = vcombine.low %v14107_v48, %v14108_v8  ;;  %v9282_v59 = vld [vmem:[#allocation4 + $0x534] ss:$8 sps:$4 sm:$0xff]   ;;  %v14111_v1 = vcombine.high %v12011_v4, %v12044_v57  ;;  %v14113_v42 = vld [vmem:[#allocation85_spill] sm:$0xff]  ;;  %v9286_v8 = vld [vmem:[#allocation4 + $0x550] ss:$8 sps:$4 sm:$0xff]  }
 0x39a   :  { %8431 = vmatprep.subr.bf16.mxu1 %v12036_v39  ;;  %5326 = vmatpush1.bf16.msra.mxu0 %v9259_v5  ;;  %v12358_v39 = vpop.f32.mrb[5].mxu0 }
 0x39b   :  { %4734 = vmatprep.mubr.bf16.mxu0 %v13789_v25  ;;  %5327 = vmatprep.subr.bf16.mxu0 %v9264_v33  ;;  %v12360_v41 = vpop.f32.mrb[6].mxu0 }
 0x39c   :  { %v12362_v37 = vpop.f32.mrb[7].mxu0 }
 0x39d   :  { %8447 = vmatpush1.bf16.msra.mxu1 %v12069_v17  ;;  %v14101_v17 = vcombine.high %v12002_v7, %v12016_v55  ;;  %v9279_v7 = vld [vmem:[#allocation4 + $0x524] ss:$8 sps:$4 sm:$0xff]  }
 0x39e   :  { %8432 = vmatprep.subr.bf16.mxu1 %v12078_v9  ;;  %5328 = vmatpush1.bf16.msra.mxu0 %v9262_v13  ;;  %v14102_v9 = vld [vmem:[#allocation71_spill] sm:$0xff]  ;;  %v12380_v27 = vpop.f32.mrb[8].mxu0  ;;  %v14112_v13 = vld [vmem:[#allocation82_spill] sm:$0xff] }
 0x39f   :  { %3939 = vmatmul.mubr.bf16.gmra.mrb[156].mxu1 %v3569_v18  ;;  %5329 = vmatprep.subr.bf16.mxu0 %v9267_v38  ;;  %v14104_v46 = vcombine.low %v14102_v9, %v14103_v6  ;;  %v12385_v5 = vpop.f32.mrb[9].mxu0  ;;  %v14114_v38 = vcombine.low %v14112_v13, %v14113_v42  ;;  %v9280_v18 = vld [vmem:[#allocation4 + $0x530] ss:$8 sps:$4 sm:$0xff]  }
 0x3a0   :  { %4631 = vmatprep.mubr.bf16.mxu1 %v14101_v17  ;;  %v12388_v55 = vpop.f32.mrb[10].mxu0  ;;  %v14115_v17 = vld [vmem:[#allocation14_spill] sm:$0xff] }
 0x3a1   :  { %8448 = vmatpush1.bf16.msra.mxu1 %v12097_v21  ;;  %4735 = vmatmul.mubr.bf16.gmra.mrb[44].mxu0 %v14104_v46  ;;  %v9271_v21 = vld [vmem:[#allocation4 + $0x500] ss:$8 sps:$4 sm:$0xff]   ;;  %v12390_v33 = vpop.f32.mrb[11].mxu0  ;;  %v4166_v9 = vrot.slane %v14115_v17, 6  ;;  %v14116_v46 = vcombine.low %v12011_v4, %v12044_v57  ;;  %v9291_v4 = vld [vmem:[#allocation4 + $0x564] ss:$8 sps:$4 sm:$0xff]  }
 0x3a2   :  { %8433 = vmatprep.subr.bf16.mxu1 %v12121_v54  ;;  %5330 = vmatpush1.bf16.msra.mxu0 %v9265_v32  ;;  %v9276_v54 = vld [vmem:[#allocation4 + $0x514] ss:$8 sps:$4 sm:$0xff]   ;;  %v9285_v32 = vld [vmem:[#allocation4 + $0x544] ss:$8 sps:$4 sm:$0xff]  }
 0x3a3   :  { %4744 = vmatprep.mubr.bf16.mxu0 %v13789_v25  ;;  %5331 = vmatprep.subr.bf16.mxu0 %v9270_v51  ;;  %v4171_v57 = vrot.slane %v4166_v9, 4 }
 0x3a5   :  { %8449 = vmatpush1.bf16.msra.mxu1 %v12150_v29  ;;  %v9274_v29 = vld [vmem:[#allocation4 + $0x510] ss:$8 sps:$4 sm:$0xff]  }
 0x3a6   :  { %5332 = vmatpush1.bf16.msra.mxu0 %v9268_v53  ;;  %v9288_v53 = vld [vmem:[#allocation4 + $0x554] ss:$8 sps:$4 sm:$0xff]  }
 0x3a7   :  { %5333 = vmatprep.subr.bf16.mxu0 %v9273_v61 }
 0x3a8   :  { %4632 = vmatmul.mubr.bf16.vlgmr.msra.gmra.mrb[160].mxu1 %v14105_v35  ;;  %v14118_v35 = vld [vmem:[#allocation95_spill] sm:$0xff] }
 0x3a9   :  { %4641 = vmatprep.mubr.bf16.mxu1 %v14106_v2  ;;  %4745 = vmatmul.mubr.bf16.gmra.mrb[64].mxu0 %v14109_v12  ;;  %v14119_v2 = vld [vmem:[#allocation31_spill] sm:$0xff]  ;;  %v14121_v12 = vld [vmem:[#allocation94_spill] sm:$0xff] }
 0x3aa   :  { %5334 = vmatpush1.bf16.msra.mxu0 %v9271_v21  ;;  %4754 = vmatprep.mubr.bf16.mxu0 %v13789_v25  ;;  %v12402_v51 = vpop.f32.mrb[12].mxu0  ;;  %v14117_v21 = vcombine.high %v12055_v34, %v12066_v30  ;;  %v14120_v48 = vcombine.low %v14011_v24, %v14119_v2  ;;  %v14122_v24 = vcombine.low %v12055_v34, %v12066_v30  ;;  %v9295_v30 = vld [vmem:[#allocation4 + $0x580] ss:$8 sps:$4 sm:$0xff]  }
 0x3ab   :  { %5335 = vmatprep.subr.bf16.mxu0 %v9276_v54  ;;  %v12404_v50 = vpop.f32.mrb[13].mxu0  ;;  %v4172_v54 = vrot.slane %v14118_v35, 6 }
 0x3ac   :  { %v12407_v6 = vpop.f32.mrb[14].mxu0 }
 0x3ad   :  { %v12412_v61 = vpop.f32.mrb[15].mxu0 }
 0x3ae   :  { %5336 = vmatpush1.bf16.msra.mxu0 %v9274_v29  ;;  %v7934_v29 = vrot.slane %v14121_v12, 10 }
 0x3af   :  { %5337 = vmatprep.subr.bf16.mxu0 %v9279_v7  ;;  %v4173_v7 = vsel %vm9723_vm11, %v4171_v57, %v4172_v54  ;;  %v9306_v57 = vld [vmem:[#allocation4 + $0x5b4] ss:$8 sps:$4 sm:$0xff]  }
 0x3b0   :  { %4642 = vmatmul.mubr.bf16.gmra.mrb[164].mxu1 %v14110_v52  ;;  %v4167_v52 = vsel %vm9723_vm11, %v7934_v29, %v4166_v9  ;;  %v14124_v9 = vcombine.low %v12087_v31, %v12103_v45  ;;  %v9304_v29 = vld [vmem:[#allocation4 + $0x5b0] ss:$8 sps:$4 sm:$0xff]   ;;  %vm6649_vm11 = vcmask 1046534  }
 0x3b1   :  { %4651 = vmatprep.mubr.bf16.mxu1 %v14111_v1  ;;  %4755 = vmatmul.mubr.bf16.gmra.mrb[68].mxu0 %v14114_v38  ;;  %v9294_v1 = vld [vmem:[#allocation4 + $0x574] ss:$8 sps:$4 sm:$0xff]   ;;  %v14123_v38 = vcombine.high %v12087_v31, %v12103_v45  ;;  %v14126_v45 = vcombine.low %v12092_v47, %v12119_v28 }
 0x3b2   :  { %5338 = vmatpush1.bf16.msra.mxu0 %v9277_v14  ;;  %4764 = vmatprep.mubr.bf16.mxu0 %v13789_v25  ;;  %v9289_v14 = vld [vmem:[#allocation4 + $0x560] ss:$8 sps:$4 sm:$0xff]  }
 0x3b3   :  { %5339 = vmatprep.subr.bf16.mxu0 %v9282_v59  ;;  %v7958_v59 = vcombine.low %v4167_v52, %v4173_v7  ;;  %v9309_v7 = vld [vmem:[#allocation4 + $0x5c4] ss:$8 sps:$4 sm:$0xff]   ;;  %v9312_v52 = vld [vmem:[#allocation4 + $0x5d4] ss:$8 sps:$4 sm:$0xff]  }
 0x3b6   :  { %5340 = vmatpush1.bf16.msra.mxu0 %v9280_v18  ;;  %v12430_v13 = vpop.f32.mrb[16].mxu0  ;;  %v9292_v18 = vld [vmem:[#allocation4 + $0x570] ss:$8 sps:$4 sm:$0xff]  }
 0x3b7   :  { %5341 = vmatprep.subr.bf16.mxu0 %v9285_v32  ;;  %v12432_v42 = vpop.f32.mrb[17].mxu0  ;;  %v9297_v32 = vld [vmem:[#allocation4 + $0x584] ss:$8 sps:$4 sm:$0xff]  }
 0x3b8   :  { %4652 = vmatmul.mubr.bf16.gmra.mrb[168].mxu1 %v14116_v46  ;;  %v12437_v15 = vpop.f32.mrb[18].mxu0  ;;  %v14125_v46 = vcombine.high %v12092_v47, %v12119_v28  ;;  %v14129_v47 = vcombine.high %v12135_v49, %v12146_v22  ;;  %v9310_v28 = vld [vmem:[#allocation4 + $0x5d0] ss:$8 sps:$4 sm:$0xff]  }
 0x3b9   :  { %4661 = vmatprep.mubr.bf16.mxu1 %v14117_v21  ;;  %4765 = vmatmul.mubr.bf16.gmra.mrb[72].mxu0 %v14120_v48  ;;  %v12439_v34 = vpop.f32.mrb[19].mxu0  ;;  %v9303_v21 = vld [vmem:[#allocation4 + $0x5a4] ss:$8 sps:$4 sm:$0xff]   ;;  %v9301_v48 = vld [vmem:[#allocation4 + $0x5a0] ss:$8 sps:$4 sm:$0xff]  }
 0x3ba   :  { %5342 = vmatpush1.bf16.msra.mxu0 %v9283_v63  ;;  %4774 = vmatprep.mubr.bf16.mxu0 %v13789_v25  ;;  %v9300_v63 = vld [vmem:[#allocation4 + $0x594] ss:$8 sps:$4 sm:$0xff]  }
 0x3bb   :  { %5343 = vmatprep.subr.bf16.mxu0 %v9288_v53  ;;  %v9298_v53 = vld [vmem:[#allocation4 + $0x590] ss:$8 sps:$4 sm:$0xff]  }
 0x3be   :  { %5344 = vmatpush1.bf16.msra.mxu0 %v9286_v8 }
 0x3bf   :  { %5345 = vmatprep.subr.bf16.mxu0 %v9291_v4  ;;  %v14127_v4 = vcombine.high %v12107_v16, %v12131_v44 }
 0x3c0   :  { %4662 = vmatmul.mubr.bf16.gmra.mrb[172].mxu1 %v14122_v24  ;;  %v14128_v24 = vcombine.low %v12107_v16, %v12131_v44  ;;  %v9318_v16 = vld [vmem:[#allocation4 + $0x5f4] ss:$8 sps:$4 sm:$0xff]   ;;  %v14130_v44 = vcombine.low %v12135_v49, %v12146_v22 }
 0x3c1   :  { %4775 = vmatmul.mubr.bf16.gmra.mrb[76].mxu0 %v7958_v59 }
 0x3c2   :  { %5346 = vmatpush1.bf16.msra.mxu0 %v9289_v14  ;;  %5349 = vmatprep.mubr.bf16.mxu0 %v14123_v38  ;;  %v12447_v54 = vpop.f32.mrb[20].mxu0  ;;  %v9307_v14 = vld [vmem:[#allocation4 + $0x5c0] ss:$8 sps:$4 sm:$0xff]  }
 0x3c3   :  { %5347 = vmatprep.subr.bf16.mxu0 %v9294_v1  ;;  %v12449_v2 = vpop.f32.mrb[21].mxu0  ;;  %v9315_v1 = vld [vmem:[#allocation4 + $0x5e4] ss:$8 sps:$4 sm:$0xff]  }
 0x3c4   :  { %v12451_v8 = vpop.f32.mrb[22].mxu0 }
 0x3c5   :  { %v12453_v31 = vpop.f32.mrb[23].mxu0 }
 0x3c6   :  { %5348 = vmatpush1.bf16.msra.mxu0 %v9292_v18 }
 0x3c7   :  { %5430 = vmatprep.subr.bf16.mxu0 %v9297_v32 }
 0x3c9   :  { %5350 = vmatmul.mubr.bf16.vlgmr.msra.gmra.mrb[32].mxu0 %v14124_v9 }
 0x3ca   :  { %5431 = vmatpush1.bf16.msra.mxu0 %v9295_v30  ;;  %5359 = vmatprep.mubr.bf16.mxu0 %v14125_v46  ;;  %v9313_v30 = vld [vmem:[#allocation4 + $0x5e0] ss:$8 sps:$4 sm:$0xff]   ;;  %v9316_v46 = vld [vmem:[#allocation4 + $0x5f0] ss:$8 sps:$4 sm:$0xff]  }
 0x3cb   :  { %5432 = vmatprep.subr.bf16.mxu0 %v9300_v63  ;;  %v14131_v63 = vld [vmem:[#allocation41_spill] sm:$0xff] }
 0x3cc   :  { %v14132_v9 = vcombine.high %v12164_v26, %v14131_v63 }
 0x3ce   :  { %5433 = vmatpush1.bf16.msra.mxu0 %v9298_v53  ;;  %v12467_v59 = vpop.f32.mrb[24].mxu0  ;;  %v9321_v53 = vld [vmem:[#allocation4 + $0x604] ss:$8 sps:$4 sm:$0xff]  }
 0x3cf   :  { %5434 = vmatprep.subr.bf16.mxu0 %v9303_v21  ;;  %v12469_v38 = vpop.f32.mrb[25].mxu0  ;;  %v14133_v21 = vcombine.low %v12164_v26, %v14131_v63 }
 0x3d0   :  { %v12471_v18 = vpop.f32.mrb[26].mxu0 }
 0x3d1   :  { %5360 = vmatmul.mubr.bf16.gmra.mrb[36].mxu0 %v14126_v45  ;;  %v12473_v32 = vpop.f32.mrb[27].mxu0 }
 0x3d2   :  { %5369 = vmatprep.mubr.bf16.mxu0 %v14127_v4  ;;  %5435 = vmatpush1.bf16.msra.mxu0 %v9301_v48  ;;  %v14134_v48 = vld [vmem:[#allocation42_spill] sm:$0xff]  ;;  %v14138_v4 = vld [vmem:[#allocation15_spill] sm:$0xff] }
 0x3d3   :  { %5436 = vmatprep.subr.bf16.mxu0 %v9306_v57  ;;  %v14135_v57 = vld [vmem:[#allocation90_spill] sm:$0xff] }
 0x3d4   :  { %v14136_v45 = vcombine.high %v14134_v48, %v14135_v57  ;;  %v14137_v49 = vcombine.low %v14134_v48, %v14135_v57 }
 0x3d6   :  { %5437 = vmatpush1.bf16.msra.mxu0 %v9304_v29  ;;  %v14139_v29 = vld [vmem:[#allocation27_spill] sm:$0xff] }
 0x3d7   :  { %5438 = vmatprep.subr.bf16.mxu0 %v9309_v7  ;;  %v14140_v7 = vcombine.high %v14138_v4, %v14139_v29 }
 0x3d9   :  { %5370 = vmatmul.mubr.bf16.gmra.mrb[40].mxu0 %v14128_v24 }
 0x3da   :  { %5379 = vmatprep.mubr.bf16.mxu0 %v14129_v47  ;;  %5439 = vmatpush1.bf16.msra.mxu0 %v9307_v14 }
 0x3db   :  { %5440 = vmatprep.subr.bf16.mxu0 %v9312_v52 }
 0x3de   :  { %5441 = vmatpush1.bf16.msra.mxu0 %v9310_v28 }
 0x3df   :  { %5442 = vmatprep.subr.bf16.mxu0 %v9315_v1 }
 0x3e1   :  { %5380 = vmatmul.mubr.bf16.gmra.mrb[44].mxu0 %v14130_v44 }
 0x3e2   :  { %5389 = vmatprep.mubr.bf16.mxu0 %v14132_v9  ;;  %5443 = vmatpush1.bf16.msra.mxu0 %v9313_v30  ;;  %v14142_v9 = vld [vmem:[#allocation103_spill] sm:$0xff] }
 0x3e3   :  { %5444 = vmatprep.subr.bf16.mxu0 %v9318_v16  ;;  %v14141_v16 = vcombine.low %v14138_v4, %v14139_v29  ;;  %v9319_v29 = vld [vmem:[#allocation4 + $0x600] ss:$8 sps:$4 sm:$0xff]  }
 0x3e6   :  { %5445 = vmatpush1.bf16.msra.mxu0 %v9316_v46  ;;  %v14143_v46 = vld [vmem:[#allocation35_spill] sm:$0xff] }
 0x3e7   :  { %5912 = vmatprep.subr.bf16.mxu0 %v9321_v53  ;;  %v14144_v53 = vcombine.high %v14142_v9, %v14143_v46 }
 0x3e9   :  { %5390 = vmatmul.mubr.bf16.gmra.mrb[64].mxu0 %v14133_v21 }
 0x3ea   :  { %5399 = vmatprep.mubr.bf16.mxu0 %v14136_v45  ;;  %v12490_v22 = vpop.f32.mrb[28].mxu0 }
 0x3eb   :  { %v12495_v14 = vpop.f32.mrb[29].mxu0 }
 0x3ec   :  { %v12497_v52 = vpop.f32.mrb[30].mxu0 }
 0x3ed   :  { %v12499_v26 = vpop.f32.mrb[31].mxu0 }
 0x3f1   :  { %5400 = vmatmul.mubr.bf16.gmra.mrb[68].mxu0 %v14137_v49  ;;  %v3356_v24 = vpop.f32.mrb[96].mxu1 }
 0x3f2   :  { %5409 = vmatprep.mubr.bf16.mxu0 %v14140_v7  ;;  %v12502_v47 = vadd.f32 %v12332_v3, %v3356_v24  ;;  %v3358_v28 = vpop.f32.mrb[97].mxu1  ;;  %v9324_v7 = vld [vmem:[#allocation4 + $0x614] ss:$8 sps:$4 sm:$0xff]  }
 0x3f3   :  { %v12505_v1 = vadd.f32 %v12336_v62, %v3358_v28  ;;  %v3360_v30 = vpop.f32.mrb[98].mxu1  ;;  %v14145_v62 = vcombine.low %v14142_v9, %v14143_v46  ;;  %v14146_v24 = vld [vmem:[#allocation55_spill] sm:$0xff]  ;;  %v14147_v28 = vld [vmem:[#allocation9_spill] sm:$0xff] }
 0x3f4   :  { %v12511_v44 = vadd.f32 %v12338_v20, %v3360_v30  ;;  %v3362_v63 = vpop.f32.mrb[99].mxu1  ;;  %v14148_v30 = vcombine.low %v14146_v24, %v14147_v28 }
 0x3f5   :  { %v12517_v3 = vadd.f32 %v12342_v60, %v3362_v63  ;;  %v9327_v63 = vld [vmem:[#allocation4 + $0x624] ss:$8 sps:$4 sm:$0xff]  }
 0x3f9   :  { %5410 = vmatmul.mubr.bf16.gmra.mrb[72].mxu0 %v14141_v16  ;;  %v9322_v16 = vld [vmem:[#allocation4 + $0x610] ss:$8 sps:$4 sm:$0xff]  }
 0x3fa   :  { %5419 = vmatprep.mubr.bf16.mxu0 %v14144_v53 }
 0x3fe   :  { %v3366_v21 = vpop.f32.mrb[100].mxu1 }
 0x3ff   :  { %v12524_v48 = vadd.f32 %v12355_v40, %v3366_v21  ;;  %v3368_v20 = vpop.f32.mrb[101].mxu1  ;;  %v9325_v21 = vld [vmem:[#allocation4 + $0x620] ss:$8 sps:$4 sm:$0xff]  }
 0x400   :  { %v12527_v57 = vadd.f32 %v12358_v39, %v3368_v20  ;;  %v3370_v45 = vpop.f32.mrb[102].mxu1  ;;  %v9330_v20 = vld [vmem:[#allocation4 + $0x634] ss:$8 sps:$4 sm:$0xff]  }
 0x401   :  { %5420 = vmatmul.mubr.bf16.gmra.mrb[76].mxu0 %v14145_v62  ;;  %v12530_v49 = vadd.f32 %v12360_v41, %v3370_v45  ;;  %v3372_v60 = vpop.f32.mrb[103].mxu1  ;;  %v14150_v45 = vld [vmem:[#allocation64_spill] sm:$0xff] }
 0x402   :  { %5462 = vmatprep.mubr.bf16.mxu0 %v13789_v25  ;;  %v12533_v4 = vadd.f32 %v12362_v37, %v3372_v60 }
 0x407   :  { %v3376_v40 = vpop.f32.mrb[104].mxu1 }
 0x408   :  { %v12540_v39 = vadd.f32 %v12380_v27, %v3376_v40  ;;  %v3378_v41 = vpop.f32.mrb[105].mxu1  ;;  %v14149_v27 = vld [vmem:[#allocation60_spill] sm:$0xff] }
 0x409   :  { %5463 = vmatmul.mubr.bf16.vlgmr.msra.gmra.mrb[32].mxu0 %v14148_v30  ;;  %v12543_v37 = vadd.f32 %v12385_v5, %v3378_v41  ;;  %v3380_v9 = vpop.f32.mrb[106].mxu1  ;;  %v14151_v60 = vcombine.low %v14149_v27, %v14150_v45  ;;  %v9328_v5 = vld [vmem:[#allocation4 + $0x630] ss:$8 sps:$4 sm:$0xff]   ;;  %v9331_v41 = vld [vmem:[#allocation4 + $0x640] ss:$8 sps:$4 sm:$0xff]  }
 0x40a   :  { %5913 = vmatpush1.bf16.msra.mxu0 %v9319_v29  ;;  %5472 = vmatprep.mubr.bf16.mxu0 %v13789_v25  ;;  %v12546_v46 = vadd.f32 %v12388_v55, %v3380_v9  ;;  %v3382_v53 = vpop.f32.mrb[107].mxu1  ;;  %v14153_v9 = vld [vmem:[#allocation70_spill] sm:$0xff] }
 0x40b   :  { %5914 = vmatprep.subr.bf16.mxu0 %v9324_v7  ;;  %v12549_v62 = vadd.f32 %v12390_v33, %v3382_v53  ;;  %v9333_v33 = vld [vmem:[#allocation4 + $0x644] ss:$8 sps:$4 sm:$0xff]  }
 0x40e   :  { %5915 = vmatpush1.bf16.msra.mxu0 %v9322_v16 }
 0x40f   :  { %5916 = vmatprep.subr.bf16.mxu0 %v9327_v63  ;;  %v9336_v63 = vld [vmem:[#allocation4 + $0x654] ss:$8 sps:$4 sm:$0xff]  }
 0x411   :  { %5473 = vmatmul.mubr.bf16.gmra.mrb[36].mxu0 %v14151_v60  ;;  %v3386_v29 = vpop.f32.mrb[108].mxu1 }
 0x412   :  { %5917 = vmatpush1.bf16.msra.mxu0 %v9325_v21  ;;  %5482 = vmatprep.mubr.bf16.mxu0 %v13789_v25  ;;  %v12556_v55 = vadd.f32 %v12402_v51, %v3386_v29  ;;  %v3388_v7 = vpop.f32.mrb[109].mxu1  ;;  %v14152_v51 = vld [vmem:[#allocation67_spill] sm:$0xff] }
 0x413   :  { %5918 = vmatprep.subr.bf16.mxu0 %v9330_v20  ;;  %v12559_v24 = vadd.f32 %v12404_v50, %v3388_v7  ;;  %v3390_v28 = vpop.f32.mrb[110].mxu1  ;;  %v14154_v53 = vcombine.low %v14152_v51, %v14153_v9  ;;  %v9334_v50 = vld [vmem:[#allocation4 + $0x650] ss:$8 sps:$4 sm:$0xff]  }
 0x414   :  { %v12562_v30 = vadd.f32 %v12407_v6, %v3390_v28  ;;  %v3392_v40 = vpop.f32.mrb[111].mxu1 }
 0x415   :  { %v12565_v16 = vadd.f32 %v12412_v61, %v3392_v40  ;;  %v9339_v61 = vld [vmem:[#allocation4 + $0x664] ss:$8 sps:$4 sm:$0xff]   ;;  %v9337_v40 = vld [vmem:[#allocation4 + $0x660] ss:$8 sps:$4 sm:$0xff]  }
 0x416   :  { %5919 = vmatpush1.bf16.msra.mxu0 %v9328_v5 }
 0x417   :  { %5920 = vmatprep.subr.bf16.mxu0 %v9333_v33 }
 0x419   :  { %5483 = vmatmul.mubr.bf16.gmra.mrb[40].mxu0 %v14154_v53  ;;  %v3396_v21 = vpop.f32.mrb[112].mxu1  ;;  %v12574_v27 = vpop.f32.mrb[48].mxu0 }
 0x41a   :  { %5921 = vmatpush1.bf16.msra.mxu0 %v9331_v41  ;;  %5492 = vmatprep.mubr.bf16.mxu0 %v13789_v25  ;;  %v12572_v6 = vadd.f32 %v12430_v13, %v3396_v21  ;;  %v3398_v20 = vpop.f32.mrb[113].mxu1  ;;  %v12579_v29 = vpop.f32.mrb[49].mxu0  ;;  %v9342_v41 = vld [vmem:[#allocation4 + $0x674] ss:$8 sps:$4 sm:$0xff]  }
 0x41b   :  { %5922 = vmatprep.subr.bf16.mxu0 %v9336_v63  ;;  %v12577_v45 = vadd.f32 %v12432_v42, %v3398_v20  ;;  %v3400_v60 = vpop.f32.mrb[114].mxu1  ;;  %v12584_v33 = vpop.f32.mrb[50].mxu0  ;;  %v14155_v42 = vld [vmem:[#allocation73_spill] sm:$0xff]  ;;  %v14156_v63 = vld [vmem:[#allocation76_spill] sm:$0xff] }
 0x41c   :  { %v12582_v5 = vadd.f32 %v12437_v15, %v3400_v60  ;;  %v3402_v7 = vpop.f32.mrb[115].mxu1  ;;  %v12589_v28 = vpop.f32.mrb[51].mxu0  ;;  %v14157_v51 = vcombine.low %v14155_v42, %v14156_v63  ;;  %v9340_v15 = vld [vmem:[#allocation4 + $0x670] ss:$8 sps:$4 sm:$0xff]  }
 0x41d   :  { %v12587_v13 = vadd.f32 %v12439_v34, %v3402_v7 }
 0x41e   :  { %5923 = vmatpush1.bf16.msra.mxu0 %v9334_v50  ;;  %v9345_v50 = vld [vmem:[#allocation4 + $0x684] ss:$8 sps:$4 sm:$0xff]  }
 0x41f   :  { %5924 = vmatprep.subr.bf16.mxu0 %v9339_v61 }
 0x421   :  { %5493 = vmatmul.mubr.bf16.gmra.mrb[44].mxu0 %v14157_v51  ;;  %v12598_v21 = vpop.f32.mrb[52].mxu0  ;;  %v9348_v51 = vld [vmem:[#allocation4 + $0x694] ss:$8 sps:$4 sm:$0xff]  }
 0x422   :  { %v3406_v9 = vpop.f32.mrb[116].mxu1  ;;  %5925 = vmatpush1.bf16.msra.mxu0 %v9337_v40  ;;  %5502 = vmatprep.mubr.bf16.mxu0 %v13789_v25  ;;  %v12603_v60 = vpop.f32.mrb[53].mxu0 }
 0x423   :  { %v12596_v53 = vadd.f32 %v12447_v54, %v3406_v9  ;;  %v3408_v34 = vpop.f32.mrb[117].mxu1  ;;  %5926 = vmatprep.subr.bf16.mxu0 %v9342_v41  ;;  %v12608_v42 = vpop.f32.mrb[54].mxu0  ;;  %v9343_v41 = vld [vmem:[#allocation4 + $0x680] ss:$8 sps:$4 sm:$0xff]  }
 0x424   :  { %v12601_v20 = vadd.f32 %v12449_v2, %v3408_v34  ;;  %v3410_v61 = vpop.f32.mrb[118].mxu1  ;;  %v12613_v63 = vpop.f32.mrb[55].mxu0  ;;  %v14158_v2 = vld [vmem:[#allocation78_spill] sm:$0xff]  ;;  %v14159_v9 = vld [vmem:[#allocation81_spill] sm:$0xff] }
 0x425   :  { %v12606_v7 = vadd.f32 %v12451_v8, %v3410_v61  ;;  %v3412_v40 = vpop.f32.mrb[119].mxu1  ;;  %v14160_v34 = vcombine.low %v14158_v2, %v14159_v9  ;;  %v9346_v8 = vld [vmem:[#allocation4 + $0x690] ss:$8 sps:$4 sm:$0xff]  }
 0x426   :  { %v12611_v54 = vadd.f32 %v12453_v31, %v3412_v40  ;;  %5927 = vmatpush1.bf16.msra.mxu0 %v9340_v15  ;;  %v9351_v15 = vld [vmem:[#allocation4 + $0x6a4] ss:$8 sps:$4 sm:$0xff]  }
 0x427   :  { %5928 = vmatprep.subr.bf16.mxu0 %v9345_v50 }
 0x429   :  { %5503 = vmatmul.mubr.bf16.gmra.mrb[64].mxu0 %v14160_v34  ;;  %v12622_v40 = vpop.f32.mrb[56].mxu0  ;;  %v9354_v34 = vld [vmem:[#allocation4 + $0x6b4] ss:$8 sps:$4 sm:$0xff]  }
 0x42a   :  { %v3416_v36 = vpop.f32.mrb[120].mxu1  ;;  %5929 = vmatpush1.bf16.msra.mxu0 %v9343_v41  ;;  %5512 = vmatprep.mubr.bf16.mxu0 %v13789_v25  ;;  %v12627_v56 = vpop.f32.mrb[57].mxu0 }
 0x42b   :  { %v12620_v61 = vadd.f32 %v12467_v59, %v3416_v36  ;;  %v3418_v31 = vpop.f32.mrb[121].mxu1  ;;  %5930 = vmatprep.subr.bf16.mxu0 %v9348_v51  ;;  %v12632_v9 = vpop.f32.mrb[58].mxu0  ;;  %v9349_v51 = vld [vmem:[#allocation4 + $0x6a0] ss:$8 sps:$4 sm:$0xff]  }
 0x42c   :  { %v12625_v50 = vadd.f32 %v12469_v38, %v3418_v31  ;;  %v3420_v23 = vpop.f32.mrb[122].mxu1  ;;  %14161 = vst [vmem:[#allocation33_spill] sm:$0xff] %v12632_v9  ;;  %v12637_v59 = vpop.f32.mrb[59].mxu0  ;;  %v14163_v38 = vld [vmem:[#allocation83_spill] sm:$0xff]  ;;  %v14164_v31 = vld [vmem:[#allocation86_spill] sm:$0xff] }
 0x42d   :  { %v12630_v2 = vadd.f32 %v12471_v18, %v3420_v23  ;;  %v3422_v41 = vpop.f32.mrb[123].mxu1  ;;  %14162 = vst [vmem:[#allocation65_spill] sm:$0xff] %v12637_v59  ;;  %v14165_v11 = vcombine.low %v14163_v38, %v14164_v31  ;;  %v9352_v23 = vld [vmem:[#allocation4 + $0x6b0] ss:$8 sps:$4 sm:$0xff]   ;;  %v4924_v31 = vrot.slane %v14115_v17, 7 }
 0x42e   :  { %v12635_v36 = vadd.f32 %v12473_v32, %v3422_v41  ;;  %5931 = vmatpush1.bf16.msra.mxu0 %v9346_v8  ;;  %v9357_v8 = vld [vmem:[#allocation4 + $0x6c4] ss:$8 sps:$4 sm:$0xff]  }
 0x42f   :  { %5932 = vmatprep.subr.bf16.mxu0 %v9351_v15  ;;  %v9363_v17 = vld [vmem:[#allocation4 + $0x6e4] ss:$8 sps:$4 sm:$0xff]  }
 0x431   :  { %5513 = vmatmul.mubr.bf16.gmra.mrb[68].mxu0 %v14165_v11  ;;  %v12646_v41 = vpop.f32.mrb[60].mxu0 }
 0x432   :  { %v3426_v0 = vpop.f32.mrb[124].mxu1  ;;  %5933 = vmatpush1.bf16.msra.mxu0 %v9349_v51  ;;  %5522 = vmatprep.mubr.bf16.mxu0 %v13789_v25  ;;  %14166 = vst [vmem:[#allocation34_spill] sm:$0xff] %v12646_v41  ;;  %v12651_v9 = vpop.f32.mrb[61].mxu0  ;;  %v14171_v41 = vld [vmem:[#allocation104_spill] sm:$0xff] }
 0x433   :  { %v12644_v18 = vadd.f32 %v12490_v22, %v3426_v0  ;;  %v3428_v32 = vpop.f32.mrb[125].mxu1  ;;  %5934 = vmatprep.subr.bf16.mxu0 %v9354_v34  ;;  %14167 = vst [vmem:[#allocation96_spill] sm:$0xff] %v12651_v9  ;;  %v12656_v38 = vpop.f32.mrb[62].mxu0  ;;  %v9355_v34 = vld [vmem:[#allocation4 + $0x6c0] ss:$8 sps:$4 sm:$0xff]   ;;  %v14170_v9 = vld [vmem:[#allocation91_spill] sm:$0xff] }
 0x434   :  { %v12649_v15 = vadd.f32 %v12495_v14, %v3428_v32  ;;  %v3430_v59 = vpop.f32.mrb[126].mxu1  ;;  %14168 = vst [vmem:[#allocation30_spill] sm:$0xff] %v12656_v38  ;;  %v12661_v22 = vpop.f32.mrb[63].mxu0  ;;  %v9360_v14 = vld [vmem:[#allocation4 + $0x6d4] ss:$8 sps:$4 sm:$0xff]   ;;  %v4930_v32 = vrot.slane %v14118_v35, 7 }
 0x435   :  { %v12654_v11 = vadd.f32 %v12497_v52, %v3430_v59  ;;  %v3432_v51 = vpop.f32.mrb[127].mxu1  ;;  %14169 = vst [vmem:[#allocation36_spill] sm:$0xff] %v12661_v22  ;;  %v14172_v52 = vcombine.low %v14170_v9, %v14171_v41  ;;  %v9358_v38 = vld [vmem:[#allocation4 + $0x6d0] ss:$8 sps:$4 sm:$0xff]   ;;  %v8022_v22 = vrot.slane %v14121_v12, 11 }
 0x436   :  { %v12659_v0 = vadd.f32 %v12499_v26, %v3432_v51  ;;  %5935 = vmatpush1.bf16.msra.mxu0 %v9352_v23  ;;  %v4929_v26 = vrot.slane %v4924_v31, 4 }
 0x437   :  { %5936 = vmatprep.subr.bf16.mxu0 %v9357_v8 }
 0x438   :  { %v4931_v41 = vsel %vm10914_vm5, %v4929_v26, %v4930_v32  ;;  %v9364_v32 = vld [vmem:[#allocation4 + $0x6f0] ss:$8 sps:$4 sm:$0xff]  }
 0x439   :  { %5523 = vmatmul.mubr.bf16.gmra.mrb[72].mxu0 %v14172_v52 }
 0x43a   :  { %v3870_v59 = vpop.f32.mrb[128].mxu1  ;;  %5937 = vmatpush1.bf16.msra.mxu0 %v9355_v34  ;;  %5532 = vmatprep.mubr.bf16.mxu0 %v13789_v25 }
 0x43b   :  { %v12670_v23 = vadd.f32 %v3870_v59, %v12502_v47  ;;  %v3872_v51 = vpop.f32.mrb[129].mxu1  ;;  %5938 = vmatprep.subr.bf16.mxu0 %v9360_v14  ;;  %v9361_v47 = vld [vmem:[#allocation4 + $0x6e0] ss:$8 sps:$4 sm:$0xff]   ;;  %v4925_v14 = vsel %vm10914_vm5, %v8022_v22, %v4924_v31  ;;  %v9366_v59 = vld [vmem:[#allocation4 + $0x6f4] ss:$8 sps:$4 sm:$0xff]  }
 0x43c   :  { %v12673_v8 = vadd.f32 %v3872_v51, %v12505_v1  ;;  %v3874_v35 = vpop.f32.mrb[130].mxu1  ;;  %v8046_v1 = vcombine.low %v4925_v14, %v4931_v41  ;;  %v14174_v51 = vld [vmem:[#allocation17_spill] sm:$0xff]  ;;  %v14176_v31 = vld [vmem:[#allocation12_spill] sm:$0xff] }
 0x43d   :  { %v12679_v34 = vadd.f32 %v3874_v35, %v12511_v44  ;;  %v3876_v52 = vpop.f32.mrb[131].mxu1  ;;  %v14175_v44 = vld [vmem:[#allocation13_spill] sm:$0xff] }
 0x43e   :  { %v12682_v25 = vadd.f32 %v3876_v52, %v12517_v3  ;;  %5939 = vmatpush1.bf16.msra.mxu0 %v9358_v38  ;;  %v2663_v26 = vunpack.c.l.b16 %v14175_v44  ;;  %v9369_v38 = vld [vmem:[#allocation4 + $0x704] ss:$8 sps:$4 sm:$0xff]   ;;  %v9367_v14 = vld [vmem:[#allocation4 + $0x700] ss:$8 sps:$4 sm:$0xff]  }
 0x43f   :  { %5940 = vmatprep.subr.bf16.mxu0 %v9363_v17  ;;  %v2660_v17 = vunpack.c.h.b16 %v14176_v31  ;;  %v9375_v44 = vld [vmem:[#allocation4 + $0x724] ss:$8 sps:$4 sm:$0xff]   ;;  %v9378_v31 = vld [vmem:[#allocation4 + $0x734] ss:$8 sps:$4 sm:$0xff]  }
 0x441   :  { %5533 = vmatmul.mubr.bf16.gmra.mrb[76].mxu0 %v8046_v1  ;;  %v9372_v1 = vld [vmem:[#allocation4 + $0x714] ss:$8 sps:$4 sm:$0xff]  }
 0x442   :  { %v3880_v12 = vpop.f32.mrb[132].mxu1  ;;  %5941 = vmatpush1.bf16.msra.mxu0 %v9361_v47  ;;  %5944 = vmatprep.mubr.bf16.mxu0 %v14174_v51 }
 0x443   :  { %v12689_v35 = vadd.f32 %v3880_v12, %v12524_v48  ;;  %v3882_v3 = vpop.f32.mrb[133].mxu1  ;;  %5942 = vmatprep.subr.bf16.mxu0 %v9366_v59  ;;  %v5624_v48 = vpack.c.b16 %v2663_v26, %v2660_v17  ;;  %v9370_v12 = vld [vmem:[#allocation4 + $0x710] ss:$8 sps:$4 sm:$0xff]  }
 0x444   :  { %v12692_v9 = vadd.f32 %v3882_v3, %v12527_v57  ;;  %v3884_v22 = vpop.f32.mrb[134].mxu1  ;;  %v14177_v57 = vld [vmem:[#allocation93_spill] sm:$0xff] }
 0x445   :  { %v12696_v41 = vadd.f32 %v3884_v22, %v12530_v49  ;;  %v3886_v52 = vpop.f32.mrb[135].mxu1  ;;  %v9373_v22 = vld [vmem:[#allocation4 + $0x720] ss:$8 sps:$4 sm:$0xff]  }
 0x446   :  { %v12699_v47 = vadd.f32 %v3886_v52, %v12533_v4  ;;  %5943 = vmatpush1.bf16.msra.mxu0 %v9364_v32  ;;  %v14179_v52 = vld [vmem:[#allocation21_spill] sm:$0xff] }
 0x447   :  { %6025 = vmatprep.subr.bf16.mxu0 %v9369_v38 }
 0x449   :  { %5945 = vmatmul.mubr.bf16.vlgmr.msra.gmra.mrb[32].mxu0 %v5624_v48  ;;  %v9381_v48 = vld [vmem:[#allocation4 + $0x744] ss:$8 sps:$4 sm:$0xff]  }
 0x44a   :  { %v3890_v59 = vpop.f32.mrb[136].mxu1  ;;  %6026 = vmatpush1.bf16.msra.mxu0 %v9367_v14  ;;  %5954 = vmatprep.mubr.bf16.mxu0 %v14177_v57 }
 0x44b   :  { %v12703_v51 = vadd.f32 %v3890_v59, %v12540_v39  ;;  %v3892_v49 = vpop.f32.mrb[137].mxu1  ;;  %6027 = vmatprep.subr.bf16.mxu0 %v9372_v1  ;;  %v14178_v39 = vld [vmem:[#allocation18_spill] sm:$0xff] }
 0x44c   :  { %v12706_v4 = vadd.f32 %v3892_v49, %v12543_v37  ;;  %v3894_v32 = vpop.f32.mrb[138].mxu1  ;;  %v9376_v37 = vld [vmem:[#allocation4 + $0x730] ss:$8 sps:$4 sm:$0xff]   ;;  %v9379_v49 = vld [vmem:[#allocation4 + $0x740] ss:$8 sps:$4 sm:$0xff]  }
 0x44d   :  { %v12709_v26 = vadd.f32 %v3894_v32, %v12546_v46  ;;  %v3896_v3 = vpop.f32.mrb[139].mxu1 }
 0x44e   :  { %v12712_v38 = vadd.f32 %v3896_v3, %v12549_v62  ;;  %6028 = vmatpush1.bf16.msra.mxu0 %v9370_v12 }
 0x44f   :  { %6029 = vmatprep.subr.bf16.mxu0 %v9375_v44  ;;  %v9384_v44 = vld [vmem:[#allocation4 + $0x754] ss:$8 sps:$4 sm:$0xff]  }
 0x451   :  { %5955 = vmatmul.mubr.bf16.gmra.mrb[36].mxu0 %v14178_v39 }
 0x452   :  { %v3900_v17 = vpop.f32.mrb[140].mxu1  ;;  %5964 = vmatprep.mubr.bf16.mxu0 %v14179_v52  ;;  %6030 = vmatpush1.bf16.msra.mxu0 %v9373_v22 }
 0x453   :  { %v12717_v14 = vadd.f32 %v3900_v17, %v12556_v55  ;;  %v3902_v46 = vpop.f32.mrb[141].mxu1  ;;  %6031 = vmatprep.subr.bf16.mxu0 %v9378_v31  ;;  %v14180_v55 = vld [vmem:[#allocation43_spill] sm:$0xff] }
 0x454   :  { %v12720_v62 = vadd.f32 %v3902_v46, %v12559_v24  ;;  %v3904_v1 = vpop.f32.mrb[142].mxu1  ;;  %v9382_v24 = vld [vmem:[#allocation4 + $0x750] ss:$8 sps:$4 sm:$0xff]   ;;  %v9385_v46 = vld [vmem:[#allocation4 + $0x760] ss:$8 sps:$4 sm:$0xff]  }
 0x455   :  { %v12723_v59 = vadd.f32 %v3904_v1, %v12562_v30  ;;  %v3906_v57 = vpop.f32.mrb[143].mxu1  ;;  %v9387_v30 = vld [vmem:[#allocation4 + $0x764] ss:$8 sps:$4 sm:$0xff]  }
 0x456   :  { %v12726_v12 = vadd.f32 %v3906_v57, %v12565_v16  ;;  %6032 = vmatpush1.bf16.msra.mxu0 %v9376_v37  ;;  %v14181_v57 = vld [vmem:[#allocation26_spill] sm:$0xff] }
 0x457   :  { %6033 = vmatprep.subr.bf16.mxu0 %v9381_v48  ;;  %v9390_v48 = vld [vmem:[#allocation4 + $0x774] ss:$8 sps:$4 sm:$0xff]  }
 0x459   :  { %5965 = vmatmul.mubr.bf16.gmra.mrb[40].mxu0 %v14180_v55 }
 0x45a   :  { %v3910_v32 = vpop.f32.mrb[144].mxu1  ;;  %5974 = vmatprep.mubr.bf16.mxu0 %v12249_v43  ;;  %6034 = vmatpush1.bf16.msra.mxu0 %v9379_v49 }
 0x45b   :  { %v3911_v3 = vadd.f32 %v3910_v32, %v12572_v6  ;;  %v3912_v22 = vpop.f32.mrb[145].mxu1  ;;  %6035 = vmatprep.subr.bf16.mxu0 %v9384_v44 }
 0x45c   :  { %v3913_v31 = vadd.f32 %v3912_v22, %v12577_v45  ;;  %v3914_v16 = vpop.f32.mrb[146].mxu1 }
 0x45d   :  { %v3915_v39 = vadd.f32 %v3914_v16, %v12582_v5  ;;  %v3916_v17 = vpop.f32.mrb[147].mxu1  ;;  %v4024_v52 = vadd.f32 %v12574_v27, %v3911_v3  ;;  %v9388_v5 = vld [vmem:[#allocation4 + $0x770] ss:$8 sps:$4 sm:$0xff]  }
 0x45e   :  { %v3917_v37 = vadd.f32 %v3916_v17, %v12587_v13  ;;  %6036 = vmatpush1.bf16.msra.mxu0 %v9382_v24  ;;  %v4026_v43 = vadd.f32 %v12579_v29, %v3913_v31  ;;  %v14183_v31 = vld [vmem:[#allocation65_spill] sm:$0xff] }
 0x45f   :  { %6037 = vmatprep.subr.bf16.mxu0 %v9387_v30  ;;  %v4028_v6 = vadd.f32 %v12584_v33, %v3915_v39  ;;  %v14182_v30 = vld [vmem:[#allocation33_spill] sm:$0xff] }
 0x460   :  { %v4030_v1 = vadd.f32 %v12589_v28, %v3917_v37  ;;  %v14185_v39 = vld [vmem:[#allocation25_spill] sm:$0xff] }
 0x461   :  { %5975 = vmatmul.mubr.bf16.gmra.mrb[44].mxu0 %v14075_v10 }
 0x462   :  { %v3920_v45 = vpop.f32.mrb[148].mxu1  ;;  %5984 = vmatprep.mubr.bf16.mxu0 %v14181_v57  ;;  %6038 = vmatpush1.bf16.msra.mxu0 %v9385_v46  ;;  %v14186_v46 = vld [vmem:[#allocation34_spill] sm:$0xff] }
 0x463   :  { %v3921_v27 = vadd.f32 %v3920_v45, %v12596_v53  ;;  %v3922_v13 = vpop.f32.mrb[149].mxu1  ;;  %6039 = vmatprep.subr.bf16.mxu0 %v9390_v48  ;;  %v14187_v45 = vld [vmem:[#allocation96_spill] sm:$0xff] }
 0x464   :  { %v3923_v29 = vadd.f32 %v3922_v13, %v12601_v20  ;;  %v3924_v49 = vpop.f32.mrb[150].mxu1  ;;  %v14189_v13 = vld [vmem:[#allocation36_spill] sm:$0xff] }
 0x465   :  { %v3925_v44 = vadd.f32 %v3924_v49, %v12606_v7  ;;  %v3926_v33 = vpop.f32.mrb[151].mxu1  ;;  %v4034_v55 = vadd.f32 %v12598_v21, %v3921_v27  ;;  %v14190_v49 = vld [vmem:[#allocation20_spill] sm:$0xff] }
 0x466   :  { %v3927_v28 = vadd.f32 %v3926_v33, %v12611_v54  ;;  %v4036_v10 = vadd.f32 %v12603_v60, %v3923_v29  ;;  %6040 = vmatpush1.bf16.msra.mxu0 %v9388_v5  ;;  %v14188_v5 = vld [vmem:[#allocation30_spill] sm:$0xff] }
 0x467   :  { %v4038_v32 = vadd.f32 %v12608_v42, %v3925_v44  ;;  %v14191_v44 = vld [vmem:[#allocation49_spill] sm:$0xff] }
 0x468   :  { %v4040_v24 = vadd.f32 %v12613_v63, %v3927_v28 }
 0x469   :  { %5985 = vmatmul.mubr.bf16.gmra.mrb[64].mxu0 %v12272_v19 }
 0x46a   :  { %v3930_v53 = vpop.f32.mrb[152].mxu1  ;;  %5994 = vmatprep.mubr.bf16.mxu0 %v14080_v58  ;;  %v14184_v58 = vld [vmem:[#allocation44_spill] sm:$0xff] }
 0x46b   :  { %v3931_v20 = vadd.f32 %v3930_v53, %v12620_v61  ;;  %v3932_v7 = vpop.f32.mrb[153].mxu1 }
 0x46c   :  { %v3933_v3 = vadd.f32 %v3932_v7, %v12625_v50  ;;  %v3934_v21 = vpop.f32.mrb[154].mxu1  ;;  %v14192_v7 = vld [vmem:[#allocation46_spill] sm:$0xff] }
 0x46d   :  { %v3935_v54 = vadd.f32 %v3934_v21, %v12630_v2  ;;  %v3936_v22 = vpop.f32.mrb[155].mxu1  ;;  %v4044_v60 = vadd.f32 %v12622_v40, %v3931_v20  ;;  %v14193_v21 = vmov 0  }
 0x46e   :  { %v3937_v42 = vadd.f32 %v3936_v22, %v12635_v36  ;;  %v4046_v63 = vadd.f32 %v12627_v56, %v3933_v3 }
 0x46f   :  { %v4048_v19 = vadd.f32 %v14182_v30, %v3935_v54  ;;  %v14194_v54 = vld [vmem:[#allocation56_spill] sm:$0xff] }
 0x470   :  { %v4050_v16 = vadd.f32 %v14183_v31, %v3937_v42  ;;  %v2665_v22 = vunpack.c.l.b16 %v14194_v54  ;;  %v14195_v31 = vld [vmem:[#allocation52_spill] sm:$0xff] }
 0x471   :  { %5995 = vmatmul.mubr.bf16.gmra.mrb[68].mxu0 %v14184_v58  ;;  %v2662_v58 = vunpack.c.h.b16 %v14195_v31  ;;  %v14204_v54 = vld [vmem:[#allocation88_spill] sm:$0xff]  ;;  %v6170_v31 = vld [vmem:[%s13469_s4] sm:$0x3]  ;;  %s9567_s4 = smov 96  }
 0x472   :  { %v3940_v61 = vpop.f32.mrb[156].mxu1  ;;  %6004 = vmatprep.mubr.bf16.mxu0 %v14185_v39 }
 0x473   :  { %v3941_v50 = vadd.f32 %v3940_v61, %v12644_v18  ;;  %v3942_v17 = vpop.f32.mrb[157].mxu1  ;;  %v5626_v39 = vpack.c.b16 %v2665_v22, %v2662_v58  ;;  %v2716_v22 = vunpack.c.h.b16 %v14204_v54  ;;  %v14206_v58 = vld [vmem:[#allocation11_spill] sm:$0xff] }
 0x474   :  { %v3943_v2 = vadd.f32 %v3942_v17, %v12649_v15  ;;  %v3944_v37 = vpop.f32.mrb[158].mxu1 }
 0x475   :  { %v3945_v40 = vadd.f32 %v3944_v37, %v12654_v11  ;;  %v3946_v36 = vpop.f32.mrb[159].mxu1  ;;  %v4054_v56 = vadd.f32 %v14186_v46, %v3941_v50 }
 0x476   :  { %v3947_v48 = vadd.f32 %v3946_v36, %v12659_v0  ;;  %v4056_v57 = vadd.f32 %v14187_v45, %v3943_v2  ;;  %v14197_v45 = vld [vmem:[#allocation68_spill] sm:$0xff] }
 0x477   :  { %v4058_v27 = vadd.f32 %v14188_v5, %v3945_v40 }
 0x478   :  { %v4060_v29 = vadd.f32 %v14189_v13, %v3947_v48 }
 0x479   :  { %6005 = vmatmul.mubr.bf16.gmra.mrb[72].mxu0 %v14190_v49  ;;  %v14198_v49 = vld [vmem:[#allocation63_spill] sm:$0xff] }
 0x47a   :  { %6014 = vmatprep.mubr.bf16.mxu0 %v14191_v44 }
 0x47b   :  { %v4633_v18 = vpop.f32.mrb[160].mxu1 }
 0x47c   :  { %v12770_v15 = vadd.f32 %v4633_v18, %v4024_v52  ;;  %v4635_v33 = vpop.f32.mrb[161].mxu1  ;;  %v2680_v18 = vunpack.c.h.b16 %v14198_v49 }
 0x47d   :  { %v12772_v11 = vadd.f32 %v4635_v33, %v4026_v43  ;;  %v4637_v28 = vpop.f32.mrb[162].mxu1  ;;  %v14199_v33 = vld [vmem:[#allocation72_spill] sm:$0xff] }
 0x47e   :  { %v12774_v53 = vadd.f32 %v4637_v28, %v4028_v6  ;;  %v4639_v0 = vpop.f32.mrb[163].mxu1 }
 0x47f   :  { %v12776_v20 = vadd.f32 %v4639_v0, %v4030_v1 }
 0x481   :  { %6015 = vmatmul.mubr.bf16.gmra.mrb[76].mxu0 %v14192_v7 }
 0x482   :  { %6057 = vmatprep.mubr.bf16.mxu0 %v14193_v21 }
 0x483   :  { %v4643_v3 = vpop.f32.mrb[164].mxu1 }
 0x484   :  { %v12781_v42 = vadd.f32 %v4643_v3, %v4034_v55  ;;  %v4645_v52 = vpop.f32.mrb[165].mxu1 }
 0x485   :  { %v12783_v30 = vadd.f32 %v4645_v52, %v4036_v10  ;;  %v4647_v43 = vpop.f32.mrb[166].mxu1 }
 0x486   :  { %v12786_v6 = vadd.f32 %v4647_v43, %v4038_v32  ;;  %v4649_v61 = vpop.f32.mrb[167].mxu1  ;;  %v14196_v32 = vld [vmem:[#allocation59_spill] sm:$0xff]  ;;  %v14205_v43 = vld [vmem:[#allocation101_spill] sm:$0xff] }
 0x487   :  { %v12788_v1 = vadd.f32 %v4649_v61, %v4040_v24  ;;  %v14207_v61 = vsub.s32 0, %v14206_v58 }
 0x489   :  { %6058 = vmatmul.mubr.bf16.vlgmr.msra.gmra.mrb[32].mxu0 %v5626_v39  ;;  %v12828_v39 = vrot.slane %v6170_v31, %v14207_v61 }
 0x48a   :  { %6067 = vmatprep.mubr.bf16.mxu0 %v14193_v21 }
 0x48b   :  { %v4653_v50 = vpop.f32.mrb[168].mxu1 }
 0x48c   :  { %v12791_v17 = vadd.f32 %v4653_v50, %v4044_v60  ;;  %v4655_v55 = vpop.f32.mrb[169].mxu1  ;;  %v2683_v60 = vunpack.c.l.b16 %v14197_v45 }
 0x48d   :  { %v12793_v2 = vadd.f32 %v4655_v55, %v4046_v63  ;;  %v4657_v10 = vpop.f32.mrb[170].mxu1  ;;  %v14208_v55 = vsub.s32 1, %v14206_v58 }
 0x48e   :  { %v12795_v37 = vadd.f32 %v4657_v10, %v4048_v19  ;;  %v4659_v40 = vpop.f32.mrb[171].mxu1  ;;  %v5632_v44 = vpack.c.b16 %v2683_v60, %v2680_v18 }
 0x48f   :  { %v12797_v36 = vadd.f32 %v4659_v40, %v4050_v16  ;;  %v12832_v10 = vrot.slane %v6170_v31, %v14208_v55 }
 0x491   :  { %6068 = vmatmul.mubr.bf16.gmra.mrb[36].mxu0 %v14196_v32 }
 0x492   :  { %6077 = vmatprep.mubr.bf16.mxu0 %v14193_v21 }
 0x493   :  { %v4663_v24 = vpop.f32.mrb[172].mxu1 }
 0x494   :  { %v12801_v46 = vadd.f32 %v4663_v24, %v4054_v56  ;;  %v4665_v48 = vpop.f32.mrb[173].mxu1  ;;  %v14200_v56 = vld [vmem:[#allocation79_spill] sm:$0xff] }
 0x495   :  { %v12804_v5 = vadd.f32 %v4665_v48, %v4056_v57  ;;  %v4667_v63 = vpop.f32.mrb[174].mxu1  ;;  %v2701_v28 = vunpack.c.l.b16 %v14200_v56  ;;  %v14201_v57 = vld [vmem:[#allocation75_spill] sm:$0xff] }
 0x496   :  { %v12806_v13 = vadd.f32 %v4667_v63, %v4058_v27  ;;  %v4669_v19 = vpop.f32.mrb[175].mxu1  ;;  %v2698_v0 = vunpack.c.h.b16 %v14201_v57  ;;  %v14202_v27 = vld [vmem:[#allocation84_spill] sm:$0xff] }
 0x497   :  { %v12809_v16 = vadd.f32 %v4669_v19, %v4060_v29  ;;  %v14203_v29 = vld [vmem:[#allocation92_spill] sm:$0xff] }
 0x498   :  { %v5638_v7 = vpack.c.b16 %v2701_v28, %v2698_v0  ;;  %v2719_v3 = vunpack.c.l.b16 %v14203_v29 }
 0x499   :  { %6078 = vmatmul.mubr.bf16.gmra.mrb[40].mxu0 %v5632_v44 }
 0x49a   :  { %6087 = vmatprep.mubr.bf16.mxu0 %v14193_v21  ;;  %v5644_v52 = vpack.c.b16 %v2719_v3, %v2716_v22 }
 0x4a1   :  { %6088 = vmatmul.mubr.bf16.gmra.mrb[44].mxu0 %v14199_v33 }
 0x4a2   :  { %6097 = vmatprep.mubr.bf16.mxu0 %v14193_v21 }
 0x4a9   :  { %6098 = vmatmul.mubr.bf16.gmra.mrb[64].mxu0 %v5638_v7 }
 0x4aa   :  { %6107 = vmatprep.mubr.bf16.mxu0 %v14193_v21 }
 0x4b1   :  { %6108 = vmatmul.mubr.bf16.gmra.mrb[68].mxu0 %v14202_v27 }
 0x4b2   :  { %6117 = vmatprep.mubr.bf16.mxu0 %v14193_v21 }
 0x4b9   :  { %6118 = vmatmul.mubr.bf16.gmra.mrb[72].mxu0 %v5644_v52 }
 0x4ba   :  { %6127 = vmatprep.mubr.bf16.mxu0 %v14193_v21 }
 0x4c1   :  { %6128 = vmatmul.mubr.bf16.gmra.mrb[76].mxu0 %v14205_v43 }
 0x55c   :  { %v6059_v50 = vpop.f32.mrb[32].mxu0 }
 0x55d   :  { %v8452_v40 = vadd.f32 %v6059_v50, %v12670_v23  ;;  %v6061_v32 = vpop.f32.mrb[33].mxu0 }
 0x55e   :  { %v8455_v21 = vadd.f32 %v6061_v32, %v12673_v8  ;;  %v6063_v24 = vpop.f32.mrb[34].mxu0 }
 0x55f   :  { %v6182_v48 = vadd.f32 %v8452_v40, %v12828_v39  ;;  %v8458_v45 = vadd.f32 %v6063_v24, %v12679_v34  ;;  %v6065_v60 = vpop.f32.mrb[35].mxu0 }
 0x560   :  { %v6183_v63 = vadd.f32 %v8455_v21, %v12832_v10  ;;  %v8461_v19 = vadd.f32 %v6065_v60, %v12682_v25 }
 0x561   :  { %v6214_v49 = vmax.f32 %v6182_v48, 0.0  ;;  %v6184_v18 = vadd.f32 %v8458_v45, %v12828_v39 }
 0x562   :  { %v6215_v44 = vmax.f32 %v6183_v63, 0.0  ;;  %v6185_v33 = vadd.f32 %v8461_v19, %v12832_v10 }
 0x563   :  { %v6216_v23 = vmax.f32 %v6184_v18, 0.0  ;;  %v12842_v8 = vrot.slane %v6214_v49, 2 }
 0x564   :  { %v6217_v56 = vmax.f32 %v6185_v33, 0.0  ;;  %v6069_v28 = vpop.f32.mrb[36].mxu0  ;;  %v12845_v7 = vrot.slane %v6215_v44, 2 }
 0x565   :  { %v6279_v57 = vrot.slane %v6216_v23, 2  ;;  %v8464_v0 = vadd.f32 %v6069_v28, %v12689_v35  ;;  %v6071_v34 = vpop.f32.mrb[37].mxu0 }
 0x566   :  { %v6282_v27 = vrot.slane %v6217_v56, 2  ;;  %v8467_v25 = vadd.f32 %v6071_v34, %v12692_v9  ;;  %v6073_v29 = vpop.f32.mrb[38].mxu0 }
 0x567   :  { %v6186_v3 = vadd.f32 %v8464_v0, %v12828_v39  ;;  %v8470_v54 = vadd.f32 %v6073_v29, %v12696_v41  ;;  %v6075_v22 = vpop.f32.mrb[39].mxu0  ;;  %v6280_v52 = vsel %vm1401_vm13, %v12842_v8, %v6279_v57 }
 0x568   :  { %v6187_v43 = vadd.f32 %v8467_v25, %v12832_v10  ;;  %v8473_v31 = vadd.f32 %v6075_v22, %v12699_v47  ;;  %v6283_v35 = vsel %vm1401_vm13, %v12845_v7, %v6282_v27  ;;  %v12856_v58 = vmax.f32 %v6214_v49, %v6280_v52 }
 0x569   :  { %v6218_v61 = vmax.f32 %v6186_v3, 0.0  ;;  %v6188_v9 = vadd.f32 %v8470_v54, %v12828_v39  ;;  %v12859_v50 = vmax.f32 %v6215_v44, %v6283_v35 }
 0x56a   :  { %v6219_v55 = vmax.f32 %v6187_v43, 0.0  ;;  %v6189_v41 = vadd.f32 %v8473_v31, %v12832_v10 }
 0x56b   :  { %v6284_v40 = vrot.slane %v6218_v61, 2  ;;  %v6220_v32 = vmax.f32 %v6188_v9, 0.0  ;;  %v8915_v21 = vpack.i.bf16 %v12859_v50, %v12856_v58 }
 0x56c   :  { %v6286_v24 = vrot.slane %v6219_v55, 2  ;;  %v6221_v47 = vmax.f32 %v6189_v41, 0.0  ;;  %v6079_v48 = vpop.f32.mrb[40].mxu0 }
 0x56d   :  { %v6285_v45 = vsel %vm1401_vm13, %v6279_v57, %v6284_v40  ;;  %v6288_v60 = vrot.slane %v6220_v32, 2  ;;  %v8476_v63 = vadd.f32 %v6079_v48, %v12703_v51  ;;  %8916 = vrot.lane.b32.xlu0 %v8915_v21, %s9567_s4  ;;  %v6081_v19 = vpop.f32.mrb[41].mxu0 }
 0x56e   :  { %v6287_v49 = vsel %vm1401_vm13, %v6282_v27, %v6286_v24  ;;  %v6290_v18 = vrot.slane %v6221_v47, 2  ;;  %v8479_v44 = vadd.f32 %v6081_v19, %v12706_v4  ;;  %v6083_v33 = vpop.f32.mrb[42].mxu0  ;;  %v12869_v28 = vmax.f32 %v6216_v23, %v6285_v45 }
 0x56f   :  { %v6190_v0 = vadd.f32 %v8476_v63, %v12828_v39  ;;  %v8482_v34 = vadd.f32 %v6083_v33, %v12709_v26  ;;  %v6085_v57 = vpop.f32.mrb[43].mxu0  ;;  %v6289_v25 = vsel %vm1401_vm13, %v6284_v40, %v6288_v60  ;;  %v12874_v51 = vmax.f32 %v6217_v56, %v6287_v49 }
 0x570   :  { %v6191_v29 = vadd.f32 %v8479_v44, %v12832_v10  ;;  %v8485_v3 = vadd.f32 %v6085_v57, %v12712_v38  ;;  %v6291_v27 = vsel %vm1401_vm13, %v6286_v24, %v6290_v18  ;;  %v12879_v54 = vmax.f32 %v6218_v61, %v6289_v25 }
 0x571   :  { %v6222_v4 = vmax.f32 %v6190_v0, 0.0  ;;  %v6192_v23 = vadd.f32 %v8482_v34, %v12828_v39  ;;  %v12882_v22 = vmax.f32 %v6219_v55, %v6291_v27 }
 0x572   :  { %v6223_v52 = vmax.f32 %v6191_v29, 0.0  ;;  %v6193_v26 = vadd.f32 %v8485_v3, %v12832_v10 }
 0x573   :  { %v6292_v43 = vrot.slane %v6222_v4, 2  ;;  %v6224_v31 = vmax.f32 %v6192_v23, 0.0  ;;  %v8920_v56 = vpack.i.bf16 %v12882_v22, %v12879_v54 }
 0x574   :  { %v6294_v35 = vrot.slane %v6223_v52, 2  ;;  %v6225_v9 = vmax.f32 %v6193_v26, 0.0  ;;  %v6089_v38 = vpop.f32.mrb[44].mxu0 }
 0x575   :  { %v6296_v41 = vrot.slane %v6224_v31, 2  ;;  %v8488_v61 = vadd.f32 %v6089_v38, %v12717_v14  ;;  %8921 = vrot.lane.b32.xlu1 %v8920_v56, %s9567_s4  ;;  %v6091_v40 = vpop.f32.mrb[45].mxu0  ;;  %v6293_v55 = vsel %vm1401_vm13, %v6288_v60, %v6292_v43 }
 0x576   :  { %v6298_v21 = vrot.slane %v6225_v9, 2  ;;  %v8491_v24 = vadd.f32 %v6091_v40, %v12720_v62  ;;  %v6093_v48 = vpop.f32.mrb[46].mxu0  ;;  %v6295_v45 = vsel %vm1401_vm13, %v6290_v18, %v6294_v35  ;;  %v12892_v63 = vmax.f32 %v6220_v32, %v6293_v55 }
 0x577   :  { %v6194_v19 = vadd.f32 %v8488_v61, %v12828_v39  ;;  %v8494_v49 = vadd.f32 %v6093_v48, %v12723_v59  ;;  %v6095_v44 = vpop.f32.mrb[47].mxu0  ;;  %v6297_v14 = vsel %vm1401_vm13, %v6292_v43, %v6296_v41  ;;  %v12897_v33 = vmax.f32 %v6221_v47, %v6295_v45 }
 0x578   :  { %v6195_v0 = vadd.f32 %v8491_v24, %v12832_v10  ;;  %v8497_v60 = vadd.f32 %v6095_v44, %v12726_v12  ;;  %v6299_v62 = vsel %vm1401_vm13, %v6294_v35, %v6298_v21  ;;  %v12902_v34 = vmax.f32 %v6222_v4, %v6297_v14 }
 0x579   :  { %v6226_v18 = vmax.f32 %v6194_v19, 0.0  ;;  %v6196_v32 = vadd.f32 %v8494_v49, %v12828_v39  ;;  %v12905_v57 = vmax.f32 %v6223_v52, %v6299_v62 }
 0x57a   :  { %v6227_v25 = vmax.f32 %v6195_v0, 0.0  ;;  %v6197_v59 = vadd.f32 %v8497_v60, %v12832_v10 }
 0x57b   :  { %v6300_v29 = vrot.slane %v6226_v18, 2  ;;  %v6228_v3 = vmax.f32 %v6196_v32, 0.0  ;;  %v8925_v47 = vpack.i.bf16 %v12905_v57, %v12902_v34 }
 0x57c   :  { %v6302_v27 = vrot.slane %v6227_v25, 2  ;;  %v6229_v23 = vmax.f32 %v6197_v59, 0.0  ;;  %v6099_v12 = vpop.f32.mrb[64].mxu0 }
 0x57d   :  { %v6304_v26 = vrot.slane %v6228_v3, 2  ;;  %v8502_v4 = vadd.f32 %v12770_v15, %v6099_v12  ;;  %8926 = vrot.lane.b32.xlu0 %v8925_v47, %s9567_s4  ;;  %v6101_v43 = vpop.f32.mrb[65].mxu0  ;;  %v6301_v52 = vsel %vm1401_vm13, %v6296_v41, %v6300_v29 }
 0x57e   :  { %v6306_v56 = vrot.slane %v6229_v23, 2  ;;  %v8507_v35 = vadd.f32 %v12772_v11, %v6101_v43  ;;  %v6103_v38 = vpop.f32.mrb[66].mxu0  ;;  %v6303_v61 = vsel %vm1401_vm13, %v6298_v21, %v6302_v27  ;;  %v12915_v40 = vmax.f32 %v6224_v31, %v6301_v52 }
 0x57f   :  { %v6198_v55 = vadd.f32 %v8502_v4, %v12828_v39  ;;  %v8512_v24 = vadd.f32 %v12774_v53, %v6103_v38  ;;  %v6105_v48 = vpop.f32.mrb[67].mxu0  ;;  %v6305_v15 = vsel %vm1401_vm13, %v6300_v29, %v6304_v26  ;;  %v12920_v45 = vmax.f32 %v6225_v9, %v6303_v61 }
 0x580   :  { %v6199_v19 = vadd.f32 %v8507_v35, %v12832_v10  ;;  %v8517_v41 = vadd.f32 %v12776_v20, %v6105_v48  ;;  %v6307_v11 = vsel %vm1401_vm13, %v6302_v27, %v6306_v56  ;;  %v12925_v49 = vmax.f32 %v6226_v18, %v6305_v15  ;;  %v9395_v48 = vld [vmem:[%s13470_s5 + $0xc8] sm:$0xff]  }
 0x581   :  { %v6230_v21 = vmax.f32 %v6198_v55, 0.0  ;;  %v12928_v31 = vadd.f32 %v8512_v24, %v12828_v39  ;;  %v12930_v44 = vmax.f32 %v6227_v25, %v6307_v11  ;;  %v9394_v24 = vld [vmem:[%s13470_s5] sm:$0xff]   ;;  %v9396_v15 = vld [vmem:[%s13470_s5 + $0x48] sm:$0xff]  }
 0x582   :  { %v6231_v53 = vmax.f32 %v6199_v19, 0.0  ;;  %v12933_v14 = vadd.f32 %v8517_v41, %v12832_v10 }
 0x583   :  { %v6308_v9 = vrot.slane %v6230_v21, 2  ;;  %v6232_v0 = vmax.f32 %v12928_v31, 0.0  ;;  %v8930_v20 = vpack.i.bf16 %v12930_v44, %v12925_v49  ;;  %v9397_v31 = vld [vmem:[%s13470_s5 + $0x88] sm:$0xff]  }
 0x584   :  { %v6310_v60 = vrot.slane %v6231_v53, 2  ;;  %v6233_v62 = vmax.f32 %v12933_v14, 0.0  ;;  %v6109_v18 = vpop.f32.mrb[68].mxu0 }
 0x585   :  { %v6309_v32 = vsel %vm1401_vm13, %v6304_v26, %v6308_v9  ;;  %v6312_v59 = vrot.slane %v6232_v0, 2  ;;  %v8522_v25 = vadd.f32 %v12781_v42, %v6109_v18  ;;  %8931 = vrot.lane.b32.xlu1 %v8930_v20, %s9567_s4  ;;  %v6111_v29 = vpop.f32.mrb[69].mxu0  ;;  %v9391_v42 = vld [vmem:[%s13470_s5 + $0xc0] sm:$0xff]  }
 0x586   :  { %v6311_v47 = vsel %vm1401_vm13, %v6306_v56, %v6310_v60  ;;  %v6314_v27 = vrot.slane %v6233_v62, 2  ;;  %v8527_v12 = vadd.f32 %v12783_v30, %v6111_v29  ;;  %v6113_v4 = vpop.f32.mrb[70].mxu0  ;;  %v12944_v43 = vmax.f32 %v6228_v3, %v6309_v32  ;;  %v9392_v30 = vld [vmem:[%s13470_s5 + $0x40] sm:$0xff]   ;;  %8323 = vmatprep.subr.bf16.mxu1 %v9391_v42 }
 0x587   :  { %v6202_v52 = vadd.f32 %v8522_v25, %v12828_v39  ;;  %v8532_v35 = vadd.f32 %v12786_v6, %v6113_v4  ;;  %v6115_v38 = vpop.f32.mrb[71].mxu0  ;;  %v6313_v26 = vsel %vm1401_vm13, %v6308_v9, %v6312_v59  ;;  %v12949_v61 = vmax.f32 %v6229_v23, %v6311_v47  ;;  %v9393_v3 = vld [vmem:[%s13470_s5 + $0x80] sm:$0xff]   ;;  %8301 = vmatprep.subr.bf16.mxu0 %v9392_v30 }
 0x588   :  { %v6203_v56 = vadd.f32 %v8527_v12, %v12832_v10  ;;  %v8537_v6 = vadd.f32 %v12788_v1, %v6115_v38  ;;  %v6315_v55 = vsel %vm1401_vm13, %v6310_v60, %v6314_v27  ;;  %v12963_v23 = vmax.f32 %v6230_v21, %v6313_v26  ;;  %8324 = vmatpush3.bf16.msra.mxu1 %v9393_v3 }
 0x589   :  { %v6234_v19 = vmax.f32 %v6202_v52, 0.0  ;;  %v12975_v41 = vadd.f32 %v8532_v35, %v12828_v39  ;;  %v12977_v1 = vmax.f32 %v6231_v53, %v6315_v55  ;;  %8302 = vmatpush3.bf16.msra.mxu0 %v9394_v24  ;;  %8325 = vmatprep.subr.bf16.mxu1 %v9395_v48  ;;  %v9403_v55 = vld [vmem:[%s13470_s5 + $0xd8] sm:$0xff]  }
 0x58a   :  { %v6235_v11 = vmax.f32 %v6203_v56, 0.0  ;;  %v12980_v21 = vadd.f32 %v8537_v6, %v12832_v10  ;;  %8303 = vmatprep.subr.bf16.mxu0 %v9396_v15  ;;  %v9401_v6 = vld [vmem:[%s13470_s5 + $0x90] sm:$0xff]  }
 0x58b   :  { %v6316_v14 = vrot.slane %v6234_v19, 2  ;;  %v6236_v9 = vmax.f32 %v12975_v41, 0.0  ;;  %v8935_v20 = vpack.i.bf16 %v12977_v1, %v12963_v23 }
 0x58c   :  { %v6318_v53 = vrot.slane %v6235_v11, 2  ;;  %v6237_v60 = vmax.f32 %v12980_v21, 0.0  ;;  %v6119_v18 = vpop.f32.mrb[72].mxu0  ;;  %8326 = vmatpush3.bf16.msra.mxu1 %v9397_v31  ;;  %v9404_v31 = vld [vmem:[%s13470_s5 + $0x58] sm:$0xff]  }
 0x58d   :  { %v6317_v32 = vsel %vm1401_vm13, %v6312_v59, %v6316_v14  ;;  %v6320_v25 = vrot.slane %v6236_v9, 2  ;;  %v8542_v29 = vadd.f32 %v12791_v17, %v6119_v18  ;;  %8936 = vrot.lane.b32.xlu1 %v8935_v20, %s9567_s4  ;;  %v6121_v47 = vpop.f32.mrb[73].mxu0 }
 0x58e   :  { %v6319_v12 = vsel %vm1401_vm13, %v6314_v27, %v6318_v53  ;;  %v6322_v4 = vrot.slane %v6237_v60, 2  ;;  %v8547_v52 = vadd.f32 %v12793_v2, %v6121_v47  ;;  %v6123_v35 = vpop.f32.mrb[74].mxu0  ;;  %v12996_v38 = vmax.f32 %v6232_v0, %v6317_v32  ;;  %v9398_v27 = vld [vmem:[%s13470_s5 + $0x8] sm:$0xff]   ;;  %v9399_v2 = vld [vmem:[%s13470_s5 + $0xd0] sm:$0xff]  }
 0x58f   :  { %v6206_v26 = vadd.f32 %v8542_v29, %v12828_v39  ;;  %v8552_v59 = vadd.f32 %v12795_v37, %v6123_v35  ;;  %v6125_v42 = vpop.f32.mrb[75].mxu0  ;;  %v6321_v17 = vsel %vm1401_vm13, %v6316_v14, %v6320_v25  ;;  %v13001_v30 = vmax.f32 %v6233_v62, %v6319_v12  ;;  %v9400_v0 = vld [vmem:[%s13470_s5 + $0x50] sm:$0xff]   ;;  %8304 = vmatpush3.bf16.msra.mxu0 %v9398_v27 }
 0x590   :  { %v6207_v3 = vadd.f32 %v8547_v52, %v12832_v10  ;;  %v8557_v37 = vadd.f32 %v12797_v36, %v6125_v42  ;;  %v6323_v56 = vsel %vm1401_vm13, %v6318_v53, %v6322_v4  ;;  %v13015_v62 = vmax.f32 %v6234_v19, %v6321_v17  ;;  %8327 = vmatprep.subr.bf16.mxu1 %v9399_v2  ;;  %v9402_v36 = vld [vmem:[%s13470_s5 + $0x10] sm:$0xff]  }
 0x591   :  { %v6238_v24 = vmax.f32 %v6206_v26, 0.0  ;;  %v13024_v48 = vadd.f32 %v8552_v59, %v12828_v39  ;;  %v13026_v15 = vmax.f32 %v6235_v11, %v6323_v56  ;;  %8305 = vmatprep.subr.bf16.mxu0 %v9400_v0  ;;  %8328 = vmatpush3.bf16.msra.mxu1 %v9401_v6  ;;  %v9405_v11 = vld [vmem:[%s13470_s5 + $0x98] sm:$0xff]   ;;  %v9409_v56 = vld [vmem:[%s13470_s5 + $0xa0] sm:$0xff]  }
 0x592   :  { %v6239_v19 = vmax.f32 %v6207_v3, 0.0  ;;  %v13032_v41 = vadd.f32 %v8557_v37, %v12832_v10  ;;  %8329 = vmatprep.subr.bf16.mxu1 %v9403_v55 }
 0x593   :  { %v6324_v14 = vrot.slane %v6238_v24, 2  ;;  %v6240_v20 = vmax.f32 %v13024_v48, 0.0  ;;  %v8940_v53 = vpack.i.bf16 %v13026_v15, %v13015_v62  ;;  %8306 = vmatpush3.bf16.msra.mxu0 %v9402_v36  ;;  %v9410_v36 = vld [vmem:[%s13470_s5 + $0x20] sm:$0xff]  }
 0x594   :  { %v6326_v18 = vrot.slane %v6239_v19, 2  ;;  %v6241_v32 = vmax.f32 %v13032_v41, 0.0  ;;  %v6129_v29 = vpop.f32.mrb[76].mxu0  ;;  %8307 = vmatprep.subr.bf16.mxu0 %v9404_v31 }
 0x595   :  { %v6325_v47 = vsel %vm1401_vm13, %v6320_v25, %v6324_v14  ;;  %v6328_v12 = vrot.slane %v6240_v20, 2  ;;  %v8562_v52 = vadd.f32 %v12801_v46, %v6129_v29  ;;  %8941 = vrot.lane.b32.xlu0 %v8940_v53, %s9567_s4  ;;  %v6131_v35 = vpop.f32.mrb[77].mxu0  ;;  %8330 = vmatpush3.bf16.msra.mxu1 %v9405_v11 }
 0x596   :  { %v6327_v26 = vsel %vm1401_vm13, %v6322_v4, %v6326_v18  ;;  %v6330_v59 = vrot.slane %v6241_v32, 2  ;;  %v8567_v42 = vadd.f32 %v12804_v5, %v6131_v35  ;;  %v6133_v17 = vpop.f32.mrb[78].mxu0  ;;  %v13049_v27 = vmax.f32 %v6236_v9, %v6325_v47  ;;  %v9406_v5 = vld [vmem:[%s13470_s5 + $0x18] sm:$0xff]   ;;  %v9407_v9 = vld [vmem:[%s13470_s5 + $0xe0] sm:$0xff]  }
 0x597   :  { %v6210_v2 = vadd.f32 %v8562_v52, %v12828_v39  ;;  %v8572_v25 = vadd.f32 %v12806_v13, %v6133_v17  ;;  %v6135_v0 = vpop.f32.mrb[79].mxu0  ;;  %v6329_v46 = vsel %vm1401_vm13, %v6324_v14, %v6328_v12  ;;  %v13056_v3 = vmax.f32 %v6237_v60, %v6327_v26  ;;  %v9408_v4 = vld [vmem:[%s13470_s5 + $0x60] sm:$0xff]   ;;  %8308 = vmatpush3.bf16.msra.mxu0 %v9406_v5 }
 0x598   :  { %v6211_v13 = vadd.f32 %v8567_v42, %v12832_v10  ;;  %v8577_v37 = vadd.f32 %v12809_v16, %v6135_v0  ;;  %v6331_v21 = vsel %vm1401_vm13, %v6326_v18, %v6330_v59  ;;  %v13070_v60 = vmax.f32 %v6238_v24, %v6329_v46  ;;  %8331 = vmatprep.subr.bf16.mxu1 %v9407_v9  ;;  %v9411_v16 = vld [vmem:[%s13470_s5 + $0xe8] sm:$0xff]   ;;  %v9417_v46 = vld [vmem:[%s13470_s5 + $0xb0] sm:$0xff]  }
 0x599   :  { %v6242_v6 = vmax.f32 %v6210_v2, 0.0  ;;  %v6212_v55 = vadd.f32 %v8572_v25, %v12828_v39  ;;  %v13076_v48 = vmax.f32 %v6239_v19, %v6331_v21  ;;  %8309 = vmatprep.subr.bf16.mxu0 %v9408_v4  ;;  %8332 = vmatpush3.bf16.msra.mxu1 %v9409_v56  ;;  %v9412_v39 = vld [vmem:[%s13470_s5 + $0x68] sm:$0xff]   ;;  %v8955_v42 = vpack.i.bf16 %v12897_v33, %v12892_v63  ;;  %v9420_v21 = vld [vmem:[%s13470_s5 + $0x78] sm:$0xff]  }
 0x59a   :  { %v6243_v24 = vmax.f32 %v6211_v13, 0.0  ;;  %v6213_v41 = vadd.f32 %v8577_v37, %v12832_v10  ;;  %v9413_v19 = vld [vmem:[%s13470_s5 + $0xa8] sm:$0xff]   ;;  %8333 = vmatprep.subr.bf16.mxu1 %v9411_v16  ;;  %v9418_v13 = vld [vmem:[%s13470_s5 + $0x30] sm:$0xff]   ;;  %v9419_v37 = vld [vmem:[%s13470_s5 + $0xf8] sm:$0xff]   ;;  %v8970_v16 = vpack.i.bf16 %v12949_v61, %v12944_v43 }
 0x59b   :  { %v6332_v31 = vrot.slane %v6242_v6, 2  ;;  %v6244_v11 = vmax.f32 %v6212_v55, 0.0  ;;  %v8945_v14 = vpack.i.bf16 %v13076_v48, %v13070_v60  ;;  %8310 = vmatpush3.bf16.msra.mxu0 %v9410_v36  ;;  %v9414_v2 = vld [vmem:[%s13470_s5 + $0x28] sm:$0xff]   ;;  %v9421_v56 = vld [vmem:[%s13470_s5 + $0xb8] sm:$0xff]   ;;  %v8960_v55 = vpack.i.bf16 %v12920_v45, %v12915_v40 }
 0x59c   :  { %v6334_v53 = vrot.slane %v6243_v24, 2  ;;  %v6245_v18 = vmax.f32 %v6213_v41, 0.0  ;;  %8311 = vmatprep.subr.bf16.mxu0 %v9412_v39  ;;  %v9423_v41 = vld [vmem:[%s13470_s5 + $0x140] sm:$0xff]   ;;  %v8980_v39 = vpack.i.bf16 %v13056_v3, %v13049_v27 }
 0x59d   :  { %v6333_v10 = vsel %vm1401_vm13, %v6328_v12, %v6332_v31  ;;  %v6336_v29 = vrot.slane %v6244_v11, 2  ;;  %8946 = vrot.lane.b32.xlu0 %v8945_v14, %s9567_s4  ;;  %8334 = vmatpush3.bf16.msra.mxu1 %v9413_v19 }
 0x59e   :  { %v6335_v47 = vsel %vm1401_vm13, %v6330_v59, %v6334_v53  ;;  %v6338_v52 = vrot.slane %v6245_v18, 2  ;;  %v13096_v35 = vmax.f32 %v6240_v20, %v6333_v10  ;;  %v9415_v20 = vld [vmem:[%s13470_s5 + $0xf0] sm:$0xff]  }
 0x59f   :  { %v6374_v26 = vsel %vm1401_vm13, %v6336_v29, %v12842_v8  ;;  %v6337_v17 = vsel %vm1401_vm13, %v6332_v31, %v6336_v29  ;;  %v13103_v12 = vmax.f32 %v6241_v32, %v6335_v47  ;;  %v9416_v59 = vld [vmem:[%s13470_s5 + $0x70] sm:$0xff]   ;;  %8312 = vmatpush3.bf16.msra.mxu0 %v9414_v2  ;;  %8335 = vmatprep.subr.bf16.mxu1 %v9415_v20 }
 0x5a0   :  { %v13114_v8 = vmax.f32 %v6244_v11, %v6374_v26  ;;  %v6375_v25 = vsel %vm1401_vm13, %v6338_v52, %v12845_v7  ;;  %v6339_v32 = vsel %vm1401_vm13, %v6334_v53, %v6338_v52  ;;  %v13119_v0 = vmax.f32 %v6242_v6, %v6337_v17  ;;  %8313 = vmatprep.subr.bf16.mxu0 %v9416_v59 }
 0x5a1   :  { %v13124_v5 = vmax.f32 %v6245_v18, %v6375_v25  ;;  %8956 = vrot.lane.b32.xlu0 %v8955_v42, %s9567_s4  ;;  %v13127_v9 = vmax.f32 %v6243_v24, %v6339_v32  ;;  %v8965_v7 = vpack.i.bf16 %v12874_v51, %v12869_v28  ;;  %8336 = vmatpush3.bf16.msra.mxu1 %v9417_v46  ;;  %v9422_v24 = vld [vmem:[%s13470_s5 + $0x38] sm:$0xff]   ;;  %vm9569_vm13 = vmmov 0  }
 0x5a2   :  { %v8975_v6 = vpack.i.bf16 %v13001_v30, %v12996_v38  ;;  %8337 = vmatprep.subr.bf16.mxu1 %v9419_v37  ;;  %v8985_v36 = vpack.i.bf16 %v13103_v12, %v13096_v35 }
 0x5a3   :  { %v8950_v4 = vpack.i.bf16 %v13127_v9, %v13119_v0  ;;  %8314 = vmatpush3.bf16.msra.mxu0 %v9418_v13  ;;  %v8990_v19 = vpack.i.bf16 %v13124_v5, %v13114_v8 }
 0x5a4   :  { %8315 = vmatprep.subr.bf16.mxu0 %v9420_v21 }
 0x5a5   :  { %8966 = vrot.lane.b32.xlu0 %v8965_v7, %s9567_s4  ;;  %8951 = vrot.lane.b32.xlu1 %v8950_v4, %s9567_s4 }
 0x5a6   :  { %8338 = vmatpush3.bf16.msra.mxu1 %v9421_v56 }
 0x5a7   :  { %8316 = vmatpush3.bf16.msra.mxu0 %v9422_v24  ;;  %8345 = vmatprep.subr.bf16.mxu1 %v9423_v41 }
 0x5a9   :  { %8976 = vrot.lane.b32.xlu0 %v8975_v6, %s9567_s4  ;;  %8961 = vrot.lane.b32.xlu1 %v8960_v55, %s9567_s4 }
 0x5ad   :  { %8986 = vrot.lane.b32.xlu0 %v8985_v36, %s9567_s4  ;;  %8971 = vrot.lane.b32.xlu1 %v8970_v16, %s9567_s4 }
 0x5b1   :  { %8981 = vrot.lane.b32.xlu1 %v8980_v39, %s9567_s4 }
 0x5b5   :  { %8991 = vrot.lane.b32.xlu1 %v8990_v19, %s9567_s4 }
 0x5df   :  { %v8917_v31 = vpop.permute.xlu0 %8916 }
 0x5e0   :  { %v8919_v10 = vunpack.i.h.bf16 %v8917_v31  ;;  %v8918_v29 = vunpack.i.l.bf16 %v8917_v31 }
 0x5e2   :  { %v6505_v2 = vsel %vm6504_vm6, %v8918_v29, %v8919_v10  ;;  %v6569_v20 = vsel %vm6504_vm6, %v8919_v10, %v8918_v29 }
 0x5e3   :  { %v6585_v4 = vmax.f32 %v12856_v58, %v6505_v2  ;;  %v6586_v21 = vmax.f32 %v12859_v50, %v6569_v20 }
 0x5e5   :  { %v6670_v41 = vrot.slane %v6585_v4, 4  ;;  %v6684_v50 = vrot.slane %v6586_v21, 4 }
 0x5e7   :  { %v8922_v11 = vpop.permute.xlu1 %8921 }
 0x5e8   :  { %v8924_v14 = vunpack.i.h.bf16 %v8922_v11  ;;  %v8923_v53 = vunpack.i.l.bf16 %v8922_v11 }
 0x5ea   :  { %v6507_v47 = vsel %vm6504_vm6, %v8923_v53, %v8924_v14  ;;  %v6571_v52 = vsel %vm6504_vm6, %v8924_v14, %v8923_v53 }
 0x5eb   :  { %v6589_v59 = vmax.f32 %v12879_v54, %v6507_v47  ;;  %v6590_v25 = vmax.f32 %v12882_v22, %v6571_v52 }
 0x5ed   :  { %v6633_v6 = vrot.slane %v6589_v59, 7  ;;  %v6654_v55 = vrot.slane %v6590_v25, 7  ;;  %v6671_v31 = vrot.slane %v6589_v59, 3  ;;  %v6685_v11 = vrot.slane %v6590_v25, 3 }
 0x5ef   :  { %v8927_v18 = vpop.permute.xlu0 %8926  ;;  %v6635_v53 = vsel %vm6634_vm7, %v6633_v6, %v6585_v4  ;;  %v6672_v20 = vsel %vm6634_vm7, %v6671_v31, %v6670_v41 }
 0x5f0   :  { %v8929_v26 = vunpack.i.h.bf16 %v8927_v18  ;;  %v8928_v42 = vunpack.i.l.bf16 %v8927_v18 }
 0x5f2   :  { %v6509_v7 = vsel %vm6504_vm6, %v8928_v42, %v8929_v26  ;;  %v6573_v13 = vsel %vm6504_vm6, %v8929_v26, %v8928_v42 }
 0x5f3   :  { %v6593_v54 = vmax.f32 %v12902_v34, %v6509_v7  ;;  %v6594_v36 = vmax.f32 %v12905_v57, %v6573_v13  ;;  %v6655_v34 = vsel %vm6634_vm7, %v6654_v55, %v6586_v21 }
 0x5f5   :  { %v6636_v18 = vrot.slane %v6593_v54, 6  ;;  %v6656_v10 = vrot.slane %v6594_v36, 6  ;;  %v6673_v29 = vrot.slane %v6593_v54, 2  ;;  %v6687_v47 = vrot.slane %v6594_v36, 2 }
 0x5f7   :  { %v8932_v17 = vpop.permute.xlu1 %8931  ;;  %v6638_v13 = vsel %vm6637_vm8, %v6636_v18, %v6635_v53  ;;  %v6674_v55 = vsel %vm6637_vm8, %v6673_v29, %v6672_v20 }
 0x5f8   :  { %v8934_v32 = vunpack.i.h.bf16 %v8932_v17  ;;  %v8933_v46 = vunpack.i.l.bf16 %v8932_v17 }
 0x5fa   :  { %v6511_v22 = vsel %vm6504_vm6, %v8933_v46, %v8934_v32  ;;  %v6575_v16 = vsel %vm6504_vm6, %v8934_v32, %v8933_v46 }
 0x5fb   :  { %v6597_v14 = vmax.f32 %v12925_v49, %v6511_v22  ;;  %v6598_v57 = vmax.f32 %v12930_v44, %v6575_v16  ;;  %v6686_v44 = vsel %vm6634_vm7, %v6685_v11, %v6684_v50 }
 0x5fc   :  { %v6688_v54 = vsel %vm6637_vm8, %v6687_v47, %v6686_v44 }
 0x5fd   :  { %v6639_v59 = vrot.slane %v6597_v14, 5  ;;  %v6675_v25 = vrot.slane %v6597_v14, 1  ;;  %v6658_v46 = vrot.slane %v6598_v57, 5  ;;  %v6689_v7 = vrot.slane %v6598_v57, 1 }
 0x5ff   :  { %v8937_v37 = vpop.permute.xlu1 %8936  ;;  %v6676_v16 = vsel %vm6640_vm9, %v6675_v25, %v6674_v55 }
 0x600   :  { %v8939_v24 = vunpack.i.h.bf16 %v8937_v37  ;;  %v8938_v58 = vunpack.i.l.bf16 %v8937_v37  ;;  %v6657_v37 = vsel %vm6637_vm8, %v6656_v10, %v6655_v34 }
 0x602   :  { %v6513_v52 = vsel %vm6504_vm6, %v8938_v58, %v8939_v24  ;;  %v6577_v42 = vsel %vm6504_vm6, %v8939_v24, %v8938_v58 }
 0x603   :  { %v6601_v4 = vmax.f32 %v12963_v23, %v6513_v52  ;;  %v6602_v21 = vmax.f32 %v12977_v1, %v6577_v42  ;;  %v6641_v23 = vsel %vm6640_vm9, %v6639_v59, %v6638_v13 }
 0x605   :  { %v6642_v41 = vrot.slane %v6601_v4, 4  ;;  %v6677_v50 = vsel %vm4818_vm4, %v6601_v4, %v6676_v16 }
 0x607   :  { %v8942_v56 = vpop.permute.xlu0 %8941 }
 0x608   :  { %v8944_v39 = vunpack.i.h.bf16 %v8942_v56  ;;  %v8943_v19 = vunpack.i.l.bf16 %v8942_v56 }
 0x60a   :  { %v6515_v17 = vsel %vm6504_vm6, %v8943_v19, %v8944_v39  ;;  %v6579_v32 = vsel %vm6504_vm6, %v8944_v39, %v8943_v19  ;;  %v6690_v39 = vsel %vm6640_vm9, %v6689_v7, %v6688_v54  ;;  %v6660_v19 = vrot.slane %v6602_v21, 4 }
 0x60b   :  { %v6605_v56 = vmax.f32 %v13015_v62, %v6515_v17  ;;  %v6606_v22 = vmax.f32 %v13026_v15, %v6579_v32  ;;  %v6659_v62 = vsel %vm6640_vm9, %v6658_v46, %v6657_v37  ;;  %v6691_v57 = vsel %vm4818_vm4, %v6602_v21, %v6690_v39 }
 0x60c   :  { %v6661_v32 = vsel %vm4818_vm4, %v6660_v19, %v6659_v62 }
 0x60d   :  { %v6645_v15 = vrot.slane %v6605_v56, 3  ;;  %v6662_v53 = vrot.slane %v6606_v22, 3  ;;  %v6678_v10 = vrot.slane %v6605_v56, 7  ;;  %v6692_v29 = vrot.slane %v6606_v22, 7 }
 0x60f   :  { %v8947_v26 = vpop.permute.xlu0 %8946  ;;  %v6679_v4 = vsel %vm6646_vm10, %v6678_v10, %v6677_v50  ;;  %v6663_v37 = vsel %vm6646_vm10, %v6662_v53, %v6661_v32  ;;  %v6693_v21 = vsel %vm6646_vm10, %v6692_v29, %v6691_v57 }
 0x610   :  { %v8949_v2 = vunpack.i.h.bf16 %v8947_v26  ;;  %v8948_v49 = vunpack.i.l.bf16 %v8947_v26  ;;  %v6644_v26 = vsel %vm4818_vm4, %v6642_v41, %v6641_v23 }
 0x612   :  { %v6517_v36 = vsel %vm6504_vm6, %v8948_v49, %v8949_v2  ;;  %v6581_v1 = vsel %vm6504_vm6, %v8949_v2, %v8948_v49  ;;  %v6647_v2 = vsel %vm6646_vm10, %v6645_v15, %v6644_v26 }
 0x613   :  { %v8957_v6 = vpop.permute.xlu0 %8956  ;;  %v13211_v31 = vmax.f32 %v13070_v60, %v6517_v36  ;;  %v13215_v47 = vmax.f32 %v13076_v48, %v6581_v1 }
 0x614   :  { %v8959_v24 = vunpack.i.h.bf16 %v8957_v6  ;;  %v8958_v58 = vunpack.i.l.bf16 %v8957_v6 }
 0x615   :  { %v6648_v49 = vrot.slane %v13211_v31, 2  ;;  %v6664_v13 = vrot.slane %v13215_v47, 2  ;;  %v6680_v56 = vrot.slane %v13211_v31, 6  ;;  %v6694_v6 = vrot.slane %v13215_v47, 6 }
 0x616   :  { %v6508_v52 = vsel %vm6504_vm6, %v8958_v58, %v8959_v24  ;;  %v6572_v20 = vsel %vm6504_vm6, %v8959_v24, %v8958_v58 }
 0x617   :  { %v8967_v11 = vpop.permute.xlu0 %8966  ;;  %v8952_v14 = vpop.permute.xlu1 %8951  ;;  %v13225_v48 = vmax.f32 %v12892_v63, %v6508_v52  ;;  %v13240_v54 = vmax.f32 %v12897_v33, %v6572_v20  ;;  %v6681_v29 = vsel %vm6649_vm11, %v6680_v56, %v6679_v4  ;;  %v6665_v4 = vsel %vm6649_vm11, %v6664_v13, %v6663_v37 }
 0x618   :  { %v8969_v34 = vunpack.i.h.bf16 %v8967_v11  ;;  %v8968_v18 = vunpack.i.l.bf16 %v8967_v11  ;;  %v8954_v60 = vunpack.i.h.bf16 %v8952_v14  ;;  %v8953_v17 = vunpack.i.l.bf16 %v8952_v14 }
 0x619   :  { %v6747_v24 = vrot.slane %v13225_v48, 3  ;;  %v6730_v14 = vrot.slane %v13240_v54, 7  ;;  %v6695_v56 = vsel %vm6649_vm11, %v6694_v6, %v6693_v21  ;;  %v9424_v6 = vld [vmem:[%s13470_s5 + $0x100] sm:$0xff]  }
 0x61a   :  { %v6506_v42 = vsel %vm6504_vm6, %v8968_v18, %v8969_v34  ;;  %v6570_v63 = vsel %vm6504_vm6, %v8969_v34, %v8968_v18  ;;  %v6519_v55 = vsel %vm6504_vm6, %v8953_v17, %v8954_v60  ;;  %v6583_v41 = vsel %vm6504_vm6, %v8954_v60, %v8953_v17 }
 0x61b   :  { %v8977_v59 = vpop.permute.xlu0 %8976  ;;  %v8962_v25 = vpop.permute.xlu1 %8961  ;;  %v13228_v44 = vmax.f32 %v12869_v28, %v6506_v42  ;;  %v6650_v28 = vsel %vm6649_vm11, %v6648_v49, %v6647_v2  ;;  %v13247_v62 = vmax.f32 %v12874_v51, %v6570_v63  ;;  %v6613_v39 = vmax.f32 %v13119_v0, %v6519_v55 }
 0x61c   :  { %v8964_v46 = vunpack.i.h.bf16 %v8962_v25  ;;  %v8963_v7 = vunpack.i.l.bf16 %v8962_v25  ;;  %v8979_v22 = vunpack.i.h.bf16 %v8977_v59  ;;  %v8978_v36 = vunpack.i.l.bf16 %v8977_v59 }
 0x61d   :  { %v6746_v58 = vrot.slane %v13228_v44, 4  ;;  %v6614_v53 = vmax.f32 %v13127_v9, %v6583_v41  ;;  %v6731_v47 = vsel %vm6634_vm7, %v6730_v14, %v13247_v62  ;;  %v6651_v9 = vrot.slane %v6613_v39, 1 }
 0x61e   :  { %v6510_v1 = vsel %vm6504_vm6, %v8963_v7, %v8964_v46  ;;  %v6574_v33 = vsel %vm6504_vm6, %v8964_v46, %v8963_v7  ;;  %v6578_v34 = vsel %vm6504_vm6, %v8979_v22, %v8978_v36  ;;  %v6682_v26 = vrot.slane %v6613_v39, 5 }
 0x61f   :  { %v8987_v23 = vpop.permute.xlu0 %8986  ;;  %v8972_v16 = vpop.permute.xlu1 %8971  ;;  %v13252_v19 = vmax.f32 %v12915_v40, %v6510_v1  ;;  %v6748_v18 = vsel %vm6634_vm7, %v6747_v24, %v6746_v58  ;;  %v13260_v0 = vmax.f32 %v12920_v45, %v6574_v33  ;;  %v6514_v42 = vsel %vm6504_vm6, %v8978_v36, %v8979_v22 }
 0x620   :  { %v8989_v50 = vunpack.i.h.bf16 %v8987_v23  ;;  %v8988_v15 = vunpack.i.l.bf16 %v8987_v23  ;;  %v8974_v31 = vunpack.i.h.bf16 %v8972_v16  ;;  %v8973_v11 = vunpack.i.l.bf16 %v8972_v16 }
 0x621   :  { %v6749_v51 = vrot.slane %v13252_v19, 2  ;;  %v13270_v60 = vmax.f32 %v13001_v30, %v6578_v34  ;;  %v6666_v20 = vrot.slane %v6614_v53, 1  ;;  %v6732_v59 = vrot.slane %v13260_v0, 6 }
 0x622   :  { %v6512_v40 = vsel %vm6504_vm6, %v8973_v11, %v8974_v31  ;;  %v6576_v57 = vsel %vm6504_vm6, %v8974_v31, %v8973_v11  ;;  %v6582_v45 = vsel %vm6504_vm6, %v8989_v50, %v8988_v15  ;;  %v6518_v17 = vsel %vm6504_vm6, %v8988_v15, %v8989_v50 }
 0x623   :  { %v8982_v10 = vpop.permute.xlu1 %8981  ;;  %v6750_v52 = vsel %vm6637_vm8, %v6749_v51, %v6748_v18  ;;  %v13275_v2 = vmax.f32 %v12944_v43, %v6512_v40  ;;  %v13278_v49 = vmax.f32 %v12949_v61, %v6576_v57  ;;  %v6696_v25 = vrot.slane %v6614_v53, 5  ;;  %v9426_v51 = vld [vmem:[%s13470_s5 + $0x108] sm:$0xff]  }
 0x624   :  { %v8984_v32 = vunpack.i.h.bf16 %v8982_v10  ;;  %v8983_v46 = vunpack.i.l.bf16 %v8982_v10  ;;  %v13282_v7 = vmax.f32 %v13103_v12, %v6582_v45  ;;  %v6667_v43 = vsel %vm6652_vm12, %v6666_v20, %v6665_v4  ;;  %v9429_v45 = vld [vmem:[%s13470_s5 + $0x158] sm:$0xff]   ;;  %v9433_v4 = vld [vmem:[%s13470_s5 + $0x168] sm:$0xff]  }
 0x625   :  { %v6751_v30 = vrot.slane %v13275_v2, 1  ;;  %v6697_v61 = vsel %vm6652_vm12, %v6696_v25, %v6695_v56  ;;  %v6734_v36 = vrot.slane %v13278_v49, 5  ;;  %v6777_v23 = vpack.c.bf16 %v6667_v43, %v6667_v43  ;;  %v9431_v25 = vld [vmem:[%s13470_s5 + $0x160] sm:$0xff]  }
 0x626   :  { %v6516_v63 = vsel %vm6504_vm6, %v8983_v46, %v8984_v32  ;;  %v6580_v55 = vsel %vm6504_vm6, %v8984_v32, %v8983_v46  ;;  %v6779_v16 = vpack.c.bf16 %v6697_v61, %v6697_v61  ;;  %v6653_v37 = vsel %vm6652_vm12, %v6651_v9, %v6650_v28  ;;  %v9432_v32 = vld [vmem:[%s13470_s5 + $0x120] sm:$0xff]  }
 0x627   :  { %v8992_v22 = vpop.permute.xlu1 %8991  ;;  %v6752_v12 = vsel %vm6640_vm9, %v6751_v30, %v6750_v52  ;;  %v13294_v24 = vmax.f32 %v13049_v27, %v6516_v63  ;;  %v13297_v13 = vmax.f32 %v13056_v3, %v6580_v55  ;;  %v6683_v21 = vsel %vm6652_vm12, %v6682_v26, %v6681_v29  ;;  %7335 = vmatprep.mubr.bf16.mxu0 %v6777_v23  ;;  %v9425_v27 = vld [vmem:[%s13470_s5 + $0x148] sm:$0xff]   ;;  %v9428_v52 = vld [vmem:[%s13470_s5 + $0x110] sm:$0xff]  }
 0x628   :  { %7375 = vmatprep.mubr.bf16.mxu1 %v6779_v16  ;;  %v6776_v58 = vpack.c.bf16 %v6653_v37, %v6653_v37  ;;  %v6778_v41 = vpack.c.bf16 %v6683_v21, %v6683_v21  ;;  %v8994_v1 = vunpack.i.h.bf16 %v8992_v22  ;;  %v8993_v39 = vunpack.i.l.bf16 %v8992_v22  ;;  %v9436_v23 = vld [vmem:[%s13470_s5 + $0x130] sm:$0xff]   ;;  %v9437_v16 = vld [vmem:[%s13470_s5 + $0x178] sm:$0xff]  }
 0x629   :  { %v6736_v3 = vrot.slane %v13270_v60, 4  ;;  %v6733_v28 = vsel %vm6637_vm8, %v6732_v59, %v6731_v47  ;;  %v13310_v33 = vmax.f32 %v13096_v35, %v6518_v17  ;;  %v6738_v50 = vrot.slane %v13297_v13, 3  ;;  %v9430_v59 = vld [vmem:[%s13470_s5 + $0x118] sm:$0xff]  }
 0x62a   :  { %v6754_v15 = vrot.slane %v13294_v24, 7  ;;  %7336 = vmatmul.mubr.bf16.vlgmr.msra.gmra.mrb[80].mxu0 %v6776_v58  ;;  %7376 = vmatmul.mubr.bf16.vlgmr.msra.gmra.mrb[176].mxu1 %v6778_v41  ;;  %v6520_v31 = vsel %vm6504_vm6, %v8993_v39, %v8994_v1  ;;  %v6584_v11 = vsel %vm6504_vm6, %v8994_v1, %v8993_v39  ;;  %v6735_v14 = vsel %vm6640_vm9, %v6734_v36, %v6733_v28  ;;  %v9438_v1 = vld [vmem:[%s13470_s5 + $0x138] sm:$0xff]  }
 0x62b   :  { %v6603_v53 = vmax.f32 %v12996_v38, %v6514_v42  ;;  %8346 = vmatpush3.bf16.msra.mxu1 %v9424_v6  ;;  %v13319_v34 = vmax.f32 %v13114_v8, %v6520_v31  ;;  %v13322_v35 = vmax.f32 %v13124_v5, %v6584_v11  ;;  %v6737_v18 = vsel %vm4818_vm4, %v6736_v3, %v6735_v14  ;;  %v9427_v38 = vld [vmem:[%s13470_s5 + $0x150] sm:$0xff]   ;;  %v9442_v11 = vld [vmem:[%s13470_s5 + $0x188] sm:$0xff]  }
 0x62c   :  { %v6740_v40 = vrot.slane %v13282_v7, 2  ;;  %8347 = vmatprep.subr.bf16.mxu1 %v9425_v27  ;;  %v6739_v57 = vsel %vm6646_vm10, %v6738_v50, %v6737_v18  ;;  %v6756_v8 = vrot.slane %v13310_v33, 6  ;;  %v6760_v46 = vrot.slane %v13247_v62, 4  ;;  %v9443_v14 = vld [vmem:[%s13470_s5 + $0x1d0] sm:$0xff]   ;;  %v9448_v18 = vld [vmem:[%s13470_s5 + $0x1a0] sm:$0xff]  }
 0x62d   :  { %v6742_v5 = vrot.slane %v13322_v35, 1  ;;  %v6758_v10 = vrot.slane %v13319_v34, 5  ;;  %v6753_v29 = vsel %vm4818_vm4, %v6603_v53, %v6752_v12  ;;  %v6718_v30 = vrot.slane %v13252_v19, 6  ;;  %v9434_v19 = vld [vmem:[%s13470_s5 + $0x128] sm:$0xff]  }
 0x62e   :  { %v6741_v47 = vsel %vm6649_vm11, %v6740_v40, %v6739_v57  ;;  %v6755_v9 = vsel %vm6646_vm10, %v6754_v15, %v6753_v29  ;;  %v6716_v56 = vrot.slane %v13225_v48, 7  ;;  %v6763_v43 = vrot.slane %v13260_v0, 2  ;;  %v9435_v0 = vld [vmem:[%s13470_s5 + $0x170] sm:$0xff]   ;;  %v9441_v15 = vld [vmem:[%s13470_s5 + $0x1c8] sm:$0xff]  }
 0x62f   :  { %8348 = vmatpush3.bf16.msra.mxu1 %v9426_v51  ;;  %v6743_v26 = vsel %vm6652_vm12, %v6742_v5, %v6741_v47  ;;  %v6757_v42 = vsel %vm6649_vm11, %v6756_v8, %v6755_v9  ;;  %v6720_v61 = vrot.slane %v13275_v2, 5  ;;  %v6761_v63 = vrot.slane %v13240_v54, 3  ;;  %v9447_v51 = vld [vmem:[%s13470_s5 + $0x1e0] sm:$0xff]   ;;  %v9449_v40 = vld [vmem:[%s13470_s5 + $0x1e8] sm:$0xff]   ;;  %v9451_v57 = vld [vmem:[%s13470_s5 + $0x1f0] sm:$0xff]  }
 0x630   :  { %8349 = vmatprep.subr.bf16.mxu1 %v9427_v38  ;;  %v6781_v17 = vpack.c.bf16 %v6743_v26, %v6743_v26  ;;  %v13348_v20 = vsel %vm6652_vm12, %v6758_v10, %v6757_v42  ;;  %v6765_v55 = vrot.slane %v13278_v49, 1  ;;  %v6717_v62 = vsel %vm6634_vm7, %v6716_v56, %v13228_v44  ;;  %v9450_v38 = vld [vmem:[%s13470_s5 + $0x1a8] sm:$0xff]   ;;  %v9452_v8 = vld [vmem:[%s13470_s5 + $0x1b0] sm:$0xff]   ;;  %v9453_v5 = vld [vmem:[%s13470_s5 + $0x1f8] sm:$0xff]  }
 0x631   :  { %v6762_v22 = vsel %vm6634_vm7, %v6761_v63, %v6760_v46  ;;  %v6719_v48 = vsel %vm6637_vm8, %v6718_v30, %v6717_v62  ;;  %v6724_v44 = vrot.slane %v13294_v24, 3  ;;  %v6722_v49 = vrot.slane %v6603_v53, 4  ;;  %v9444_v53 = vld [vmem:[%s13470_s5 + $0x190] sm:$0xff]   ;;  %v9454_v10 = vld [vmem:[%s13470_s5 + $0x1b8] sm:$0xff]   ;;  %v9457_v26 = vld [vmem:[#allocation6 + $0x10] sm:$0xff]  }
 0x632   :  { %7415 = vmatprep.mubr.bf16.mxu1 %v6781_v17  ;;  %v6764_v54 = vsel %vm6637_vm8, %v6763_v43, %v6762_v22  ;;  %v6721_v2 = vsel %vm6640_vm9, %v6720_v61, %v6719_v48  ;;  %v6768_v36 = vrot.slane %v13297_v13, 7  ;;  %v6728_v21 = vrot.slane %v13319_v34, 1  ;;  %v9445_v34 = vld [vmem:[%s13470_s5 + $0x1d8] sm:$0xff]   ;;  %v9458_v42 = vld [vmem:[#allocation6 + $0x18] sm:$0xff]   ;;  %v9460_v17 = vld [vmem:[#allocation6 + $0x28] sm:$0xff]  }
 0x633   :  { %8350 = vmatpush3.bf16.msra.mxu1 %v9428_v52  ;;  %v6766_v12 = vsel %vm6640_vm9, %v6765_v55, %v6764_v54  ;;  %v6723_v37 = vsel %vm4818_vm4, %v6722_v49, %v6721_v2  ;;  %v6726_v6 = vrot.slane %v13310_v33, 2  ;;  %v6772_v58 = vrot.slane %v13322_v35, 5  ;;  %v9446_v35 = vld [vmem:[%s13470_s5 + $0x198] sm:$0xff]   ;;  %v9456_v52 = vld [vmem:[#allocation6 + $0x8] sm:$0xff]  }
 0x634   :  { %8351 = vmatprep.subr.bf16.mxu1 %v9429_v45  ;;  %v6725_v24 = vsel %vm6646_vm10, %v6724_v44, %v6723_v37  ;;  %v6767_v13 = vsel %vm4818_vm4, %v13270_v60, %v6766_v12  ;;  %v6770_v27 = vrot.slane %v13282_v7, 6  ;;  %v9439_v60 = vld [vmem:[%s13470_s5 + $0x1c0] sm:$0xff]   ;;  %v6782_v29 = vpack.c.bf16 %v13348_v20, %v13348_v20  ;;  %v9455_v47 = vld [vmem:[#allocation6] sm:$0xff]   ;;  %v9461_v20 = vld [vmem:[#allocation6 + $0x30] sm:$0xff]  }
 0x635   :  { %v6769_v41 = vsel %vm6646_vm10, %v6768_v36, %v6767_v13  ;;  %v6727_v39 = vsel %vm6649_vm11, %v6726_v6, %v6725_v24  ;;  %v9440_v7 = vld [vmem:[%s13470_s5 + $0x180] sm:$0xff]   ;;  %v9568_v9 = vmov 0.0   ;;  %v9459_v45 = vld [vmem:[#allocation6 + $0x20] sm:$0xff]  }
 0x636   :  { %v6729_v3 = vsel %vm6652_vm12, %v6728_v21, %v6727_v39  ;;  %v6771_v28 = vsel %vm6649_vm11, %v6770_v27, %v6769_v41  ;;  %v8143_v46 = vld [vmem:[%s13471_s6] ss:$0 sm:$0xff] }
 0x637   :  { %8352 = vmatpush3.bf16.msra.mxu1 %v9430_v59  ;;  %v6773_v33 = vsel %vm6652_vm12, %v6772_v58, %v6771_v28  ;;  %v6780_v50 = vpack.c.bf16 %v6729_v3, %v6729_v3  ;;  %v9462_v59 = vld [vmem:[#allocation6 + $0x38] sm:$0xff]   ;;  %v8208_v6 = vld [vmem:[%s13473_s8] ss:$0 sm:$0xff] }
 0x638   :  { %8353 = vmatprep.subr.bf16.mxu1 %v9431_v25  ;;  %v6783_v31 = vpack.c.bf16 %v6773_v33, %v6773_v33 }
 0x63b   :  { %8354 = vmatpush3.bf16.msra.mxu1 %v9432_v32 }
 0x63c   :  { %8355 = vmatprep.subr.bf16.mxu1 %v9433_v4 }
 0x63f   :  { %8356 = vmatpush3.bf16.msra.mxu1 %v9434_v19 }
 0x640   :  { %8357 = vmatprep.subr.bf16.mxu1 %v9435_v0 }
 0x643   :  { %8358 = vmatpush3.bf16.msra.mxu1 %v9436_v23 }
 0x644   :  { %8359 = vmatprep.subr.bf16.mxu1 %v9437_v16 }
 0x647   :  { %8360 = vmatpush3.bf16.msra.mxu1 %v9438_v1 }
 0x648   :  { %8367 = vmatprep.subr.bf16.mxu1 %v9439_v60 }
 0x64a   :  { %7416 = vmatmul.mubr.bf16.vlgmr.msra.gmra.mrb[180].mxu1 %v6780_v50 }
 0x64b   :  { %8368 = vmatpush3.bf16.msra.mxu1 %v9440_v7  ;;  %7455 = vmatprep.mubr.bf16.mxu1 %v6783_v31 }
 0x64c   :  { %8369 = vmatprep.subr.bf16.mxu1 %v9441_v15 }
 0x64f   :  { %8370 = vmatpush3.bf16.msra.mxu1 %v9442_v11 }
 0x650   :  { %8371 = vmatprep.subr.bf16.mxu1 %v9443_v14 }
 0x653   :  { %8372 = vmatpush3.bf16.msra.mxu1 %v9444_v53 }
 0x654   :  { %8373 = vmatprep.subr.bf16.mxu1 %v9445_v34 }
 0x657   :  { %8374 = vmatpush3.bf16.msra.mxu1 %v9446_v35 }
 0x658   :  { %8375 = vmatprep.subr.bf16.mxu1 %v9447_v51 }
 0x65b   :  { %8376 = vmatpush3.bf16.msra.mxu1 %v9448_v18 }
 0x65c   :  { %8377 = vmatprep.subr.bf16.mxu1 %v9449_v40 }
 0x65f   :  { %8378 = vmatpush3.bf16.msra.mxu1 %v9450_v38 }
 0x660   :  { %8379 = vmatprep.subr.bf16.mxu1 %v9451_v57 }
 0x663   :  { %8380 = vmatpush3.bf16.msra.mxu1 %v9452_v8 }
 0x664   :  { %8381 = vmatprep.subr.bf16.mxu1 %v9453_v5 }
 0x667   :  { %8382 = vmatpush3.bf16.msra.mxu1 %v9454_v10 }
 0x668   :  { %8398 = vmatprep.subr.bf16.mxu1 %v9568_v9 }
 0x66a   :  { %7456 = vmatmul.mubr.bf16.vlgmr.msra.gmra.mrb[184].mxu1 %v6782_v29 }
 0x66b   :  { %8399 = vmatpush3.bf16.msra.mxu1 %v9455_v47  ;;  %8414 = vmatprep.mubr.msk.bf16.mxu1 %vm9569_vm13, %v9568_v9 }
 0x66c   :  { %8400 = vmatprep.subr.bf16.mxu1 %v9568_v9 }
 0x66f   :  { %8401 = vmatpush3.bf16.msra.mxu1 %v9456_v52 }
 0x670   :  { %8402 = vmatprep.subr.bf16.mxu1 %v9568_v9 }
 0x673   :  { %8403 = vmatpush3.bf16.msra.mxu1 %v9457_v26 }
 0x674   :  { %8404 = vmatprep.subr.bf16.mxu1 %v9568_v9 }
 0x677   :  { %8405 = vmatpush3.bf16.msra.mxu1 %v9458_v42 }
 0x678   :  { %8406 = vmatprep.subr.bf16.mxu1 %v9568_v9 }
 0x67b   :  { %8407 = vmatpush3.bf16.msra.mxu1 %v9459_v45 }
 0x67c   :  { %8408 = vmatprep.subr.bf16.mxu1 %v9568_v9 }
 0x67f   :  { %8409 = vmatpush3.bf16.msra.mxu1 %v9460_v17 }
 0x680   :  { %8410 = vmatprep.subr.bf16.mxu1 %v9568_v9 }
 0x683   :  { %8411 = vmatpush3.bf16.msra.mxu1 %v9461_v20 }
 0x684   :  { %8412 = vmatprep.subr.bf16.mxu1 %v9568_v9 }
 0x687   :  { %8413 = vmatpush3.bf16.msra.mxu1 %v9462_v59 }
 0x6fd   :  { %v8317_v25 = vpop.f32.mrb[80].mxu0  ;;  %v8339_v32 = vpop.f32.mrb[176].mxu1 }
 0x6fe   :  { %v8318_v30 = vpop.f32.mrb[81].mxu0  ;;  %v8340_v4 = vpop.f32.mrb[177].mxu1 }
 0x6ff   :  { %v8319_v56 = vadd.f32 %v8318_v30, %v8317_v25  ;;  %v8341_v43 = vadd.f32 %v8340_v4, %v8339_v32  ;;  %v8320_v61 = vpop.f32.mrb[82].mxu0  ;;  %v8342_v63 = vpop.f32.mrb[178].mxu1 }
 0x700   :  { %v8321_v55 = vpop.f32.mrb[83].mxu0  ;;  %v8343_v62 = vpop.f32.mrb[179].mxu1 }
 0x701   :  { %v7338_v19 = vadd.f32 %v8319_v56, %v8143_v46 }
 0x703   :  { %v7378_v22 = vadd.f32 %v8341_v43, %v7338_v19 }
 0x71d   :  { %v8361_v48 = vpop.f32.mrb[180].mxu1 }
 0x71e   :  { %v8362_v0 = vpop.f32.mrb[181].mxu1 }
 0x71f   :  { %v8363_v54 = vadd.f32 %v8362_v0, %v8361_v48  ;;  %v8364_v2 = vpop.f32.mrb[182].mxu1 }
 0x720   :  { %v8365_v44 = vpop.f32.mrb[183].mxu1 }
 0x721   :  { %v7418_v49 = vadd.f32 %v8363_v54, %v7378_v22 }
 0x73d   :  { %v8383_v36 = vpop.f32.mrb[184].mxu1 }
 0x73e   :  { %v8384_v12 = vpop.f32.mrb[185].mxu1 }
 0x73f   :  { %v8385_v23 = vadd.f32 %v8384_v12, %v8383_v36  ;;  %v8386_v16 = vpop.f32.mrb[186].mxu1 }
 0x740   :  { %v8387_v37 = vpop.f32.mrb[187].mxu1 }
 0x741   :  { %v7458_v21 = vadd.f32 %v8385_v23, %v7418_v49 }
 0x743   :  { %v7463_v24 = vmax.f32 %v7458_v21, 0.0 }
 0x745   :  { %v7464_v13 = vpack.c.bf16 %v7463_v24, %v7463_v24 }
 0x747   :  { %8415 = vmatmul.mubr.bf16.vlgmr.msra.gmra.mrb[188].mxu1 %v7464_v13 }
 0x81a   :  { %v7570_v58 = vpop.f32.mrb[188].mxu1 }
 0x81b   :  { %v7571_v41 = vadd.f32 %v8208_v6, %v7570_v58  ;;  %v8416_v27 = vpop.f32.mrb[189].mxu1 }
 0x81c   :  { %v7573_v1 = vpop.f32.mrb[190].mxu1 }
 0x81d   :  { %7576 = vst [vmem:[%s13474_s9] sm:$0xff] %v7571_v41  ;;  %v8417_v39 = vpop.f32.mrb[191].mxu1 }
 0x81e   :  { %7581 = vsyncpa [#allocation3], 1 }
 0x81f   :  { %7582 = vsyncpa [#allocation5], 1 }

</bundles_post_ra>
